<compile_context>
chip_gen: v7x
topology: tpu7x:2x2x1
jax: 0.10.0
libtpu: 0.0.40
codegen_flags: <defaults>
</compile_context>

<pallas_src>
import functools

import jax
import jax.numpy as jnp
from jax.experimental import pallas as pl
from jax.experimental.pallas import tpu as pltpu


# Matmul inputs may be cast to bf16 on v6e/v7x (native MXU path, halved DMA traffic) while
# keeping f32 accumulation; kept at f32 here so the output matches the f32 reference < 2e-3.
_MATMUL_INPUT_DTYPE = jnp.float32

_MM_ROW_CAP = 2048     # row-tile cap for the matmul kernels
_EW_ROW_CAP = 1024     # row-tile cap for elementwise / BN kernels


def _pick_vmem_limit():
    """~48 MiB on v7x (64 MiB physical/TC), up to 96 MiB on v5e/v6e (128 MiB physical)."""
    try:
        cap = int(getattr(pltpu.get_tpu_info(), "vmem_capacity_bytes", 128 * 1024 * 1024))
    except Exception:
        cap = 128 * 1024 * 1024
    return max(32 * 1024 * 1024, min(96 * 1024 * 1024, (cap * 3) // 4))


_VMEM_LIMIT = _pick_vmem_limit()


def _cdiv(a, b):
    return (a + b - 1) // b


def _round_up(a, b):
    return _cdiv(a, b) * b


def _row_tiling(m, cap):
    """(tile_rows, padded_rows, num_tiles); tile is a multiple of 8 unless single-block."""
    if m <= cap:
        return m, m, 1
    nb = _cdiv(m, cap)
    tm = _round_up(_cdiv(m, nb), 8)
    return tm, nb * tm, nb


def _pad_rows(x, mp):
    m = x.shape[0]
    return x if mp == m else jnp.pad(x, ((0, mp - m), (0, 0)))


# ----------------------------- Pallas kernels -----------------------------

def _matmul_kernel(a_ref, b_ref, o_ref):
    o_ref[...] = jnp.dot(a_ref[...], b_ref[...], preferred_element_type=jnp.float32)


def pallas_matmul(a, b):
    """(M, K) @ (K, N) -> (M, N) f32; rows tiled ("parallel"), K and N whole in VMEM."""
    m, k = a.shape
    _, n = b.shape
    tm, mp, nblk = _row_tiling(m, _MM_ROW_CAP)
    a = _pad_rows(a.astype(_MATMUL_INPUT_DTYPE), mp)
    b = b.astype(_MATMUL_INPUT_DTYPE)
    y = pl.pallas_call(
        _matmul_kernel,
        out_shape=jax.ShapeDtypeStruct((mp, n), jnp.float32),
        grid=(nblk,),
        in_specs=[pl.BlockSpec((tm, k), lambda i: (i, 0)),
                  pl.BlockSpec((k, n), lambda i: (0, 0))],
        out_specs=pl.BlockSpec((tm, n), lambda i: (i, 0)),
        compiler_params=pltpu.CompilerParams(
            dimension_semantics=("parallel",),
            vmem_limit_bytes=_VMEM_LIMIT),
    )(a, b)
    return y[:m] if mp != m else y


def _bn_stats_kernel(x_ref, s_ref, sq_ref):
    @pl.when(pl.program_id(0) == 0)
    def _():
        s_ref[...] = jnp.zeros_like(s_ref)
        sq_ref[...] = jnp.zeros_like(sq_ref)
    x = x_ref[...]
    s_ref[...] += jnp.sum(x, axis=0, keepdims=True)
    sq_ref[...] += jnp.sum(x * x, axis=0, keepdims=True)


def pallas_column_stats(x2):
    """Per-column sum and sum-of-squares, accumulated across row tiles (resident outputs)."""
    m, cw = x2.shape
    tm, mp, nblk = _row_tiling(m, _EW_ROW_CAP)
    x2 = _pad_rows(x2, mp)                       # zero pad rows do not change the sums
    return pl.pallas_call(
        _bn_stats_kernel,
        out_shape=(jax.ShapeDtypeStruct((1, cw), jnp.float32),
                   jax.ShapeDtypeStruct((1, cw), jnp.float32)),
        grid=(nblk,),
        in_specs=[pl.BlockSpec((tm, cw), lambda i: (i, 0))],
        out_specs=(pl.BlockSpec((1, cw), lambda i: (0, 0)),
                   pl.BlockSpec((1, cw), lambda i: (0, 0))),
        compiler_params=pltpu.CompilerParams(
            dimension_semantics=("arbitrary",),  # accumulation across the row axis
            vmem_limit_bytes=_VMEM_LIMIT),
    )(x2)


def _scale_shift_relu_kernel(x_ref, a_ref, b_ref, o_ref):
    o_ref[...] = jnp.maximum(x_ref[...] * a_ref[...] + b_ref[...], 0.0)


def pallas_scale_shift_relu(x2, scale, shift):
    m, cw = x2.shape
    tm, mp, nblk = _row_tiling(m, _EW_ROW_CAP)
    xp = _pad_rows(x2, mp)
    y = pl.pallas_call(
        _scale_shift_relu_kernel,
        out_shape=jax.ShapeDtypeStruct((mp, cw), jnp.float32),
        grid=(nblk,),
        in_specs=[pl.BlockSpec((tm, cw), lambda i: (i, 0)),
                  pl.BlockSpec((1, cw), lambda i: (0, 0)),
                  pl.BlockSpec((1, cw), lambda i: (0, 0))],
        out_specs=pl.BlockSpec((tm, cw), lambda i: (i, 0)),
        compiler_params=pltpu.CompilerParams(
            dimension_semantics=("parallel",),
            vmem_limit_bytes=_VMEM_LIMIT),
    )(xp, scale, shift)
    return y[:m] if mp != m else y


def _tanh_kernel(x_ref, o_ref):
    o_ref[...] = jnp.tanh(x_ref[...])


def pallas_tanh(x2):
    m, cw = x2.shape
    tm, mp, nblk = _row_tiling(m, _EW_ROW_CAP)
    xp = _pad_rows(x2, mp)
    y = pl.pallas_call(
        _tanh_kernel,
        out_shape=jax.ShapeDtypeStruct((mp, cw), jnp.float32),
        grid=(nblk,),
        in_specs=[pl.BlockSpec((tm, cw), lambda i: (i, 0))],
        out_specs=pl.BlockSpec((tm, cw), lambda i: (i, 0)),
        compiler_params=pltpu.CompilerParams(
            dimension_semantics=("parallel",),
            vmem_limit_bytes=_VMEM_LIMIT),
    )(xp)
    return y[:m] if mp != m else y


# ------------------------- BatchNorm (training mode) + ReLU -------------------------

def _fold_factor(m, c):
    f = max(1, 128 // c)
    while m % f:
        f -= 1
    return f


def batchnorm_relu(a_nhwc, gamma, beta, eps=1e-5):
    """BatchNorm2d with batch statistics over N*H*W, then ReLU, on a lane-folded view."""
    n, h, w, c = a_nhwc.shape
    m = n * h * w
    f = _fold_factor(m, c)
    x2 = a_nhwc.reshape(m // f, f * c)           # pure reshape; rows are 128-lane dense
    s, sq = pallas_column_stats(x2)
    s = s.reshape(f, c).sum(axis=0)
    sq = sq.reshape(f, c).sum(axis=0)
    mean = s / m
    var = sq / m - mean * mean                   # E[x^2] - mean^2, single pass over data
    inv = jax.lax.rsqrt(var + eps)
    scale = gamma.reshape(-1) * inv
    shift = beta.reshape(-1) - mean * scale
    scale_f = jnp.tile(scale, f).reshape(1, f * c)
    shift_f = jnp.tile(shift, f).reshape(1, f * c)
    y2 = pallas_scale_shift_relu(x2, scale_f, shift_f)
    return y2.reshape(n, h, w, c)
    # TODO(synk): fuse the per-channel sum/sumsq accumulation into the matmul epilogue (needs
    # masking of the (H+1, W+1) boundary rows each phase discards) to save one HBM read/layer.


# -------------- ConvTranspose2d(k=4, s=2, p=1) via 4-phase decomposition --------------
# Output pixel (2m+py, 2l+px) depends on the 2x2 window of the 1-padded input starting at
# (m+py, l+px), contracted with kernel taps k{y,x} = (3 - p{y,x}) - 2*d{y,x}.  One matmul of
# the (N*(H+1)*(W+1), 4*Cin) window matrix against a combined (4*Cin, 4*Cout) weight gives
# all 4 phases at once; depth-to-space interleaving recovers the (N, 2H, 2W, Cout) output.

def _build_cols(x_nhwc):
    n, h, w, c = x_nhwc.shape
    xp = jnp.pad(x_nhwc, ((0, 0), (1, 1), (1, 1), (0, 0)))
    wins = [xp[:, dy:dy + h + 1, dx:dx + w + 1, :] for dy in (0, 1) for dx in (0, 1)]
    cols = jnp.stack(wins, axis=3)               # (N, H+1, W+1, 4, Cin)
    return cols.reshape(n * (h + 1) * (w + 1), 4 * c)
    # TODO(synk): generate these 2x2 windows inside the matmul kernel (manual DMA / Element
    # index_map) so the 4x-expanded cols matrix never round-trips through HBM.


def _conv_t_weight_matrix(w):
    """PyTorch (Cin, Cout, 4, 4) -> combined (4*Cin, 4*Cout) phase weight matrix."""
    rows = []
    for dy in (0, 1):
        for dx in (0, 1):
            taps = [w[:, :, 3 - py - 2 * dy, 3 - px - 2 * dx]
                    for py in (0, 1) for px in (0, 1)]   # 4 x (Cin, Cout)
            rows.append(jnp.concatenate(taps, axis=1))   # (Cin, 4*Cout)
    return jnp.concatenate(rows, axis=0)                 # (4*Cin, 4*Cout)


def _depth_to_space(y, n, h, w, c):
    yr = y.reshape(n, h + 1, w + 1, 2, 2, c)
    p00 = yr[:, 0:h, 0:w, 0, 0, :]
    p01 = yr[:, 0:h, 1:w + 1, 0, 1, :]
    p10 = yr[:, 1:h + 1, 0:w, 1, 0, :]
    p11 = yr[:, 1:h + 1, 1:w + 1, 1, 1, :]
    row0 = jnp.stack([p00, p01], axis=3).reshape(n, h, 2 * w, c)
    row1 = jnp.stack([p10, p11], axis=3).reshape(n, h, 2 * w, c)
    return jnp.stack([row0, row1], axis=2).reshape(n, 2 * h, 2 * w, c)


def conv_transpose_s2(x_nhwc, w):
    """ConvTranspose2d(Cin, Cout, 4, stride=2, padding=1, bias=False), NHWC in/out."""
    n, h, ww, _ = x_nhwc.shape
    cout = w.shape[1]
    cols = _build_cols(x_nhwc)                           # (N*(H+1)*(W+1), 4*Cin)
    y = pallas_matmul(cols, _conv_t_weight_matrix(w))    # (N*(H+1)*(W+1), 4*Cout)
    return _depth_to_space(y, n, h, ww, cout)            # (N, 2H, 2W, Cout)


# ------------------------------- Generator128 -------------------------------

def init_params(key, nz, ngf, nc):
    chans = [nz, ngf * 16, ngf * 8, ngf * 4, ngf * 2, ngf, nc]
    params = []
    for layer in range(6):
        key, sub = jax.random.split(key)
        w = 0.02 * jax.random.normal(sub, (chans[layer], chans[layer + 1], 4, 4), jnp.float32)
        if layer < 5:
            gamma = jnp.ones((chans[layer + 1],), jnp.float32)
            beta = jnp.zeros((chans[layer + 1],), jnp.float32)
        else:
            gamma = beta = None
        params.append((w, gamma, beta))
    return params


def generator128(params, x_nchw):
    n, nz = x_nchw.shape[0], x_nchw.shape[1]

    # Layer 1: ConvTranspose2d(nz, ngf*16, 4, 1, 0) on a 1x1 input == matmul with full kernel.
    w1, g1, b1 = params[0]
    c1 = w1.shape[1]
    w1_mat = jnp.transpose(w1, (0, 2, 3, 1)).reshape(nz, 16 * c1)   # (nz, ky*kx*Cout)
    y = pallas_matmul(x_nchw.reshape(n, nz), w1_mat)                # (N, 16*Cout)
    act = batchnorm_relu(y.reshape(n, 4, 4, c1), g1, b1)

    # Layers 2-5: ConvTranspose2d(4, 2, 1) + BN + ReLU, spatial 4->8->16->32->64.
    for layer in range(1, 5):
        w, g, b = params[layer]
        act = batchnorm_relu(conv_transpose_s2(act, w), g, b)

    # Layer 6: ConvTranspose2d(ngf, nc, 4, 2, 1) + Tanh, spatial 64->128.
    out_nhwc = conv_transpose_s2(act, params[5][0])                 # (N, 128, 128, nc)
    out_nchw = jnp.transpose(out_nhwc, (0, 3, 1, 2))                # (N, nc, 128, 128)
    flat = out_nchw.reshape(-1, out_nchw.shape[-1])                 # (N*nc*128, 128) lane-dense
    return pallas_tanh(flat).reshape(out_nchw.shape)


# --------------------------- pure-JAX reference ---------------------------

def _ref_conv_t(x_nhwc, w, stride, pad):
    rhs = jnp.transpose(w[:, :, ::-1, ::-1], (2, 3, 0, 1))          # HWIO, flipped
    return jax.lax.conv_general_dilated(
        x_nhwc, rhs, window_strides=(1, 1),
        padding=((3 - pad, 3 - pad), (3 - pad, 3 - pad)),
        lhs_dilation=(stride, stride),
        dimension_numbers=("NHWC", "HWIO", "NHWC"),
        precision=jax.lax.Precision.HIGHEST)


def _ref_bn_relu(x_nhwc, gamma, beta):
    mean = jnp.mean(x_nhwc, axis=(0, 1, 2), keepdims=True)
    var = jnp.mean(jnp.square(x_nhwc - mean), axis=(0, 1, 2), keepdims=True)
    y = (x_nhwc - mean) * jax.lax.rsqrt(var + 1e-5)
    y = y * gamma.reshape(1, 1, 1, -1) + beta.reshape(1, 1, 1, -1)
    return jnp.maximum(y, 0.0)


def reference(params, x_nchw):
    x = jnp.transpose(x_nchw, (0, 2, 3, 1))
    for layer in range(5):
        w, g, b = params[layer]
        stride, pad = (1, 0) if layer == 0 else (2, 1)
        x = _ref_bn_relu(_ref_conv_t(x, w, stride, pad), g, b)
    x = jnp.tanh(_ref_conv_t(x, params[5][0], 2, 1))
    return jnp.transpose(x, (0, 3, 1, 2))


# ----------------------------------- main -----------------------------------

if __name__ == "__main__":
    nz, ngf, nc, batch = 16, 8, 3, 2
    key = jax.random.PRNGKey(0)
    kp, kx = jax.random.split(key)
    params = init_params(kp, nz, ngf, nc)
    x = jax.random.normal(kx, (batch, nz, 1, 1), jnp.float32)

    fwd = jax.jit(functools.partial(generator128, params))
    out = jax.block_until_ready(fwd(x))

    assert out.shape == (batch, nc, 128, 128), out.shape
    assert bool(jnp.all(jnp.isfinite(out)))

    ref = reference(params, x)
    max_err = float(jnp.max(jnp.abs(out - ref)))
    assert max_err < 2e-3, max_err

    print("KERNEL_OK")
</pallas_src>

<mosaic_0001>
module attributes {stable_mosaic.version = 11 : i64} {
  func.func @_bn_stats_kernel(%arg0: i32, %arg1: memref<32x128xf32, #tpu.memory_space<vmem>>, %arg2: memref<1x128xf32, #tpu.memory_space<vmem>>, %arg3: memref<1x128xf32, #tpu.memory_space<vmem>>) attributes {dimension_semantics = [#tpu.dimension_semantics<arbitrary>], iteration_bounds = array<i64: 1>, scalar_prefetch = 0 : i64, scratch_operands = 0 : i64, tpu.core_type = #tpu.core_type<tc>, window_params = [{transform_indices = @transform_0, window_bounds = array<i64: 32, 128>}, {pipeline_mode = #tpu.pipeline_mode<synchronous>, transform_indices = @transform_1, window_bounds = array<i64: 1, 128>}, {pipeline_mode = #tpu.pipeline_mode<synchronous>, transform_indices = @transform_2, window_bounds = array<i64: 1, 128>}]} {
    %c0_i32 = arith.constant 0 : i32
    %0 = arith.cmpi eq, %arg0, %c0_i32 : i32
    %1 = arith.extui %0 : i1 to i32
    %c0_i32_0 = arith.constant 0 : i32
    %2 = arith.cmpi ne, %1, %c0_i32_0 : i32
    scf.if %2 {
      %cst_11 = arith.constant 0.000000e+00 : f32
      %15 = vector.broadcast %cst_11 : f32 to vector<1x128xf32>
      %c0_12 = arith.constant 0 : index
      %c0_13 = arith.constant 0 : index
      %16 = vector.load %arg2[%c0_12, %c0_13] : memref<1x128xf32, #tpu.memory_space<vmem>>, vector<1x128xf32>
      tpu.vector_store %arg2[%c0_12, %c0_13], %15 {strides = array<i32>} : memref<1x128xf32, #tpu.memory_space<vmem>>, vector<1x128xf32>,
      %cst_14 = arith.constant 0.000000e+00 : f32
      %17 = vector.broadcast %cst_14 : f32 to vector<1x128xf32>
      %c0_15 = arith.constant 0 : index
      %c0_16 = arith.constant 0 : index
      %18 = vector.load %arg3[%c0_15, %c0_16] : memref<1x128xf32, #tpu.memory_space<vmem>>, vector<1x128xf32>
      tpu.vector_store %arg3[%c0_15, %c0_16], %17 {strides = array<i32>} : memref<1x128xf32, #tpu.memory_space<vmem>>, vector<1x128xf32>,
    } else {
    }
    %c0 = arith.constant 0 : index
    %c0_1 = arith.constant 0 : index
    %3 = vector.load %arg1[%c0, %c0_1] : memref<32x128xf32, #tpu.memory_space<vmem>>, vector<32x128xf32>
    %c0_2 = arith.constant 0 : index
    %c0_3 = arith.constant 0 : index
    %4 = vector.load %arg2[%c0_2, %c0_3] : memref<1x128xf32, #tpu.memory_space<vmem>>, vector<1x128xf32>
    %cst = arith.constant dense<0.000000e+00> : vector<128xf32>
    %5 = vector.multi_reduction <add>, %3, %cst [0] : vector<32x128xf32> to vector<128xf32>
    %6 = vector.shape_cast %5 : vector<128xf32> to vector<1x128xf32>
    %7 = arith.addf %4, %6 : vector<1x128xf32>
    %c0_4 = arith.constant 0 : index
    %c0_5 = arith.constant 0 : index
    %8 = vector.load %arg2[%c0_4, %c0_5] : memref<1x128xf32, #tpu.memory_space<vmem>>, vector<1x128xf32>
    tpu.vector_store %arg2[%c0_4, %c0_5], %7 {strides = array<i32>} : memref<1x128xf32, #tpu.memory_space<vmem>>, vector<1x128xf32>,
    %c0_6 = arith.constant 0 : index
    %c0_7 = arith.constant 0 : index
    %9 = vector.load %arg3[%c0_6, %c0_7] : memref<1x128xf32, #tpu.memory_space<vmem>>, vector<1x128xf32>
    %10 = arith.mulf %3, %3 : vector<32x128xf32>
    %cst_8 = arith.constant dense<0.000000e+00> : vector<128xf32>
    %11 = vector.multi_reduction <add>, %10, %cst_8 [0] : vector<32x128xf32> to vector<128xf32>
    %12 = vector.shape_cast %11 : vector<128xf32> to vector<1x128xf32>
    %13 = arith.addf %9, %12 : vector<1x128xf32>
    %c0_9 = arith.constant 0 : index
    %c0_10 = arith.constant 0 : index
    %14 = vector.load %arg3[%c0_9, %c0_10] : memref<1x128xf32, #tpu.memory_space<vmem>>, vector<1x128xf32>
    tpu.vector_store %arg3[%c0_9, %c0_10], %13 {strides = array<i32>} : memref<1x128xf32, #tpu.memory_space<vmem>>, vector<1x128xf32>,
    return
  }
  func.func @transform_0(%arg0: i32) -> (i32, i32) {
    %c0_i32 = arith.constant 0 : i32
    %c0_i32_0 = arith.constant 0 : i32
    return %arg0, %c0_i32 : i32, i32
  }
  func.func @transform_1(%arg0: i32) -> (i32, i32) {
    %c0_i32 = arith.constant 0 : i32
    %c0_i32_0 = arith.constant 0 : i32
    %c0_i32_1 = arith.constant 0 : i32
    return %c0_i32, %c0_i32_0 : i32, i32
  }
  func.func @transform_2(%arg0: i32) -> (i32, i32) {
    %c0_i32 = arith.constant 0 : i32
    %c0_i32_0 = arith.constant 0 : i32
    %c0_i32_1 = arith.constant 0 : i32
    return %c0_i32, %c0_i32_0 : i32, i32
  }
}

module attributes {stable_mosaic.version = 11 : i64} {
  func.func @_matmul_kernel(%arg0: i32, %arg1: memref<2x16xf32, #tpu.memory_space<vmem>>, %arg2: memref<16x2048xf32, #tpu.memory_space<vmem>>, %arg3: memref<2x2048xf32, #tpu.memory_space<vmem>>) attributes {dimension_semantics = [#tpu.dimension_semantics<parallel>], iteration_bounds = array<i64: 1>, scalar_prefetch = 0 : i64, scratch_operands = 0 : i64, tpu.core_type = #tpu.core_type<tc>, window_params = [{transform_indices = @transform_0, window_bounds = array<i64: 2, 16>}, {pipeline_mode = #tpu.pipeline_mode<synchronous>, transform_indices = @transform_1, window_bounds = array<i64: 16, 2048>}, {transform_indices = @transform_2, window_bounds = array<i64: 2, 2048>}]} {
    %c0 = arith.constant 0 : index
    %c0_0 = arith.constant 0 : index
    %0 = vector.load %arg1[%c0, %c0_0] : memref<2x16xf32, #tpu.memory_space<vmem>>, vector<2x16xf32>
    %c0_1 = arith.constant 0 : index
    %c0_2 = arith.constant 0 : index
    %1 = vector.load %arg2[%c0_1, %c0_2] : memref<16x2048xf32, #tpu.memory_space<vmem>>, vector<16x2048xf32>
    %cst = arith.constant dense<0.000000e+00> : vector<2x2048xf32>
    %2 = tpu.matmul %0, %1, %cst {dimension_numbers = #tpu.dot_dimension_numbers<[1], [0], [0], [1], [0, 0, 1, 1], [], []>} : vector<2x16xf32>, vector<16x2048xf32>, vector<2x2048xf32> -> vector<2x2048xf32>
    %c0_3 = arith.constant 0 : index
    %c0_4 = arith.constant 0 : index
    %3 = vector.load %arg3[%c0_3, %c0_4] : memref<2x2048xf32, #tpu.memory_space<vmem>>, vector<2x2048xf32>
    tpu.vector_store %arg3[%c0_3, %c0_4], %2 {strides = array<i32>} : memref<2x2048xf32, #tpu.memory_space<vmem>>, vector<2x2048xf32>,
    return
  }
  func.func @transform_0(%arg0: i32) -> (i32, i32) {
    %c0_i32 = arith.constant 0 : i32
    %c0_i32_0 = arith.constant 0 : i32
    return %arg0, %c0_i32 : i32, i32
  }
  func.func @transform_1(%arg0: i32) -> (i32, i32) {
    %c0_i32 = arith.constant 0 : i32
    %c0_i32_0 = arith.constant 0 : i32
    %c0_i32_1 = arith.constant 0 : i32
    return %c0_i32, %c0_i32_0 : i32, i32
  }
  func.func @transform_2(%arg0: i32) -> (i32, i32) {
    %c0_i32 = arith.constant 0 : i32
    %c0_i32_0 = arith.constant 0 : i32
    return %arg0, %c0_i32 : i32, i32
  }
}

module attributes {stable_mosaic.version = 11 : i64} {
  func.func @_scale_shift_relu_kernel(%arg0: i32, %arg1: memref<32x128xf32, #tpu.memory_space<vmem>>, %arg2: memref<1x128xf32, #tpu.memory_space<vmem>>, %arg3: memref<1x128xf32, #tpu.memory_space<vmem>>, %arg4: memref<32x128xf32, #tpu.memory_space<vmem>>) attributes {dimension_semantics = [#tpu.dimension_semantics<parallel>], iteration_bounds = array<i64: 1>, scalar_prefetch = 0 : i64, scratch_operands = 0 : i64, tpu.core_type = #tpu.core_type<tc>, window_params = [{transform_indices = @transform_0, window_bounds = array<i64: 32, 128>}, {pipeline_mode = #tpu.pipeline_mode<synchronous>, transform_indices = @transform_1, window_bounds = array<i64: 1, 128>}, {pipeline_mode = #tpu.pipeline_mode<synchronous>, transform_indices = @transform_2, window_bounds = array<i64: 1, 128>}, {transform_indices = @transform_3, window_bounds = array<i64: 32, 128>}]} {
    %c0 = arith.constant 0 : index
    %c0_0 = arith.constant 0 : index
    %0 = vector.load %arg1[%c0, %c0_0] : memref<32x128xf32, #tpu.memory_space<vmem>>, vector<32x128xf32>
    %c0_1 = arith.constant 0 : index
    %c0_2 = arith.constant 0 : index
    %1 = vector.load %arg2[%c0_1, %c0_2] : memref<1x128xf32, #tpu.memory_space<vmem>>, vector<1x128xf32>
    %2 = vector.broadcast %1 : vector<1x128xf32> to vector<32x128xf32>
    %3 = arith.mulf %0, %2 : vector<32x128xf32>
    %c0_3 = arith.constant 0 : index
    %c0_4 = arith.constant 0 : index
    %4 = vector.load %arg3[%c0_3, %c0_4] : memref<1x128xf32, #tpu.memory_space<vmem>>, vector<1x128xf32>
    %5 = vector.broadcast %4 : vector<1x128xf32> to vector<32x128xf32>
    %6 = arith.addf %3, %5 : vector<32x128xf32>
    %cst = arith.constant 0.000000e+00 : f32
    %7 = vector.broadcast %cst : f32 to vector<32x128xf32>
    %8 = arith.maximumf %6, %7 : vector<32x128xf32>
    %c0_5 = arith.constant 0 : index
    %c0_6 = arith.constant 0 : index
    %9 = vector.load %arg4[%c0_5, %c0_6] : memref<32x128xf32, #tpu.memory_space<vmem>>, vector<32x128xf32>
    tpu.vector_store %arg4[%c0_5, %c0_6], %8 {strides = array<i32>} : memref<32x128xf32, #tpu.memory_space<vmem>>, vector<32x128xf32>,
    return
  }
  func.func @transform_0(%arg0: i32) -> (i32, i32) {
    %c0_i32 = arith.constant 0 : i32
    %c0_i32_0 = arith.constant 0 : i32
    return %arg0, %c0_i32 : i32, i32
  }
  func.func @transform_1(%arg0: i32) -> (i32, i32) {
    %c0_i32 = arith.constant 0 : i32
    %c0_i32_0 = arith.constant 0 : i32
    %c0_i32_1 = arith.constant 0 : i32
    return %c0_i32, %c0_i32_0 : i32, i32
  }
  func.func @transform_2(%arg0: i32) -> (i32, i32) {
    %c0_i32 = arith.constant 0 : i32
    %c0_i32_0 = arith.constant 0 : i32
    %c0_i32_1 = arith.constant 0 : i32
    return %c0_i32, %c0_i32_0 : i32, i32
  }
  func.func @transform_3(%arg0: i32) -> (i32, i32) {
    %c0_i32 = arith.constant 0 : i32
    %c0_i32_0 = arith.constant 0 : i32
    return %arg0, %c0_i32 : i32, i32
  }
}

module attributes {stable_mosaic.version = 11 : i64} {
  func.func @_matmul_kernel(%arg0: i32, %arg1: memref<50x512xf32, #tpu.memory_space<vmem>>, %arg2: memref<512x256xf32, #tpu.memory_space<vmem>>, %arg3: memref<50x256xf32, #tpu.memory_space<vmem>>) attributes {dimension_semantics = [#tpu.dimension_semantics<parallel>], iteration_bounds = array<i64: 1>, scalar_prefetch = 0 : i64, scratch_operands = 0 : i64, tpu.core_type = #tpu.core_type<tc>, window_params = [{transform_indices = @transform_0, window_bounds = array<i64: 50, 512>}, {pipeline_mode = #tpu.pipeline_mode<synchronous>, transform_indices = @transform_1, window_bounds = array<i64: 512, 256>}, {transform_indices = @transform_2, window_bounds = array<i64: 50, 256>}]} {
    %c0 = arith.constant 0 : index
    %c0_0 = arith.constant 0 : index
    %0 = vector.load %arg1[%c0, %c0_0] : memref<50x512xf32, #tpu.memory_space<vmem>>, vector<50x512xf32>
    %c0_1 = arith.constant 0 : index
    %c0_2 = arith.constant 0 : index
    %1 = vector.load %arg2[%c0_1, %c0_2] : memref<512x256xf32, #tpu.memory_space<vmem>>, vector<512x256xf32>
    %cst = arith.constant dense<0.000000e+00> : vector<50x256xf32>
    %2 = tpu.matmul %0, %1, %cst {dimension_numbers = #tpu.dot_dimension_numbers<[1], [0], [0], [1], [0, 0, 1, 1], [], []>} : vector<50x512xf32>, vector<512x256xf32>, vector<50x256xf32> -> vector<50x256xf32>
    %c0_3 = arith.constant 0 : index
    %c0_4 = arith.constant 0 : index
    %3 = vector.load %arg3[%c0_3, %c0_4] : memref<50x256xf32, #tpu.memory_space<vmem>>, vector<50x256xf32>
    tpu.vector_store %arg3[%c0_3, %c0_4], %2 {strides = array<i32>} : memref<50x256xf32, #tpu.memory_space<vmem>>, vector<50x256xf32>,
    return
  }
  func.func @transform_0(%arg0: i32) -> (i32, i32) {
    %c0_i32 = arith.constant 0 : i32
    %c0_i32_0 = arith.constant 0 : i32
    return %arg0, %c0_i32 : i32, i32
  }
  func.func @transform_1(%arg0: i32) -> (i32, i32) {
    %c0_i32 = arith.constant 0 : i32
    %c0_i32_0 = arith.constant 0 : i32
    %c0_i32_1 = arith.constant 0 : i32
    return %c0_i32, %c0_i32_0 : i32, i32
  }
  func.func @transform_2(%arg0: i32) -> (i32, i32) {
    %c0_i32 = arith.constant 0 : i32
    %c0_i32_0 = arith.constant 0 : i32
    return %arg0, %c0_i32 : i32, i32
  }
}

module attributes {stable_mosaic.version = 11 : i64} {
  func.func @_bn_stats_kernel(%arg0: i32, %arg1: memref<64x128xf32, #tpu.memory_space<vmem>>, %arg2: memref<1x128xf32, #tpu.memory_space<vmem>>, %arg3: memref<1x128xf32, #tpu.memory_space<vmem>>) attributes {dimension_semantics = [#tpu.dimension_semantics<arbitrary>], iteration_bounds = array<i64: 1>, scalar_prefetch = 0 : i64, scratch_operands = 0 : i64, tpu.core_type = #tpu.core_type<tc>, window_params = [{transform_indices = @transform_0, window_bounds = array<i64: 64, 128>}, {pipeline_mode = #tpu.pipeline_mode<synchronous>, transform_indices = @transform_1, window_bounds = array<i64: 1, 128>}, {pipeline_mode = #tpu.pipeline_mode<synchronous>, transform_indices = @transform_2, window_bounds = array<i64: 1, 128>}]} {
    %c0_i32 = arith.constant 0 : i32
    %0 = arith.cmpi eq, %arg0, %c0_i32 : i32
    %1 = arith.extui %0 : i1 to i32
    %c0_i32_0 = arith.constant 0 : i32
    %2 = arith.cmpi ne, %1, %c0_i32_0 : i32
    scf.if %2 {
      %cst_11 = arith.constant 0.000000e+00 : f32
      %15 = vector.broadcast %cst_11 : f32 to vector<1x128xf32>
      %c0_12 = arith.constant 0 : index
      %c0_13 = arith.constant 0 : index
      %16 = vector.load %arg2[%c0_12, %c0_13] : memref<1x128xf32, #tpu.memory_space<vmem>>, vector<1x128xf32>
      tpu.vector_store %arg2[%c0_12, %c0_13], %15 {strides = array<i32>} : memref<1x128xf32, #tpu.memory_space<vmem>>, vector<1x128xf32>,
      %cst_14 = arith.constant 0.000000e+00 : f32
      %17 = vector.broadcast %cst_14 : f32 to vector<1x128xf32>
      %c0_15 = arith.constant 0 : index
      %c0_16 = arith.constant 0 : index
      %18 = vector.load %arg3[%c0_15, %c0_16] : memref<1x128xf32, #tpu.memory_space<vmem>>, vector<1x128xf32>
      tpu.vector_store %arg3[%c0_15, %c0_16], %17 {strides = array<i32>} : memref<1x128xf32, #tpu.memory_space<vmem>>, vector<1x128xf32>,
    } else {
    }
    %c0 = arith.constant 0 : index
    %c0_1 = arith.constant 0 : index
    %3 = vector.load %arg1[%c0, %c0_1] : memref<64x128xf32, #tpu.memory_space<vmem>>, vector<64x128xf32>
    %c0_2 = arith.constant 0 : index
    %c0_3 = arith.constant 0 : index
    %4 = vector.load %arg2[%c0_2, %c0_3] : memref<1x128xf32, #tpu.memory_space<vmem>>, vector<1x128xf32>
    %cst = arith.constant dense<0.000000e+00> : vector<128xf32>
    %5 = vector.multi_reduction <add>, %3, %cst [0] : vector<64x128xf32> to vector<128xf32>
    %6 = vector.shape_cast %5 : vector<128xf32> to vector<1x128xf32>
    %7 = arith.addf %4, %6 : vector<1x128xf32>
    %c0_4 = arith.constant 0 : index
    %c0_5 = arith.constant 0 : index
    %8 = vector.load %arg2[%c0_4, %c0_5] : memref<1x128xf32, #tpu.memory_space<vmem>>, vector<1x128xf32>
    tpu.vector_store %arg2[%c0_4, %c0_5], %7 {strides = array<i32>} : memref<1x128xf32, #tpu.memory_space<vmem>>, vector<1x128xf32>,
    %c0_6 = arith.constant 0 : index
    %c0_7 = arith.constant 0 : index
    %9 = vector.load %arg3[%c0_6, %c0_7] : memref<1x128xf32, #tpu.memory_space<vmem>>, vector<1x128xf32>
    %10 = arith.mulf %3, %3 : vector<64x128xf32>
    %cst_8 = arith.constant dense<0.000000e+00> : vector<128xf32>
    %11 = vector.multi_reduction <add>, %10, %cst_8 [0] : vector<64x128xf32> to vector<128xf32>
    %12 = vector.shape_cast %11 : vector<128xf32> to vector<1x128xf32>
    %13 = arith.addf %9, %12 : vector<1x128xf32>
    %c0_9 = arith.constant 0 : index
    %c0_10 = arith.constant 0 : index
    %14 = vector.load %arg3[%c0_9, %c0_10] : memref<1x128xf32, #tpu.memory_space<vmem>>, vector<1x128xf32>
    tpu.vector_store %arg3[%c0_9, %c0_10], %13 {strides = array<i32>} : memref<1x128xf32, #tpu.memory_space<vmem>>, vector<1x128xf32>,
    return
  }
  func.func @transform_0(%arg0: i32) -> (i32, i32) {
    %c0_i32 = arith.constant 0 : i32
    %c0_i32_0 = arith.constant 0 : i32
    return %arg0, %c0_i32 : i32, i32
  }
  func.func @transform_1(%arg0: i32) -> (i32, i32) {
    %c0_i32 = arith.constant 0 : i32
    %c0_i32_0 = arith.constant 0 : i32
    %c0_i32_1 = arith.constant 0 : i32
    return %c0_i32, %c0_i32_0 : i32, i32
  }
  func.func @transform_2(%arg0: i32) -> (i32, i32) {
    %c0_i32 = arith.constant 0 : i32
    %c0_i32_0 = arith.constant 0 : i32
    %c0_i32_1 = arith.constant 0 : i32
    return %c0_i32, %c0_i32_0 : i32, i32
  }
}

module attributes {stable_mosaic.version = 11 : i64} {
  func.func @_scale_shift_relu_kernel(%arg0: i32, %arg1: memref<64x128xf32, #tpu.memory_space<vmem>>, %arg2: memref<1x128xf32, #tpu.memory_space<vmem>>, %arg3: memref<1x128xf32, #tpu.memory_space<vmem>>, %arg4: memref<64x128xf32, #tpu.memory_space<vmem>>) attributes {dimension_semantics = [#tpu.dimension_semantics<parallel>], iteration_bounds = array<i64: 1>, scalar_prefetch = 0 : i64, scratch_operands = 0 : i64, tpu.core_type = #tpu.core_type<tc>, window_params = [{transform_indices = @transform_0, window_bounds = array<i64: 64, 128>}, {pipeline_mode = #tpu.pipeline_mode<synchronous>, transform_indices = @transform_1, window_bounds = array<i64: 1, 128>}, {pipeline_mode = #tpu.pipeline_mode<synchronous>, transform_indices = @transform_2, window_bounds = array<i64: 1, 128>}, {transform_indices = @transform_3, window_bounds = array<i64: 64, 128>}]} {
    %c0 = arith.constant 0 : index
    %c0_0 = arith.constant 0 : index
    %0 = vector.load %arg1[%c0, %c0_0] : memref<64x128xf32, #tpu.memory_space<vmem>>, vector<64x128xf32>
    %c0_1 = arith.constant 0 : index
    %c0_2 = arith.constant 0 : index
    %1 = vector.load %arg2[%c0_1, %c0_2] : memref<1x128xf32, #tpu.memory_space<vmem>>, vector<1x128xf32>
    %2 = vector.broadcast %1 : vector<1x128xf32> to vector<64x128xf32>
    %3 = arith.mulf %0, %2 : vector<64x128xf32>
    %c0_3 = arith.constant 0 : index
    %c0_4 = arith.constant 0 : index
    %4 = vector.load %arg3[%c0_3, %c0_4] : memref<1x128xf32, #tpu.memory_space<vmem>>, vector<1x128xf32>
    %5 = vector.broadcast %4 : vector<1x128xf32> to vector<64x128xf32>
    %6 = arith.addf %3, %5 : vector<64x128xf32>
    %cst = arith.constant 0.000000e+00 : f32
    %7 = vector.broadcast %cst : f32 to vector<64x128xf32>
    %8 = arith.maximumf %6, %7 : vector<64x128xf32>
    %c0_5 = arith.constant 0 : index
    %c0_6 = arith.constant 0 : index
    %9 = vector.load %arg4[%c0_5, %c0_6] : memref<64x128xf32, #tpu.memory_space<vmem>>, vector<64x128xf32>
    tpu.vector_store %arg4[%c0_5, %c0_6], %8 {strides = array<i32>} : memref<64x128xf32, #tpu.memory_space<vmem>>, vector<64x128xf32>,
    return
  }
  func.func @transform_0(%arg0: i32) -> (i32, i32) {
    %c0_i32 = arith.constant 0 : i32
    %c0_i32_0 = arith.constant 0 : i32
    return %arg0, %c0_i32 : i32, i32
  }
  func.func @transform_1(%arg0: i32) -> (i32, i32) {
    %c0_i32 = arith.constant 0 : i32
    %c0_i32_0 = arith.constant 0 : i32
    %c0_i32_1 = arith.constant 0 : i32
    return %c0_i32, %c0_i32_0 : i32, i32
  }
  func.func @transform_2(%arg0: i32) -> (i32, i32) {
    %c0_i32 = arith.constant 0 : i32
    %c0_i32_0 = arith.constant 0 : i32
    %c0_i32_1 = arith.constant 0 : i32
    return %c0_i32, %c0_i32_0 : i32, i32
  }
  func.func @transform_3(%arg0: i32) -> (i32, i32) {
    %c0_i32 = arith.constant 0 : i32
    %c0_i32_0 = arith.constant 0 : i32
    return %arg0, %c0_i32 : i32, i32
  }
}

module attributes {stable_mosaic.version = 11 : i64} {
  func.func @_matmul_kernel(%arg0: i32, %arg1: memref<162x256xf32, #tpu.memory_space<vmem>>, %arg2: memref<256x128xf32, #tpu.memory_space<vmem>>, %arg3: memref<162x128xf32, #tpu.memory_space<vmem>>) attributes {dimension_semantics = [#tpu.dimension_semantics<parallel>], iteration_bounds = array<i64: 1>, scalar_prefetch = 0 : i64, scratch_operands = 0 : i64, tpu.core_type = #tpu.core_type<tc>, window_params = [{transform_indices = @transform_0, window_bounds = array<i64: 162, 256>}, {pipeline_mode = #tpu.pipeline_mode<synchronous>, transform_indices = @transform_1, window_bounds = array<i64: 256, 128>}, {transform_indices = @transform_2, window_bounds = array<i64: 162, 128>}]} {
    %c0 = arith.constant 0 : index
    %c0_0 = arith.constant 0 : index
    %0 = vector.load %arg1[%c0, %c0_0] : memref<162x256xf32, #tpu.memory_space<vmem>>, vector<162x256xf32>
    %c0_1 = arith.constant 0 : index
    %c0_2 = arith.constant 0 : index
    %1 = vector.load %arg2[%c0_1, %c0_2] : memref<256x128xf32, #tpu.memory_space<vmem>>, vector<256x128xf32>
    %cst = arith.constant dense<0.000000e+00> : vector<162x128xf32>
    %2 = tpu.matmul %0, %1, %cst {dimension_numbers = #tpu.dot_dimension_numbers<[1], [0], [0], [1], [0, 0, 1, 1], [], []>} : vector<162x256xf32>, vector<256x128xf32>, vector<162x128xf32> -> vector<162x128xf32>
    %c0_3 = arith.constant 0 : index
    %c0_4 = arith.constant 0 : index
    %3 = vector.load %arg3[%c0_3, %c0_4] : memref<162x128xf32, #tpu.memory_space<vmem>>, vector<162x128xf32>
    tpu.vector_store %arg3[%c0_3, %c0_4], %2 {strides = array<i32>} : memref<162x128xf32, #tpu.memory_space<vmem>>, vector<162x128xf32>,
    return
  }
  func.func @transform_0(%arg0: i32) -> (i32, i32) {
    %c0_i32 = arith.constant 0 : i32
    %c0_i32_0 = arith.constant 0 : i32
    return %arg0, %c0_i32 : i32, i32
  }
  func.func @transform_1(%arg0: i32) -> (i32, i32) {
    %c0_i32 = arith.constant 0 : i32
    %c0_i32_0 = arith.constant 0 : i32
    %c0_i32_1 = arith.constant 0 : i32
    return %c0_i32, %c0_i32_0 : i32, i32
  }
  func.func @transform_2(%arg0: i32) -> (i32, i32) {
    %c0_i32 = arith.constant 0 : i32
    %c0_i32_0 = arith.constant 0 : i32
    return %arg0, %c0_i32 : i32, i32
  }
}

module attributes {stable_mosaic.version = 11 : i64} {
  func.func @_bn_stats_kernel(%arg0: i32, %arg1: memref<128x128xf32, #tpu.memory_space<vmem>>, %arg2: memref<1x128xf32, #tpu.memory_space<vmem>>, %arg3: memref<1x128xf32, #tpu.memory_space<vmem>>) attributes {dimension_semantics = [#tpu.dimension_semantics<arbitrary>], iteration_bounds = array<i64: 1>, scalar_prefetch = 0 : i64, scratch_operands = 0 : i64, tpu.core_type = #tpu.core_type<tc>, window_params = [{transform_indices = @transform_0, window_bounds = array<i64: 128, 128>}, {pipeline_mode = #tpu.pipeline_mode<synchronous>, transform_indices = @transform_1, window_bounds = array<i64: 1, 128>}, {pipeline_mode = #tpu.pipeline_mode<synchronous>, transform_indices = @transform_2, window_bounds = array<i64: 1, 128>}]} {
    %c0_i32 = arith.constant 0 : i32
    %0 = arith.cmpi eq, %arg0, %c0_i32 : i32
    %1 = arith.extui %0 : i1 to i32
    %c0_i32_0 = arith.constant 0 : i32
    %2 = arith.cmpi ne, %1, %c0_i32_0 : i32
    scf.if %2 {
      %cst_11 = arith.constant 0.000000e+00 : f32
      %15 = vector.broadcast %cst_11 : f32 to vector<1x128xf32>
      %c0_12 = arith.constant 0 : index
      %c0_13 = arith.constant 0 : index
      %16 = vector.load %arg2[%c0_12, %c0_13] : memref<1x128xf32, #tpu.memory_space<vmem>>, vector<1x128xf32>
      tpu.vector_store %arg2[%c0_12, %c0_13], %15 {strides = array<i32>} : memref<1x128xf32, #tpu.memory_space<vmem>>, vector<1x128xf32>,
      %cst_14 = arith.constant 0.000000e+00 : f32
      %17 = vector.broadcast %cst_14 : f32 to vector<1x128xf32>
      %c0_15 = arith.constant 0 : index
      %c0_16 = arith.constant 0 : index
      %18 = vector.load %arg3[%c0_15, %c0_16] : memref<1x128xf32, #tpu.memory_space<vmem>>, vector<1x128xf32>
      tpu.vector_store %arg3[%c0_15, %c0_16], %17 {strides = array<i32>} : memref<1x128xf32, #tpu.memory_space<vmem>>, vector<1x128xf32>,
    } else {
    }
    %c0 = arith.constant 0 : index
    %c0_1 = arith.constant 0 : index
    %3 = vector.load %arg1[%c0, %c0_1] : memref<128x128xf32, #tpu.memory_space<vmem>>, vector<128x128xf32>
    %c0_2 = arith.constant 0 : index
    %c0_3 = arith.constant 0 : index
    %4 = vector.load %arg2[%c0_2, %c0_3] : memref<1x128xf32, #tpu.memory_space<vmem>>, vector<1x128xf32>
    %cst = arith.constant dense<0.000000e+00> : vector<128xf32>
    %5 = vector.multi_reduction <add>, %3, %cst [0] : vector<128x128xf32> to vector<128xf32>
    %6 = vector.shape_cast %5 : vector<128xf32> to vector<1x128xf32>
    %7 = arith.addf %4, %6 : vector<1x128xf32>
    %c0_4 = arith.constant 0 : index
    %c0_5 = arith.constant 0 : index
    %8 = vector.load %arg2[%c0_4, %c0_5] : memref<1x128xf32, #tpu.memory_space<vmem>>, vector<1x128xf32>
    tpu.vector_store %arg2[%c0_4, %c0_5], %7 {strides = array<i32>} : memref<1x128xf32, #tpu.memory_space<vmem>>, vector<1x128xf32>,
    %c0_6 = arith.constant 0 : index
    %c0_7 = arith.constant 0 : index
    %9 = vector.load %arg3[%c0_6, %c0_7] : memref<1x128xf32, #tpu.memory_space<vmem>>, vector<1x128xf32>
    %10 = arith.mulf %3, %3 : vector<128x128xf32>
    %cst_8 = arith.constant dense<0.000000e+00> : vector<128xf32>
    %11 = vector.multi_reduction <add>, %10, %cst_8 [0] : vector<128x128xf32> to vector<128xf32>
    %12 = vector.shape_cast %11 : vector<128xf32> to vector<1x128xf32>
    %13 = arith.addf %9, %12 : vector<1x128xf32>
    %c0_9 = arith.constant 0 : index
    %c0_10 = arith.constant 0 : index
    %14 = vector.load %arg3[%c0_9, %c0_10] : memref<1x128xf32, #tpu.memory_space<vmem>>, vector<1x128xf32>
    tpu.vector_store %arg3[%c0_9, %c0_10], %13 {strides = array<i32>} : memref<1x128xf32, #tpu.memory_space<vmem>>, vector<1x128xf32>,
    return
  }
  func.func @transform_0(%arg0: i32) -> (i32, i32) {
    %c0_i32 = arith.constant 0 : i32
    %c0_i32_0 = arith.constant 0 : i32
    return %arg0, %c0_i32 : i32, i32
  }
  func.func @transform_1(%arg0: i32) -> (i32, i32) {
    %c0_i32 = arith.constant 0 : i32
    %c0_i32_0 = arith.constant 0 : i32
    %c0_i32_1 = arith.constant 0 : i32
    return %c0_i32, %c0_i32_0 : i32, i32
  }
  func.func @transform_2(%arg0: i32) -> (i32, i32) {
    %c0_i32 = arith.constant 0 : i32
    %c0_i32_0 = arith.constant 0 : i32
    %c0_i32_1 = arith.constant 0 : i32
    return %c0_i32, %c0_i32_0 : i32, i32
  }
}

module attributes {stable_mosaic.version = 11 : i64} {
  func.func @_scale_shift_relu_kernel(%arg0: i32, %arg1: memref<128x128xf32, #tpu.memory_space<vmem>>, %arg2: memref<1x128xf32, #tpu.memory_space<vmem>>, %arg3: memref<1x128xf32, #tpu.memory_space<vmem>>, %arg4: memref<128x128xf32, #tpu.memory_space<vmem>>) attributes {dimension_semantics = [#tpu.dimension_semantics<parallel>], iteration_bounds = array<i64: 1>, scalar_prefetch = 0 : i64, scratch_operands = 0 : i64, tpu.core_type = #tpu.core_type<tc>, window_params = [{transform_indices = @transform_0, window_bounds = array<i64: 128, 128>}, {pipeline_mode = #tpu.pipeline_mode<synchronous>, transform_indices = @transform_1, window_bounds = array<i64: 1, 128>}, {pipeline_mode = #tpu.pipeline_mode<synchronous>, transform_indices = @transform_2, window_bounds = array<i64: 1, 128>}, {transform_indices = @transform_3, window_bounds = array<i64: 128, 128>}]} {
    %c0 = arith.constant 0 : index
    %c0_0 = arith.constant 0 : index
    %0 = vector.load %arg1[%c0, %c0_0] : memref<128x128xf32, #tpu.memory_space<vmem>>, vector<128x128xf32>
    %c0_1 = arith.constant 0 : index
    %c0_2 = arith.constant 0 : index
    %1 = vector.load %arg2[%c0_1, %c0_2] : memref<1x128xf32, #tpu.memory_space<vmem>>, vector<1x128xf32>
    %2 = vector.broadcast %1 : vector<1x128xf32> to vector<128x128xf32>
    %3 = arith.mulf %0, %2 : vector<128x128xf32>
    %c0_3 = arith.constant 0 : index
    %c0_4 = arith.constant 0 : index
    %4 = vector.load %arg3[%c0_3, %c0_4] : memref<1x128xf32, #tpu.memory_space<vmem>>, vector<1x128xf32>
    %5 = vector.broadcast %4 : vector<1x128xf32> to vector<128x128xf32>
    %6 = arith.addf %3, %5 : vector<128x128xf32>
    %cst = arith.constant 0.000000e+00 : f32
    %7 = vector.broadcast %cst : f32 to vector<128x128xf32>
    %8 = arith.maximumf %6, %7 : vector<128x128xf32>
    %c0_5 = arith.constant 0 : index
    %c0_6 = arith.constant 0 : index
    %9 = vector.load %arg4[%c0_5, %c0_6] : memref<128x128xf32, #tpu.memory_space<vmem>>, vector<128x128xf32>
    tpu.vector_store %arg4[%c0_5, %c0_6], %8 {strides = array<i32>} : memref<128x128xf32, #tpu.memory_space<vmem>>, vector<128x128xf32>,
    return
  }
  func.func @transform_0(%arg0: i32) -> (i32, i32) {
    %c0_i32 = arith.constant 0 : i32
    %c0_i32_0 = arith.constant 0 : i32
    return %arg0, %c0_i32 : i32, i32
  }
  func.func @transform_1(%arg0: i32) -> (i32, i32) {
    %c0_i32 = arith.constant 0 : i32
    %c0_i32_0 = arith.constant 0 : i32
    %c0_i32_1 = arith.constant 0 : i32
    return %c0_i32, %c0_i32_0 : i32, i32
  }
  func.func @transform_2(%arg0: i32) -> (i32, i32) {
    %c0_i32 = arith.constant 0 : i32
    %c0_i32_0 = arith.constant 0 : i32
    %c0_i32_1 = arith.constant 0 : i32
    return %c0_i32, %c0_i32_0 : i32, i32
  }
  func.func @transform_3(%arg0: i32) -> (i32, i32) {
    %c0_i32 = arith.constant 0 : i32
    %c0_i32_0 = arith.constant 0 : i32
    return %arg0, %c0_i32 : i32, i32
  }
}

module attributes {stable_mosaic.version = 11 : i64} {
  func.func @_matmul_kernel(%arg0: i32, %arg1: memref<578x128xf32, #tpu.memory_space<vmem>>, %arg2: memref<128x64xf32, #tpu.memory_space<vmem>>, %arg3: memref<578x64xf32, #tpu.memory_space<vmem>>) attributes {dimension_semantics = [#tpu.dimension_semantics<parallel>], iteration_bounds = array<i64: 1>, scalar_prefetch = 0 : i64, scratch_operands = 0 : i64, tpu.core_type = #tpu.core_type<tc>, window_params = [{transform_indices = @transform_0, window_bounds = array<i64: 578, 128>}, {pipeline_mode = #tpu.pipeline_mode<synchronous>, transform_indices = @transform_1, window_bounds = array<i64: 128, 64>}, {transform_indices = @transform_2, window_bounds = array<i64: 578, 64>}]} {
    %c0 = arith.constant 0 : index
    %c0_0 = arith.constant 0 : index
    %0 = vector.load %arg1[%c0, %c0_0] : memref<578x128xf32, #tpu.memory_space<vmem>>, vector<578x128xf32>
    %c0_1 = arith.constant 0 : index
    %c0_2 = arith.constant 0 : index
    %1 = vector.load %arg2[%c0_1, %c0_2] : memref<128x64xf32, #tpu.memory_space<vmem>>, vector<128x64xf32>
    %cst = arith.constant dense<0.000000e+00> : vector<578x64xf32>
    %2 = tpu.matmul %0, %1, %cst {dimension_numbers = #tpu.dot_dimension_numbers<[1], [0], [0], [1], [0, 0, 1, 1], [], []>} : vector<578x128xf32>, vector<128x64xf32>, vector<578x64xf32> -> vector<578x64xf32>
    %c0_3 = arith.constant 0 : index
    %c0_4 = arith.constant 0 : index
    %3 = vector.load %arg3[%c0_3, %c0_4] : memref<578x64xf32, #tpu.memory_space<vmem>>, vector<578x64xf32>
    tpu.vector_store %arg3[%c0_3, %c0_4], %2 {strides = array<i32>} : memref<578x64xf32, #tpu.memory_space<vmem>>, vector<578x64xf32>,
    return
  }
  func.func @transform_0(%arg0: i32) -> (i32, i32) {
    %c0_i32 = arith.constant 0 : i32
    %c0_i32_0 = arith.constant 0 : i32
    return %arg0, %c0_i32 : i32, i32
  }
  func.func @transform_1(%arg0: i32) -> (i32, i32) {
    %c0_i32 = arith.constant 0 : i32
    %c0_i32_0 = arith.constant 0 : i32
    %c0_i32_1 = arith.constant 0 : i32
    return %c0_i32, %c0_i32_0 : i32, i32
  }
  func.func @transform_2(%arg0: i32) -> (i32, i32) {
    %c0_i32 = arith.constant 0 : i32
    %c0_i32_0 = arith.constant 0 : i32
    return %arg0, %c0_i32 : i32, i32
  }
}

module attributes {stable_mosaic.version = 11 : i64} {
  func.func @_bn_stats_kernel(%arg0: i32, %arg1: memref<256x128xf32, #tpu.memory_space<vmem>>, %arg2: memref<1x128xf32, #tpu.memory_space<vmem>>, %arg3: memref<1x128xf32, #tpu.memory_space<vmem>>) attributes {dimension_semantics = [#tpu.dimension_semantics<arbitrary>], iteration_bounds = array<i64: 1>, scalar_prefetch = 0 : i64, scratch_operands = 0 : i64, tpu.core_type = #tpu.core_type<tc>, window_params = [{transform_indices = @transform_0, window_bounds = array<i64: 256, 128>}, {pipeline_mode = #tpu.pipeline_mode<synchronous>, transform_indices = @transform_1, window_bounds = array<i64: 1, 128>}, {pipeline_mode = #tpu.pipeline_mode<synchronous>, transform_indices = @transform_2, window_bounds = array<i64: 1, 128>}]} {
    %c0_i32 = arith.constant 0 : i32
    %0 = arith.cmpi eq, %arg0, %c0_i32 : i32
    %1 = arith.extui %0 : i1 to i32
    %c0_i32_0 = arith.constant 0 : i32
    %2 = arith.cmpi ne, %1, %c0_i32_0 : i32
    scf.if %2 {
      %cst_11 = arith.constant 0.000000e+00 : f32
      %15 = vector.broadcast %cst_11 : f32 to vector<1x128xf32>
      %c0_12 = arith.constant 0 : index
      %c0_13 = arith.constant 0 : index
      %16 = vector.load %arg2[%c0_12, %c0_13] : memref<1x128xf32, #tpu.memory_space<vmem>>, vector<1x128xf32>
      tpu.vector_store %arg2[%c0_12, %c0_13], %15 {strides = array<i32>} : memref<1x128xf32, #tpu.memory_space<vmem>>, vector<1x128xf32>,
      %cst_14 = arith.constant 0.000000e+00 : f32
      %17 = vector.broadcast %cst_14 : f32 to vector<1x128xf32>
      %c0_15 = arith.constant 0 : index
      %c0_16 = arith.constant 0 : index
      %18 = vector.load %arg3[%c0_15, %c0_16] : memref<1x128xf32, #tpu.memory_space<vmem>>, vector<1x128xf32>
      tpu.vector_store %arg3[%c0_15, %c0_16], %17 {strides = array<i32>} : memref<1x128xf32, #tpu.memory_space<vmem>>, vector<1x128xf32>,
    } else {
    }
    %c0 = arith.constant 0 : index
    %c0_1 = arith.constant 0 : index
    %3 = vector.load %arg1[%c0, %c0_1] : memref<256x128xf32, #tpu.memory_space<vmem>>, vector<256x128xf32>
    %c0_2 = arith.constant 0 : index
    %c0_3 = arith.constant 0 : index
    %4 = vector.load %arg2[%c0_2, %c0_3] : memref<1x128xf32, #tpu.memory_space<vmem>>, vector<1x128xf32>
    %cst = arith.constant dense<0.000000e+00> : vector<128xf32>
    %5 = vector.multi_reduction <add>, %3, %cst [0] : vector<256x128xf32> to vector<128xf32>
    %6 = vector.shape_cast %5 : vector<128xf32> to vector<1x128xf32>
    %7 = arith.addf %4, %6 : vector<1x128xf32>
    %c0_4 = arith.constant 0 : index
    %c0_5 = arith.constant 0 : index
    %8 = vector.load %arg2[%c0_4, %c0_5] : memref<1x128xf32, #tpu.memory_space<vmem>>, vector<1x128xf32>
    tpu.vector_store %arg2[%c0_4, %c0_5], %7 {strides = array<i32>} : memref<1x128xf32, #tpu.memory_space<vmem>>, vector<1x128xf32>,
    %c0_6 = arith.constant 0 : index
    %c0_7 = arith.constant 0 : index
    %9 = vector.load %arg3[%c0_6, %c0_7] : memref<1x128xf32, #tpu.memory_space<vmem>>, vector<1x128xf32>
    %10 = arith.mulf %3, %3 : vector<256x128xf32>
    %cst_8 = arith.constant dense<0.000000e+00> : vector<128xf32>
    %11 = vector.multi_reduction <add>, %10, %cst_8 [0] : vector<256x128xf32> to vector<128xf32>
    %12 = vector.shape_cast %11 : vector<128xf32> to vector<1x128xf32>
    %13 = arith.addf %9, %12 : vector<1x128xf32>
    %c0_9 = arith.constant 0 : index
    %c0_10 = arith.constant 0 : index
    %14 = vector.load %arg3[%c0_9, %c0_10] : memref<1x128xf32, #tpu.memory_space<vmem>>, vector<1x128xf32>
    tpu.vector_store %arg3[%c0_9, %c0_10], %13 {strides = array<i32>} : memref<1x128xf32, #tpu.memory_space<vmem>>, vector<1x128xf32>,
    return
  }
  func.func @transform_0(%arg0: i32) -> (i32, i32) {
    %c0_i32 = arith.constant 0 : i32
    %c0_i32_0 = arith.constant 0 : i32
    return %arg0, %c0_i32 : i32, i32
  }
  func.func @transform_1(%arg0: i32) -> (i32, i32) {
    %c0_i32 = arith.constant 0 : i32
    %c0_i32_0 = arith.constant 0 : i32
    %c0_i32_1 = arith.constant 0 : i32
    return %c0_i32, %c0_i32_0 : i32, i32
  }
  func.func @transform_2(%arg0: i32) -> (i32, i32) {
    %c0_i32 = arith.constant 0 : i32
    %c0_i32_0 = arith.constant 0 : i32
    %c0_i32_1 = arith.constant 0 : i32
    return %c0_i32, %c0_i32_0 : i32, i32
  }
}

module attributes {stable_mosaic.version = 11 : i64} {
  func.func @_scale_shift_relu_kernel(%arg0: i32, %arg1: memref<256x128xf32, #tpu.memory_space<vmem>>, %arg2: memref<1x128xf32, #tpu.memory_space<vmem>>, %arg3: memref<1x128xf32, #tpu.memory_space<vmem>>, %arg4: memref<256x128xf32, #tpu.memory_space<vmem>>) attributes {dimension_semantics = [#tpu.dimension_semantics<parallel>], iteration_bounds = array<i64: 1>, scalar_prefetch = 0 : i64, scratch_operands = 0 : i64, tpu.core_type = #tpu.core_type<tc>, window_params = [{transform_indices = @transform_0, window_bounds = array<i64: 256, 128>}, {pipeline_mode = #tpu.pipeline_mode<synchronous>, transform_indices = @transform_1, window_bounds = array<i64: 1, 128>}, {pipeline_mode = #tpu.pipeline_mode<synchronous>, transform_indices = @transform_2, window_bounds = array<i64: 1, 128>}, {transform_indices = @transform_3, window_bounds = array<i64: 256, 128>}]} {
    %c0 = arith.constant 0 : index
    %c0_0 = arith.constant 0 : index
    %0 = vector.load %arg1[%c0, %c0_0] : memref<256x128xf32, #tpu.memory_space<vmem>>, vector<256x128xf32>
    %c0_1 = arith.constant 0 : index
    %c0_2 = arith.constant 0 : index
    %1 = vector.load %arg2[%c0_1, %c0_2] : memref<1x128xf32, #tpu.memory_space<vmem>>, vector<1x128xf32>
    %2 = vector.broadcast %1 : vector<1x128xf32> to vector<256x128xf32>
    %3 = arith.mulf %0, %2 : vector<256x128xf32>
    %c0_3 = arith.constant 0 : index
    %c0_4 = arith.constant 0 : index
    %4 = vector.load %arg3[%c0_3, %c0_4] : memref<1x128xf32, #tpu.memory_space<vmem>>, vector<1x128xf32>
    %5 = vector.broadcast %4 : vector<1x128xf32> to vector<256x128xf32>
    %6 = arith.addf %3, %5 : vector<256x128xf32>
    %cst = arith.constant 0.000000e+00 : f32
    %7 = vector.broadcast %cst : f32 to vector<256x128xf32>
    %8 = arith.maximumf %6, %7 : vector<256x128xf32>
    %c0_5 = arith.constant 0 : index
    %c0_6 = arith.constant 0 : index
    %9 = vector.load %arg4[%c0_5, %c0_6] : memref<256x128xf32, #tpu.memory_space<vmem>>, vector<256x128xf32>
    tpu.vector_store %arg4[%c0_5, %c0_6], %8 {strides = array<i32>} : memref<256x128xf32, #tpu.memory_space<vmem>>, vector<256x128xf32>,
    return
  }
  func.func @transform_0(%arg0: i32) -> (i32, i32) {
    %c0_i32 = arith.constant 0 : i32
    %c0_i32_0 = arith.constant 0 : i32
    return %arg0, %c0_i32 : i32, i32
  }
  func.func @transform_1(%arg0: i32) -> (i32, i32) {
    %c0_i32 = arith.constant 0 : i32
    %c0_i32_0 = arith.constant 0 : i32
    %c0_i32_1 = arith.constant 0 : i32
    return %c0_i32, %c0_i32_0 : i32, i32
  }
  func.func @transform_2(%arg0: i32) -> (i32, i32) {
    %c0_i32 = arith.constant 0 : i32
    %c0_i32_0 = arith.constant 0 : i32
    %c0_i32_1 = arith.constant 0 : i32
    return %c0_i32, %c0_i32_0 : i32, i32
  }
  func.func @transform_3(%arg0: i32) -> (i32, i32) {
    %c0_i32 = arith.constant 0 : i32
    %c0_i32_0 = arith.constant 0 : i32
    return %arg0, %c0_i32 : i32, i32
  }
}

module attributes {stable_mosaic.version = 11 : i64} {
  func.func @_matmul_kernel(%arg0: i32, %arg1: memref<1096x64xf32, #tpu.memory_space<vmem>>, %arg2: memref<64x32xf32, #tpu.memory_space<vmem>>, %arg3: memref<1096x32xf32, #tpu.memory_space<vmem>>) attributes {dimension_semantics = [#tpu.dimension_semantics<parallel>], iteration_bounds = array<i64: 2>, scalar_prefetch = 0 : i64, scratch_operands = 0 : i64, tpu.core_type = #tpu.core_type<tc>, window_params = [{transform_indices = @transform_0, window_bounds = array<i64: 1096, 64>}, {pipeline_mode = #tpu.pipeline_mode<synchronous>, transform_indices = @transform_1, window_bounds = array<i64: 64, 32>}, {transform_indices = @transform_2, window_bounds = array<i64: 1096, 32>}]} {
    %c0 = arith.constant 0 : index
    %c0_0 = arith.constant 0 : index
    %0 = vector.load %arg1[%c0, %c0_0] : memref<1096x64xf32, #tpu.memory_space<vmem>>, vector<1096x64xf32>
    %c0_1 = arith.constant 0 : index
    %c0_2 = arith.constant 0 : index
    %1 = vector.load %arg2[%c0_1, %c0_2] : memref<64x32xf32, #tpu.memory_space<vmem>>, vector<64x32xf32>
    %cst = arith.constant dense<0.000000e+00> : vector<1096x32xf32>
    %2 = tpu.matmul %0, %1, %cst {dimension_numbers = #tpu.dot_dimension_numbers<[1], [0], [0], [1], [0, 0, 1, 1], [], []>} : vector<1096x64xf32>, vector<64x32xf32>, vector<1096x32xf32> -> vector<1096x32xf32>
    %c0_3 = arith.constant 0 : index
    %c0_4 = arith.constant 0 : index
    %3 = vector.load %arg3[%c0_3, %c0_4] : memref<1096x32xf32, #tpu.memory_space<vmem>>, vector<1096x32xf32>
    tpu.vector_store %arg3[%c0_3, %c0_4], %2 {strides = array<i32>} : memref<1096x32xf32, #tpu.memory_space<vmem>>, vector<1096x32xf32>,
    return
  }
  func.func @transform_0(%arg0: i32) -> (i32, i32) {
    %c0_i32 = arith.constant 0 : i32
    %c0_i32_0 = arith.constant 0 : i32
    return %arg0, %c0_i32 : i32, i32
  }
  func.func @transform_1(%arg0: i32) -> (i32, i32) {
    %c0_i32 = arith.constant 0 : i32
    %c0_i32_0 = arith.constant 0 : i32
    %c0_i32_1 = arith.constant 0 : i32
    return %c0_i32, %c0_i32_0 : i32, i32
  }
  func.func @transform_2(%arg0: i32) -> (i32, i32) {
    %c0_i32 = arith.constant 0 : i32
    %c0_i32_0 = arith.constant 0 : i32
    return %arg0, %c0_i32 : i32, i32
  }
}

module attributes {stable_mosaic.version = 11 : i64} {
  func.func @_bn_stats_kernel(%arg0: i32, %arg1: memref<512x128xf32, #tpu.memory_space<vmem>>, %arg2: memref<1x128xf32, #tpu.memory_space<vmem>>, %arg3: memref<1x128xf32, #tpu.memory_space<vmem>>) attributes {dimension_semantics = [#tpu.dimension_semantics<arbitrary>], iteration_bounds = array<i64: 1>, scalar_prefetch = 0 : i64, scratch_operands = 0 : i64, tpu.core_type = #tpu.core_type<tc>, window_params = [{transform_indices = @transform_0, window_bounds = array<i64: 512, 128>}, {pipeline_mode = #tpu.pipeline_mode<synchronous>, transform_indices = @transform_1, window_bounds = array<i64: 1, 128>}, {pipeline_mode = #tpu.pipeline_mode<synchronous>, transform_indices = @transform_2, window_bounds = array<i64: 1, 128>}]} {
    %c0_i32 = arith.constant 0 : i32
    %0 = arith.cmpi eq, %arg0, %c0_i32 : i32
    %1 = arith.extui %0 : i1 to i32
    %c0_i32_0 = arith.constant 0 : i32
    %2 = arith.cmpi ne, %1, %c0_i32_0 : i32
    scf.if %2 {
      %cst_11 = arith.constant 0.000000e+00 : f32
      %15 = vector.broadcast %cst_11 : f32 to vector<1x128xf32>
      %c0_12 = arith.constant 0 : index
      %c0_13 = arith.constant 0 : index
      %16 = vector.load %arg2[%c0_12, %c0_13] : memref<1x128xf32, #tpu.memory_space<vmem>>, vector<1x128xf32>
      tpu.vector_store %arg2[%c0_12, %c0_13], %15 {strides = array<i32>} : memref<1x128xf32, #tpu.memory_space<vmem>>, vector<1x128xf32>,
      %cst_14 = arith.constant 0.000000e+00 : f32
      %17 = vector.broadcast %cst_14 : f32 to vector<1x128xf32>
      %c0_15 = arith.constant 0 : index
      %c0_16 = arith.constant 0 : index
      %18 = vector.load %arg3[%c0_15, %c0_16] : memref<1x128xf32, #tpu.memory_space<vmem>>, vector<1x128xf32>
      tpu.vector_store %arg3[%c0_15, %c0_16], %17 {strides = array<i32>} : memref<1x128xf32, #tpu.memory_space<vmem>>, vector<1x128xf32>,
    } else {
    }
    %c0 = arith.constant 0 : index
    %c0_1 = arith.constant 0 : index
    %3 = vector.load %arg1[%c0, %c0_1] : memref<512x128xf32, #tpu.memory_space<vmem>>, vector<512x128xf32>
    %c0_2 = arith.constant 0 : index
    %c0_3 = arith.constant 0 : index
    %4 = vector.load %arg2[%c0_2, %c0_3] : memref<1x128xf32, #tpu.memory_space<vmem>>, vector<1x128xf32>
    %cst = arith.constant dense<0.000000e+00> : vector<128xf32>
    %5 = vector.multi_reduction <add>, %3, %cst [0] : vector<512x128xf32> to vector<128xf32>
    %6 = vector.shape_cast %5 : vector<128xf32> to vector<1x128xf32>
    %7 = arith.addf %4, %6 : vector<1x128xf32>
    %c0_4 = arith.constant 0 : index
    %c0_5 = arith.constant 0 : index
    %8 = vector.load %arg2[%c0_4, %c0_5] : memref<1x128xf32, #tpu.memory_space<vmem>>, vector<1x128xf32>
    tpu.vector_store %arg2[%c0_4, %c0_5], %7 {strides = array<i32>} : memref<1x128xf32, #tpu.memory_space<vmem>>, vector<1x128xf32>,
    %c0_6 = arith.constant 0 : index
    %c0_7 = arith.constant 0 : index
    %9 = vector.load %arg3[%c0_6, %c0_7] : memref<1x128xf32, #tpu.memory_space<vmem>>, vector<1x128xf32>
    %10 = arith.mulf %3, %3 : vector<512x128xf32>
    %cst_8 = arith.constant dense<0.000000e+00> : vector<128xf32>
    %11 = vector.multi_reduction <add>, %10, %cst_8 [0] : vector<512x128xf32> to vector<128xf32>
    %12 = vector.shape_cast %11 : vector<128xf32> to vector<1x128xf32>
    %13 = arith.addf %9, %12 : vector<1x128xf32>
    %c0_9 = arith.constant 0 : index
    %c0_10 = arith.constant 0 : index
    %14 = vector.load %arg3[%c0_9, %c0_10] : memref<1x128xf32, #tpu.memory_space<vmem>>, vector<1x128xf32>
    tpu.vector_store %arg3[%c0_9, %c0_10], %13 {strides = array<i32>} : memref<1x128xf32, #tpu.memory_space<vmem>>, vector<1x128xf32>,
    return
  }
  func.func @transform_0(%arg0: i32) -> (i32, i32) {
    %c0_i32 = arith.constant 0 : i32
    %c0_i32_0 = arith.constant 0 : i32
    return %arg0, %c0_i32 : i32, i32
  }
  func.func @transform_1(%arg0: i32) -> (i32, i32) {
    %c0_i32 = arith.constant 0 : i32
    %c0_i32_0 = arith.constant 0 : i32
    %c0_i32_1 = arith.constant 0 : i32
    return %c0_i32, %c0_i32_0 : i32, i32
  }
  func.func @transform_2(%arg0: i32) -> (i32, i32) {
    %c0_i32 = arith.constant 0 : i32
    %c0_i32_0 = arith.constant 0 : i32
    %c0_i32_1 = arith.constant 0 : i32
    return %c0_i32, %c0_i32_0 : i32, i32
  }
}

module attributes {stable_mosaic.version = 11 : i64} {
  func.func @_scale_shift_relu_kernel(%arg0: i32, %arg1: memref<512x128xf32, #tpu.memory_space<vmem>>, %arg2: memref<1x128xf32, #tpu.memory_space<vmem>>, %arg3: memref<1x128xf32, #tpu.memory_space<vmem>>, %arg4: memref<512x128xf32, #tpu.memory_space<vmem>>) attributes {dimension_semantics = [#tpu.dimension_semantics<parallel>], iteration_bounds = array<i64: 1>, scalar_prefetch = 0 : i64, scratch_operands = 0 : i64, tpu.core_type = #tpu.core_type<tc>, window_params = [{transform_indices = @transform_0, window_bounds = array<i64: 512, 128>}, {pipeline_mode = #tpu.pipeline_mode<synchronous>, transform_indices = @transform_1, window_bounds = array<i64: 1, 128>}, {pipeline_mode = #tpu.pipeline_mode<synchronous>, transform_indices = @transform_2, window_bounds = array<i64: 1, 128>}, {transform_indices = @transform_3, window_bounds = array<i64: 512, 128>}]} {
    %c0 = arith.constant 0 : index
    %c0_0 = arith.constant 0 : index
    %0 = vector.load %arg1[%c0, %c0_0] : memref<512x128xf32, #tpu.memory_space<vmem>>, vector<512x128xf32>
    %c0_1 = arith.constant 0 : index
    %c0_2 = arith.constant 0 : index
    %1 = vector.load %arg2[%c0_1, %c0_2] : memref<1x128xf32, #tpu.memory_space<vmem>>, vector<1x128xf32>
    %2 = vector.broadcast %1 : vector<1x128xf32> to vector<512x128xf32>
    %3 = arith.mulf %0, %2 : vector<512x128xf32>
    %c0_3 = arith.constant 0 : index
    %c0_4 = arith.constant 0 : index
    %4 = vector.load %arg3[%c0_3, %c0_4] : memref<1x128xf32, #tpu.memory_space<vmem>>, vector<1x128xf32>
    %5 = vector.broadcast %4 : vector<1x128xf32> to vector<512x128xf32>
    %6 = arith.addf %3, %5 : vector<512x128xf32>
    %cst = arith.constant 0.000000e+00 : f32
    %7 = vector.broadcast %cst : f32 to vector<512x128xf32>
    %8 = arith.maximumf %6, %7 : vector<512x128xf32>
    %c0_5 = arith.constant 0 : index
    %c0_6 = arith.constant 0 : index
    %9 = vector.load %arg4[%c0_5, %c0_6] : memref<512x128xf32, #tpu.memory_space<vmem>>, vector<512x128xf32>
    tpu.vector_store %arg4[%c0_5, %c0_6], %8 {strides = array<i32>} : memref<512x128xf32, #tpu.memory_space<vmem>>, vector<512x128xf32>,
    return
  }
  func.func @transform_0(%arg0: i32) -> (i32, i32) {
    %c0_i32 = arith.constant 0 : i32
    %c0_i32_0 = arith.constant 0 : i32
    return %arg0, %c0_i32 : i32, i32
  }
  func.func @transform_1(%arg0: i32) -> (i32, i32) {
    %c0_i32 = arith.constant 0 : i32
    %c0_i32_0 = arith.constant 0 : i32
    %c0_i32_1 = arith.constant 0 : i32
    return %c0_i32, %c0_i32_0 : i32, i32
  }
  func.func @transform_2(%arg0: i32) -> (i32, i32) {
    %c0_i32 = arith.constant 0 : i32
    %c0_i32_0 = arith.constant 0 : i32
    %c0_i32_1 = arith.constant 0 : i32
    return %c0_i32, %c0_i32_0 : i32, i32
  }
  func.func @transform_3(%arg0: i32) -> (i32, i32) {
    %c0_i32 = arith.constant 0 : i32
    %c0_i32_0 = arith.constant 0 : i32
    return %arg0, %c0_i32 : i32, i32
  }
}

module attributes {stable_mosaic.version = 11 : i64} {
  func.func @_matmul_kernel(%arg0: i32, %arg1: memref<1696x32xf32, #tpu.memory_space<vmem>>, %arg2: memref<32x12xf32, #tpu.memory_space<vmem>>, %arg3: memref<1696x12xf32, #tpu.memory_space<vmem>>) attributes {dimension_semantics = [#tpu.dimension_semantics<parallel>], iteration_bounds = array<i64: 5>, scalar_prefetch = 0 : i64, scratch_operands = 0 : i64, tpu.core_type = #tpu.core_type<tc>, window_params = [{transform_indices = @transform_0, window_bounds = array<i64: 1696, 32>}, {pipeline_mode = #tpu.pipeline_mode<synchronous>, transform_indices = @transform_1, window_bounds = array<i64: 32, 12>}, {transform_indices = @transform_2, window_bounds = array<i64: 1696, 12>}]} {
    %c0 = arith.constant 0 : index
    %c0_0 = arith.constant 0 : index
    %0 = vector.load %arg1[%c0, %c0_0] : memref<1696x32xf32, #tpu.memory_space<vmem>>, vector<1696x32xf32>
    %c0_1 = arith.constant 0 : index
    %c0_2 = arith.constant 0 : index
    %1 = vector.load %arg2[%c0_1, %c0_2] : memref<32x12xf32, #tpu.memory_space<vmem>>, vector<32x12xf32>
    %cst = arith.constant dense<0.000000e+00> : vector<1696x12xf32>
    %2 = tpu.matmul %0, %1, %cst {dimension_numbers = #tpu.dot_dimension_numbers<[1], [0], [0], [1], [0, 0, 1, 1], [], []>} : vector<1696x32xf32>, vector<32x12xf32>, vector<1696x12xf32> -> vector<1696x12xf32>
    %c0_3 = arith.constant 0 : index
    %c0_4 = arith.constant 0 : index
    %3 = vector.load %arg3[%c0_3, %c0_4] : memref<1696x12xf32, #tpu.memory_space<vmem>>, vector<1696x12xf32>
    tpu.vector_store %arg3[%c0_3, %c0_4], %2 {strides = array<i32>} : memref<1696x12xf32, #tpu.memory_space<vmem>>, vector<1696x12xf32>,
    return
  }
  func.func @transform_0(%arg0: i32) -> (i32, i32) {
    %c0_i32 = arith.constant 0 : i32
    %c0_i32_0 = arith.constant 0 : i32
    return %arg0, %c0_i32 : i32, i32
  }
  func.func @transform_1(%arg0: i32) -> (i32, i32) {
    %c0_i32 = arith.constant 0 : i32
    %c0_i32_0 = arith.constant 0 : i32
    %c0_i32_1 = arith.constant 0 : i32
    return %c0_i32, %c0_i32_0 : i32, i32
  }
  func.func @transform_2(%arg0: i32) -> (i32, i32) {
    %c0_i32 = arith.constant 0 : i32
    %c0_i32_0 = arith.constant 0 : i32
    return %arg0, %c0_i32 : i32, i32
  }
}

module attributes {stable_mosaic.version = 11 : i64} {
  func.func @_tanh_kernel(%arg0: i32, %arg1: memref<768x128xf32, #tpu.memory_space<vmem>>, %arg2: memref<768x128xf32, #tpu.memory_space<vmem>>) attributes {dimension_semantics = [#tpu.dimension_semantics<parallel>], iteration_bounds = array<i64: 1>, scalar_prefetch = 0 : i64, scratch_operands = 0 : i64, tpu.core_type = #tpu.core_type<tc>, window_params = [{transform_indices = @transform_0, window_bounds = array<i64: 768, 128>}, {transform_indices = @transform_1, window_bounds = array<i64: 768, 128>}]} {
    %c0 = arith.constant 0 : index
    %c0_0 = arith.constant 0 : index
    %0 = vector.load %arg1[%c0, %c0_0] : memref<768x128xf32, #tpu.memory_space<vmem>>, vector<768x128xf32>
    %1 = math.tanh %0 : vector<768x128xf32>
    %c0_1 = arith.constant 0 : index
    %c0_2 = arith.constant 0 : index
    %2 = vector.load %arg2[%c0_1, %c0_2] : memref<768x128xf32, #tpu.memory_space<vmem>>, vector<768x128xf32>
    tpu.vector_store %arg2[%c0_1, %c0_2], %1 {strides = array<i32>} : memref<768x128xf32, #tpu.memory_space<vmem>>, vector<768x128xf32>,
    return
  }
  func.func @transform_0(%arg0: i32) -> (i32, i32) {
    %c0_i32 = arith.constant 0 : i32
    %c0_i32_0 = arith.constant 0 : i32
    return %arg0, %c0_i32 : i32, i32
  }
  func.func @transform_1(%arg0: i32) -> (i32, i32) {
    %c0_i32 = arith.constant 0 : i32
    %c0_i32_0 = arith.constant 0 : i32
    return %arg0, %c0_i32 : i32, i32
  }
}

</mosaic_0001>

<bundles_post_ra>
// kernel: generator128.18
= control target key start
LH: loop header
LB: loop body
LE: loop exit
PB: predicated region body
PF: predicated region fallthrough
CT: control target
= control target key end

     0   :  { %8 = vsyncpa [#allocation3], 0  ;;  %s236_s0 = inlined_call_operand.hbm [shape: f32[32,128], index: 0, kind: input, shape index: {}]   ;;  %s237_s1 = inlined_call_operand.hbm [shape: f32[1,128], index: 1, kind: output, shape index: {0}]   ;;  %s238_s2 = inlined_call_operand.hbm [shape: f32[1,128], index: 2, kind: output, shape index: {1}]  }
   0x1   :  { %9 = vsyncpa [#allocation4], 0 }
   0x2   :  { %10 = vsyncpa [#allocation7], 0  ;;  %s171_s9 = smov [#allocation2]   ;;  %s99_s13 = scalar_lea.hbm %s236_s0, 512 }
   0x3   :  { %s16_s10 = sshll.u32 %s171_s9, 4  ;;  %p100_p0 = scmp.ne.s32.totalorder %s236_s0, %s99_s13  ;;  %s17_s10 = int_to_ptr.vmem [resolvable:$true] %s16_s10 }
   0x4   :  { %p103_p1 = scmp.lt.u32.totalorder %s99_s13, %s236_s0 }
   0x6   :  { %p105_p2 = pnand %p103_p1, %p100_p0 }
   0x8   :  { %108 = shalt.err (!%p105_p2)
}
   0x9   :  { %s109_s18 = scalar_lea.vmem %s17_s10, 512  ;;  %p114_p4 = scmp.lt.s32.totalorder %s17_s10, %s17_s10 }
   0xa   :  { %p110_p3 = scmp.ne.s32.totalorder %s17_s10, %s109_s18  ;;  %p115_p5 = scmp.lt.s32.totalorder %s109_s18, %s109_s18 }
   0xc   :  { %p116_p6 = por %p115_p5, %p114_p4 }
   0xe   :  { %p117_p7 = pnand %p116_p6, %p110_p3 }
  0x10   :  { %120 = shalt.err (!%p117_p7)
}
  0x11   :  { %s172_s19 = smov 128   ;;  %s173_s20 = smov 8  }
  0x12   :  { %22 = dma.hbm_to_vmem [thread:$0]  %s236_s0, 512, %s17_s10, [#allocation3], %s172_s19, %s172_s19, %s173_s20  }
  0x13   :  { %165 = dma.done.wait [#allocation3], 512  }
  0x14   :  { %166 = vsyncadd [#allocation3], 4294966784  ;;  %v174_v0 = vmov 0.0   ;;  %v32_v1 = vld [vmem:[#allocation2] sm:$0xff]  ;;  %v33_v2 = vld [vmem:[#allocation2 + $0x8] sm:$0xff]  ;;  %s175_s0 = smov [#allocation5]  }
  0x15   :  { %30 = vst [vmem:[#allocation5] sm:$0x1] %v174_v0  ;;  %31 = vst [vmem:[#allocation6] sm:$0x1] %v174_v0  ;;  %v34_v3 = vld [vmem:[#allocation2 + $0x10] sm:$0xff]  ;;  %v35_v4 = vld [vmem:[#allocation2 + $0x18] sm:$0xff]  ;;  %v37_v5 = vadd.f32 %v33_v2, %v32_v1  ;;  %v49_v6 = vmul.f32 %v32_v1, %v32_v1  ;;  %v50_v7 = vmul.f32 %v33_v2, %v33_v2 }
  0x16   :  { %v51_v8 = vmul.f32 %v34_v3, %v34_v3  ;;  %v52_v10 = vmul.f32 %v35_v4, %v35_v4  ;;  %s70_s23 = sshll.u32 %s175_s0, 4  ;;  %s176_s24 = smov [#allocation6]   ;;  %s71_s23 = int_to_ptr.vmem [resolvable:$true] %s70_s23 }
  0x17   :  { %v38_v9 = vadd.f32 %v37_v5, %v34_v3  ;;  %v53_v11 = vadd.f32 %v50_v7, %v49_v6  ;;  %s80_s25 = sshll.u32 %s176_s24, 4  ;;  %s121_s26 = scalar_lea.vmem %s71_s23, 16  ;;  %s204_s25 = int_to_ptr.vmem [resolvable:$true] %s80_s25 }
  0x18   :  { %p122_p8 = scmp.ne.s32.totalorder %s71_s23, %s121_s26  ;;  %s125_s27 = scalar_lea.vmem %s71_s23, 32 }
  0x19   :  { %v39_v12 = vadd.f32 %v38_v9, %v35_v4  ;;  %v54_v13 = vadd.f32 %v53_v11, %v51_v8  ;;  %p126_p9 = scmp.lt.s32.totalorder %s71_s23, %s71_s23  ;;  %p127_p10 = scmp.lt.s32.totalorder %s125_s27, %s121_s26 }
  0x1b   :  { %v40_v14 = vrot.slane %v39_v12, 4  ;;  %v55_v15 = vadd.f32 %v54_v13, %v52_v10  ;;  %p128_p11 = por %p127_p10, %p126_p9 }
  0x1c   :  { %v36_v24 = vld [vmem:[#allocation5] sm:$0x1]  ;;  %v48_v27 = vld [vmem:[#allocation6] sm:$0x1] }
  0x1d   :  { %v41_v16 = vadd.f32 %v40_v14, %v39_v12  ;;  %v56_v17 = vrot.slane %v55_v15, 4  ;;  %p129_p12 = pnand %p128_p11, %p122_p8 }
  0x1f   :  { %v42_v18 = vrot.slane %v41_v16, 2  ;;  %v57_v19 = vadd.f32 %v56_v17, %v55_v15 }
  0x21   :  { %v43_v20 = vadd.f32 %v42_v18, %v41_v16  ;;  %v58_v21 = vrot.slane %v57_v19, 2 }
  0x23   :  { %v44_v22 = vrot.slane %v43_v20, 1  ;;  %v59_v23 = vadd.f32 %v58_v21, %v57_v19 }
  0x25   :  { %v45_v25 = vadd.f32 %v44_v22, %v43_v20  ;;  %v60_v26 = vrot.slane %v59_v23, 1 }
  0x27   :  { %v46_v28 = vadd.f32 %v45_v25, %v36_v24  ;;  %v61_v29 = vadd.f32 %v60_v26, %v59_v23 }
  0x29   :  { %47 = vst [vmem:[#allocation5] sm:$0x1] %v46_v28  ;;  %v62_v30 = vadd.f32 %v61_v29, %v48_v27 }
  0x2a   :  { %132 = shalt.err (!%p129_p12)
}
  0x2b   :  { %s133_s30 = scalar_lea.hbm %s237_s1, 16 }
  0x2c   :  { %p134_p13 = scmp.ne.s32.totalorder %s237_s1, %s133_s30  ;;  %p137_p0 = scmp.lt.u32.totalorder %s133_s30, %s237_s1 }
  0x2e   :  { %p139_p1 = pnand %p137_p0, %p134_p13 }
  0x30   :  { %142 = shalt.err (!%p139_p1)
}
  0x31   :  { %73 = dma.vmem_to_hbm [thread:$0]  %s71_s23, 16, %s237_s1, [#allocation4]   ;;  %63 = vst [vmem:[#allocation6] sm:$0x1] %v62_v30 }
  0x32   :  { %s143_s9 = scalar_lea.vmem %s204_s25, 16  ;;  %s147_s10 = scalar_lea.vmem %s204_s25, 32 }
  0x33   :  { %p144_p2 = scmp.ne.s32.totalorder %s204_s25, %s143_s9  ;;  %p148_p3 = scmp.lt.s32.totalorder %s204_s25, %s204_s25 }
  0x34   :  { %p149_p4 = scmp.lt.s32.totalorder %s147_s10, %s143_s9 }
  0x36   :  { %p150_p5 = por %p149_p4, %p148_p3 }
  0x38   :  { %p151_p6 = pnand %p150_p5, %p144_p2 }
  0x3a   :  { %154 = shalt.err (!%p151_p6)
}
  0x3b   :  { %s155_s13 = scalar_lea.hbm %s238_s2, 16 }
  0x3c   :  { %p156_p7 = scmp.ne.s32.totalorder %s238_s2, %s155_s13  ;;  %p159_p8 = scmp.lt.u32.totalorder %s155_s13, %s238_s2 }
  0x3e   :  { %p161_p9 = pnand %p159_p8, %p156_p7 }
  0x40   :  { %164 = shalt.err (!%p161_p9)
}
  0x41   :  { %83 = dma.vmem_to_hbm [thread:$0]  %s204_s25, 16, %s238_s2, [#allocation7]  }
  0x42   :  { %167 = dma.done.wait [#allocation4], 16  }
  0x43   :  { %168 = vsyncadd [#allocation4], 4294967280 }
  0x44   :  { %169 = dma.done.wait [#allocation7], 16  }
  0x45   :  { %170 = vsyncadd [#allocation7], 4294967280 }
  0x46   :  { %90 = vsyncpa [#allocation3], 1 }
  0x47   :  { %91 = vsyncpa [#allocation4], 1 }
  0x48   :  { %92 = vsyncpa [#allocation7], 1 }

// kernel: generator128.17
= control target key start
LH: loop header
LB: loop body
LE: loop exit
PB: predicated region body
PF: predicated region fallthrough
CT: control target
= control target key end

     0   :  { %7 = vsyncpa [#allocation3], 0  ;;  %s961_s0 = inlined_call_operand.hbm [shape: f32[2,16], index: 0, kind: input, shape index: {}]   ;;  %s962_s1 = inlined_call_operand.hbm [shape: f32[16,2048], index: 1, kind: input, shape index: {}]   ;;  %s963_s2 = inlined_call_operand.hbm [shape: f32[2,2048], index: 2, kind: output, shape index: {}]  }
   0x1   :  { %8 = vsyncpa [#allocation6], 0 }
   0x2   :  { %9 = vsyncpa [#allocation4], 0  ;;  %s870_s9 = smov [#allocation2]   ;;  %s871_s11 = smov [#allocation5]  }
   0x3   :  { %s16_s10 = sshll.u32 %s870_s9, 4  ;;  %s25_s12 = sshll.u32 %s871_s11, 4  ;;  %s17_s10 = int_to_ptr.vmem [resolvable:$true] %s16_s10  ;;  %s892_s12 = int_to_ptr.vmem [resolvable:$true] %s25_s12 }
   0x4   :  { %s798_s15 = scalar_lea.hbm %s961_s0, 32 }
   0x5   :  { %p799_p0 = scmp.ne.s32.totalorder %s961_s0, %s798_s15  ;;  %p802_p1 = scmp.lt.u32.totalorder %s798_s15, %s961_s0 }
   0x7   :  { %p804_p2 = pnand %p802_p1, %p799_p0 }
   0x9   :  { %807 = shalt.err (!%p804_p2)
}
   0xa   :  { %s808_s20 = scalar_lea.vmem %s17_s10, 32  ;;  %p813_p4 = scmp.lt.s32.totalorder %s17_s10, %s17_s10 }
   0xb   :  { %p809_p3 = scmp.ne.s32.totalorder %s17_s10, %s808_s20  ;;  %p814_p5 = scmp.lt.s32.totalorder %s808_s20, %s808_s20 }
   0xd   :  { %p815_p6 = por %p814_p5, %p813_p4 }
   0xf   :  { %p816_p7 = pnand %p815_p6, %p809_p3 }
  0x11   :  { %819 = shalt.err (!%p816_p7)
}
  0x12   :  { %19 = dma.hbm_to_vmem [thread:$0]  %s961_s0, 32, %s17_s10, [#allocation3]  }
  0x13   :  { %s820_s25 = scalar_lea.hbm %s962_s1, 4096 }
  0x14   :  { %p821_p8 = scmp.ne.s32.totalorder %s962_s1, %s820_s25  ;;  %p824_p9 = scmp.lt.u32.totalorder %s820_s25, %s962_s1 }
  0x16   :  { %p826_p10 = pnand %p824_p9, %p821_p8 }
  0x18   :  { %829 = shalt.err (!%p826_p10)
}
  0x19   :  { %s830_s30 = scalar_lea.vmem %s892_s12, 4096  ;;  %p835_p12 = scmp.lt.s32.totalorder %s892_s12, %s892_s12 }
  0x1a   :  { %p831_p11 = scmp.ne.s32.totalorder %s892_s12, %s830_s30  ;;  %p836_p13 = scmp.lt.s32.totalorder %s830_s30, %s830_s30 }
  0x1c   :  { %p837_p0 = por %p836_p13, %p835_p12 }
  0x1e   :  { %p838_p1 = pnand %p837_p0, %p831_p11 }
  0x20   :  { %841 = shalt.err (!%p838_p1)
}
  0x21   :  { %s872_s0 = smov 2048   ;;  %s873_s3 = smov 128  }
  0x22   :  { %31 = dma.hbm_to_vmem [thread:$0]  %s962_s1, 4096, %s892_s12, [#allocation6], %s872_s0, %s872_s0, %s873_s3  }
  0x23   :  { %864 = dma.done.wait [#allocation3], 32  }
  0x24   :  { %865 = vsyncadd [#allocation3], 4294967264 }
  0x25   :  { %866 = dma.done.wait [#allocation6], 4096  }
  0x26   :  { %867 = vsyncadd [#allocation6], 4294963200  ;;  %v874_v0 = vmov 0.0   ;;  %v40_v1 = vld [vmem:[#allocation5 + $0x8] sm:$0xff]  ;;  %v42_v3 = vld [vmem:[#allocation5 + $0x18] sm:$0xff]  ;;  %vm71_vm0 = vcmask 130048   ;;  %v664_v52 = vlaneseq }
  0x27   :  { %139 = vmatprep.mubr.f32.mxu0 %v874_v0  ;;  %210 = vmatprep.mubr.f32.mxu1 %v874_v0  ;;  %v56_v2 = vld [vmem:[#allocation5 + $0x88] sm:$0xff]  ;;  %v58_v5 = vld [vmem:[#allocation5 + $0x98] sm:$0xff]  ;;  %v39_v6 = vld [vmem:[#allocation5] sm:$0xff]  ;;  %v875_v50 = vmov 1983009808   ;;  %s876_s1 = smov [#allocation7]  }
  0x28   :  { %v759_v4 = vpack.c.bf16 %v56_v2, %v40_v1  ;;  %v55_v7 = vld [vmem:[#allocation5 + $0x80] sm:$0xff]  ;;  %v763_v8 = vpack.c.bf16 %v58_v5, %v42_v3  ;;  %v41_v10 = vld [vmem:[#allocation5 + $0x10] sm:$0xff]  ;;  %v925_v12 = vld [vmem:[#allocation2] sm:$0x3]  ;;  %v662_v51 = vunpack.c.l.s4 %v875_v50  ;;  %v665_v54 = vshrl.u32 %v664_v52, 7  ;;  %s741_s6 = sshll.u32 %s876_s1, 4  ;;  %s742_s6 = int_to_ptr.vmem [resolvable:$true] %s741_s6 }
  0x29   :  { %v761_v9 = vpack.c.bf16 %v55_v7, %v39_v6  ;;  %v57_v11 = vld [vmem:[#allocation5 + $0x90] sm:$0xff]  ;;  %v44_v14 = vld [vmem:[#allocation5 + $0x28] sm:$0xff]  ;;  %v46_v16 = vld [vmem:[#allocation5 + $0x38] sm:$0xff]  ;;  %s842_s7 = scalar_lea.vmem %s742_s6, 512  ;;  %p847_p3 = scmp.lt.s32.totalorder %s742_s6, %s742_s6 }
  0x2a   :  { %760 = vmatprep.subr.bf16.mxu0 %v759_v4  ;;  %v765_v13 = vpack.c.bf16 %v57_v11, %v41_v10  ;;  %v60_v15 = vld [vmem:[#allocation5 + $0xa8] sm:$0xff]  ;;  %764 = vmatprep.subr.bf16.mxu1 %v763_v8  ;;  %v62_v18 = vld [vmem:[#allocation5 + $0xb8] sm:$0xff]  ;;  %v43_v19 = vld [vmem:[#allocation5 + $0x20] sm:$0xff]  ;;  %v663_v53 = vunpack.c.0.s8 %v662_v51  ;;  %p843_p2 = scmp.ne.s32.totalorder %s742_s6, %s842_s7  ;;  %p848_p4 = scmp.lt.s32.totalorder %s842_s7, %s842_s7 }
  0x2b   :  { %762 = vmatpush1.bf16.msra.mxu0 %v761_v9  ;;  %v767_v17 = vpack.c.bf16 %v60_v15, %v44_v14  ;;  %v59_v20 = vld [vmem:[#allocation5 + $0xa0] sm:$0xff]  ;;  %v771_v21 = vpack.c.bf16 %v62_v18, %v46_v16  ;;  %v45_v23 = vld [vmem:[#allocation5 + $0x30] sm:$0xff]  ;;  %v48_v25 = vld [vmem:[#allocation5 + $0x48] sm:$0xff] }
  0x2c   :  { %766 = vmatpush1.bf16.msra.mxu1 %v765_v13  ;;  %v769_v22 = vpack.c.bf16 %v59_v20, %v43_v19  ;;  %v61_v24 = vld [vmem:[#allocation5 + $0xb0] sm:$0xff]  ;;  %v64_v27 = vld [vmem:[#allocation5 + $0xc8] sm:$0xff]  ;;  %v50_v28 = vld [vmem:[#allocation5 + $0x58] sm:$0xff]  ;;  %v666_v56 = vsub.s32 %v663_v53, %v665_v54  ;;  %p849_p5 = por %p848_p4, %p847_p3 }
  0x2d   :  { %768 = vmatprep.subr.bf16.mxu0 %v767_v17  ;;  %v773_v26 = vpack.c.bf16 %v61_v24, %v45_v23  ;;  %v66_v29 = vld [vmem:[#allocation5 + $0xd8] sm:$0xff]  ;;  %772 = vmatprep.subr.bf16.mxu1 %v771_v21  ;;  %v775_v30 = vpack.c.bf16 %v64_v27, %v48_v25  ;;  %v47_v32 = vld [vmem:[#allocation5 + $0x40] sm:$0xff]  ;;  %v49_v34 = vld [vmem:[#allocation5 + $0x50] sm:$0xff] }
  0x2e   :  { %751 = vmatmul.mubr.msk.f32.vlgmr.msra.gmra.mrb[0].mxu0 %vm71_vm0, %v925_v12  ;;  %v779_v31 = vpack.c.bf16 %v66_v29, %v50_v28  ;;  %v63_v33 = vld [vmem:[#allocation5 + $0xc0] sm:$0xff]  ;;  %v65_v36 = vld [vmem:[#allocation5 + $0xd0] sm:$0xff]  ;;  %v52_v37 = vld [vmem:[#allocation5 + $0x68] sm:$0xff]  ;;  %p850_p6 = pnand %p849_p5, %p843_p2 }
  0x2f   :  { %752 = vmatmul.mubr.msk.f32.vlgmr.msra.gmra.mrb[0].mxu1 %vm71_vm0, %v925_v12  ;;  %770 = vmatpush1.bf16.msra.mxu0 %v769_v22  ;;  %v777_v35 = vpack.c.bf16 %v63_v33, %v47_v32  ;;  %v68_v38 = vld [vmem:[#allocation5 + $0xe8] sm:$0xff]  ;;  %v781_v39 = vpack.c.bf16 %v65_v36, %v49_v34  ;;  %v54_v40 = vld [vmem:[#allocation5 + $0x78] sm:$0xff]  ;;  %v51_v42 = vld [vmem:[#allocation5 + $0x60] sm:$0xff] }
  0x30   :  { %774 = vmatpush1.bf16.msra.mxu1 %v773_v26  ;;  %281 = vmatprep.mubr.f32.mxu0 %v874_v0  ;;  %v70_v41 = vld [vmem:[#allocation5 + $0xf8] sm:$0xff]  ;;  %v783_v43 = vpack.c.bf16 %v68_v38, %v52_v37  ;;  %v67_v44 = vld [vmem:[#allocation5 + $0xe0] sm:$0xff]  ;;  %v53_v45 = vld [vmem:[#allocation5 + $0x70] sm:$0xff] }
  0x31   :  { %352 = vmatprep.mubr.f32.mxu1 %v874_v0  ;;  %776 = vmatprep.subr.bf16.mxu0 %v775_v30  ;;  %v69_v46 = vld [vmem:[#allocation5 + $0xf0] sm:$0xff]  ;;  %v787_v47 = vpack.c.bf16 %v70_v41, %v54_v40  ;;  %v785_v48 = vpack.c.bf16 %v67_v44, %v51_v42 }
  0x32   :  { %753 = vmatmul.mubr.msk.f32.vlgmr.msra.gmra.mrb[2].mxu0 %vm71_vm0, %v925_v12  ;;  %780 = vmatprep.subr.bf16.mxu1 %v779_v31  ;;  %v789_v49 = vpack.c.bf16 %v69_v46, %v53_v45 }
  0x33   :  { %754 = vmatmul.mubr.msk.f32.vlgmr.msra.gmra.mrb[2].mxu1 %vm71_vm0, %v925_v12  ;;  %778 = vmatpush1.bf16.msra.mxu0 %v777_v35 }
  0x34   :  { %782 = vmatpush1.bf16.msra.mxu1 %v781_v39  ;;  %423 = vmatprep.mubr.f32.mxu0 %v874_v0 }
  0x35   :  { %494 = vmatprep.mubr.f32.mxu1 %v874_v0  ;;  %784 = vmatprep.subr.bf16.mxu0 %v783_v43 }
  0x36   :  { %755 = vmatmul.mubr.msk.f32.vlgmr.msra.gmra.mrb[4].mxu0 %vm71_vm0, %v925_v12  ;;  %788 = vmatprep.subr.bf16.mxu1 %v787_v47 }
  0x37   :  { %756 = vmatmul.mubr.msk.f32.vlgmr.msra.gmra.mrb[4].mxu1 %vm71_vm0, %v925_v12  ;;  %786 = vmatpush1.bf16.msra.mxu0 %v785_v48 }
  0x38   :  { %790 = vmatpush1.bf16.msra.mxu1 %v789_v49  ;;  %565 = vmatprep.mubr.f32.mxu0 %v874_v0 }
  0x39   :  { %636 = vmatprep.mubr.f32.mxu1 %v874_v0 }
  0x3a   :  { %757 = vmatmul.mubr.msk.f32.vlgmr.msra.gmra.mrb[6].mxu0 %vm71_vm0, %v925_v12 }
  0x3b   :  { %758 = vmatmul.mubr.msk.f32.vlgmr.msra.gmra.mrb[6].mxu1 %vm71_vm0, %v925_v12 }
 0x101   :  { %v141_v55 = vpop.f32.mrb[0].mxu0 }
 0x102   :  { %v212_v57 = vpop.f32.mrb[0].mxu1  ;;  %v143_v58 = vpop.f32.mrb[1].mxu0 }
 0x103   :  { %v659_v59 = vcombine.low %v141_v55, %v143_v58  ;;  %v214_v60 = vpop.f32.mrb[1].mxu1 }
 0x104   :  { %v660_v61 = vcombine.low %v212_v57, %v214_v60 }
 0x105   :  { %v667_v62 = vrot.slane %v659_v59, %v666_v56  ;;  %v283_v63 = vpop.f32.mrb[2].mxu0 }
 0x106   :  { %v674_v0 = vrot.slane %v660_v61, %v666_v56  ;;  %v354_v1 = vpop.f32.mrb[2].mxu1  ;;  %v285_v2 = vpop.f32.mrb[3].mxu0 }
 0x107   :  { %v676_v3 = vcombine.low %v283_v63, %v285_v2  ;;  %v356_v4 = vpop.f32.mrb[3].mxu1 }
 0x108   :  { %v675_v5 = vcombine.low %v667_v62, %v674_v0  ;;  %v677_v6 = vcombine.low %v354_v1, %v356_v4 }
 0x109   :  { %v684_v7 = vrot.slane %v676_v3, %v666_v56  ;;  %v425_v8 = vpop.f32.mrb[4].mxu0 }
 0x10a   :  { %731 = vst [vmem:[#allocation7] sm:$0xff] %v675_v5  ;;  %v691_v9 = vrot.slane %v677_v6, %v666_v56  ;;  %v496_v10 = vpop.f32.mrb[4].mxu1  ;;  %v427_v11 = vpop.f32.mrb[5].mxu0 }
 0x10b   :  { %v693_v12 = vcombine.low %v425_v8, %v427_v11  ;;  %v498_v13 = vpop.f32.mrb[5].mxu1 }
 0x10c   :  { %v692_v14 = vcombine.low %v684_v7, %v691_v9  ;;  %v694_v15 = vcombine.low %v496_v10, %v498_v13 }
 0x10d   :  { %v701_v16 = vrot.slane %v693_v12, %v666_v56  ;;  %v567_v17 = vpop.f32.mrb[6].mxu0 }
 0x10e   :  { %732 = vst [vmem:[#allocation7 + $0x8] sm:$0xff] %v692_v14  ;;  %v708_v18 = vrot.slane %v694_v15, %v666_v56  ;;  %v638_v19 = vpop.f32.mrb[6].mxu1  ;;  %v569_v20 = vpop.f32.mrb[7].mxu0 }
 0x10f   :  { %v710_v21 = vcombine.low %v567_v17, %v569_v20  ;;  %v640_v22 = vpop.f32.mrb[7].mxu1 }
 0x110   :  { %v709_v23 = vcombine.low %v701_v16, %v708_v18  ;;  %v711_v24 = vcombine.low %v638_v19, %v640_v22 }
 0x111   :  { %v718_v25 = vrot.slane %v710_v21, %v666_v56 }
 0x112   :  { %733 = vst [vmem:[#allocation7 + $0x10] sm:$0xff] %v709_v23  ;;  %v725_v26 = vrot.slane %v711_v24, %v666_v56 }
 0x114   :  { %v726_v27 = vcombine.low %v718_v25, %v725_v26 }
 0x116   :  { %734 = vst [vmem:[#allocation7 + $0x18] sm:$0xff] %v726_v27 }
 0x117   :  { %853 = shalt.err (!%p850_p6)
}
 0x118   :  { %s854_s10 = scalar_lea.hbm %s963_s2, 512 }
 0x119   :  { %p855_p7 = scmp.ne.s32.totalorder %s963_s2, %s854_s10  ;;  %p858_p8 = scmp.lt.u32.totalorder %s854_s10, %s963_s2 }
 0x11b   :  { %p860_p9 = pnand %p858_p8, %p855_p7 }
 0x11d   :  { %863 = shalt.err (!%p860_p9)
}
 0x11e   :  { %744 = dma.vmem_to_hbm [thread:$0]  %s742_s6, 512, %s963_s2, [#allocation4]  }
 0x11f   :  { %868 = dma.done.wait [#allocation4], 512  }
 0x120   :  { %869 = vsyncadd [#allocation4], 4294966784 }
 0x121   :  { %748 = vsyncpa [#allocation3], 1 }
 0x122   :  { %749 = vsyncpa [#allocation6], 1 }
 0x123   :  { %750 = vsyncpa [#allocation4], 1 }

// kernel: generator128.19
= control target key start
LH: loop header
LB: loop body
LE: loop exit
PB: predicated region body
PF: predicated region fallthrough
CT: control target
= control target key end

     0   :  { %8 = vsyncpa [#allocation3], 0  ;;  %s293_s0 = inlined_call_operand.hbm [shape: f32[32,128], index: 0, kind: input, shape index: {}]   ;;  %s294_s1 = inlined_call_operand.hbm [shape: f32[1,128], index: 1, kind: input, shape index: {}]   ;;  %s295_s2 = inlined_call_operand.hbm [shape: f32[1,128], index: 2, kind: input, shape index: {}]   ;;  %s296_s3 = inlined_call_operand.hbm [shape: f32[32,128], index: 3, kind: output, shape index: {}]  }
   0x1   :  { %9 = vsyncpa [#allocation6], 0 }
   0x2   :  { %10 = vsyncpa [#allocation4], 0  ;;  %s206_s12 = smov [#allocation5]   ;;  %s207_s14 = smov [#allocation2]  }
   0x3   :  { %s29_s13 = sshll.u32 %s206_s12, 4  ;;  %s16_s15 = sshll.u32 %s207_s14, 4  ;;  %s30_s13 = int_to_ptr.vmem [resolvable:$true] %s29_s13  ;;  %s232_s15 = int_to_ptr.vmem [resolvable:$true] %s16_s15 }
   0x4   :  { %s112_s18 = scalar_lea.hbm %s294_s1, 16 }
   0x5   :  { %p113_p0 = scmp.ne.s32.totalorder %s294_s1, %s112_s18  ;;  %p116_p1 = scmp.lt.u32.totalorder %s112_s18, %s294_s1 }
   0x7   :  { %p118_p2 = pnand %p116_p1, %p113_p0 }
   0x9   :  { %121 = shalt.err (!%p118_p2)
}
   0xa   :  { %s122_s23 = scalar_lea.vmem %s30_s13, 16  ;;  %s126_s24 = scalar_lea.vmem %s30_s13, 32 }
   0xb   :  { %p123_p3 = scmp.ne.s32.totalorder %s30_s13, %s122_s23  ;;  %p127_p4 = scmp.lt.s32.totalorder %s30_s13, %s30_s13 }
   0xc   :  { %p128_p5 = scmp.lt.s32.totalorder %s126_s24, %s122_s23 }
   0xe   :  { %p129_p6 = por %p128_p5, %p127_p4 }
  0x10   :  { %p130_p7 = pnand %p129_p6, %p123_p3 }
  0x12   :  { %133 = shalt.err (!%p130_p7)
}
  0x13   :  { %32 = dma.hbm_to_vmem [thread:$0]  %s294_s1, 16, %s30_s13, [#allocation6]  }
  0x14   :  { %s134_s29 = scalar_lea.hbm %s293_s0, 512 }
  0x15   :  { %p135_p8 = scmp.ne.s32.totalorder %s293_s0, %s134_s29  ;;  %p138_p9 = scmp.lt.u32.totalorder %s134_s29, %s293_s0 }
  0x17   :  { %p140_p10 = pnand %p138_p9, %p135_p8 }
  0x19   :  { %143 = shalt.err (!%p140_p10)
}
  0x1a   :  { %s144_s7 = scalar_lea.vmem %s232_s15, 512  ;;  %p149_p12 = scmp.lt.s32.totalorder %s232_s15, %s232_s15 }
  0x1b   :  { %p145_p11 = scmp.ne.s32.totalorder %s232_s15, %s144_s7  ;;  %p150_p13 = scmp.lt.s32.totalorder %s144_s7, %s144_s7 }
  0x1d   :  { %p151_p0 = por %p150_p13, %p149_p12 }
  0x1f   :  { %p152_p1 = pnand %p151_p0, %p145_p11 }
  0x21   :  { %155 = shalt.err (!%p152_p1)
}
  0x22   :  { %s208_s1 = smov 128   ;;  %s209_s8 = smov 8  }
  0x23   :  { %22 = dma.hbm_to_vmem [thread:$0]  %s293_s0, 512, %s232_s15, [#allocation3], %s208_s1, %s208_s1, %s209_s8  }
  0x24   :  { %s210_s11 = smov [#allocation7]   ;;  %s156_s16 = scalar_lea.hbm %s295_s2, 16 }
  0x25   :  { %s39_s12 = sshll.u32 %s210_s11, 4  ;;  %p157_p2 = scmp.ne.s32.totalorder %s295_s2, %s156_s16  ;;  %s40_s12 = int_to_ptr.vmem [resolvable:$true] %s39_s12 }
  0x26   :  { %p160_p3 = scmp.lt.u32.totalorder %s156_s16, %s295_s2 }
  0x28   :  { %p162_p4 = pnand %p160_p3, %p157_p2 }
  0x2a   :  { %165 = shalt.err (!%p162_p4)
}
  0x2b   :  { %s166_s21 = scalar_lea.vmem %s40_s12, 16  ;;  %s170_s0 = scalar_lea.vmem %s40_s12, 32 }
  0x2c   :  { %p167_p5 = scmp.ne.s32.totalorder %s40_s12, %s166_s21  ;;  %p171_p6 = scmp.lt.s32.totalorder %s40_s12, %s40_s12 }
  0x2d   :  { %p172_p7 = scmp.lt.s32.totalorder %s170_s0, %s166_s21 }
  0x2f   :  { %p173_p8 = por %p172_p7, %p171_p6 }
  0x31   :  { %p174_p9 = pnand %p173_p8, %p167_p5 }
  0x33   :  { %177 = shalt.err (!%p174_p9)
}
  0x34   :  { %42 = dma.hbm_to_vmem [thread:$0]  %s295_s2, 16, %s40_s12, [#allocation6]  }
  0x35   :  { %200 = dma.done.wait [#allocation3], 512  }
  0x36   :  { %201 = vsyncadd [#allocation3], 4294966784 }
  0x37   :  { %202 = dma.done.wait [#allocation6], 32  }
  0x38   :  { %203 = vsyncadd [#allocation6], 4294967264  ;;  %v52_v0 = vld [vmem:[#allocation2] sm:$0xff]  ;;  %v53_v4 = vld [vmem:[#allocation2 + $0x8] sm:$0xff]  ;;  %s211_s23 = smov [#allocation8]  }
  0x39   :  { %v104_v1 = vld [vmem:[#allocation5] ss:$0 sm:$0xff]  ;;  %v105_v2 = vld [vmem:[#allocation7] ss:$0 sm:$0xff]  ;;  %v54_v5 = vld [vmem:[#allocation2 + $0x10] sm:$0xff]  ;;  %s91_s24 = sshll.u32 %s211_s23, 4  ;;  %s92_s24 = int_to_ptr.vmem [resolvable:$true] %s91_s24 }
  0x3a   :  { %v63_v3 = vmul.f32 %v104_v1, %v52_v0  ;;  %v55_v6 = vld [vmem:[#allocation2 + $0x18] sm:$0xff]  ;;  %v64_v7 = vmul.f32 %v104_v1, %v53_v4  ;;  %v65_v8 = vmul.f32 %v104_v1, %v54_v5  ;;  %s178_s2 = scalar_lea.vmem %s92_s24, 512  ;;  %p183_p11 = scmp.lt.s32.totalorder %s92_s24, %s92_s24 }
  0x3b   :  { %v66_v9 = vmul.f32 %v104_v1, %v55_v6  ;;  %p179_p10 = scmp.ne.s32.totalorder %s92_s24, %s178_s2  ;;  %p184_p12 = scmp.lt.s32.totalorder %s178_s2, %s178_s2 }
  0x3c   :  { %v74_v10 = vadd.f32 %v105_v2, %v63_v3  ;;  %v75_v11 = vadd.f32 %v105_v2, %v64_v7  ;;  %v76_v12 = vadd.f32 %v105_v2, %v65_v8 }
  0x3d   :  { %v77_v13 = vadd.f32 %v105_v2, %v66_v9  ;;  %p185_p13 = por %p184_p12, %p183_p11 }
  0x3e   :  { %v78_v14 = vmax.f32 %v74_v10, 0.0  ;;  %v79_v15 = vmax.f32 %v75_v11, 0.0  ;;  %v80_v16 = vmax.f32 %v76_v12, 0.0 }
  0x3f   :  { %v81_v17 = vmax.f32 %v77_v13, 0.0  ;;  %p186_p0 = pnand %p185_p13, %p179_p10 }
  0x40   :  { %82 = vst [vmem:[#allocation8] sm:$0xff] %v78_v14  ;;  %83 = vst [vmem:[#allocation8 + $0x8] sm:$0xff] %v79_v15 }
  0x41   :  { %84 = vst [vmem:[#allocation8 + $0x10] sm:$0xff] %v80_v16  ;;  %85 = vst [vmem:[#allocation8 + $0x18] sm:$0xff] %v81_v17 }
  0x42   :  { %189 = shalt.err (!%p186_p0)
}
  0x43   :  { %s190_s27 = scalar_lea.hbm %s296_s3, 512 }
  0x44   :  { %p191_p1 = scmp.ne.s32.totalorder %s296_s3, %s190_s27  ;;  %p194_p2 = scmp.lt.u32.totalorder %s190_s27, %s296_s3 }
  0x46   :  { %p196_p3 = pnand %p194_p2, %p191_p1 }
  0x48   :  { %199 = shalt.err (!%p196_p3)
}
  0x49   :  { %97 = dma.vmem_to_hbm [thread:$0]  %s92_s24, 512, %s296_s3, [#allocation4], %s208_s1, %s208_s1, %s209_s8  }
  0x4a   :  { %204 = dma.done.wait [#allocation4], 512  }
  0x4b   :  { %205 = vsyncadd [#allocation4], 4294966784 }
  0x4c   :  { %101 = vsyncpa [#allocation3], 1 }
  0x4d   :  { %102 = vsyncpa [#allocation6], 1 }
  0x4e   :  { %103 = vsyncpa [#allocation4], 1 }

// kernel: tile.52
= control target key start
LH: loop header
LB: loop body
LE: loop exit
PB: predicated region body
PF: predicated region fallthrough
CT: control target
= control target key end

     0   :  { %s22_s0 = inlined_call_operand.vmem [shape: f32[64], index: 0, kind: input, shape index: {}]   ;;  %s23_s1 = inlined_call_operand.vmem [shape: f32[2,64], index: 1, kind: output, shape index: {}]  }
   0x1   :  { %v4_v0 = vld [vmem:[%s22_s0] ss:$0 sm:$0xff] }
   0x2   :  { %5 = vst [vmem:[%s23_s1] sm:$0x3] %v4_v0 }

// kernel: tile.53
= control target key start
LH: loop header
LB: loop body
LE: loop exit
PB: predicated region body
PF: predicated region fallthrough
CT: control target
= control target key end

     0   :  { %s85_s0 = inlined_call_operand.vmem [shape: f32[2,64], index: 0, kind: input, shape index: {}]   ;;  %s86_s1 = inlined_call_operand.hbm [shape: f32[1,128], index: 1, kind: output, shape index: {}]  }
   0x1   :  { %v5_v0 = vld [vmem:[%s85_s0] sm:$0x3] }
   0x2   :  { %6 = vst [vmem:[#allocation3] sm:$0x3] %v5_v0 }
   0x3   :  { %2 = vsyncpa [#allocation1], 0  ;;  %vm8_vm0 = vcmask 523264   ;;  %s58_s0 = smov 64   ;;  %vm14_vm1 = vcmask 1048064   ;;  %s59_s8 = smov [#allocation0]  }
   0x4   :  { %s26_s9 = sshll.u32 %s59_s8, 4  ;;  %s27_s9 = int_to_ptr.vmem [resolvable:$true] %s26_s9 }
   0x5   :  { %s34_s10 = scalar_lea.vmem %s27_s9, 16  ;;  %s38_s11 = scalar_lea.vmem %s27_s9, 32 }
   0x6   :  { %p35_p0 = scmp.ne.s32.totalorder %s27_s9, %s34_s10  ;;  %p39_p1 = scmp.lt.s32.totalorder %s27_s9, %s27_s9 }
   0x7   :  { %p40_p2 = scmp.lt.s32.totalorder %s38_s11, %s34_s10 }
   0x9   :  { %v11_v1 = vld [vmem:[#allocation3 + $0x1] sm:$0x1]   ;;  %v7_v2 = vld [vmem:[#allocation3] sm:$0x1]   ;;  %p41_p3 = por %p40_p2, %p39_p1 }
   0xa   :  { %12 = vrot.lane.b32.xlu0 %v11_v1, %s58_s0  ;;  %9 = vst.msk [vmem:[#allocation2] sm:$0x1] %vm8_vm0, %v7_v2  }
   0xb   :  { %p42_p4 = pnand %p41_p3, %p35_p0 }
  0x7c   :  { %v13_v3 = vpop.permute.xlu0 %12  }
  0x7d   :  { %15 = vst.msk [vmem:[#allocation2] sm:$0x1] %vm14_vm1, %v13_v3  }
  0x84   :  { %v19_v4 = vld [vmem:[#allocation2] sm:$0x1] }
  0x85   :  { %21 = vst [vmem:[#allocation0] sm:$0x1] %v19_v4 }
  0x86   :  { %45 = shalt.err (!%p42_p4)
}
  0x87   :  { %s46_s14 = scalar_lea.hbm %s86_s1, 16 }
  0x88   :  { %p47_p5 = scmp.ne.s32.totalorder %s86_s1, %s46_s14  ;;  %p50_p6 = scmp.lt.u32.totalorder %s46_s14, %s86_s1 }
  0x8a   :  { %p52_p7 = pnand %p50_p6, %p47_p5 }
  0x8c   :  { %55 = shalt.err (!%p52_p7)
}
  0x8d   :  { %29 = dma.vmem_to_hbm [thread:$0]  %s27_s9, 16, %s86_s1, [#allocation1]  }
  0x8e   :  { %56 = dma.done.wait [#allocation1], 16  }
  0x8f   :  { %57 = vsyncadd [#allocation1], 4294967280 }
  0x90   :  { %31 = vsyncpa [#allocation1], 1 }

// kernel: generator128.20
= control target key start
LH: loop header
LB: loop body
LE: loop exit
PB: predicated region body
PF: predicated region fallthrough
CT: control target
= control target key end

     0   :  { %7 = vsyncpa [#allocation3], 0  ;;  %s727_s0 = inlined_call_operand.hbm [shape: f32[50,512], index: 0, kind: input, shape index: {}]   ;;  %s728_s1 = inlined_call_operand.hbm [shape: f32[512,256], index: 1, kind: input, shape index: {}]   ;;  %s729_s2 = inlined_call_operand.hbm [shape: f32[50,256], index: 2, kind: output, shape index: {}]  }
   0x1   :  { %8 = vsyncpa [#allocation6], 0 }
   0x2   :  { %9 = vsyncpa [#allocation4], 0  ;;  %s663_s9 = smov [#allocation2]   ;;  %s591_s13 = scalar_lea.hbm %s727_s0, 3584 }
   0x3   :  { %s15_s10 = sshll.u32 %s663_s9, 4  ;;  %p592_p0 = scmp.ne.s32.totalorder %s727_s0, %s591_s13  ;;  %s16_s10 = int_to_ptr.vmem [resolvable:$true] %s15_s10 }
   0x4   :  { %p595_p1 = scmp.lt.u32.totalorder %s591_s13, %s727_s0 }
   0x6   :  { %p597_p2 = pnand %p595_p1, %p592_p0 }
   0x8   :  { %600 = shalt.err (!%p597_p2)
}
   0x9   :  { %s601_s18 = scalar_lea.vmem %s16_s10, 3584  ;;  %p606_p4 = scmp.lt.s32.totalorder %s16_s10, %s16_s10 }
   0xa   :  { %p602_p3 = scmp.ne.s32.totalorder %s16_s10, %s601_s18  ;;  %p607_p5 = scmp.lt.s32.totalorder %s601_s18, %s601_s18 }
   0xc   :  { %p608_p6 = por %p607_p5, %p606_p4 }
   0xe   :  { %p609_p7 = pnand %p608_p6, %p602_p3 }
  0x10   :  { %612 = shalt.err (!%p609_p7)
}
  0x11   :  { %s664_s19 = smov 512   ;;  %s665_s20 = smov 32  }
  0x12   :  { %21 = dma.hbm_to_vmem [thread:$0]  %s727_s0, 3584, %s16_s10, [#allocation3], %s664_s19, %s664_s19, %s665_s20  }
  0x13   :  { %s666_s23 = smov [#allocation5]   ;;  %s613_s27 = scalar_lea.hbm %s728_s1, 16384 }
  0x14   :  { %s27_s24 = sshll.u32 %s666_s23, 4  ;;  %p614_p8 = scmp.ne.s32.totalorder %s728_s1, %s613_s27  ;;  %s28_s24 = int_to_ptr.vmem [resolvable:$true] %s27_s24 }
  0x15   :  { %p617_p9 = scmp.lt.u32.totalorder %s613_s27, %s728_s1 }
  0x17   :  { %p619_p10 = pnand %p617_p9, %p614_p8 }
  0x19   :  { %622 = shalt.err (!%p619_p10)
}
  0x1a   :  { %s623_s4 = scalar_lea.vmem %s28_s24, 16384  ;;  %p628_p12 = scmp.lt.s32.totalorder %s28_s24, %s28_s24 }
  0x1b   :  { %p624_p11 = scmp.ne.s32.totalorder %s28_s24, %s623_s4  ;;  %p629_p13 = scmp.lt.s32.totalorder %s623_s4, %s623_s4 }
  0x1d   :  { %p630_p0 = por %p629_p13, %p628_p12 }
  0x1f   :  { %p631_p1 = pnand %p630_p0, %p624_p11 }
  0x21   :  { %634 = shalt.err (!%p631_p1)
}
  0x22   :  { %s667_s0 = smov 256   ;;  %s668_s5 = smov 16  }
  0x23   :  { %33 = dma.hbm_to_vmem [thread:$0]  %s728_s1, 16384, %s28_s24, [#allocation6], %s667_s0, %s667_s0, %s668_s5  }
  0x24   :  { %657 = dma.done.wait [#allocation3], 3584  }
  0x25   :  { %658 = vsyncadd [#allocation3], 4294963712 }
  0x26   :  { %659 = dma.done.wait [#allocation6], 16384  }
  0x27   :  { %660 = vsyncadd [#allocation6], 4294950912  ;;  %v69_v0 = vld [vmem:[#allocation5 + $0x8] sm:$0xff]  ;;  %v71_v1 = vld [vmem:[#allocation5 + $0x18] sm:$0xff]  ;;  %s669_s1 = smov [#allocation7]  }
  0x28   :  { %v133_v2 = vld [vmem:[#allocation5 + $0x208] sm:$0xff]  ;;  %v442_v3 = vpack.c.bf16 %v71_v1, %v69_v0  ;;  %v135_v4 = vld [vmem:[#allocation5 + $0x218] sm:$0xff]  ;;  %v68_v5 = vld [vmem:[#allocation5] sm:$0xff]  ;;  %s429_s8 = sshll.u32 %s669_s1, 4  ;;  %s430_s8 = int_to_ptr.vmem [resolvable:$true] %s429_s8 }
  0x29   :  { %v70_v6 = vld [vmem:[#allocation5 + $0x10] sm:$0xff]  ;;  %v506_v7 = vpack.c.bf16 %v135_v4, %v133_v2  ;;  %v132_v9 = vld [vmem:[#allocation5 + $0x200] sm:$0xff]  ;;  %v73_v11 = vld [vmem:[#allocation5 + $0x28] sm:$0xff]  ;;  %s635_s9 = scalar_lea.vmem %s430_s8, 1792  ;;  %p640_p3 = scmp.lt.s32.totalorder %s430_s8, %s430_s8 }
  0x2a   :  { %v444_v8 = vpack.c.bf16 %v70_v6, %v68_v5  ;;  %v134_v10 = vld [vmem:[#allocation5 + $0x210] sm:$0xff]  ;;  %443 = vmatprep.subr.bf16.mxu1 %v442_v3  ;;  %v75_v13 = vld [vmem:[#allocation5 + $0x38] sm:$0xff]  ;;  %v137_v14 = vld [vmem:[#allocation5 + $0x228] sm:$0xff]  ;;  %p636_p2 = scmp.ne.s32.totalorder %s430_s8, %s635_s9  ;;  %p641_p4 = scmp.lt.s32.totalorder %s635_s9, %s635_s9 }
  0x2b   :  { %v508_v12 = vpack.c.bf16 %v134_v10, %v132_v9  ;;  %v139_v15 = vld [vmem:[#allocation5 + $0x238] sm:$0xff]  ;;  %507 = vmatprep.subr.bf16.mxu0 %v506_v7  ;;  %v446_v16 = vpack.c.bf16 %v75_v13, %v73_v11  ;;  %v72_v18 = vld [vmem:[#allocation5 + $0x20] sm:$0xff]  ;;  %v74_v19 = vld [vmem:[#allocation5 + $0x30] sm:$0xff] }
  0x2c   :  { %445 = vmatpush1.bf16.msra.mxu1 %v444_v8  ;;  %v510_v17 = vpack.c.bf16 %v139_v15, %v137_v14  ;;  %v136_v20 = vld [vmem:[#allocation5 + $0x220] sm:$0xff]  ;;  %v448_v21 = vpack.c.bf16 %v74_v19, %v72_v18  ;;  %v138_v22 = vld [vmem:[#allocation5 + $0x230] sm:$0xff]  ;;  %v77_v23 = vld [vmem:[#allocation5 + $0x48] sm:$0xff]  ;;  %p642_p5 = por %p641_p4, %p640_p3 }
  0x2d   :  { %509 = vmatpush1.bf16.msra.mxu0 %v508_v12  ;;  %v79_v24 = vld [vmem:[#allocation5 + $0x58] sm:$0xff]  ;;  %447 = vmatprep.subr.bf16.mxu1 %v446_v16  ;;  %v512_v25 = vpack.c.bf16 %v138_v22, %v136_v20  ;;  %v141_v27 = vld [vmem:[#allocation5 + $0x248] sm:$0xff]  ;;  %v76_v29 = vld [vmem:[#allocation5 + $0x40] sm:$0xff] }
  0x2e   :  { %511 = vmatprep.subr.bf16.mxu0 %v510_v17  ;;  %v450_v26 = vpack.c.bf16 %v79_v24, %v77_v23  ;;  %v143_v28 = vld [vmem:[#allocation5 + $0x258] sm:$0xff]  ;;  %v78_v31 = vld [vmem:[#allocation5 + $0x50] sm:$0xff]  ;;  %v140_v32 = vld [vmem:[#allocation5 + $0x240] sm:$0xff]  ;;  %p643_p6 = pnand %p642_p5, %p636_p2 }
  0x2f   :  { %v514_v30 = vpack.c.bf16 %v143_v28, %v141_v27  ;;  %v142_v33 = vld [vmem:[#allocation5 + $0x250] sm:$0xff]  ;;  %v452_v34 = vpack.c.bf16 %v78_v31, %v76_v29  ;;  %v81_v35 = vld [vmem:[#allocation5 + $0x68] sm:$0xff]  ;;  %v83_v36 = vld [vmem:[#allocation5 + $0x78] sm:$0xff] }
  0x30   :  { %449 = vmatpush1.bf16.msra.mxu1 %v448_v21  ;;  %v145_v37 = vld [vmem:[#allocation5 + $0x268] sm:$0xff]  ;;  %v516_v38 = vpack.c.bf16 %v142_v33, %v140_v32  ;;  %v454_v39 = vpack.c.bf16 %v83_v36, %v81_v35  ;;  %v147_v40 = vld [vmem:[#allocation5 + $0x278] sm:$0xff]  ;;  %v80_v41 = vld [vmem:[#allocation5 + $0x60] sm:$0xff] }
  0x31   :  { %513 = vmatpush1.bf16.msra.mxu0 %v512_v25  ;;  %451 = vmatprep.subr.bf16.mxu1 %v450_v26  ;;  %v82_v42 = vld [vmem:[#allocation5 + $0x70] sm:$0xff]  ;;  %v518_v43 = vpack.c.bf16 %v147_v40, %v145_v37  ;;  %v144_v44 = vld [vmem:[#allocation5 + $0x260] sm:$0xff]  ;;  %v85_v46 = vld [vmem:[#allocation5 + $0x88] sm:$0xff] }
  0x32   :  { %515 = vmatprep.subr.bf16.mxu0 %v514_v30  ;;  %v146_v45 = vld [vmem:[#allocation5 + $0x270] sm:$0xff]  ;;  %v87_v47 = vld [vmem:[#allocation5 + $0x98] sm:$0xff]  ;;  %v149_v48 = vld [vmem:[#allocation5 + $0x288] sm:$0xff]  ;;  %v456_v50 = vpack.c.bf16 %v82_v42, %v80_v41 }
  0x33   :  { %v151_v49 = vld [vmem:[#allocation5 + $0x298] sm:$0xff]  ;;  %v520_v51 = vpack.c.bf16 %v146_v45, %v144_v44  ;;  %v458_v52 = vpack.c.bf16 %v87_v47, %v85_v46  ;;  %v84_v53 = vld [vmem:[#allocation5 + $0x80] sm:$0xff]  ;;  %v86_v54 = vld [vmem:[#allocation5 + $0x90] sm:$0xff] }
  0x34   :  { %453 = vmatpush1.bf16.msra.mxu1 %v452_v34  ;;  %v148_v55 = vld [vmem:[#allocation5 + $0x280] sm:$0xff]  ;;  %v522_v56 = vpack.c.bf16 %v151_v49, %v149_v48  ;;  %v150_v57 = vld [vmem:[#allocation5 + $0x290] sm:$0xff]  ;;  %v89_v58 = vld [vmem:[#allocation5 + $0xa8] sm:$0xff]  ;;  %v460_v62 = vpack.c.bf16 %v86_v54, %v84_v53 }
  0x35   :  { %517 = vmatpush1.bf16.msra.mxu0 %v516_v38  ;;  %455 = vmatprep.subr.bf16.mxu1 %v454_v39  ;;  %v91_v59 = vld [vmem:[#allocation5 + $0xb8] sm:$0xff]  ;;  %v153_v60 = vld [vmem:[#allocation5 + $0x2a8] sm:$0xff]  ;;  %v524_v63 = vpack.c.bf16 %v150_v57, %v148_v55  ;;  %v88_v1 = vld [vmem:[#allocation5 + $0xa0] sm:$0xff] }
  0x36   :  { %519 = vmatprep.subr.bf16.mxu0 %v518_v43  ;;  %v155_v61 = vld [vmem:[#allocation5 + $0x2b8] sm:$0xff]  ;;  %v462_v0 = vpack.c.bf16 %v91_v59, %v89_v58  ;;  %v90_v2 = vld [vmem:[#allocation5 + $0xb0] sm:$0xff]  ;;  %v152_v3 = vld [vmem:[#allocation5 + $0x2a0] sm:$0xff] }
  0x37   :  { %v526_v4 = vpack.c.bf16 %v155_v61, %v153_v60  ;;  %v154_v5 = vld [vmem:[#allocation5 + $0x2b0] sm:$0xff]  ;;  %v93_v6 = vld [vmem:[#allocation5 + $0xc8] sm:$0xff]  ;;  %v95_v7 = vld [vmem:[#allocation5 + $0xd8] sm:$0xff]  ;;  %v464_v10 = vpack.c.bf16 %v90_v2, %v88_v1 }
  0x38   :  { %457 = vmatpush1.bf16.msra.mxu1 %v456_v50  ;;  %v157_v8 = vld [vmem:[#allocation5 + $0x2c8] sm:$0xff]  ;;  %v159_v9 = vld [vmem:[#allocation5 + $0x2d8] sm:$0xff]  ;;  %v528_v11 = vpack.c.bf16 %v154_v5, %v152_v3  ;;  %v466_v12 = vpack.c.bf16 %v95_v7, %v93_v6  ;;  %v92_v13 = vld [vmem:[#allocation5 + $0xc0] sm:$0xff] }
  0x39   :  { %521 = vmatpush1.bf16.msra.mxu0 %v520_v51  ;;  %459 = vmatprep.subr.bf16.mxu1 %v458_v52  ;;  %v94_v14 = vld [vmem:[#allocation5 + $0xd0] sm:$0xff]  ;;  %v156_v15 = vld [vmem:[#allocation5 + $0x2c0] sm:$0xff]  ;;  %v530_v16 = vpack.c.bf16 %v159_v9, %v157_v8  ;;  %v97_v18 = vld [vmem:[#allocation5 + $0xe8] sm:$0xff] }
  0x3a   :  { %523 = vmatprep.subr.bf16.mxu0 %v522_v56  ;;  %v158_v17 = vld [vmem:[#allocation5 + $0x2d0] sm:$0xff]  ;;  %v99_v19 = vld [vmem:[#allocation5 + $0xf8] sm:$0xff]  ;;  %v161_v20 = vld [vmem:[#allocation5 + $0x2e8] sm:$0xff]  ;;  %v468_v22 = vpack.c.bf16 %v94_v14, %v92_v13 }
  0x3b   :  { %v163_v21 = vld [vmem:[#allocation5 + $0x2f8] sm:$0xff]  ;;  %v532_v23 = vpack.c.bf16 %v158_v17, %v156_v15  ;;  %v470_v24 = vpack.c.bf16 %v99_v19, %v97_v18  ;;  %v96_v25 = vld [vmem:[#allocation5 + $0xe0] sm:$0xff]  ;;  %v98_v26 = vld [vmem:[#allocation5 + $0xf0] sm:$0xff] }
  0x3c   :  { %461 = vmatpush1.bf16.msra.mxu1 %v460_v62  ;;  %v160_v27 = vld [vmem:[#allocation5 + $0x2e0] sm:$0xff]  ;;  %v534_v28 = vpack.c.bf16 %v163_v21, %v161_v20  ;;  %v162_v29 = vld [vmem:[#allocation5 + $0x2f0] sm:$0xff]  ;;  %v101_v30 = vld [vmem:[#allocation5 + $0x108] sm:$0xff]  ;;  %v472_v34 = vpack.c.bf16 %v98_v26, %v96_v25 }
  0x3d   :  { %525 = vmatpush1.bf16.msra.mxu0 %v524_v63  ;;  %463 = vmatprep.subr.bf16.mxu1 %v462_v0  ;;  %v103_v31 = vld [vmem:[#allocation5 + $0x118] sm:$0xff]  ;;  %v165_v32 = vld [vmem:[#allocation5 + $0x308] sm:$0xff]  ;;  %v536_v35 = vpack.c.bf16 %v162_v29, %v160_v27  ;;  %v100_v37 = vld [vmem:[#allocation5 + $0x100] sm:$0xff] }
  0x3e   :  { %527 = vmatprep.subr.bf16.mxu0 %v526_v4  ;;  %v167_v33 = vld [vmem:[#allocation5 + $0x318] sm:$0xff]  ;;  %v474_v36 = vpack.c.bf16 %v103_v31, %v101_v30  ;;  %v102_v38 = vld [vmem:[#allocation5 + $0x110] sm:$0xff]  ;;  %v164_v39 = vld [vmem:[#allocation5 + $0x300] sm:$0xff] }
  0x3f   :  { %v538_v40 = vpack.c.bf16 %v167_v33, %v165_v32  ;;  %v166_v41 = vld [vmem:[#allocation5 + $0x310] sm:$0xff]  ;;  %v105_v42 = vld [vmem:[#allocation5 + $0x128] sm:$0xff]  ;;  %v107_v43 = vld [vmem:[#allocation5 + $0x138] sm:$0xff]  ;;  %v476_v46 = vpack.c.bf16 %v102_v38, %v100_v37 }
  0x40   :  { %465 = vmatpush1.bf16.msra.mxu1 %v464_v10  ;;  %v169_v44 = vld [vmem:[#allocation5 + $0x328] sm:$0xff]  ;;  %v171_v45 = vld [vmem:[#allocation5 + $0x338] sm:$0xff]  ;;  %v540_v47 = vpack.c.bf16 %v166_v41, %v164_v39  ;;  %v478_v48 = vpack.c.bf16 %v107_v43, %v105_v42  ;;  %v104_v49 = vld [vmem:[#allocation5 + $0x120] sm:$0xff] }
  0x41   :  { %529 = vmatpush1.bf16.msra.mxu0 %v528_v11  ;;  %467 = vmatprep.subr.bf16.mxu1 %v466_v12  ;;  %v106_v50 = vld [vmem:[#allocation5 + $0x130] sm:$0xff]  ;;  %v168_v51 = vld [vmem:[#allocation5 + $0x320] sm:$0xff]  ;;  %v542_v52 = vpack.c.bf16 %v171_v45, %v169_v44  ;;  %v109_v54 = vld [vmem:[#allocation5 + $0x148] sm:$0xff] }
  0x42   :  { %531 = vmatprep.subr.bf16.mxu0 %v530_v16  ;;  %v170_v53 = vld [vmem:[#allocation5 + $0x330] sm:$0xff]  ;;  %v111_v55 = vld [vmem:[#allocation5 + $0x158] sm:$0xff]  ;;  %v173_v56 = vld [vmem:[#allocation5 + $0x348] sm:$0xff]  ;;  %v480_v58 = vpack.c.bf16 %v106_v50, %v104_v49 }
  0x43   :  { %v175_v57 = vld [vmem:[#allocation5 + $0x358] sm:$0xff]  ;;  %v544_v59 = vpack.c.bf16 %v170_v53, %v168_v51  ;;  %v482_v60 = vpack.c.bf16 %v111_v55, %v109_v54  ;;  %v108_v61 = vld [vmem:[#allocation5 + $0x140] sm:$0xff]  ;;  %v110_v62 = vld [vmem:[#allocation5 + $0x150] sm:$0xff] }
  0x44   :  { %469 = vmatpush1.bf16.msra.mxu1 %v468_v22  ;;  %v172_v63 = vld [vmem:[#allocation5 + $0x340] sm:$0xff]  ;;  %v546_v0 = vpack.c.bf16 %v175_v57, %v173_v56  ;;  %v174_v1 = vld [vmem:[#allocation5 + $0x350] sm:$0xff]  ;;  %v113_v2 = vld [vmem:[#allocation5 + $0x168] sm:$0xff]  ;;  %v484_v6 = vpack.c.bf16 %v110_v62, %v108_v61 }
  0x45   :  { %533 = vmatpush1.bf16.msra.mxu0 %v532_v23  ;;  %471 = vmatprep.subr.bf16.mxu1 %v470_v24  ;;  %v115_v3 = vld [vmem:[#allocation5 + $0x178] sm:$0xff]  ;;  %v177_v4 = vld [vmem:[#allocation5 + $0x368] sm:$0xff]  ;;  %v112_v7 = vld [vmem:[#allocation5 + $0x160] sm:$0xff]  ;;  %v548_v8 = vpack.c.bf16 %v174_v1, %v172_v63 }
  0x46   :  { %535 = vmatprep.subr.bf16.mxu0 %v534_v28  ;;  %v179_v5 = vld [vmem:[#allocation5 + $0x378] sm:$0xff]  ;;  %v486_v9 = vpack.c.bf16 %v115_v3, %v113_v2  ;;  %v114_v10 = vld [vmem:[#allocation5 + $0x170] sm:$0xff]  ;;  %v176_v11 = vld [vmem:[#allocation5 + $0x360] sm:$0xff] }
  0x47   :  { %v178_v12 = vld [vmem:[#allocation5 + $0x370] sm:$0xff]  ;;  %v550_v13 = vpack.c.bf16 %v179_v5, %v177_v4  ;;  %v117_v14 = vld [vmem:[#allocation5 + $0x188] sm:$0xff]  ;;  %v119_v15 = vld [vmem:[#allocation5 + $0x198] sm:$0xff]  ;;  %v488_v20 = vpack.c.bf16 %v114_v10, %v112_v7 }
  0x48   :  { %473 = vmatpush1.bf16.msra.mxu1 %v472_v34  ;;  %v41_v16 = vld [vmem:[#allocation2 + $0x8] sm:$0xff]  ;;  %v183_v18 = vld [vmem:[#allocation5 + $0x398] sm:$0xff]  ;;  %v552_v21 = vpack.c.bf16 %v178_v12, %v176_v11  ;;  %v490_v22 = vpack.c.bf16 %v119_v15, %v117_v14  ;;  %v116_v23 = vld [vmem:[#allocation5 + $0x180] sm:$0xff] }
  0x49   :  { %537 = vmatpush1.bf16.msra.mxu0 %v536_v35  ;;  %475 = vmatprep.subr.bf16.mxu1 %v474_v36  ;;  %v181_v17 = vld [vmem:[#allocation5 + $0x388] sm:$0xff]  ;;  %v43_v19 = vld [vmem:[#allocation2 + $0x18] sm:$0xff]  ;;  %v118_v24 = vld [vmem:[#allocation5 + $0x190] sm:$0xff] }
  0x4a   :  { %539 = vmatprep.subr.bf16.mxu0 %v538_v40  ;;  %260 = vmatprep.mubr.f32.mxu1 %v41_v16  ;;  %v180_v25 = vld [vmem:[#allocation5 + $0x380] sm:$0xff]  ;;  %v554_v26 = vpack.c.bf16 %v183_v18, %v181_v17  ;;  %v182_v27 = vld [vmem:[#allocation5 + $0x390] sm:$0xff]  ;;  %v121_v28 = vld [vmem:[#allocation5 + $0x1a8] sm:$0xff]  ;;  %v492_v32 = vpack.c.bf16 %v118_v24, %v116_v23 }
  0x4b   :  { %367 = vmatprep.mubr.f32.mxu0 %v43_v19  ;;  %v123_v29 = vld [vmem:[#allocation5 + $0x1b8] sm:$0xff]  ;;  %v185_v30 = vld [vmem:[#allocation5 + $0x3a8] sm:$0xff]  ;;  %v556_v33 = vpack.c.bf16 %v182_v27, %v180_v25  ;;  %v120_v35 = vld [vmem:[#allocation5 + $0x1a0] sm:$0xff] }
  0x4c   :  { %477 = vmatpush1.bf16.msra.mxu1 %v476_v46  ;;  %v187_v31 = vld [vmem:[#allocation5 + $0x3b8] sm:$0xff]  ;;  %v494_v34 = vpack.c.bf16 %v123_v29, %v121_v28  ;;  %v122_v36 = vld [vmem:[#allocation5 + $0x1b0] sm:$0xff]  ;;  %v184_v37 = vld [vmem:[#allocation5 + $0x3a0] sm:$0xff] }
  0x4d   :  { %541 = vmatpush1.bf16.msra.mxu0 %v540_v47  ;;  %479 = vmatprep.subr.bf16.mxu1 %v478_v48  ;;  %v558_v38 = vpack.c.bf16 %v187_v31, %v185_v30  ;;  %v186_v39 = vld [vmem:[#allocation5 + $0x3b0] sm:$0xff]  ;;  %v125_v40 = vld [vmem:[#allocation5 + $0x1c8] sm:$0xff]  ;;  %v127_v41 = vld [vmem:[#allocation5 + $0x1d8] sm:$0xff]  ;;  %v496_v44 = vpack.c.bf16 %v122_v36, %v120_v35 }
  0x4e   :  { %543 = vmatprep.subr.bf16.mxu0 %v542_v52  ;;  %v189_v42 = vld [vmem:[#allocation5 + $0x3c8] sm:$0xff]  ;;  %v191_v43 = vld [vmem:[#allocation5 + $0x3d8] sm:$0xff]  ;;  %v560_v45 = vpack.c.bf16 %v186_v39, %v184_v37  ;;  %v498_v46 = vpack.c.bf16 %v127_v41, %v125_v40  ;;  %v124_v47 = vld [vmem:[#allocation5 + $0x1c0] sm:$0xff] }
  0x4f   :  { %v126_v48 = vld [vmem:[#allocation5 + $0x1d0] sm:$0xff]  ;;  %v188_v49 = vld [vmem:[#allocation5 + $0x3c0] sm:$0xff]  ;;  %v562_v50 = vpack.c.bf16 %v191_v43, %v189_v42  ;;  %v129_v52 = vld [vmem:[#allocation5 + $0x1e8] sm:$0xff] }
  0x50   :  { %481 = vmatpush1.bf16.msra.mxu1 %v480_v58  ;;  %v190_v51 = vld [vmem:[#allocation5 + $0x3d0] sm:$0xff]  ;;  %v131_v53 = vld [vmem:[#allocation5 + $0x1f8] sm:$0xff]  ;;  %v193_v54 = vld [vmem:[#allocation5 + $0x3e8] sm:$0xff]  ;;  %v500_v56 = vpack.c.bf16 %v126_v48, %v124_v47 }
  0x51   :  { %545 = vmatpush1.bf16.msra.mxu0 %v544_v59  ;;  %483 = vmatprep.subr.bf16.mxu1 %v482_v60  ;;  %v195_v55 = vld [vmem:[#allocation5 + $0x3f8] sm:$0xff]  ;;  %v564_v57 = vpack.c.bf16 %v190_v51, %v188_v49  ;;  %v502_v58 = vpack.c.bf16 %v131_v53, %v129_v52  ;;  %v128_v59 = vld [vmem:[#allocation5 + $0x1e0] sm:$0xff]  ;;  %v130_v60 = vld [vmem:[#allocation5 + $0x1f0] sm:$0xff] }
  0x52   :  { %547 = vmatprep.subr.bf16.mxu0 %v546_v0  ;;  %v566_v61 = vpack.c.bf16 %v195_v55, %v193_v54  ;;  %v192_v62 = vld [vmem:[#allocation5 + $0x3e0] sm:$0xff]  ;;  %v194_v63 = vld [vmem:[#allocation5 + $0x3f0] sm:$0xff]  ;;  %v504_v0 = vpack.c.bf16 %v130_v60, %v128_v59  ;;  %v45_v4 = vld [vmem:[#allocation2 + $0x28] sm:$0xff] }
  0x53   :  { %v568_v1 = vpack.c.bf16 %v194_v63, %v192_v62  ;;  %v40_v2 = vld [vmem:[#allocation2] sm:$0xff]  ;;  %v42_v3 = vld [vmem:[#allocation2 + $0x10] sm:$0xff]  ;;  %v47_v5 = vld [vmem:[#allocation2 + $0x38] sm:$0xff] }
  0x54   :  { %485 = vmatpush1.bf16.msra.mxu1 %v484_v6  ;;  %v44_v6 = vld [vmem:[#allocation2 + $0x20] sm:$0xff]  ;;  %v46_v7 = vld [vmem:[#allocation2 + $0x30] sm:$0xff]  ;;  %v53_v12 = vld [vmem:[#allocation2 + $0x68] sm:$0xff] }
  0x55   :  { %549 = vmatpush1.bf16.msra.mxu0 %v548_v8  ;;  %487 = vmatprep.subr.bf16.mxu1 %v486_v9  ;;  %v49_v8 = vld [vmem:[#allocation2 + $0x48] sm:$0xff]  ;;  %v51_v9 = vld [vmem:[#allocation2 + $0x58] sm:$0xff]  ;;  %v48_v10 = vld [vmem:[#allocation2 + $0x40] sm:$0xff] }
  0x56   :  { %551 = vmatprep.subr.bf16.mxu0 %v550_v13  ;;  %v50_v11 = vld [vmem:[#allocation2 + $0x50] sm:$0xff]  ;;  %v55_v13 = vld [vmem:[#allocation2 + $0x78] sm:$0xff]  ;;  %v52_v14 = vld [vmem:[#allocation2 + $0x60] sm:$0xff] }
  0x57   :  { %v54_v15 = vld [vmem:[#allocation2 + $0x70] sm:$0xff]  ;;  %v57_v16 = vld [vmem:[#allocation2 + $0x88] sm:$0xff]  ;;  %v59_v17 = vld [vmem:[#allocation2 + $0x98] sm:$0xff] }
  0x58   :  { %489 = vmatpush1.bf16.msra.mxu1 %v488_v20  ;;  %v56_v18 = vld [vmem:[#allocation2 + $0x80] sm:$0xff]  ;;  %v58_v19 = vld [vmem:[#allocation2 + $0x90] sm:$0xff]  ;;  %v61_v20 = vld [vmem:[#allocation2 + $0xa8] sm:$0xff] }
  0x59   :  { %553 = vmatpush1.bf16.msra.mxu0 %v552_v21  ;;  %491 = vmatprep.subr.bf16.mxu1 %v490_v22  ;;  %v63_v21 = vld [vmem:[#allocation2 + $0xb8] sm:$0xff]  ;;  %v60_v22 = vld [vmem:[#allocation2 + $0xa0] sm:$0xff]  ;;  %v62_v23 = vld [vmem:[#allocation2 + $0xb0] sm:$0xff] }
  0x5a   :  { %555 = vmatprep.subr.bf16.mxu0 %v554_v26  ;;  %v65_v24 = vld [vmem:[#allocation2 + $0xc8] sm:$0x3]  ;;  %v67_v25 = vld [vmem:[#allocation2 + $0xd8] sm:$0x3]  ;;  %v64_v26 = vld [vmem:[#allocation2 + $0xc0] sm:$0x3] }
  0x5b   :  { %v66_v27 = vld [vmem:[#allocation2 + $0xd0] sm:$0x3] }
  0x5c   :  { %493 = vmatpush1.bf16.msra.mxu1 %v492_v32 }
  0x5d   :  { %557 = vmatpush1.bf16.msra.mxu0 %v556_v33  ;;  %495 = vmatprep.subr.bf16.mxu1 %v494_v34 }
  0x5e   :  { %559 = vmatprep.subr.bf16.mxu0 %v558_v38 }
  0x60   :  { %497 = vmatpush1.bf16.msra.mxu1 %v496_v44 }
  0x61   :  { %561 = vmatpush1.bf16.msra.mxu0 %v560_v45  ;;  %499 = vmatprep.subr.bf16.mxu1 %v498_v46 }
  0x62   :  { %563 = vmatprep.subr.bf16.mxu0 %v562_v50 }
  0x64   :  { %501 = vmatpush1.bf16.msra.mxu1 %v500_v56 }
  0x65   :  { %565 = vmatpush1.bf16.msra.mxu0 %v564_v57  ;;  %503 = vmatprep.subr.bf16.mxu1 %v502_v58 }
  0x66   :  { %567 = vmatprep.subr.bf16.mxu0 %v566_v61 }
  0x68   :  { %505 = vmatpush1.bf16.msra.mxu1 %v504_v0 }
  0x69   :  { %569 = vmatpush1.bf16.msra.mxu0 %v568_v1 }
  0x6b   :  { %261 = vmatmul.mubr.f32.vlgmr.msra.gmra.mrb[0].mxu1 %v40_v2 }
  0x6c   :  { %368 = vmatmul.mubr.f32.vlgmr.msra.gmra.mrb[0].mxu0 %v42_v3  ;;  %266 = vmatprep.mubr.f32.mxu1 %v45_v4 }
  0x6d   :  { %373 = vmatprep.mubr.f32.mxu0 %v47_v5 }
  0x6f   :  { %267 = vmatmul.mubr.f32.gmra.mrb[2].mxu1 %v44_v6 }
  0x70   :  { %374 = vmatmul.mubr.f32.gmra.mrb[2].mxu0 %v46_v7  ;;  %272 = vmatprep.mubr.f32.mxu1 %v49_v8 }
  0x71   :  { %379 = vmatprep.mubr.f32.mxu0 %v51_v9 }
  0x73   :  { %273 = vmatmul.mubr.f32.gmra.mrb[4].mxu1 %v48_v10 }
  0x74   :  { %380 = vmatmul.mubr.f32.gmra.mrb[4].mxu0 %v50_v11  ;;  %278 = vmatprep.mubr.f32.mxu1 %v53_v12 }
  0x75   :  { %385 = vmatprep.mubr.f32.mxu0 %v55_v13 }
  0x77   :  { %279 = vmatmul.mubr.f32.gmra.mrb[6].mxu1 %v52_v14 }
  0x78   :  { %386 = vmatmul.mubr.f32.gmra.mrb[6].mxu0 %v54_v15  ;;  %284 = vmatprep.mubr.f32.mxu1 %v57_v16 }
  0x79   :  { %391 = vmatprep.mubr.f32.mxu0 %v59_v17 }
  0x7b   :  { %285 = vmatmul.mubr.f32.gmra.mrb[8].mxu1 %v56_v18 }
  0x7c   :  { %392 = vmatmul.mubr.f32.gmra.mrb[8].mxu0 %v58_v19  ;;  %290 = vmatprep.mubr.f32.mxu1 %v61_v20 }
  0x7d   :  { %397 = vmatprep.mubr.f32.mxu0 %v63_v21 }
  0x7f   :  { %291 = vmatmul.mubr.f32.gmra.mrb[10].mxu1 %v60_v22 }
  0x80   :  { %398 = vmatmul.mubr.f32.gmra.mrb[10].mxu0 %v62_v23  ;;  %296 = vmatprep.mubr.f32.mxu1 %v65_v24 }
  0x81   :  { %403 = vmatprep.mubr.f32.mxu0 %v67_v25 }
  0x83   :  { %297 = vmatmul.mubr.f32.gmra.mrb[12].mxu1 %v64_v26 }
  0x84   :  { %404 = vmatmul.mubr.f32.gmra.mrb[12].mxu0 %v66_v27 }
 0x13e   :  { %v262_v28 = vpop.f32.mrb[0].mxu1 }
 0x13f   :  { %v369_v29 = vpop.f32.mrb[0].mxu0  ;;  %v264_v30 = vpop.f32.mrb[1].mxu1 }
 0x140   :  { %v370_v31 = vadd.f32 %v369_v29, %v262_v28  ;;  %v371_v32 = vpop.f32.mrb[1].mxu0 }
 0x141   :  { %v372_v33 = vadd.f32 %v371_v32, %v264_v30 }
 0x142   :  { %410 = vst [vmem:[#allocation7] sm:$0xff] %v370_v31  ;;  %v268_v34 = vpop.f32.mrb[2].mxu1 }
 0x143   :  { %411 = vst [vmem:[#allocation7 + $0x8] sm:$0xff] %v372_v33  ;;  %v375_v35 = vpop.f32.mrb[2].mxu0  ;;  %v270_v36 = vpop.f32.mrb[3].mxu1 }
 0x144   :  { %v376_v37 = vadd.f32 %v375_v35, %v268_v34  ;;  %v377_v38 = vpop.f32.mrb[3].mxu0 }
 0x145   :  { %v378_v39 = vadd.f32 %v377_v38, %v270_v36 }
 0x146   :  { %412 = vst [vmem:[#allocation7 + $0x10] sm:$0xff] %v376_v37  ;;  %v274_v40 = vpop.f32.mrb[4].mxu1 }
 0x147   :  { %413 = vst [vmem:[#allocation7 + $0x18] sm:$0xff] %v378_v39  ;;  %v381_v41 = vpop.f32.mrb[4].mxu0  ;;  %v276_v42 = vpop.f32.mrb[5].mxu1 }
 0x148   :  { %v382_v43 = vadd.f32 %v381_v41, %v274_v40  ;;  %v383_v44 = vpop.f32.mrb[5].mxu0 }
 0x149   :  { %v384_v45 = vadd.f32 %v383_v44, %v276_v42 }
 0x14a   :  { %414 = vst [vmem:[#allocation7 + $0x20] sm:$0xff] %v382_v43  ;;  %v280_v46 = vpop.f32.mrb[6].mxu1 }
 0x14b   :  { %415 = vst [vmem:[#allocation7 + $0x28] sm:$0xff] %v384_v45  ;;  %v387_v47 = vpop.f32.mrb[6].mxu0  ;;  %v282_v48 = vpop.f32.mrb[7].mxu1 }
 0x14c   :  { %v388_v49 = vadd.f32 %v387_v47, %v280_v46  ;;  %v389_v50 = vpop.f32.mrb[7].mxu0 }
 0x14d   :  { %v390_v51 = vadd.f32 %v389_v50, %v282_v48 }
 0x14e   :  { %416 = vst [vmem:[#allocation7 + $0x30] sm:$0xff] %v388_v49  ;;  %v286_v52 = vpop.f32.mrb[8].mxu1 }
 0x14f   :  { %417 = vst [vmem:[#allocation7 + $0x38] sm:$0xff] %v390_v51  ;;  %v393_v53 = vpop.f32.mrb[8].mxu0  ;;  %v288_v54 = vpop.f32.mrb[9].mxu1 }
 0x150   :  { %v394_v55 = vadd.f32 %v393_v53, %v286_v52  ;;  %v395_v56 = vpop.f32.mrb[9].mxu0 }
 0x151   :  { %v396_v57 = vadd.f32 %v395_v56, %v288_v54 }
 0x152   :  { %418 = vst [vmem:[#allocation7 + $0x40] sm:$0xff] %v394_v55  ;;  %v292_v58 = vpop.f32.mrb[10].mxu1 }
 0x153   :  { %419 = vst [vmem:[#allocation7 + $0x48] sm:$0xff] %v396_v57  ;;  %v399_v59 = vpop.f32.mrb[10].mxu0  ;;  %v294_v60 = vpop.f32.mrb[11].mxu1 }
 0x154   :  { %v400_v61 = vadd.f32 %v399_v59, %v292_v58  ;;  %v401_v62 = vpop.f32.mrb[11].mxu0 }
 0x155   :  { %v402_v63 = vadd.f32 %v401_v62, %v294_v60 }
 0x156   :  { %420 = vst [vmem:[#allocation7 + $0x50] sm:$0xff] %v400_v61  ;;  %v298_v0 = vpop.f32.mrb[12].mxu1 }
 0x157   :  { %421 = vst [vmem:[#allocation7 + $0x58] sm:$0xff] %v402_v63  ;;  %v405_v1 = vpop.f32.mrb[12].mxu0  ;;  %v300_v2 = vpop.f32.mrb[13].mxu1 }
 0x158   :  { %v406_v3 = vadd.f32 %v405_v1, %v298_v0  ;;  %v407_v4 = vpop.f32.mrb[13].mxu0 }
 0x159   :  { %v408_v5 = vadd.f32 %v407_v4, %v300_v2 }
 0x15a   :  { %422 = vst [vmem:[#allocation7 + $0x60] sm:$0x3] %v406_v3 }
 0x15b   :  { %423 = vst [vmem:[#allocation7 + $0x68] sm:$0x3] %v408_v5 }
 0x15c   :  { %646 = shalt.err (!%p643_p6)
}
 0x15d   :  { %s647_s12 = scalar_lea.hbm %s729_s2, 1792 }
 0x15e   :  { %p648_p7 = scmp.ne.s32.totalorder %s729_s2, %s647_s12  ;;  %p651_p8 = scmp.lt.u32.totalorder %s647_s12, %s729_s2 }
 0x160   :  { %p653_p9 = pnand %p651_p8, %p648_p7 }
 0x162   :  { %656 = shalt.err (!%p653_p9)
}
 0x163   :  { %435 = dma.vmem_to_hbm [thread:$0]  %s430_s8, 1792, %s729_s2, [#allocation4], %s667_s0, %s667_s0, %s668_s5  }
 0x164   :  { %661 = dma.done.wait [#allocation4], 1792  }
 0x165   :  { %662 = vsyncadd [#allocation4], 4294965504 }
 0x166   :  { %439 = vsyncpa [#allocation3], 1 }
 0x167   :  { %440 = vsyncpa [#allocation6], 1 }
 0x168   :  { %441 = vsyncpa [#allocation4], 1 }

// kernel: generator128.21
= control target key start
LH: loop header
LB: loop body
LE: loop exit
PB: predicated region body
PF: predicated region fallthrough
CT: control target
= control target key end

     0   :  { %8 = vsyncpa [#allocation3], 0  ;;  %s252_s0 = inlined_call_operand.hbm [shape: f32[64,128], index: 0, kind: input, shape index: {}]   ;;  %s253_s1 = inlined_call_operand.hbm [shape: f32[1,128], index: 1, kind: output, shape index: {0}]   ;;  %s254_s2 = inlined_call_operand.hbm [shape: f32[1,128], index: 2, kind: output, shape index: {1}]  }
   0x1   :  { %9 = vsyncpa [#allocation4], 0 }
   0x2   :  { %10 = vsyncpa [#allocation7], 0  ;;  %s187_s9 = smov [#allocation2]   ;;  %s115_s13 = scalar_lea.hbm %s252_s0, 1024 }
   0x3   :  { %s16_s10 = sshll.u32 %s187_s9, 4  ;;  %p116_p0 = scmp.ne.s32.totalorder %s252_s0, %s115_s13  ;;  %s17_s10 = int_to_ptr.vmem [resolvable:$true] %s16_s10 }
   0x4   :  { %p119_p1 = scmp.lt.u32.totalorder %s115_s13, %s252_s0 }
   0x6   :  { %p121_p2 = pnand %p119_p1, %p116_p0 }
   0x8   :  { %124 = shalt.err (!%p121_p2)
}
   0x9   :  { %s125_s18 = scalar_lea.vmem %s17_s10, 1024  ;;  %p130_p4 = scmp.lt.s32.totalorder %s17_s10, %s17_s10 }
   0xa   :  { %p126_p3 = scmp.ne.s32.totalorder %s17_s10, %s125_s18  ;;  %p131_p5 = scmp.lt.s32.totalorder %s125_s18, %s125_s18 }
   0xc   :  { %p132_p6 = por %p131_p5, %p130_p4 }
   0xe   :  { %p133_p7 = pnand %p132_p6, %p126_p3 }
  0x10   :  { %136 = shalt.err (!%p133_p7)
}
  0x11   :  { %s188_s19 = smov 128   ;;  %s189_s20 = smov 8  }
  0x12   :  { %22 = dma.hbm_to_vmem [thread:$0]  %s252_s0, 1024, %s17_s10, [#allocation3], %s188_s19, %s188_s19, %s189_s20  }
  0x13   :  { %181 = dma.done.wait [#allocation3], 1024  }
  0x14   :  { %182 = vsyncadd [#allocation3], 4294966272  ;;  %v190_v0 = vmov 0.0   ;;  %v32_v1 = vld [vmem:[#allocation2] sm:$0xff]  ;;  %v33_v2 = vld [vmem:[#allocation2 + $0x8] sm:$0xff]  ;;  %s191_s0 = smov [#allocation5]  }
  0x15   :  { %30 = vst [vmem:[#allocation5] sm:$0x1] %v190_v0  ;;  %31 = vst [vmem:[#allocation6] sm:$0x1] %v190_v0  ;;  %v34_v3 = vld [vmem:[#allocation2 + $0x10] sm:$0xff]  ;;  %v35_v4 = vld [vmem:[#allocation2 + $0x18] sm:$0xff]  ;;  %v41_v5 = vadd.f32 %v33_v2, %v32_v1  ;;  %v57_v6 = vmul.f32 %v32_v1, %v32_v1  ;;  %v58_v7 = vmul.f32 %v33_v2, %v33_v2 }
  0x16   :  { %v59_v8 = vmul.f32 %v34_v3, %v34_v3  ;;  %v36_v9 = vld [vmem:[#allocation2 + $0x20] sm:$0xff]  ;;  %v60_v11 = vmul.f32 %v35_v4, %v35_v4  ;;  %v37_v13 = vld [vmem:[#allocation2 + $0x28] sm:$0xff]  ;;  %v38_v17 = vld [vmem:[#allocation2 + $0x30] sm:$0xff]  ;;  %s86_s23 = sshll.u32 %s191_s0, 4  ;;  %s192_s24 = smov [#allocation6]   ;;  %s87_s23 = int_to_ptr.vmem [resolvable:$true] %s86_s23 }
  0x17   :  { %v42_v10 = vadd.f32 %v41_v5, %v34_v3  ;;  %v65_v12 = vadd.f32 %v58_v7, %v57_v6  ;;  %v61_v15 = vmul.f32 %v36_v9, %v36_v9  ;;  %v62_v19 = vmul.f32 %v37_v13, %v37_v13  ;;  %v39_v21 = vld [vmem:[#allocation2 + $0x38] sm:$0xff]  ;;  %s96_s25 = sshll.u32 %s192_s24, 4  ;;  %s137_s26 = scalar_lea.vmem %s87_s23, 16  ;;  %s220_s25 = int_to_ptr.vmem [resolvable:$true] %s96_s25 }
  0x18   :  { %v63_v23 = vmul.f32 %v38_v17, %v38_v17  ;;  %v64_v26 = vmul.f32 %v39_v21, %v39_v21  ;;  %p138_p8 = scmp.ne.s32.totalorder %s87_s23, %s137_s26  ;;  %s141_s27 = scalar_lea.vmem %s87_s23, 32 }
  0x19   :  { %v43_v14 = vadd.f32 %v42_v10, %v35_v4  ;;  %v66_v16 = vadd.f32 %v65_v12, %v59_v8  ;;  %p142_p9 = scmp.lt.s32.totalorder %s87_s23, %s87_s23  ;;  %p143_p10 = scmp.lt.s32.totalorder %s141_s27, %s137_s26 }
  0x1b   :  { %v44_v18 = vadd.f32 %v43_v14, %v36_v9  ;;  %v67_v20 = vadd.f32 %v66_v16, %v60_v11  ;;  %p144_p11 = por %p143_p10, %p142_p9 }
  0x1c   :  { %v40_v40 = vld [vmem:[#allocation5] sm:$0x1]  ;;  %v56_v43 = vld [vmem:[#allocation6] sm:$0x1] }
  0x1d   :  { %v45_v22 = vadd.f32 %v44_v18, %v37_v13  ;;  %v68_v24 = vadd.f32 %v67_v20, %v61_v15  ;;  %p145_p12 = pnand %p144_p11, %p138_p8 }
  0x1f   :  { %v46_v25 = vadd.f32 %v45_v22, %v38_v17  ;;  %v69_v27 = vadd.f32 %v68_v24, %v62_v19 }
  0x21   :  { %v47_v28 = vadd.f32 %v46_v25, %v39_v21  ;;  %v70_v29 = vadd.f32 %v69_v27, %v63_v23 }
  0x23   :  { %v48_v30 = vrot.slane %v47_v28, 4  ;;  %v71_v31 = vadd.f32 %v70_v29, %v64_v26 }
  0x25   :  { %v49_v32 = vadd.f32 %v48_v30, %v47_v28  ;;  %v72_v33 = vrot.slane %v71_v31, 4 }
  0x27   :  { %v50_v34 = vrot.slane %v49_v32, 2  ;;  %v73_v35 = vadd.f32 %v72_v33, %v71_v31 }
  0x29   :  { %v51_v36 = vadd.f32 %v50_v34, %v49_v32  ;;  %v74_v37 = vrot.slane %v73_v35, 2 }
  0x2b   :  { %v52_v38 = vrot.slane %v51_v36, 1  ;;  %v75_v39 = vadd.f32 %v74_v37, %v73_v35 }
  0x2d   :  { %v53_v41 = vadd.f32 %v52_v38, %v51_v36  ;;  %v76_v42 = vrot.slane %v75_v39, 1 }
  0x2f   :  { %v54_v44 = vadd.f32 %v53_v41, %v40_v40  ;;  %v77_v45 = vadd.f32 %v76_v42, %v75_v39 }
  0x31   :  { %55 = vst [vmem:[#allocation5] sm:$0x1] %v54_v44  ;;  %v78_v46 = vadd.f32 %v77_v45, %v56_v43 }
  0x32   :  { %148 = shalt.err (!%p145_p12)
}
  0x33   :  { %s149_s30 = scalar_lea.hbm %s253_s1, 16 }
  0x34   :  { %p150_p13 = scmp.ne.s32.totalorder %s253_s1, %s149_s30  ;;  %p153_p0 = scmp.lt.u32.totalorder %s149_s30, %s253_s1 }
  0x36   :  { %p155_p1 = pnand %p153_p0, %p150_p13 }
  0x38   :  { %158 = shalt.err (!%p155_p1)
}
  0x39   :  { %89 = dma.vmem_to_hbm [thread:$0]  %s87_s23, 16, %s253_s1, [#allocation4]   ;;  %79 = vst [vmem:[#allocation6] sm:$0x1] %v78_v46 }
  0x3a   :  { %s159_s9 = scalar_lea.vmem %s220_s25, 16  ;;  %s163_s10 = scalar_lea.vmem %s220_s25, 32 }
  0x3b   :  { %p160_p2 = scmp.ne.s32.totalorder %s220_s25, %s159_s9  ;;  %p164_p3 = scmp.lt.s32.totalorder %s220_s25, %s220_s25 }
  0x3c   :  { %p165_p4 = scmp.lt.s32.totalorder %s163_s10, %s159_s9 }
  0x3e   :  { %p166_p5 = por %p165_p4, %p164_p3 }
  0x40   :  { %p167_p6 = pnand %p166_p5, %p160_p2 }
  0x42   :  { %170 = shalt.err (!%p167_p6)
}
  0x43   :  { %s171_s13 = scalar_lea.hbm %s254_s2, 16 }
  0x44   :  { %p172_p7 = scmp.ne.s32.totalorder %s254_s2, %s171_s13  ;;  %p175_p8 = scmp.lt.u32.totalorder %s171_s13, %s254_s2 }
  0x46   :  { %p177_p9 = pnand %p175_p8, %p172_p7 }
  0x48   :  { %180 = shalt.err (!%p177_p9)
}
  0x49   :  { %99 = dma.vmem_to_hbm [thread:$0]  %s220_s25, 16, %s254_s2, [#allocation7]  }
  0x4a   :  { %183 = dma.done.wait [#allocation4], 16  }
  0x4b   :  { %184 = vsyncadd [#allocation4], 4294967280 }
  0x4c   :  { %185 = dma.done.wait [#allocation7], 16  }
  0x4d   :  { %186 = vsyncadd [#allocation7], 4294967280 }
  0x4e   :  { %106 = vsyncpa [#allocation3], 1 }
  0x4f   :  { %107 = vsyncpa [#allocation4], 1 }
  0x50   :  { %108 = vsyncpa [#allocation7], 1 }

// kernel: generator128.22
= control target key start
LH: loop header
LB: loop body
LE: loop exit
PB: predicated region body
PF: predicated region fallthrough
CT: control target
= control target key end

     0   :  { %8 = vsyncpa [#allocation3], 0  ;;  %s313_s0 = inlined_call_operand.hbm [shape: f32[64,128], index: 0, kind: input, shape index: {}]   ;;  %s314_s1 = inlined_call_operand.hbm [shape: f32[1,128], index: 1, kind: input, shape index: {}]   ;;  %s315_s2 = inlined_call_operand.hbm [shape: f32[1,128], index: 2, kind: input, shape index: {}]   ;;  %s316_s3 = inlined_call_operand.hbm [shape: f32[64,128], index: 3, kind: output, shape index: {}]  }
   0x1   :  { %9 = vsyncpa [#allocation6], 0 }
   0x2   :  { %10 = vsyncpa [#allocation4], 0  ;;  %s226_s12 = smov [#allocation5]   ;;  %s227_s14 = smov [#allocation2]  }
   0x3   :  { %s29_s13 = sshll.u32 %s226_s12, 4  ;;  %s16_s15 = sshll.u32 %s227_s14, 4  ;;  %s30_s13 = int_to_ptr.vmem [resolvable:$true] %s29_s13  ;;  %s252_s15 = int_to_ptr.vmem [resolvable:$true] %s16_s15 }
   0x4   :  { %s132_s18 = scalar_lea.hbm %s314_s1, 16 }
   0x5   :  { %p133_p0 = scmp.ne.s32.totalorder %s314_s1, %s132_s18  ;;  %p136_p1 = scmp.lt.u32.totalorder %s132_s18, %s314_s1 }
   0x7   :  { %p138_p2 = pnand %p136_p1, %p133_p0 }
   0x9   :  { %141 = shalt.err (!%p138_p2)
}
   0xa   :  { %s142_s23 = scalar_lea.vmem %s30_s13, 16  ;;  %s146_s24 = scalar_lea.vmem %s30_s13, 32 }
   0xb   :  { %p143_p3 = scmp.ne.s32.totalorder %s30_s13, %s142_s23  ;;  %p147_p4 = scmp.lt.s32.totalorder %s30_s13, %s30_s13 }
   0xc   :  { %p148_p5 = scmp.lt.s32.totalorder %s146_s24, %s142_s23 }
   0xe   :  { %p149_p6 = por %p148_p5, %p147_p4 }
  0x10   :  { %p150_p7 = pnand %p149_p6, %p143_p3 }
  0x12   :  { %153 = shalt.err (!%p150_p7)
}
  0x13   :  { %32 = dma.hbm_to_vmem [thread:$0]  %s314_s1, 16, %s30_s13, [#allocation6]  }
  0x14   :  { %s154_s29 = scalar_lea.hbm %s313_s0, 1024 }
  0x15   :  { %p155_p8 = scmp.ne.s32.totalorder %s313_s0, %s154_s29  ;;  %p158_p9 = scmp.lt.u32.totalorder %s154_s29, %s313_s0 }
  0x17   :  { %p160_p10 = pnand %p158_p9, %p155_p8 }
  0x19   :  { %163 = shalt.err (!%p160_p10)
}
  0x1a   :  { %s164_s7 = scalar_lea.vmem %s252_s15, 1024  ;;  %p169_p12 = scmp.lt.s32.totalorder %s252_s15, %s252_s15 }
  0x1b   :  { %p165_p11 = scmp.ne.s32.totalorder %s252_s15, %s164_s7  ;;  %p170_p13 = scmp.lt.s32.totalorder %s164_s7, %s164_s7 }
  0x1d   :  { %p171_p0 = por %p170_p13, %p169_p12 }
  0x1f   :  { %p172_p1 = pnand %p171_p0, %p165_p11 }
  0x21   :  { %175 = shalt.err (!%p172_p1)
}
  0x22   :  { %s228_s1 = smov 128   ;;  %s229_s8 = smov 8  }
  0x23   :  { %22 = dma.hbm_to_vmem [thread:$0]  %s313_s0, 1024, %s252_s15, [#allocation3], %s228_s1, %s228_s1, %s229_s8  }
  0x24   :  { %s230_s11 = smov [#allocation7]   ;;  %s176_s16 = scalar_lea.hbm %s315_s2, 16 }
  0x25   :  { %s39_s12 = sshll.u32 %s230_s11, 4  ;;  %p177_p2 = scmp.ne.s32.totalorder %s315_s2, %s176_s16  ;;  %s40_s12 = int_to_ptr.vmem [resolvable:$true] %s39_s12 }
  0x26   :  { %p180_p3 = scmp.lt.u32.totalorder %s176_s16, %s315_s2 }
  0x28   :  { %p182_p4 = pnand %p180_p3, %p177_p2 }
  0x2a   :  { %185 = shalt.err (!%p182_p4)
}
  0x2b   :  { %s186_s21 = scalar_lea.vmem %s40_s12, 16  ;;  %s190_s0 = scalar_lea.vmem %s40_s12, 32 }
  0x2c   :  { %p187_p5 = scmp.ne.s32.totalorder %s40_s12, %s186_s21  ;;  %p191_p6 = scmp.lt.s32.totalorder %s40_s12, %s40_s12 }
  0x2d   :  { %p192_p7 = scmp.lt.s32.totalorder %s190_s0, %s186_s21 }
  0x2f   :  { %p193_p8 = por %p192_p7, %p191_p6 }
  0x31   :  { %p194_p9 = pnand %p193_p8, %p187_p5 }
  0x33   :  { %197 = shalt.err (!%p194_p9)
}
  0x34   :  { %42 = dma.hbm_to_vmem [thread:$0]  %s315_s2, 16, %s40_s12, [#allocation6]  }
  0x35   :  { %220 = dma.done.wait [#allocation3], 1024  }
  0x36   :  { %221 = vsyncadd [#allocation3], 4294966272 }
  0x37   :  { %222 = dma.done.wait [#allocation6], 32  }
  0x38   :  { %223 = vsyncadd [#allocation6], 4294967264  ;;  %v52_v0 = vld [vmem:[#allocation2] sm:$0xff]  ;;  %v53_v4 = vld [vmem:[#allocation2 + $0x8] sm:$0xff]  ;;  %s231_s2 = smov [#allocation8]  }
  0x39   :  { %v124_v1 = vld [vmem:[#allocation5] ss:$0 sm:$0xff]  ;;  %v125_v2 = vld [vmem:[#allocation7] ss:$0 sm:$0xff]  ;;  %v54_v5 = vld [vmem:[#allocation2 + $0x10] sm:$0xff]  ;;  %s111_s23 = sshll.u32 %s231_s2, 4  ;;  %s112_s23 = int_to_ptr.vmem [resolvable:$true] %s111_s23 }
  0x3a   :  { %v67_v3 = vmul.f32 %v124_v1, %v52_v0  ;;  %v55_v6 = vld [vmem:[#allocation2 + $0x18] sm:$0xff]  ;;  %v68_v7 = vmul.f32 %v124_v1, %v53_v4  ;;  %v69_v8 = vmul.f32 %v124_v1, %v54_v5  ;;  %v56_v10 = vld [vmem:[#allocation2 + $0x20] sm:$0xff]  ;;  %v57_v11 = vld [vmem:[#allocation2 + $0x28] sm:$0xff]  ;;  %s198_s24 = scalar_lea.vmem %s112_s23, 1024  ;;  %p203_p11 = scmp.lt.s32.totalorder %s112_s23, %s112_s23 }
  0x3b   :  { %v70_v9 = vmul.f32 %v124_v1, %v55_v6  ;;  %v58_v12 = vld [vmem:[#allocation2 + $0x30] sm:$0xff]  ;;  %v71_v14 = vmul.f32 %v124_v1, %v56_v10  ;;  %v72_v15 = vmul.f32 %v124_v1, %v57_v11  ;;  %v59_v17 = vld [vmem:[#allocation2 + $0x38] sm:$0xff]  ;;  %p199_p10 = scmp.ne.s32.totalorder %s112_s23, %s198_s24  ;;  %p204_p12 = scmp.lt.s32.totalorder %s198_s24, %s198_s24 }
  0x3c   :  { %v82_v13 = vadd.f32 %v125_v2, %v67_v3  ;;  %v73_v16 = vmul.f32 %v124_v1, %v58_v12  ;;  %v83_v18 = vadd.f32 %v125_v2, %v68_v7  ;;  %v84_v19 = vadd.f32 %v125_v2, %v69_v8 }
  0x3d   :  { %v85_v20 = vadd.f32 %v125_v2, %v70_v9  ;;  %v74_v21 = vmul.f32 %v124_v1, %v59_v17  ;;  %v86_v23 = vadd.f32 %v125_v2, %v71_v14  ;;  %v87_v24 = vadd.f32 %v125_v2, %v72_v15  ;;  %p205_p13 = por %p204_p12, %p203_p11 }
  0x3e   :  { %v90_v22 = vmax.f32 %v82_v13, 0.0  ;;  %v88_v25 = vadd.f32 %v125_v2, %v73_v16  ;;  %v91_v26 = vmax.f32 %v83_v18, 0.0  ;;  %v92_v27 = vmax.f32 %v84_v19, 0.0 }
  0x3f   :  { %v93_v28 = vmax.f32 %v85_v20, 0.0  ;;  %v89_v29 = vadd.f32 %v125_v2, %v74_v21  ;;  %v94_v30 = vmax.f32 %v86_v23, 0.0  ;;  %v95_v31 = vmax.f32 %v87_v24, 0.0  ;;  %p206_p0 = pnand %p205_p13, %p199_p10 }
  0x40   :  { %98 = vst [vmem:[#allocation8] sm:$0xff] %v90_v22  ;;  %v96_v32 = vmax.f32 %v88_v25, 0.0  ;;  %99 = vst [vmem:[#allocation8 + $0x8] sm:$0xff] %v91_v26 }
  0x41   :  { %100 = vst [vmem:[#allocation8 + $0x10] sm:$0xff] %v92_v27  ;;  %101 = vst [vmem:[#allocation8 + $0x18] sm:$0xff] %v93_v28  ;;  %v97_v33 = vmax.f32 %v89_v29, 0.0 }
  0x42   :  { %102 = vst [vmem:[#allocation8 + $0x20] sm:$0xff] %v94_v30  ;;  %103 = vst [vmem:[#allocation8 + $0x28] sm:$0xff] %v95_v31 }
  0x43   :  { %104 = vst [vmem:[#allocation8 + $0x30] sm:$0xff] %v96_v32  ;;  %105 = vst [vmem:[#allocation8 + $0x38] sm:$0xff] %v97_v33 }
  0x44   :  { %209 = shalt.err (!%p206_p0)
}
  0x45   :  { %s210_s27 = scalar_lea.hbm %s316_s3, 1024 }
  0x46   :  { %p211_p1 = scmp.ne.s32.totalorder %s316_s3, %s210_s27  ;;  %p214_p2 = scmp.lt.u32.totalorder %s210_s27, %s316_s3 }
  0x48   :  { %p216_p3 = pnand %p214_p2, %p211_p1 }
  0x4a   :  { %219 = shalt.err (!%p216_p3)
}
  0x4b   :  { %117 = dma.vmem_to_hbm [thread:$0]  %s112_s23, 1024, %s316_s3, [#allocation4], %s228_s1, %s228_s1, %s229_s8  }
  0x4c   :  { %224 = dma.done.wait [#allocation4], 1024  }
  0x4d   :  { %225 = vsyncadd [#allocation4], 4294966272 }
  0x4e   :  { %121 = vsyncpa [#allocation3], 1 }
  0x4f   :  { %122 = vsyncpa [#allocation6], 1 }
  0x50   :  { %123 = vsyncpa [#allocation4], 1 }

// kernel: generator128.23
= control target key start
LH: loop header
LB: loop body
LE: loop exit
PB: predicated region body
PF: predicated region fallthrough
CT: control target
= control target key end

     0   :  { %7 = vsyncpa [#allocation3], 0  ;;  %s580_s0 = inlined_call_operand.hbm [shape: f32[162,256], index: 0, kind: input, shape index: {}]   ;;  %s581_s1 = inlined_call_operand.hbm [shape: f32[256,128], index: 1, kind: input, shape index: {}]   ;;  %s582_s2 = inlined_call_operand.hbm [shape: f32[162,128], index: 2, kind: output, shape index: {}]  }
   0x1   :  { %8 = vsyncpa [#allocation6], 0 }
   0x2   :  { %9 = vsyncpa [#allocation4], 0  ;;  %s483_s9 = smov [#allocation2]   ;;  %s411_s13 = scalar_lea.hbm %s580_s0, 5376 }
   0x3   :  { %s15_s10 = sshll.u32 %s483_s9, 4  ;;  %p412_p0 = scmp.ne.s32.totalorder %s580_s0, %s411_s13  ;;  %s16_s10 = int_to_ptr.vmem [resolvable:$true] %s15_s10 }
   0x4   :  { %p415_p1 = scmp.lt.u32.totalorder %s411_s13, %s580_s0 }
   0x6   :  { %p417_p2 = pnand %p415_p1, %p412_p0 }
   0x8   :  { %420 = shalt.err (!%p417_p2)
}
   0x9   :  { %s421_s18 = scalar_lea.vmem %s16_s10, 5376  ;;  %p426_p4 = scmp.lt.s32.totalorder %s16_s10, %s16_s10 }
   0xa   :  { %p422_p3 = scmp.ne.s32.totalorder %s16_s10, %s421_s18  ;;  %p427_p5 = scmp.lt.s32.totalorder %s421_s18, %s421_s18 }
   0xc   :  { %p428_p6 = por %p427_p5, %p426_p4 }
   0xe   :  { %p429_p7 = pnand %p428_p6, %p422_p3 }
  0x10   :  { %432 = shalt.err (!%p429_p7)
}
  0x11   :  { %s484_s19 = smov 256   ;;  %s485_s20 = smov 16  }
  0x12   :  { %21 = dma.hbm_to_vmem [thread:$0]  %s580_s0, 5376, %s16_s10, [#allocation3], %s484_s19, %s484_s19, %s485_s20  }
  0x13   :  { %s486_s23 = smov [#allocation5]   ;;  %s433_s27 = scalar_lea.hbm %s581_s1, 4096 }
  0x14   :  { %s27_s24 = sshll.u32 %s486_s23, 4  ;;  %p434_p8 = scmp.ne.s32.totalorder %s581_s1, %s433_s27  ;;  %s28_s24 = int_to_ptr.vmem [resolvable:$true] %s27_s24 }
  0x15   :  { %p437_p9 = scmp.lt.u32.totalorder %s433_s27, %s581_s1 }
  0x17   :  { %p439_p10 = pnand %p437_p9, %p434_p8 }
  0x19   :  { %442 = shalt.err (!%p439_p10)
}
  0x1a   :  { %s443_s4 = scalar_lea.vmem %s28_s24, 4096  ;;  %p448_p12 = scmp.lt.s32.totalorder %s28_s24, %s28_s24 }
  0x1b   :  { %p444_p11 = scmp.ne.s32.totalorder %s28_s24, %s443_s4  ;;  %p449_p13 = scmp.lt.s32.totalorder %s443_s4, %s443_s4 }
  0x1d   :  { %p450_p0 = por %p449_p13, %p448_p12 }
  0x1f   :  { %p451_p1 = pnand %p450_p0, %p444_p11 }
  0x21   :  { %454 = shalt.err (!%p451_p1)
}
  0x22   :  { %s487_s0 = smov 128   ;;  %s488_s5 = smov 8  }
  0x23   :  { %33 = dma.hbm_to_vmem [thread:$0]  %s581_s1, 4096, %s28_s24, [#allocation6], %s487_s0, %s487_s0, %s488_s5  }
  0x24   :  { %477 = dma.done.wait [#allocation3], 5376  }
  0x25   :  { %478 = vsyncadd [#allocation3], 4294961920 }
  0x26   :  { %479 = dma.done.wait [#allocation6], 4096  }
  0x27   :  { %480 = vsyncadd [#allocation6], 4294963200  ;;  %v489_v0 = vmov 0.0|0.0   ;;  %v82_v1 = vld [vmem:[#allocation5] sm:$0xff]  ;;  %v83_v2 = vld [vmem:[#allocation5 + $0x8] sm:$0xff]  ;;  %s490_s1 = smov [#allocation7]  }
  0x28   :  { %323 = vmatprep.subr.bf16.mxu0 %v489_v0  ;;  %371 = vmatprep.subr.bf16.mxu1 %v489_v0  ;;  %v84_v3 = vld [vmem:[#allocation5 + $0x10] sm:$0xff]  ;;  %v324_v4 = vpack.c.bf16 %v83_v2, %v82_v1  ;;  %v85_v5 = vld [vmem:[#allocation5 + $0x18] sm:$0xff]  ;;  %v86_v7 = vld [vmem:[#allocation5 + $0x20] sm:$0xff]  ;;  %s310_s8 = sshll.u32 %s490_s1, 4  ;;  %s311_s8 = int_to_ptr.vmem [resolvable:$true] %s310_s8 }
  0x29   :  { %v327_v6 = vpack.c.bf16 %v85_v5, %v84_v3  ;;  %v87_v8 = vld [vmem:[#allocation5 + $0x28] sm:$0xff]  ;;  %v88_v10 = vld [vmem:[#allocation5 + $0x30] sm:$0xff]  ;;  %v89_v11 = vld [vmem:[#allocation5 + $0x38] sm:$0xff]  ;;  %s455_s9 = scalar_lea.vmem %s311_s8, 2688  ;;  %p460_p3 = scmp.lt.s32.totalorder %s311_s8, %s311_s8 }
  0x2a   :  { %325 = vmatpush1.bf16.msra.mxu0 %v324_v4  ;;  %387 = vmatpush1.bf16.msra.mxu1 %v324_v4  ;;  %v330_v9 = vpack.c.bf16 %v87_v8, %v86_v7  ;;  %v41_v12 = vld [vmem:[#allocation2 + $0x8] sm:$0xff]  ;;  %v333_v13 = vpack.c.bf16 %v89_v11, %v88_v10  ;;  %v63_v14 = vld [vmem:[#allocation2 + $0xb8] sm:$0xff]  ;;  %v90_v15 = vld [vmem:[#allocation5 + $0x40] sm:$0xff]  ;;  %p456_p2 = scmp.ne.s32.totalorder %s311_s8, %s455_s9  ;;  %p461_p4 = scmp.lt.s32.totalorder %s455_s9, %s455_s9 }
  0x2b   :  { %326 = vmatprep.subr.bf16.mxu0 %v489_v0  ;;  %372 = vmatprep.subr.bf16.mxu1 %v489_v0  ;;  %v91_v16 = vld [vmem:[#allocation5 + $0x48] sm:$0xff]  ;;  %v92_v18 = vld [vmem:[#allocation5 + $0x50] sm:$0xff]  ;;  %v93_v19 = vld [vmem:[#allocation5 + $0x58] sm:$0xff] }
  0x2c   :  { %178 = vmatprep.mubr.f32.mxu0 %v41_v12  ;;  %233 = vmatprep.mubr.f32.mxu1 %v63_v14  ;;  %v336_v17 = vpack.c.bf16 %v91_v16, %v90_v15  ;;  %v339_v20 = vpack.c.bf16 %v93_v19, %v92_v18  ;;  %v94_v21 = vld [vmem:[#allocation5 + $0x60] sm:$0xff]  ;;  %v95_v22 = vld [vmem:[#allocation5 + $0x68] sm:$0xff]  ;;  %v96_v24 = vld [vmem:[#allocation5 + $0x70] sm:$0xff]  ;;  %p462_p5 = por %p461_p4, %p460_p3 }
  0x2d   :  { %v342_v23 = vpack.c.bf16 %v95_v22, %v94_v21  ;;  %v97_v25 = vld [vmem:[#allocation5 + $0x78] sm:$0xff]  ;;  %v98_v27 = vld [vmem:[#allocation5 + $0x80] sm:$0xff]  ;;  %v99_v28 = vld [vmem:[#allocation5 + $0x88] sm:$0xff] }
  0x2e   :  { %328 = vmatpush1.bf16.msra.mxu0 %v327_v6  ;;  %388 = vmatpush1.bf16.msra.mxu1 %v327_v6  ;;  %v345_v26 = vpack.c.bf16 %v97_v25, %v96_v24  ;;  %v348_v29 = vpack.c.bf16 %v99_v28, %v98_v27  ;;  %v100_v30 = vld [vmem:[#allocation5 + $0x90] sm:$0xff]  ;;  %v101_v31 = vld [vmem:[#allocation5 + $0x98] sm:$0xff]  ;;  %v102_v33 = vld [vmem:[#allocation5 + $0xa0] sm:$0xff]  ;;  %p463_p6 = pnand %p462_p5, %p456_p2 }
  0x2f   :  { %329 = vmatprep.subr.bf16.mxu0 %v489_v0  ;;  %373 = vmatprep.subr.bf16.mxu1 %v489_v0  ;;  %v351_v32 = vpack.c.bf16 %v101_v31, %v100_v30  ;;  %v103_v34 = vld [vmem:[#allocation5 + $0xa8] sm:$0xff]  ;;  %v104_v36 = vld [vmem:[#allocation5 + $0xb0] sm:$0xff]  ;;  %v105_v37 = vld [vmem:[#allocation5 + $0xb8] sm:$0xff] }
  0x30   :  { %v354_v35 = vpack.c.bf16 %v103_v34, %v102_v33  ;;  %v357_v38 = vpack.c.bf16 %v105_v37, %v104_v36  ;;  %v106_v39 = vld [vmem:[#allocation5 + $0xc0] sm:$0xff]  ;;  %v107_v40 = vld [vmem:[#allocation5 + $0xc8] sm:$0xff]  ;;  %v108_v42 = vld [vmem:[#allocation5 + $0xd0] sm:$0xff] }
  0x31   :  { %v360_v41 = vpack.c.bf16 %v107_v40, %v106_v39  ;;  %v109_v43 = vld [vmem:[#allocation5 + $0xd8] sm:$0xff]  ;;  %v110_v45 = vld [vmem:[#allocation5 + $0xe0] sm:$0xff]  ;;  %v111_v46 = vld [vmem:[#allocation5 + $0xe8] sm:$0xff] }
  0x32   :  { %331 = vmatpush1.bf16.msra.mxu0 %v330_v9  ;;  %389 = vmatpush1.bf16.msra.mxu1 %v330_v9  ;;  %v363_v44 = vpack.c.bf16 %v109_v43, %v108_v42  ;;  %v366_v47 = vpack.c.bf16 %v111_v46, %v110_v45  ;;  %v112_v48 = vld [vmem:[#allocation5 + $0xf0] sm:$0xff]  ;;  %v113_v49 = vld [vmem:[#allocation5 + $0xf8] sm:$0xff]  ;;  %v62_v52 = vld [vmem:[#allocation2 + $0xb0] sm:$0xff] }
  0x33   :  { %332 = vmatprep.subr.bf16.mxu0 %v489_v0  ;;  %374 = vmatprep.subr.bf16.mxu1 %v489_v0  ;;  %v369_v50 = vpack.c.bf16 %v113_v49, %v112_v48  ;;  %v40_v51 = vld [vmem:[#allocation2] sm:$0xff]  ;;  %v43_v53 = vld [vmem:[#allocation2 + $0x18] sm:$0xff]  ;;  %v65_v54 = vld [vmem:[#allocation2 + $0xc8] sm:$0xff] }
  0x34   :  { %v42_v55 = vld [vmem:[#allocation2 + $0x10] sm:$0xff]  ;;  %v64_v56 = vld [vmem:[#allocation2 + $0xc0] sm:$0xff]  ;;  %v45_v57 = vld [vmem:[#allocation2 + $0x28] sm:$0xff] }
  0x35   :  { %v67_v58 = vld [vmem:[#allocation2 + $0xd8] sm:$0xff]  ;;  %v44_v59 = vld [vmem:[#allocation2 + $0x20] sm:$0xff]  ;;  %v66_v60 = vld [vmem:[#allocation2 + $0xd0] sm:$0xff] }
  0x36   :  { %334 = vmatpush1.bf16.msra.mxu0 %v333_v13  ;;  %390 = vmatpush1.bf16.msra.mxu1 %v333_v13  ;;  %v47_v61 = vld [vmem:[#allocation2 + $0x38] sm:$0xff]  ;;  %v69_v62 = vld [vmem:[#allocation2 + $0xe8] sm:$0xff]  ;;  %v46_v63 = vld [vmem:[#allocation2 + $0x30] sm:$0xff] }
  0x37   :  { %335 = vmatprep.subr.bf16.mxu0 %v489_v0  ;;  %375 = vmatprep.subr.bf16.mxu1 %v489_v0  ;;  %v49_v1 = vld [vmem:[#allocation2 + $0x48] sm:$0xff]  ;;  %v71_v2 = vld [vmem:[#allocation2 + $0xf8] sm:$0xff]  ;;  %v48_v3 = vld [vmem:[#allocation2 + $0x40] sm:$0xff] }
  0x38   :  { %v70_v4 = vld [vmem:[#allocation2 + $0xf0] sm:$0xff]  ;;  %v51_v5 = vld [vmem:[#allocation2 + $0x58] sm:$0xff]  ;;  %v73_v6 = vld [vmem:[#allocation2 + $0x108] sm:$0xff] }
  0x39   :  { %v50_v7 = vld [vmem:[#allocation2 + $0x50] sm:$0xff]  ;;  %v72_v8 = vld [vmem:[#allocation2 + $0x100] sm:$0xff]  ;;  %v53_v9 = vld [vmem:[#allocation2 + $0x68] sm:$0xff] }
  0x3a   :  { %337 = vmatpush1.bf16.msra.mxu0 %v336_v17  ;;  %391 = vmatpush1.bf16.msra.mxu1 %v336_v17  ;;  %v75_v10 = vld [vmem:[#allocation2 + $0x118] sm:$0xff]  ;;  %v52_v11 = vld [vmem:[#allocation2 + $0x60] sm:$0xff]  ;;  %v74_v12 = vld [vmem:[#allocation2 + $0x110] sm:$0xff] }
  0x3b   :  { %338 = vmatprep.subr.bf16.mxu0 %v489_v0  ;;  %376 = vmatprep.subr.bf16.mxu1 %v489_v0  ;;  %v55_v13 = vld [vmem:[#allocation2 + $0x78] sm:$0xff]  ;;  %v77_v14 = vld [vmem:[#allocation2 + $0x128] sm:$0xff]  ;;  %v54_v15 = vld [vmem:[#allocation2 + $0x70] sm:$0xff] }
  0x3c   :  { %v76_v16 = vld [vmem:[#allocation2 + $0x120] sm:$0xff]  ;;  %v57_v17 = vld [vmem:[#allocation2 + $0x88] sm:$0xff]  ;;  %v79_v18 = vld [vmem:[#allocation2 + $0x138] sm:$0xff] }
  0x3d   :  { %v56_v19 = vld [vmem:[#allocation2 + $0x80] sm:$0xff]  ;;  %v59_v21 = vld [vmem:[#allocation2 + $0x98] sm:$0xff]  ;;  %v81_v22 = vld [vmem:[#allocation2 + $0x148] sm:$0x3] }
  0x3e   :  { %340 = vmatpush1.bf16.msra.mxu0 %v339_v20  ;;  %392 = vmatpush1.bf16.msra.mxu1 %v339_v20  ;;  %v78_v20 = vld [vmem:[#allocation2 + $0x130] sm:$0xff]  ;;  %v80_v24 = vld [vmem:[#allocation2 + $0x140] sm:$0x3]  ;;  %v61_v25 = vld [vmem:[#allocation2 + $0xa8] sm:$0xff] }
  0x3f   :  { %341 = vmatprep.subr.bf16.mxu0 %v489_v0  ;;  %377 = vmatprep.subr.bf16.mxu1 %v489_v0 }
  0x42   :  { %343 = vmatpush1.bf16.msra.mxu0 %v342_v23  ;;  %393 = vmatpush1.bf16.msra.mxu1 %v342_v23  ;;  %v58_v23 = vld [vmem:[#allocation2 + $0x90] sm:$0xff] }
  0x43   :  { %344 = vmatprep.subr.bf16.mxu0 %v489_v0  ;;  %378 = vmatprep.subr.bf16.mxu1 %v489_v0 }
  0x46   :  { %346 = vmatpush1.bf16.msra.mxu0 %v345_v26  ;;  %394 = vmatpush1.bf16.msra.mxu1 %v345_v26  ;;  %v60_v26 = vld [vmem:[#allocation2 + $0xa0] sm:$0xff] }
  0x47   :  { %347 = vmatprep.subr.bf16.mxu0 %v489_v0  ;;  %379 = vmatprep.subr.bf16.mxu1 %v489_v0 }
  0x4a   :  { %349 = vmatpush1.bf16.msra.mxu0 %v348_v29  ;;  %395 = vmatpush1.bf16.msra.mxu1 %v348_v29 }
  0x4b   :  { %350 = vmatprep.subr.bf16.mxu0 %v489_v0  ;;  %380 = vmatprep.subr.bf16.mxu1 %v489_v0 }
  0x4e   :  { %352 = vmatpush1.bf16.msra.mxu0 %v351_v32  ;;  %396 = vmatpush1.bf16.msra.mxu1 %v351_v32 }
  0x4f   :  { %353 = vmatprep.subr.bf16.mxu0 %v489_v0  ;;  %381 = vmatprep.subr.bf16.mxu1 %v489_v0 }
  0x52   :  { %355 = vmatpush1.bf16.msra.mxu0 %v354_v35  ;;  %397 = vmatpush1.bf16.msra.mxu1 %v354_v35 }
  0x53   :  { %356 = vmatprep.subr.bf16.mxu0 %v489_v0  ;;  %382 = vmatprep.subr.bf16.mxu1 %v489_v0 }
  0x56   :  { %358 = vmatpush1.bf16.msra.mxu0 %v357_v38  ;;  %398 = vmatpush1.bf16.msra.mxu1 %v357_v38 }
  0x57   :  { %359 = vmatprep.subr.bf16.mxu0 %v489_v0  ;;  %383 = vmatprep.subr.bf16.mxu1 %v489_v0 }
  0x5a   :  { %361 = vmatpush1.bf16.msra.mxu0 %v360_v41  ;;  %399 = vmatpush1.bf16.msra.mxu1 %v360_v41 }
  0x5b   :  { %362 = vmatprep.subr.bf16.mxu0 %v489_v0  ;;  %384 = vmatprep.subr.bf16.mxu1 %v489_v0 }
  0x5e   :  { %364 = vmatpush1.bf16.msra.mxu0 %v363_v44  ;;  %400 = vmatpush1.bf16.msra.mxu1 %v363_v44 }
  0x5f   :  { %365 = vmatprep.subr.bf16.mxu0 %v489_v0  ;;  %385 = vmatprep.subr.bf16.mxu1 %v489_v0 }
  0x62   :  { %367 = vmatpush1.bf16.msra.mxu0 %v366_v47  ;;  %401 = vmatpush1.bf16.msra.mxu1 %v366_v47 }
  0x63   :  { %368 = vmatprep.subr.bf16.mxu0 %v489_v0  ;;  %386 = vmatprep.subr.bf16.mxu1 %v489_v0  ;;  %v68_v0 = vld [vmem:[#allocation2 + $0xe0] sm:$0xff] }
  0x66   :  { %370 = vmatpush1.bf16.msra.mxu0 %v369_v50  ;;  %402 = vmatpush1.bf16.msra.mxu1 %v369_v50 }
  0x69   :  { %179 = vmatmul.mubr.f32.vlgmr.msra.gmra.mrb[0].mxu0 %v40_v51  ;;  %234 = vmatmul.mubr.f32.vlgmr.msra.gmra.mrb[0].mxu1 %v62_v52 }
  0x6a   :  { %183 = vmatprep.mubr.f32.mxu0 %v43_v53  ;;  %238 = vmatprep.mubr.f32.mxu1 %v65_v54 }
  0x6d   :  { %184 = vmatmul.mubr.f32.gmra.mrb[2].mxu0 %v42_v55  ;;  %239 = vmatmul.mubr.f32.gmra.mrb[2].mxu1 %v64_v56 }
  0x6e   :  { %188 = vmatprep.mubr.f32.mxu0 %v45_v57  ;;  %243 = vmatprep.mubr.f32.mxu1 %v67_v58 }
  0x71   :  { %189 = vmatmul.mubr.f32.gmra.mrb[4].mxu0 %v44_v59  ;;  %244 = vmatmul.mubr.f32.gmra.mrb[4].mxu1 %v66_v60 }
  0x72   :  { %193 = vmatprep.mubr.f32.mxu0 %v47_v61  ;;  %248 = vmatprep.mubr.f32.mxu1 %v69_v62 }
  0x75   :  { %194 = vmatmul.mubr.f32.gmra.mrb[6].mxu0 %v46_v63  ;;  %249 = vmatmul.mubr.f32.gmra.mrb[6].mxu1 %v68_v0 }
  0x76   :  { %198 = vmatprep.mubr.f32.mxu0 %v49_v1  ;;  %253 = vmatprep.mubr.f32.mxu1 %v71_v2 }
  0x79   :  { %199 = vmatmul.mubr.f32.gmra.mrb[8].mxu0 %v48_v3  ;;  %254 = vmatmul.mubr.f32.gmra.mrb[8].mxu1 %v70_v4 }
  0x7a   :  { %203 = vmatprep.mubr.f32.mxu0 %v51_v5  ;;  %258 = vmatprep.mubr.f32.mxu1 %v73_v6 }
  0x7d   :  { %204 = vmatmul.mubr.f32.gmra.mrb[10].mxu0 %v50_v7  ;;  %259 = vmatmul.mubr.f32.gmra.mrb[10].mxu1 %v72_v8 }
  0x7e   :  { %208 = vmatprep.mubr.f32.mxu0 %v53_v9  ;;  %263 = vmatprep.mubr.f32.mxu1 %v75_v10 }
  0x81   :  { %209 = vmatmul.mubr.f32.gmra.mrb[12].mxu0 %v52_v11  ;;  %264 = vmatmul.mubr.f32.gmra.mrb[12].mxu1 %v74_v12 }
  0x82   :  { %213 = vmatprep.mubr.f32.mxu0 %v55_v13  ;;  %268 = vmatprep.mubr.f32.mxu1 %v77_v14 }
  0x85   :  { %214 = vmatmul.mubr.f32.gmra.mrb[14].mxu0 %v54_v15  ;;  %269 = vmatmul.mubr.f32.gmra.mrb[14].mxu1 %v76_v16 }
  0x86   :  { %218 = vmatprep.mubr.f32.mxu0 %v57_v17  ;;  %273 = vmatprep.mubr.f32.mxu1 %v79_v18 }
  0x89   :  { %219 = vmatmul.mubr.f32.gmra.mrb[16].mxu0 %v56_v19  ;;  %274 = vmatmul.mubr.f32.gmra.mrb[16].mxu1 %v78_v20 }
  0x8a   :  { %223 = vmatprep.mubr.f32.mxu0 %v59_v21  ;;  %278 = vmatprep.mubr.f32.mxu1 %v81_v22 }
  0x8d   :  { %224 = vmatmul.mubr.f32.gmra.mrb[18].mxu0 %v58_v23  ;;  %279 = vmatmul.mubr.f32.gmra.mrb[18].mxu1 %v80_v24 }
  0x8e   :  { %228 = vmatprep.mubr.f32.mxu0 %v61_v25 }
  0x91   :  { %229 = vmatmul.mubr.f32.gmra.mrb[20].mxu0 %v60_v26 }
 0x13c   :  { %v180_v27 = vpop.f32.mrb[0].mxu0  ;;  %v235_v28 = vpop.f32.mrb[0].mxu1 }
 0x13d   :  { %284 = vst [vmem:[#allocation7] sm:$0xff] %v180_v27  ;;  %v182_v29 = vpop.f32.mrb[1].mxu0  ;;  %295 = vst [vmem:[#allocation7 + $0x58] sm:$0xff] %v235_v28  ;;  %v237_v30 = vpop.f32.mrb[1].mxu1 }
 0x140   :  { %v185_v31 = vpop.f32.mrb[2].mxu0  ;;  %v240_v32 = vpop.f32.mrb[2].mxu1 }
 0x141   :  { %285 = vst [vmem:[#allocation7 + $0x8] sm:$0xff] %v185_v31  ;;  %v187_v33 = vpop.f32.mrb[3].mxu0  ;;  %296 = vst [vmem:[#allocation7 + $0x60] sm:$0xff] %v240_v32  ;;  %v242_v34 = vpop.f32.mrb[3].mxu1 }
 0x144   :  { %v190_v35 = vpop.f32.mrb[4].mxu0  ;;  %v245_v36 = vpop.f32.mrb[4].mxu1 }
 0x145   :  { %286 = vst [vmem:[#allocation7 + $0x10] sm:$0xff] %v190_v35  ;;  %v192_v37 = vpop.f32.mrb[5].mxu0  ;;  %297 = vst [vmem:[#allocation7 + $0x68] sm:$0xff] %v245_v36  ;;  %v247_v38 = vpop.f32.mrb[5].mxu1 }
 0x148   :  { %v195_v39 = vpop.f32.mrb[6].mxu0  ;;  %v250_v40 = vpop.f32.mrb[6].mxu1 }
 0x149   :  { %287 = vst [vmem:[#allocation7 + $0x18] sm:$0xff] %v195_v39  ;;  %v197_v41 = vpop.f32.mrb[7].mxu0  ;;  %298 = vst [vmem:[#allocation7 + $0x70] sm:$0xff] %v250_v40  ;;  %v252_v42 = vpop.f32.mrb[7].mxu1 }
 0x14c   :  { %v200_v43 = vpop.f32.mrb[8].mxu0  ;;  %v255_v44 = vpop.f32.mrb[8].mxu1 }
 0x14d   :  { %288 = vst [vmem:[#allocation7 + $0x20] sm:$0xff] %v200_v43  ;;  %v202_v45 = vpop.f32.mrb[9].mxu0  ;;  %299 = vst [vmem:[#allocation7 + $0x78] sm:$0xff] %v255_v44  ;;  %v257_v46 = vpop.f32.mrb[9].mxu1 }
 0x150   :  { %v205_v47 = vpop.f32.mrb[10].mxu0  ;;  %v260_v48 = vpop.f32.mrb[10].mxu1 }
 0x151   :  { %289 = vst [vmem:[#allocation7 + $0x28] sm:$0xff] %v205_v47  ;;  %v207_v49 = vpop.f32.mrb[11].mxu0  ;;  %300 = vst [vmem:[#allocation7 + $0x80] sm:$0xff] %v260_v48  ;;  %v262_v50 = vpop.f32.mrb[11].mxu1 }
 0x154   :  { %v210_v51 = vpop.f32.mrb[12].mxu0  ;;  %v265_v52 = vpop.f32.mrb[12].mxu1 }
 0x155   :  { %290 = vst [vmem:[#allocation7 + $0x30] sm:$0xff] %v210_v51  ;;  %v212_v53 = vpop.f32.mrb[13].mxu0  ;;  %301 = vst [vmem:[#allocation7 + $0x88] sm:$0xff] %v265_v52  ;;  %v267_v54 = vpop.f32.mrb[13].mxu1 }
 0x158   :  { %v215_v55 = vpop.f32.mrb[14].mxu0  ;;  %v270_v56 = vpop.f32.mrb[14].mxu1 }
 0x159   :  { %291 = vst [vmem:[#allocation7 + $0x38] sm:$0xff] %v215_v55  ;;  %v217_v57 = vpop.f32.mrb[15].mxu0  ;;  %302 = vst [vmem:[#allocation7 + $0x90] sm:$0xff] %v270_v56  ;;  %v272_v58 = vpop.f32.mrb[15].mxu1 }
 0x15c   :  { %v220_v59 = vpop.f32.mrb[16].mxu0  ;;  %v275_v60 = vpop.f32.mrb[16].mxu1 }
 0x15d   :  { %292 = vst [vmem:[#allocation7 + $0x40] sm:$0xff] %v220_v59  ;;  %v222_v61 = vpop.f32.mrb[17].mxu0  ;;  %303 = vst [vmem:[#allocation7 + $0x98] sm:$0xff] %v275_v60  ;;  %v277_v62 = vpop.f32.mrb[17].mxu1 }
 0x160   :  { %v225_v63 = vpop.f32.mrb[18].mxu0  ;;  %v280_v0 = vpop.f32.mrb[18].mxu1 }
 0x161   :  { %293 = vst [vmem:[#allocation7 + $0x48] sm:$0xff] %v225_v63  ;;  %v227_v1 = vpop.f32.mrb[19].mxu0  ;;  %304 = vst [vmem:[#allocation7 + $0xa0] sm:$0x3] %v280_v0  ;;  %v282_v2 = vpop.f32.mrb[19].mxu1 }
 0x164   :  { %v230_v3 = vpop.f32.mrb[20].mxu0 }
 0x165   :  { %294 = vst [vmem:[#allocation7 + $0x50] sm:$0xff] %v230_v3  ;;  %v232_v4 = vpop.f32.mrb[21].mxu0 }
 0x166   :  { %466 = shalt.err (!%p463_p6)
}
 0x167   :  { %s467_s12 = scalar_lea.hbm %s582_s2, 2688 }
 0x168   :  { %p468_p7 = scmp.ne.s32.totalorder %s582_s2, %s467_s12  ;;  %p471_p8 = scmp.lt.u32.totalorder %s467_s12, %s582_s2 }
 0x16a   :  { %p473_p9 = pnand %p471_p8, %p468_p7 }
 0x16c   :  { %476 = shalt.err (!%p473_p9)
}
 0x16d   :  { %316 = dma.vmem_to_hbm [thread:$0]  %s311_s8, 2688, %s582_s2, [#allocation4], %s487_s0, %s487_s0, %s488_s5  }
 0x16e   :  { %481 = dma.done.wait [#allocation4], 2688  }
 0x16f   :  { %482 = vsyncadd [#allocation4], 4294964608 }
 0x170   :  { %320 = vsyncpa [#allocation3], 1 }
 0x171   :  { %321 = vsyncpa [#allocation6], 1 }
 0x172   :  { %322 = vsyncpa [#allocation4], 1 }

// kernel: tile.62
= control target key start
LH: loop header
LB: loop body
LE: loop exit
PB: predicated region body
PF: predicated region fallthrough
CT: control target
= control target key end

     0   :  { %s22_s0 = inlined_call_operand.vmem [shape: f32[32], index: 0, kind: input, shape index: {}]   ;;  %s23_s1 = inlined_call_operand.vmem [shape: f32[4,32], index: 1, kind: output, shape index: {}]  }
   0x1   :  { %v4_v0 = vld [vmem:[%s22_s0] ss:$0 sm:$0xff] }
   0x2   :  { %5 = vst [vmem:[%s23_s1] sm:$0xf] %v4_v0 }

// kernel: tile.63
= control target key start
LH: loop header
LB: loop body
LE: loop exit
PB: predicated region body
PF: predicated region fallthrough
CT: control target
= control target key end

     0   :  { %s101_s0 = inlined_call_operand.vmem [shape: f32[4,32], index: 0, kind: input, shape index: {}]   ;;  %s102_s1 = inlined_call_operand.hbm [shape: f32[1,128], index: 1, kind: output, shape index: {}]  }
   0x1   :  { %v5_v0 = vld [vmem:[%s101_s0] sm:$0xf] }
   0x2   :  { %6 = vst [vmem:[#allocation3] sm:$0xf] %v5_v0 }
   0x3   :  { %2 = vsyncpa [#allocation1], 0  ;;  %vm8_vm0 = vcmask 261120   ;;  %s72_s0 = smov 96   ;;  %s73_s8 = smov 32   ;;  %vm14_vm1 = vcmask 1048320  }
   0x4   :  { %s74_s9 = smov 64   ;;  %vm20_vm2 = vcmask 785920   ;;  %vm26_vm3 = vcmask 523520   ;;  %s75_s10 = smov [#allocation0]  }
   0x5   :  { %s38_s11 = sshll.u32 %s75_s10, 4  ;;  %s39_s11 = int_to_ptr.vmem [resolvable:$true] %s38_s11 }
   0x6   :  { %s48_s12 = scalar_lea.vmem %s39_s11, 16  ;;  %s52_s13 = scalar_lea.vmem %s39_s11, 32 }
   0x7   :  { %p49_p0 = scmp.ne.s32.totalorder %s39_s11, %s48_s12  ;;  %p53_p1 = scmp.lt.s32.totalorder %s39_s11, %s39_s11 }
   0x8   :  { %p54_p2 = scmp.lt.s32.totalorder %s52_s13, %s48_s12 }
   0x9   :  { %v11_v1 = vld [vmem:[#allocation3 + $0x3] sm:$0x1]   ;;  %v23_v2 = vld [vmem:[#allocation3 + $0x1] sm:$0x1]   ;;  %v7_v3 = vld [vmem:[#allocation3] sm:$0x1]  }
   0xa   :  { %12 = vrot.lane.b32.xlu0 %v11_v1, %s72_s0  ;;  %24 = vrot.lane.b32.xlu1 %v23_v2, %s73_s8  ;;  %v17_v4 = vld [vmem:[#allocation3 + $0x2] sm:$0x1]   ;;  %9 = vst.msk [vmem:[#allocation2] sm:$0x1] %vm8_vm0, %v7_v3   ;;  %p55_p3 = por %p54_p2, %p53_p1 }
   0xc   :  { %p56_p4 = pnand %p55_p3, %p49_p0 }
   0xe   :  { %18 = vrot.lane.b32.xlu0 %v17_v4, %s74_s9 }
  0x7c   :  { %v13_v5 = vpop.permute.xlu0 %12   ;;  %v25_v6 = vpop.permute.xlu1 %24  }
  0x7d   :  { %15 = vst.msk [vmem:[#allocation2] sm:$0x1] %vm14_vm1, %v13_v5  }
  0x80   :  { %v19_v7 = vpop.permute.xlu0 %18  }
  0x81   :  { %21 = vst.msk [vmem:[#allocation2] sm:$0x1] %vm20_vm2, %v19_v7  }
  0x82   :  { %27 = vst.msk [vmem:[#allocation2] sm:$0x1] %vm26_vm3, %v25_v6  }
  0x89   :  { %v31_v8 = vld [vmem:[#allocation2] sm:$0x1] }
  0x8a   :  { %33 = vst [vmem:[#allocation0] sm:$0x1] %v31_v8 }
  0x8b   :  { %59 = shalt.err (!%p56_p4)
}
  0x8c   :  { %s60_s16 = scalar_lea.hbm %s102_s1, 16 }
  0x8d   :  { %p61_p5 = scmp.ne.s32.totalorder %s102_s1, %s60_s16  ;;  %p64_p6 = scmp.lt.u32.totalorder %s60_s16, %s102_s1 }
  0x8f   :  { %p66_p7 = pnand %p64_p6, %p61_p5 }
  0x91   :  { %69 = shalt.err (!%p66_p7)
}
  0x92   :  { %41 = dma.vmem_to_hbm [thread:$0]  %s39_s11, 16, %s102_s1, [#allocation1]  }
  0x93   :  { %70 = dma.done.wait [#allocation1], 16  }
  0x94   :  { %71 = vsyncadd [#allocation1], 4294967280 }
  0x95   :  { %43 = vsyncpa [#allocation1], 1 }

// kernel: generator128.24
= control target key start
LH: loop header
LB: loop body
LE: loop exit
PB: predicated region body
PF: predicated region fallthrough
CT: control target
= control target key end

     0   :  { %8 = vsyncpa [#allocation3], 0  ;;  %s284_s0 = inlined_call_operand.hbm [shape: f32[128,128], index: 0, kind: input, shape index: {}]   ;;  %s285_s1 = inlined_call_operand.hbm [shape: f32[1,128], index: 1, kind: output, shape index: {0}]   ;;  %s286_s2 = inlined_call_operand.hbm [shape: f32[1,128], index: 2, kind: output, shape index: {1}]  }
   0x1   :  { %9 = vsyncpa [#allocation4], 0 }
   0x2   :  { %10 = vsyncpa [#allocation7], 0  ;;  %s219_s9 = smov [#allocation2]   ;;  %s147_s13 = scalar_lea.hbm %s284_s0, 2048 }
   0x3   :  { %s16_s10 = sshll.u32 %s219_s9, 4  ;;  %p148_p0 = scmp.ne.s32.totalorder %s284_s0, %s147_s13  ;;  %s17_s10 = int_to_ptr.vmem [resolvable:$true] %s16_s10 }
   0x4   :  { %p151_p1 = scmp.lt.u32.totalorder %s147_s13, %s284_s0 }
   0x6   :  { %p153_p2 = pnand %p151_p1, %p148_p0 }
   0x8   :  { %156 = shalt.err (!%p153_p2)
}
   0x9   :  { %s157_s18 = scalar_lea.vmem %s17_s10, 2048  ;;  %p162_p4 = scmp.lt.s32.totalorder %s17_s10, %s17_s10 }
   0xa   :  { %p158_p3 = scmp.ne.s32.totalorder %s17_s10, %s157_s18  ;;  %p163_p5 = scmp.lt.s32.totalorder %s157_s18, %s157_s18 }
   0xc   :  { %p164_p6 = por %p163_p5, %p162_p4 }
   0xe   :  { %p165_p7 = pnand %p164_p6, %p158_p3 }
  0x10   :  { %168 = shalt.err (!%p165_p7)
}
  0x11   :  { %s220_s19 = smov 128   ;;  %s221_s20 = smov 8  }
  0x12   :  { %22 = dma.hbm_to_vmem [thread:$0]  %s284_s0, 2048, %s17_s10, [#allocation3], %s220_s19, %s220_s19, %s221_s20  }
  0x13   :  { %213 = dma.done.wait [#allocation3], 2048  }
  0x14   :  { %214 = vsyncadd [#allocation3], 4294965248  ;;  %v222_v0 = vmov 0.0   ;;  %v32_v1 = vld [vmem:[#allocation2] sm:$0xff]  ;;  %v33_v2 = vld [vmem:[#allocation2 + $0x8] sm:$0xff]  ;;  %s223_s0 = smov [#allocation5]  }
  0x15   :  { %30 = vst [vmem:[#allocation5] sm:$0x1] %v222_v0  ;;  %31 = vst [vmem:[#allocation6] sm:$0x1] %v222_v0  ;;  %v34_v3 = vld [vmem:[#allocation2 + $0x10] sm:$0xff]  ;;  %v35_v4 = vld [vmem:[#allocation2 + $0x18] sm:$0xff]  ;;  %v49_v5 = vadd.f32 %v33_v2, %v32_v1  ;;  %v73_v6 = vmul.f32 %v32_v1, %v32_v1  ;;  %v74_v7 = vmul.f32 %v33_v2, %v33_v2 }
  0x16   :  { %v75_v8 = vmul.f32 %v34_v3, %v34_v3  ;;  %v36_v9 = vld [vmem:[#allocation2 + $0x20] sm:$0xff]  ;;  %v76_v11 = vmul.f32 %v35_v4, %v35_v4  ;;  %v37_v13 = vld [vmem:[#allocation2 + $0x28] sm:$0xff]  ;;  %v38_v17 = vld [vmem:[#allocation2 + $0x30] sm:$0xff]  ;;  %s118_s23 = sshll.u32 %s223_s0, 4  ;;  %s224_s24 = smov [#allocation6]   ;;  %s119_s23 = int_to_ptr.vmem [resolvable:$true] %s118_s23 }
  0x17   :  { %v50_v10 = vadd.f32 %v49_v5, %v34_v3  ;;  %v89_v12 = vadd.f32 %v74_v7, %v73_v6  ;;  %v77_v15 = vmul.f32 %v36_v9, %v36_v9  ;;  %v78_v19 = vmul.f32 %v37_v13, %v37_v13  ;;  %v39_v21 = vld [vmem:[#allocation2 + $0x38] sm:$0xff]  ;;  %v40_v25 = vld [vmem:[#allocation2 + $0x40] sm:$0xff]  ;;  %v41_v29 = vld [vmem:[#allocation2 + $0x48] sm:$0xff]  ;;  %s128_s25 = sshll.u32 %s224_s24, 4  ;;  %s169_s26 = scalar_lea.vmem %s119_s23, 16  ;;  %s252_s25 = int_to_ptr.vmem [resolvable:$true] %s128_s25 }
  0x18   :  { %v79_v23 = vmul.f32 %v38_v17, %v38_v17  ;;  %v80_v27 = vmul.f32 %v39_v21, %v39_v21  ;;  %v81_v31 = vmul.f32 %v40_v25, %v40_v25  ;;  %v42_v33 = vld [vmem:[#allocation2 + $0x50] sm:$0xff]  ;;  %v82_v35 = vmul.f32 %v41_v29, %v41_v29  ;;  %v43_v37 = vld [vmem:[#allocation2 + $0x58] sm:$0xff]  ;;  %v44_v41 = vld [vmem:[#allocation2 + $0x60] sm:$0xff]  ;;  %p170_p8 = scmp.ne.s32.totalorder %s119_s23, %s169_s26  ;;  %s173_s27 = scalar_lea.vmem %s119_s23, 32 }
  0x19   :  { %v51_v14 = vadd.f32 %v50_v10, %v35_v4  ;;  %v90_v16 = vadd.f32 %v89_v12, %v75_v8  ;;  %v83_v39 = vmul.f32 %v42_v33, %v42_v33  ;;  %v84_v43 = vmul.f32 %v43_v37, %v43_v37  ;;  %v45_v45 = vld [vmem:[#allocation2 + $0x68] sm:$0xff]  ;;  %v46_v49 = vld [vmem:[#allocation2 + $0x70] sm:$0xff]  ;;  %v47_v53 = vld [vmem:[#allocation2 + $0x78] sm:$0xff]  ;;  %p174_p9 = scmp.lt.s32.totalorder %s119_s23, %s119_s23  ;;  %p175_p10 = scmp.lt.s32.totalorder %s173_s27, %s169_s26 }
  0x1a   :  { %v85_v47 = vmul.f32 %v44_v41, %v44_v41  ;;  %v86_v51 = vmul.f32 %v45_v45, %v45_v45  ;;  %v87_v55 = vmul.f32 %v46_v49, %v46_v49  ;;  %v88_v58 = vmul.f32 %v47_v53, %v47_v53 }
  0x1b   :  { %v52_v18 = vadd.f32 %v51_v14, %v36_v9  ;;  %v91_v20 = vadd.f32 %v90_v16, %v76_v11  ;;  %p176_p11 = por %p175_p10, %p174_p9 }
  0x1c   :  { %v48_v7 = vld [vmem:[#allocation5] sm:$0x1]  ;;  %v72_v12 = vld [vmem:[#allocation6] sm:$0x1] }
  0x1d   :  { %v53_v22 = vadd.f32 %v52_v18, %v37_v13  ;;  %v92_v24 = vadd.f32 %v91_v20, %v77_v15  ;;  %p177_p12 = pnand %p176_p11, %p170_p8 }
  0x1f   :  { %v54_v26 = vadd.f32 %v53_v22, %v38_v17  ;;  %v93_v28 = vadd.f32 %v92_v24, %v78_v19 }
  0x21   :  { %v55_v30 = vadd.f32 %v54_v26, %v39_v21  ;;  %v94_v32 = vadd.f32 %v93_v28, %v79_v23 }
  0x23   :  { %v56_v34 = vadd.f32 %v55_v30, %v40_v25  ;;  %v95_v36 = vadd.f32 %v94_v32, %v80_v27 }
  0x25   :  { %v57_v38 = vadd.f32 %v56_v34, %v41_v29  ;;  %v96_v40 = vadd.f32 %v95_v36, %v81_v31 }
  0x27   :  { %v58_v42 = vadd.f32 %v57_v38, %v42_v33  ;;  %v97_v44 = vadd.f32 %v96_v40, %v82_v35 }
  0x29   :  { %v59_v46 = vadd.f32 %v58_v42, %v43_v37  ;;  %v98_v48 = vadd.f32 %v97_v44, %v83_v39 }
  0x2b   :  { %v60_v50 = vadd.f32 %v59_v46, %v44_v41  ;;  %v99_v52 = vadd.f32 %v98_v48, %v84_v43 }
  0x2d   :  { %v61_v54 = vadd.f32 %v60_v50, %v45_v45  ;;  %v100_v56 = vadd.f32 %v99_v52, %v85_v47 }
  0x2f   :  { %v62_v57 = vadd.f32 %v61_v54, %v46_v49  ;;  %v101_v59 = vadd.f32 %v100_v56, %v86_v51 }
  0x31   :  { %v63_v60 = vadd.f32 %v62_v57, %v47_v53  ;;  %v102_v61 = vadd.f32 %v101_v59, %v87_v55 }
  0x33   :  { %v64_v62 = vrot.slane %v63_v60, 4  ;;  %v103_v63 = vadd.f32 %v102_v61, %v88_v58 }
  0x35   :  { %v65_v0 = vadd.f32 %v64_v62, %v63_v60  ;;  %v104_v1 = vrot.slane %v103_v63, 4 }
  0x37   :  { %v66_v2 = vrot.slane %v65_v0, 2  ;;  %v105_v3 = vadd.f32 %v104_v1, %v103_v63 }
  0x39   :  { %v67_v4 = vadd.f32 %v66_v2, %v65_v0  ;;  %v106_v5 = vrot.slane %v105_v3, 2 }
  0x3b   :  { %v68_v6 = vrot.slane %v67_v4, 1  ;;  %v107_v8 = vadd.f32 %v106_v5, %v105_v3 }
  0x3d   :  { %v69_v9 = vadd.f32 %v68_v6, %v67_v4  ;;  %v108_v10 = vrot.slane %v107_v8, 1 }
  0x3f   :  { %v70_v11 = vadd.f32 %v69_v9, %v48_v7  ;;  %v109_v13 = vadd.f32 %v108_v10, %v107_v8 }
  0x41   :  { %71 = vst [vmem:[#allocation5] sm:$0x1] %v70_v11  ;;  %v110_v14 = vadd.f32 %v109_v13, %v72_v12 }
  0x42   :  { %180 = shalt.err (!%p177_p12)
}
  0x43   :  { %s181_s30 = scalar_lea.hbm %s285_s1, 16 }
  0x44   :  { %p182_p13 = scmp.ne.s32.totalorder %s285_s1, %s181_s30  ;;  %p185_p0 = scmp.lt.u32.totalorder %s181_s30, %s285_s1 }
  0x46   :  { %p187_p1 = pnand %p185_p0, %p182_p13 }
  0x48   :  { %190 = shalt.err (!%p187_p1)
}
  0x49   :  { %121 = dma.vmem_to_hbm [thread:$0]  %s119_s23, 16, %s285_s1, [#allocation4]   ;;  %111 = vst [vmem:[#allocation6] sm:$0x1] %v110_v14 }
  0x4a   :  { %s191_s9 = scalar_lea.vmem %s252_s25, 16  ;;  %s195_s10 = scalar_lea.vmem %s252_s25, 32 }
  0x4b   :  { %p192_p2 = scmp.ne.s32.totalorder %s252_s25, %s191_s9  ;;  %p196_p3 = scmp.lt.s32.totalorder %s252_s25, %s252_s25 }
  0x4c   :  { %p197_p4 = scmp.lt.s32.totalorder %s195_s10, %s191_s9 }
  0x4e   :  { %p198_p5 = por %p197_p4, %p196_p3 }
  0x50   :  { %p199_p6 = pnand %p198_p5, %p192_p2 }
  0x52   :  { %202 = shalt.err (!%p199_p6)
}
  0x53   :  { %s203_s13 = scalar_lea.hbm %s286_s2, 16 }
  0x54   :  { %p204_p7 = scmp.ne.s32.totalorder %s286_s2, %s203_s13  ;;  %p207_p8 = scmp.lt.u32.totalorder %s203_s13, %s286_s2 }
  0x56   :  { %p209_p9 = pnand %p207_p8, %p204_p7 }
  0x58   :  { %212 = shalt.err (!%p209_p9)
}
  0x59   :  { %131 = dma.vmem_to_hbm [thread:$0]  %s252_s25, 16, %s286_s2, [#allocation7]  }
  0x5a   :  { %215 = dma.done.wait [#allocation4], 16  }
  0x5b   :  { %216 = vsyncadd [#allocation4], 4294967280 }
  0x5c   :  { %217 = dma.done.wait [#allocation7], 16  }
  0x5d   :  { %218 = vsyncadd [#allocation7], 4294967280 }
  0x5e   :  { %138 = vsyncpa [#allocation3], 1 }
  0x5f   :  { %139 = vsyncpa [#allocation4], 1 }
  0x60   :  { %140 = vsyncpa [#allocation7], 1 }

// kernel: generator128.25
= control target key start
LH: loop header
LB: loop body
LE: loop exit
PB: predicated region body
PF: predicated region fallthrough
CT: control target
= control target key end

     0   :  { %8 = vsyncpa [#allocation3], 0  ;;  %s371_s0 = inlined_call_operand.hbm [shape: f32[128,128], index: 0, kind: input, shape index: {}]   ;;  %s372_s1 = inlined_call_operand.hbm [shape: f32[1,128], index: 1, kind: input, shape index: {}]   ;;  %s373_s2 = inlined_call_operand.hbm [shape: f32[1,128], index: 2, kind: input, shape index: {}]   ;;  %s374_s3 = inlined_call_operand.hbm [shape: f32[128,128], index: 3, kind: output, shape index: {}]  }
   0x1   :  { %9 = vsyncpa [#allocation6], 0 }
   0x2   :  { %10 = vsyncpa [#allocation4], 0  ;;  %s266_s12 = smov [#allocation5]   ;;  %s267_s14 = smov [#allocation2]  }
   0x3   :  { %s29_s13 = sshll.u32 %s266_s12, 4  ;;  %s16_s15 = sshll.u32 %s267_s14, 4  ;;  %s30_s13 = int_to_ptr.vmem [resolvable:$true] %s29_s13  ;;  %s292_s15 = int_to_ptr.vmem [resolvable:$true] %s16_s15 }
   0x4   :  { %s172_s18 = scalar_lea.hbm %s372_s1, 16 }
   0x5   :  { %p173_p0 = scmp.ne.s32.totalorder %s372_s1, %s172_s18  ;;  %p176_p1 = scmp.lt.u32.totalorder %s172_s18, %s372_s1 }
   0x7   :  { %p178_p2 = pnand %p176_p1, %p173_p0 }
   0x9   :  { %181 = shalt.err (!%p178_p2)
}
   0xa   :  { %s182_s23 = scalar_lea.vmem %s30_s13, 16  ;;  %s186_s24 = scalar_lea.vmem %s30_s13, 32 }
   0xb   :  { %p183_p3 = scmp.ne.s32.totalorder %s30_s13, %s182_s23  ;;  %p187_p4 = scmp.lt.s32.totalorder %s30_s13, %s30_s13 }
   0xc   :  { %p188_p5 = scmp.lt.s32.totalorder %s186_s24, %s182_s23 }
   0xe   :  { %p189_p6 = por %p188_p5, %p187_p4 }
  0x10   :  { %p190_p7 = pnand %p189_p6, %p183_p3 }
  0x12   :  { %193 = shalt.err (!%p190_p7)
}
  0x13   :  { %32 = dma.hbm_to_vmem [thread:$0]  %s372_s1, 16, %s30_s13, [#allocation6]  }
  0x14   :  { %s194_s29 = scalar_lea.hbm %s371_s0, 2048 }
  0x15   :  { %p195_p8 = scmp.ne.s32.totalorder %s371_s0, %s194_s29  ;;  %p198_p9 = scmp.lt.u32.totalorder %s194_s29, %s371_s0 }
  0x17   :  { %p200_p10 = pnand %p198_p9, %p195_p8 }
  0x19   :  { %203 = shalt.err (!%p200_p10)
}
  0x1a   :  { %s204_s7 = scalar_lea.vmem %s292_s15, 2048  ;;  %p209_p12 = scmp.lt.s32.totalorder %s292_s15, %s292_s15 }
  0x1b   :  { %p205_p11 = scmp.ne.s32.totalorder %s292_s15, %s204_s7  ;;  %p210_p13 = scmp.lt.s32.totalorder %s204_s7, %s204_s7 }
  0x1d   :  { %p211_p0 = por %p210_p13, %p209_p12 }
  0x1f   :  { %p212_p1 = pnand %p211_p0, %p205_p11 }
  0x21   :  { %215 = shalt.err (!%p212_p1)
}
  0x22   :  { %s268_s1 = smov 128   ;;  %s269_s8 = smov 8  }
  0x23   :  { %22 = dma.hbm_to_vmem [thread:$0]  %s371_s0, 2048, %s292_s15, [#allocation3], %s268_s1, %s268_s1, %s269_s8  }
  0x24   :  { %s270_s11 = smov [#allocation7]   ;;  %s216_s16 = scalar_lea.hbm %s373_s2, 16 }
  0x25   :  { %s39_s12 = sshll.u32 %s270_s11, 4  ;;  %p217_p2 = scmp.ne.s32.totalorder %s373_s2, %s216_s16  ;;  %s40_s12 = int_to_ptr.vmem [resolvable:$true] %s39_s12 }
  0x26   :  { %p220_p3 = scmp.lt.u32.totalorder %s216_s16, %s373_s2 }
  0x28   :  { %p222_p4 = pnand %p220_p3, %p217_p2 }
  0x2a   :  { %225 = shalt.err (!%p222_p4)
}
  0x2b   :  { %s226_s21 = scalar_lea.vmem %s40_s12, 16  ;;  %s230_s0 = scalar_lea.vmem %s40_s12, 32 }
  0x2c   :  { %p227_p5 = scmp.ne.s32.totalorder %s40_s12, %s226_s21  ;;  %p231_p6 = scmp.lt.s32.totalorder %s40_s12, %s40_s12 }
  0x2d   :  { %p232_p7 = scmp.lt.s32.totalorder %s230_s0, %s226_s21 }
  0x2f   :  { %p233_p8 = por %p232_p7, %p231_p6 }
  0x31   :  { %p234_p9 = pnand %p233_p8, %p227_p5 }
  0x33   :  { %237 = shalt.err (!%p234_p9)
}
  0x34   :  { %42 = dma.hbm_to_vmem [thread:$0]  %s373_s2, 16, %s40_s12, [#allocation6]  }
  0x35   :  { %260 = dma.done.wait [#allocation3], 2048  }
  0x36   :  { %261 = vsyncadd [#allocation3], 4294965248 }
  0x37   :  { %262 = dma.done.wait [#allocation6], 32  }
  0x38   :  { %263 = vsyncadd [#allocation6], 4294967264  ;;  %v52_v0 = vld [vmem:[#allocation2] sm:$0xff]  ;;  %v53_v4 = vld [vmem:[#allocation2 + $0x8] sm:$0xff]  ;;  %s271_s2 = smov [#allocation8]  }
  0x39   :  { %v164_v1 = vld [vmem:[#allocation5] ss:$0 sm:$0xff]  ;;  %v338_v2 = vld [vmem:[#allocation7] ss:$0 sm:$0xff]  ;;  %v54_v5 = vld [vmem:[#allocation2 + $0x10] sm:$0xff]  ;;  %s151_s23 = sshll.u32 %s271_s2, 4  ;;  %s152_s23 = int_to_ptr.vmem [resolvable:$true] %s151_s23 }
  0x3a   :  { %v75_v3 = vmul.f32 %v164_v1, %v52_v0  ;;  %v55_v6 = vld [vmem:[#allocation2 + $0x18] sm:$0xff]  ;;  %v76_v7 = vmul.f32 %v164_v1, %v53_v4  ;;  %v77_v8 = vmul.f32 %v164_v1, %v54_v5  ;;  %v56_v10 = vld [vmem:[#allocation2 + $0x20] sm:$0xff]  ;;  %v57_v11 = vld [vmem:[#allocation2 + $0x28] sm:$0xff]  ;;  %s238_s24 = scalar_lea.vmem %s152_s23, 2048  ;;  %p243_p11 = scmp.lt.s32.totalorder %s152_s23, %s152_s23 }
  0x3b   :  { %v78_v9 = vmul.f32 %v164_v1, %v55_v6  ;;  %v58_v12 = vld [vmem:[#allocation2 + $0x30] sm:$0xff]  ;;  %v79_v14 = vmul.f32 %v164_v1, %v56_v10  ;;  %v80_v15 = vmul.f32 %v164_v1, %v57_v11  ;;  %v59_v17 = vld [vmem:[#allocation2 + $0x38] sm:$0xff]  ;;  %v60_v22 = vld [vmem:[#allocation2 + $0x40] sm:$0xff]  ;;  %p239_p10 = scmp.ne.s32.totalorder %s152_s23, %s238_s24  ;;  %p244_p12 = scmp.lt.s32.totalorder %s238_s24, %s238_s24 }
  0x3c   :  { %v98_v13 = vadd.f32 %v338_v2, %v75_v3  ;;  %v81_v16 = vmul.f32 %v164_v1, %v58_v12  ;;  %v99_v18 = vadd.f32 %v338_v2, %v76_v7  ;;  %v100_v19 = vadd.f32 %v338_v2, %v77_v8  ;;  %v61_v27 = vld [vmem:[#allocation2 + $0x48] sm:$0xff]  ;;  %v62_v28 = vld [vmem:[#allocation2 + $0x50] sm:$0xff]  ;;  %v63_v29 = vld [vmem:[#allocation2 + $0x58] sm:$0xff] }
  0x3d   :  { %v101_v20 = vadd.f32 %v338_v2, %v78_v9  ;;  %v82_v21 = vmul.f32 %v164_v1, %v59_v17  ;;  %v102_v24 = vadd.f32 %v338_v2, %v79_v14  ;;  %v103_v25 = vadd.f32 %v338_v2, %v80_v15  ;;  %v64_v34 = vld [vmem:[#allocation2 + $0x60] sm:$0xff]  ;;  %v65_v35 = vld [vmem:[#allocation2 + $0x68] sm:$0xff]  ;;  %v66_v36 = vld [vmem:[#allocation2 + $0x70] sm:$0xff]  ;;  %p245_p13 = por %p244_p12, %p243_p11 }
  0x3e   :  { %v114_v23 = vmax.f32 %v98_v13, 0.0  ;;  %v104_v26 = vadd.f32 %v338_v2, %v81_v16  ;;  %v115_v30 = vmax.f32 %v99_v18, 0.0  ;;  %v116_v31 = vmax.f32 %v100_v19, 0.0  ;;  %v67_v41 = vld [vmem:[#allocation2 + $0x78] sm:$0xff] }
  0x3f   :  { %v117_v32 = vmax.f32 %v101_v20, 0.0  ;;  %v105_v33 = vadd.f32 %v338_v2, %v82_v21  ;;  %v118_v37 = vmax.f32 %v102_v24, 0.0  ;;  %v119_v38 = vmax.f32 %v103_v25, 0.0  ;;  %p246_p0 = pnand %p245_p13, %p239_p10 }
  0x40   :  { %130 = vst [vmem:[#allocation8] sm:$0xff] %v114_v23  ;;  %v120_v39 = vmax.f32 %v104_v26, 0.0  ;;  %v83_v40 = vmul.f32 %v164_v1, %v60_v22  ;;  %131 = vst [vmem:[#allocation8 + $0x8] sm:$0xff] %v115_v30  ;;  %v84_v43 = vmul.f32 %v164_v1, %v61_v27  ;;  %v85_v44 = vmul.f32 %v164_v1, %v62_v28 }
  0x41   :  { %132 = vst [vmem:[#allocation8 + $0x10] sm:$0xff] %v116_v31  ;;  %133 = vst [vmem:[#allocation8 + $0x18] sm:$0xff] %v117_v32  ;;  %v121_v42 = vmax.f32 %v105_v33, 0.0  ;;  %v86_v45 = vmul.f32 %v164_v1, %v63_v29  ;;  %v87_v47 = vmul.f32 %v164_v1, %v64_v34  ;;  %v88_v48 = vmul.f32 %v164_v1, %v65_v35 }
  0x42   :  { %134 = vst [vmem:[#allocation8 + $0x20] sm:$0xff] %v118_v37  ;;  %135 = vst [vmem:[#allocation8 + $0x28] sm:$0xff] %v119_v38  ;;  %v106_v46 = vadd.f32 %v338_v2, %v83_v40  ;;  %v89_v49 = vmul.f32 %v164_v1, %v66_v36  ;;  %v107_v50 = vadd.f32 %v338_v2, %v84_v43 }
  0x43   :  { %136 = vst [vmem:[#allocation8 + $0x30] sm:$0xff] %v120_v39  ;;  %137 = vst [vmem:[#allocation8 + $0x38] sm:$0xff] %v121_v42  ;;  %v108_v51 = vadd.f32 %v338_v2, %v85_v44  ;;  %v109_v52 = vadd.f32 %v338_v2, %v86_v45  ;;  %v90_v53 = vmul.f32 %v164_v1, %v67_v41 }
  0x44   :  { %v122_v54 = vmax.f32 %v106_v46, 0.0  ;;  %v110_v55 = vadd.f32 %v338_v2, %v87_v47  ;;  %v111_v56 = vadd.f32 %v338_v2, %v88_v48  ;;  %v112_v57 = vadd.f32 %v338_v2, %v89_v49 }
  0x45   :  { %v123_v58 = vmax.f32 %v107_v50, 0.0  ;;  %v124_v59 = vmax.f32 %v108_v51, 0.0  ;;  %v125_v60 = vmax.f32 %v109_v52, 0.0  ;;  %v113_v61 = vadd.f32 %v338_v2, %v90_v53 }
  0x46   :  { %138 = vst [vmem:[#allocation8 + $0x40] sm:$0xff] %v122_v54  ;;  %v126_v62 = vmax.f32 %v110_v55, 0.0  ;;  %v127_v63 = vmax.f32 %v111_v56, 0.0  ;;  %v128_v0 = vmax.f32 %v112_v57, 0.0 }
  0x47   :  { %139 = vst [vmem:[#allocation8 + $0x48] sm:$0xff] %v123_v58  ;;  %140 = vst [vmem:[#allocation8 + $0x50] sm:$0xff] %v124_v59  ;;  %v129_v1 = vmax.f32 %v113_v61, 0.0 }
  0x48   :  { %141 = vst [vmem:[#allocation8 + $0x58] sm:$0xff] %v125_v60  ;;  %142 = vst [vmem:[#allocation8 + $0x60] sm:$0xff] %v126_v62 }
  0x49   :  { %143 = vst [vmem:[#allocation8 + $0x68] sm:$0xff] %v127_v63  ;;  %144 = vst [vmem:[#allocation8 + $0x70] sm:$0xff] %v128_v0 }
  0x4a   :  { %145 = vst [vmem:[#allocation8 + $0x78] sm:$0xff] %v129_v1 }
  0x4b   :  { %249 = shalt.err (!%p246_p0)
}
  0x4c   :  { %s250_s27 = scalar_lea.hbm %s374_s3, 2048 }
  0x4d   :  { %p251_p1 = scmp.ne.s32.totalorder %s374_s3, %s250_s27  ;;  %p254_p2 = scmp.lt.u32.totalorder %s250_s27, %s374_s3 }
  0x4f   :  { %p256_p3 = pnand %p254_p2, %p251_p1 }
  0x51   :  { %259 = shalt.err (!%p256_p3)
}
  0x52   :  { %157 = dma.vmem_to_hbm [thread:$0]  %s152_s23, 2048, %s374_s3, [#allocation4], %s268_s1, %s268_s1, %s269_s8  }
  0x53   :  { %264 = dma.done.wait [#allocation4], 2048  }
  0x54   :  { %265 = vsyncadd [#allocation4], 4294965248 }
  0x55   :  { %161 = vsyncpa [#allocation3], 1 }
  0x56   :  { %162 = vsyncpa [#allocation6], 1 }
  0x57   :  { %163 = vsyncpa [#allocation4], 1 }

// kernel: generator128.26
= control target key start
LH: loop header
LB: loop body
LE: loop exit
PB: predicated region body
PF: predicated region fallthrough
CT: control target
= control target key end

     0   :  { %7 = vsyncpa [#allocation3], 0  ;;  %s1398_s0 = inlined_call_operand.hbm [shape: f32[578,128], index: 0, kind: input, shape index: {}]   ;;  %s1399_s1 = inlined_call_operand.hbm [shape: f32[128,64], index: 1, kind: input, shape index: {}]   ;;  %s1400_s2 = inlined_call_operand.hbm [shape: f32[578,64], index: 2, kind: output, shape index: {}]  }
   0x1   :  { %8 = vsyncpa [#allocation6], 0 }
   0x2   :  { %9 = vsyncpa [#allocation4], 0  ;;  %s1112_s9 = smov [#allocation2]   ;;  %s1040_s13 = scalar_lea.hbm %s1398_s0, 9344 }
   0x3   :  { %s15_s10 = sshll.u32 %s1112_s9, 4  ;;  %p1041_p0 = scmp.ne.s32.totalorder %s1398_s0, %s1040_s13  ;;  %s16_s10 = int_to_ptr.vmem [resolvable:$true] %s15_s10 }
   0x4   :  { %p1044_p1 = scmp.lt.u32.totalorder %s1040_s13, %s1398_s0 }
   0x6   :  { %p1046_p2 = pnand %p1044_p1, %p1041_p0 }
   0x8   :  { %1049 = shalt.err (!%p1046_p2)
}
   0x9   :  { %s1050_s18 = scalar_lea.vmem %s16_s10, 9344  ;;  %p1055_p4 = scmp.lt.s32.totalorder %s16_s10, %s16_s10 }
   0xa   :  { %p1051_p3 = scmp.ne.s32.totalorder %s16_s10, %s1050_s18  ;;  %p1056_p5 = scmp.lt.s32.totalorder %s1050_s18, %s1050_s18 }
   0xc   :  { %p1057_p6 = por %p1056_p5, %p1055_p4 }
   0xe   :  { %p1058_p7 = pnand %p1057_p6, %p1051_p3 }
  0x10   :  { %1061 = shalt.err (!%p1058_p7)
}
  0x11   :  { %s1113_s19 = smov 128   ;;  %s1114_s20 = smov 8  }
  0x12   :  { %21 = dma.hbm_to_vmem [thread:$0]  %s1398_s0, 9344, %s16_s10, [#allocation3], %s1113_s19, %s1113_s19, %s1114_s20  }
  0x13   :  { %s1115_s23 = smov [#allocation5]   ;;  %s1062_s27 = scalar_lea.hbm %s1399_s1, 2048 }
  0x14   :  { %s27_s24 = sshll.u32 %s1115_s23, 4  ;;  %p1063_p8 = scmp.ne.s32.totalorder %s1399_s1, %s1062_s27  ;;  %s28_s24 = int_to_ptr.vmem [resolvable:$true] %s27_s24 }
  0x15   :  { %p1066_p9 = scmp.lt.u32.totalorder %s1062_s27, %s1399_s1 }
  0x17   :  { %p1068_p10 = pnand %p1066_p9, %p1063_p8 }
  0x19   :  { %1071 = shalt.err (!%p1068_p10)
}
  0x1a   :  { %s1072_s4 = scalar_lea.vmem %s28_s24, 2048  ;;  %p1077_p12 = scmp.lt.s32.totalorder %s28_s24, %s28_s24 }
  0x1b   :  { %p1073_p11 = scmp.ne.s32.totalorder %s28_s24, %s1072_s4  ;;  %p1078_p13 = scmp.lt.s32.totalorder %s1072_s4, %s1072_s4 }
  0x1d   :  { %p1079_p0 = por %p1078_p13, %p1077_p12 }
  0x1f   :  { %p1080_p1 = pnand %p1079_p0, %p1073_p11 }
  0x21   :  { %1083 = shalt.err (!%p1080_p1)
}
  0x22   :  { %33 = dma.hbm_to_vmem [thread:$0]  %s1399_s1, 2048, %s28_s24, [#allocation6], %s1113_s19, %s1113_s19, %s1114_s20  }
  0x23   :  { %1106 = dma.done.wait [#allocation3], 9344  }
  0x24   :  { %1107 = vsyncadd [#allocation3], 4294957952 }
  0x25   :  { %1108 = dma.done.wait [#allocation6], 2048  }
  0x26   :  { %1109 = vsyncadd [#allocation6], 4294965248  ;;  %v1116_v0 = vmov 0.0|0.0   ;;  %vm1117_vm0 = vmmov 0   ;;  %v1118_v1 = vmov 0.0   ;;  %v113_v2 = vld [vmem:[#allocation5] sm:$0xff] }
  0x27   :  { %992 = vmatprep.subr.bf16.mxu0 %v1116_v0  ;;  %1016 = vmatprep.subr.bf16.mxu1 %v1116_v0  ;;  %v114_v3 = vld [vmem:[#allocation5 + $0x8] sm:$0xff]  ;;  %v115_v4 = vld [vmem:[#allocation5 + $0x10] sm:$0xff]  ;;  %v116_v6 = vld [vmem:[#allocation5 + $0x18] sm:$0xff]  ;;  %vm559_vm1 = vcmask 523264   ;;  %vm632_vm2 = vcmask 517120   ;;  %s1119_s1 = smov [#allocation7]  }
  0x28   :  { %773 = vmatprep.mubr.msk.f32.mxu0 %vm1117_vm0, %v1118_v1  ;;  %884 = vmatprep.mubr.msk.f32.mxu1 %vm1117_vm0, %v1118_v1  ;;  %v993_v5 = vpack.c.bf16 %v114_v3, %v113_v2  ;;  %v996_v7 = vpack.c.bf16 %v116_v6, %v115_v4  ;;  %v117_v8 = vld [vmem:[#allocation5 + $0x20] sm:$0xff]  ;;  %v118_v9 = vld [vmem:[#allocation5 + $0x28] sm:$0xff]  ;;  %v119_v11 = vld [vmem:[#allocation5 + $0x30] sm:$0xff]  ;;  %s639_s6 = sshll.u32 %s1119_s1, 4  ;;  %s640_s6 = int_to_ptr.vmem [resolvable:$true] %s639_s6 }
  0x29   :  { %v999_v10 = vpack.c.bf16 %v118_v9, %v117_v8  ;;  %v120_v12 = vld [vmem:[#allocation5 + $0x38] sm:$0xff]  ;;  %v121_v14 = vld [vmem:[#allocation5 + $0x40] sm:$0xff]  ;;  %v122_v15 = vld [vmem:[#allocation5 + $0x48] sm:$0xff]  ;;  %s1084_s7 = scalar_lea.vmem %s640_s6, 9344  ;;  %p1089_p3 = scmp.lt.s32.totalorder %s640_s6, %s640_s6 }
  0x2a   :  { %994 = vmatpush3.bf16.msra.mxu0 %v993_v5  ;;  %1024 = vmatpush3.bf16.msra.mxu1 %v993_v5  ;;  %v1002_v13 = vpack.c.bf16 %v120_v12, %v119_v11  ;;  %v1005_v16 = vpack.c.bf16 %v122_v15, %v121_v14  ;;  %v123_v17 = vld [vmem:[#allocation5 + $0x50] sm:$0xff]  ;;  %v124_v18 = vld [vmem:[#allocation5 + $0x58] sm:$0xff]  ;;  %v125_v20 = vld [vmem:[#allocation5 + $0x60] sm:$0xff]  ;;  %p1085_p2 = scmp.ne.s32.totalorder %s640_s6, %s1084_s7  ;;  %p1090_p4 = scmp.lt.s32.totalorder %s1084_s7, %s1084_s7 }
  0x2b   :  { %995 = vmatprep.subr.bf16.mxu0 %v1116_v0  ;;  %1017 = vmatprep.subr.bf16.mxu1 %v1116_v0  ;;  %v1008_v19 = vpack.c.bf16 %v124_v18, %v123_v17  ;;  %v126_v21 = vld [vmem:[#allocation5 + $0x68] sm:$0xff]  ;;  %v127_v23 = vld [vmem:[#allocation5 + $0x70] sm:$0xff]  ;;  %v128_v24 = vld [vmem:[#allocation5 + $0x78] sm:$0xff] }
  0x2c   :  { %v1011_v22 = vpack.c.bf16 %v126_v21, %v125_v20  ;;  %v1014_v25 = vpack.c.bf16 %v128_v24, %v127_v23  ;;  %v40_v26 = vld [vmem:[#allocation2] sm:$0xff]  ;;  %v77_v27 = vld [vmem:[#allocation2 + $0x128] sm:$0xff]  ;;  %v78_v29 = vld [vmem:[#allocation2 + $0x130] sm:$0xff]  ;;  %p1091_p5 = por %p1090_p4, %p1089_p3 }
  0x2d   :  { %v41_v28 = vld [vmem:[#allocation2 + $0x8] sm:$0xff]  ;;  %v42_v30 = vld [vmem:[#allocation2 + $0x10] sm:$0xff]  ;;  %v79_v31 = vld [vmem:[#allocation2 + $0x138] sm:$0xff] }
  0x2e   :  { %997 = vmatpush3.bf16.msra.mxu0 %v996_v7  ;;  %1025 = vmatpush3.bf16.msra.mxu1 %v996_v7  ;;  %v43_v32 = vld [vmem:[#allocation2 + $0x18] sm:$0xff]  ;;  %v80_v33 = vld [vmem:[#allocation2 + $0x140] sm:$0xff]  ;;  %v81_v35 = vld [vmem:[#allocation2 + $0x148] sm:$0xff]  ;;  %p1092_p6 = pnand %p1091_p5, %p1085_p2 }
  0x2f   :  { %998 = vmatprep.subr.bf16.mxu0 %v1116_v0  ;;  %1018 = vmatprep.subr.bf16.mxu1 %v1116_v0  ;;  %v44_v34 = vld [vmem:[#allocation2 + $0x20] sm:$0xff]  ;;  %v45_v36 = vld [vmem:[#allocation2 + $0x28] sm:$0xff]  ;;  %v82_v37 = vld [vmem:[#allocation2 + $0x150] sm:$0xff] }
  0x30   :  { %v46_v38 = vld [vmem:[#allocation2 + $0x30] sm:$0xff]  ;;  %v83_v39 = vld [vmem:[#allocation2 + $0x158] sm:$0xff]  ;;  %v84_v41 = vld [vmem:[#allocation2 + $0x160] sm:$0xff] }
  0x31   :  { %v47_v40 = vld [vmem:[#allocation2 + $0x38] sm:$0xff]  ;;  %v48_v42 = vld [vmem:[#allocation2 + $0x40] sm:$0xff]  ;;  %v85_v43 = vld [vmem:[#allocation2 + $0x168] sm:$0xff] }
  0x32   :  { %1000 = vmatpush3.bf16.msra.mxu0 %v999_v10  ;;  %1026 = vmatpush3.bf16.msra.mxu1 %v999_v10  ;;  %v49_v44 = vld [vmem:[#allocation2 + $0x48] sm:$0xff]  ;;  %v86_v45 = vld [vmem:[#allocation2 + $0x170] sm:$0xff]  ;;  %v87_v47 = vld [vmem:[#allocation2 + $0x178] sm:$0xff] }
  0x33   :  { %1001 = vmatprep.subr.bf16.mxu0 %v1116_v0  ;;  %1019 = vmatprep.subr.bf16.mxu1 %v1116_v0  ;;  %v50_v46 = vld [vmem:[#allocation2 + $0x50] sm:$0xff]  ;;  %v51_v48 = vld [vmem:[#allocation2 + $0x58] sm:$0xff]  ;;  %v88_v49 = vld [vmem:[#allocation2 + $0x180] sm:$0xff] }
  0x34   :  { %v52_v50 = vld [vmem:[#allocation2 + $0x60] sm:$0xff]  ;;  %v89_v51 = vld [vmem:[#allocation2 + $0x188] sm:$0xff]  ;;  %v90_v53 = vld [vmem:[#allocation2 + $0x190] sm:$0xff] }
  0x35   :  { %v53_v52 = vld [vmem:[#allocation2 + $0x68] sm:$0xff]  ;;  %v54_v54 = vld [vmem:[#allocation2 + $0x70] sm:$0xff]  ;;  %v91_v55 = vld [vmem:[#allocation2 + $0x198] sm:$0xff] }
  0x36   :  { %1003 = vmatpush3.bf16.msra.mxu0 %v1002_v13  ;;  %1027 = vmatpush3.bf16.msra.mxu1 %v1002_v13  ;;  %v55_v56 = vld [vmem:[#allocation2 + $0x78] sm:$0xff]  ;;  %v92_v57 = vld [vmem:[#allocation2 + $0x1a0] sm:$0xff]  ;;  %v93_v59 = vld [vmem:[#allocation2 + $0x1a8] sm:$0xff] }
  0x37   :  { %1004 = vmatprep.subr.bf16.mxu0 %v1116_v0  ;;  %1020 = vmatprep.subr.bf16.mxu1 %v1116_v0  ;;  %v56_v58 = vld [vmem:[#allocation2 + $0x80] sm:$0xff]  ;;  %v57_v60 = vld [vmem:[#allocation2 + $0x88] sm:$0xff]  ;;  %v94_v61 = vld [vmem:[#allocation2 + $0x1b0] sm:$0xff] }
  0x38   :  { %v58_v62 = vld [vmem:[#allocation2 + $0x90] sm:$0xff]  ;;  %v95_v63 = vld [vmem:[#allocation2 + $0x1b8] sm:$0xff]  ;;  %v96_v2 = vld [vmem:[#allocation2 + $0x1c0] sm:$0xff] }
  0x39   :  { %v60_v3 = vld [vmem:[#allocation2 + $0xa0] sm:$0xff]  ;;  %v97_v4 = vld [vmem:[#allocation2 + $0x1c8] sm:$0xff]  ;;  %v98_v6 = vld [vmem:[#allocation2 + $0x1d0] sm:$0xff] }
  0x3a   :  { %1006 = vmatpush3.bf16.msra.mxu0 %v1005_v16  ;;  %1028 = vmatpush3.bf16.msra.mxu1 %v1005_v16  ;;  %v61_v5 = vld [vmem:[#allocation2 + $0xa8] sm:$0xff]  ;;  %v62_v7 = vld [vmem:[#allocation2 + $0xb0] sm:$0xff]  ;;  %v99_v8 = vld [vmem:[#allocation2 + $0x1d8] sm:$0xff] }
  0x3b   :  { %1007 = vmatprep.subr.bf16.mxu0 %v1116_v0  ;;  %1021 = vmatprep.subr.bf16.mxu1 %v1116_v0  ;;  %v63_v9 = vld [vmem:[#allocation2 + $0xb8] sm:$0xff]  ;;  %v100_v10 = vld [vmem:[#allocation2 + $0x1e0] sm:$0xff]  ;;  %v101_v12 = vld [vmem:[#allocation2 + $0x1e8] sm:$0xff] }
  0x3c   :  { %v64_v11 = vld [vmem:[#allocation2 + $0xc0] sm:$0xff]  ;;  %v65_v13 = vld [vmem:[#allocation2 + $0xc8] sm:$0xff]  ;;  %v102_v14 = vld [vmem:[#allocation2 + $0x1f0] sm:$0xff] }
  0x3d   :  { %v66_v15 = vld [vmem:[#allocation2 + $0xd0] sm:$0xff]  ;;  %v103_v16 = vld [vmem:[#allocation2 + $0x1f8] sm:$0xff]  ;;  %v104_v18 = vld [vmem:[#allocation2 + $0x200] sm:$0xff] }
  0x3e   :  { %1009 = vmatpush3.bf16.msra.mxu0 %v1008_v19  ;;  %1029 = vmatpush3.bf16.msra.mxu1 %v1008_v19  ;;  %v67_v17 = vld [vmem:[#allocation2 + $0xd8] sm:$0xff]  ;;  %v68_v19 = vld [vmem:[#allocation2 + $0xe0] sm:$0xff]  ;;  %v105_v20 = vld [vmem:[#allocation2 + $0x208] sm:$0xff] }
  0x3f   :  { %1010 = vmatprep.subr.bf16.mxu0 %v1116_v0  ;;  %1022 = vmatprep.subr.bf16.mxu1 %v1116_v0  ;;  %v69_v21 = vld [vmem:[#allocation2 + $0xe8] sm:$0xff]  ;;  %v70_v23 = vld [vmem:[#allocation2 + $0xf0] sm:$0xff]  ;;  %v107_v24 = vld [vmem:[#allocation2 + $0x218] sm:$0xff] }
  0x42   :  { %1012 = vmatpush3.bf16.msra.mxu0 %v1011_v22  ;;  %1030 = vmatpush3.bf16.msra.mxu1 %v1011_v22  ;;  %v106_v22 = vld [vmem:[#allocation2 + $0x210] sm:$0xff] }
  0x43   :  { %1013 = vmatprep.subr.bf16.mxu0 %v1116_v0  ;;  %1023 = vmatprep.subr.bf16.mxu1 %v1116_v0  ;;  %v59_v0 = vld [vmem:[#allocation2 + $0x98] sm:$0xff] }
  0x46   :  { %1015 = vmatpush3.bf16.msra.mxu0 %v1014_v25  ;;  %1031 = vmatpush3.bf16.msra.mxu1 %v1014_v25  ;;  %v71_v25 = vld [vmem:[#allocation2 + $0xf8] sm:$0xff] }
  0x49   :  { %774 = vmatmul.mubr.f32.vlgmr.msra.gmra.mrb[0].mxu0 %v40_v26  ;;  %885 = vmatmul.mubr.f32.vlgmr.msra.gmra.mrb[0].mxu1 %v77_v27  ;;  %v108_v26 = vld [vmem:[#allocation2 + $0x220] sm:$0xff] }
  0x4a   :  { %776 = vmatprep.mubr.msk.f32.mxu0 %vm1117_vm0, %v1118_v1  ;;  %887 = vmatprep.mubr.msk.f32.mxu1 %vm1117_vm0, %v1118_v1  ;;  %v72_v27 = vld [vmem:[#allocation2 + $0x100] sm:$0xff] }
  0x4d   :  { %777 = vmatmul.mubr.f32.gmra.mrb[2].mxu0 %v41_v28  ;;  %888 = vmatmul.mubr.f32.gmra.mrb[2].mxu1 %v78_v29  ;;  %v109_v28 = vld [vmem:[#allocation2 + $0x228] sm:$0xff] }
  0x4e   :  { %779 = vmatprep.mubr.msk.f32.mxu0 %vm1117_vm0, %v1118_v1  ;;  %890 = vmatprep.mubr.msk.f32.mxu1 %vm1117_vm0, %v1118_v1  ;;  %v73_v29 = vld [vmem:[#allocation2 + $0x108] sm:$0xff] }
  0x51   :  { %780 = vmatmul.mubr.f32.gmra.mrb[4].mxu0 %v42_v30  ;;  %891 = vmatmul.mubr.f32.gmra.mrb[4].mxu1 %v79_v31  ;;  %v110_v30 = vld [vmem:[#allocation2 + $0x230] sm:$0xff] }
  0x52   :  { %782 = vmatprep.mubr.msk.f32.mxu0 %vm1117_vm0, %v1118_v1  ;;  %893 = vmatprep.mubr.msk.f32.mxu1 %vm1117_vm0, %v1118_v1  ;;  %v74_v31 = vld [vmem:[#allocation2 + $0x110] sm:$0xff] }
  0x55   :  { %783 = vmatmul.mubr.f32.gmra.mrb[6].mxu0 %v43_v32  ;;  %894 = vmatmul.mubr.f32.gmra.mrb[6].mxu1 %v80_v33  ;;  %v111_v32 = vld [vmem:[#allocation2 + $0x238] sm:$0xff] }
  0x56   :  { %785 = vmatprep.mubr.msk.f32.mxu0 %vm1117_vm0, %v1118_v1  ;;  %896 = vmatprep.mubr.msk.f32.mxu1 %vm1117_vm0, %v1118_v1  ;;  %v75_v33 = vld [vmem:[#allocation2 + $0x118] sm:$0xff] }
  0x59   :  { %786 = vmatmul.mubr.f32.gmra.mrb[8].mxu0 %v44_v34  ;;  %897 = vmatmul.mubr.f32.gmra.mrb[8].mxu1 %v81_v35  ;;  %v112_v34 = vld [vmem:[#allocation2 + $0x240] sm:$0x3] }
  0x5a   :  { %788 = vmatprep.mubr.msk.f32.mxu0 %vm1117_vm0, %v1118_v1  ;;  %899 = vmatprep.mubr.msk.f32.mxu1 %vm1117_vm0, %v1118_v1  ;;  %v76_v35 = vld [vmem:[#allocation2 + $0x120] sm:$0xff] }
  0x5d   :  { %789 = vmatmul.mubr.f32.gmra.mrb[10].mxu0 %v45_v36  ;;  %900 = vmatmul.mubr.f32.gmra.mrb[10].mxu1 %v82_v37 }
  0x5e   :  { %791 = vmatprep.mubr.msk.f32.mxu0 %vm1117_vm0, %v1118_v1  ;;  %902 = vmatprep.mubr.msk.f32.mxu1 %vm1117_vm0, %v1118_v1 }
  0x61   :  { %792 = vmatmul.mubr.f32.gmra.mrb[12].mxu0 %v46_v38  ;;  %903 = vmatmul.mubr.f32.gmra.mrb[12].mxu1 %v83_v39 }
  0x62   :  { %794 = vmatprep.mubr.msk.f32.mxu0 %vm1117_vm0, %v1118_v1  ;;  %905 = vmatprep.mubr.msk.f32.mxu1 %vm1117_vm0, %v1118_v1 }
  0x65   :  { %795 = vmatmul.mubr.f32.gmra.mrb[14].mxu0 %v47_v40  ;;  %906 = vmatmul.mubr.f32.gmra.mrb[14].mxu1 %v84_v41 }
  0x66   :  { %797 = vmatprep.mubr.msk.f32.mxu0 %vm1117_vm0, %v1118_v1  ;;  %908 = vmatprep.mubr.msk.f32.mxu1 %vm1117_vm0, %v1118_v1 }
  0x69   :  { %798 = vmatmul.mubr.f32.gmra.mrb[16].mxu0 %v48_v42  ;;  %909 = vmatmul.mubr.f32.gmra.mrb[16].mxu1 %v85_v43 }
  0x6a   :  { %800 = vmatprep.mubr.msk.f32.mxu0 %vm1117_vm0, %v1118_v1  ;;  %911 = vmatprep.mubr.msk.f32.mxu1 %vm1117_vm0, %v1118_v1 }
  0x6d   :  { %801 = vmatmul.mubr.f32.gmra.mrb[18].mxu0 %v49_v44  ;;  %912 = vmatmul.mubr.f32.gmra.mrb[18].mxu1 %v86_v45 }
  0x6e   :  { %803 = vmatprep.mubr.msk.f32.mxu0 %vm1117_vm0, %v1118_v1  ;;  %914 = vmatprep.mubr.msk.f32.mxu1 %vm1117_vm0, %v1118_v1 }
  0x71   :  { %804 = vmatmul.mubr.f32.gmra.mrb[20].mxu0 %v50_v46  ;;  %915 = vmatmul.mubr.f32.gmra.mrb[20].mxu1 %v87_v47 }
  0x72   :  { %806 = vmatprep.mubr.msk.f32.mxu0 %vm1117_vm0, %v1118_v1  ;;  %917 = vmatprep.mubr.msk.f32.mxu1 %vm1117_vm0, %v1118_v1 }
  0x75   :  { %807 = vmatmul.mubr.f32.gmra.mrb[22].mxu0 %v51_v48  ;;  %918 = vmatmul.mubr.f32.gmra.mrb[22].mxu1 %v88_v49 }
  0x76   :  { %809 = vmatprep.mubr.msk.f32.mxu0 %vm1117_vm0, %v1118_v1  ;;  %920 = vmatprep.mubr.msk.f32.mxu1 %vm1117_vm0, %v1118_v1 }
  0x79   :  { %810 = vmatmul.mubr.f32.gmra.mrb[24].mxu0 %v52_v50  ;;  %921 = vmatmul.mubr.f32.gmra.mrb[24].mxu1 %v89_v51 }
  0x7a   :  { %812 = vmatprep.mubr.msk.f32.mxu0 %vm1117_vm0, %v1118_v1  ;;  %923 = vmatprep.mubr.msk.f32.mxu1 %vm1117_vm0, %v1118_v1 }
  0x7d   :  { %813 = vmatmul.mubr.f32.gmra.mrb[26].mxu0 %v53_v52  ;;  %924 = vmatmul.mubr.f32.gmra.mrb[26].mxu1 %v90_v53 }
  0x7e   :  { %815 = vmatprep.mubr.msk.f32.mxu0 %vm1117_vm0, %v1118_v1  ;;  %926 = vmatprep.mubr.msk.f32.mxu1 %vm1117_vm0, %v1118_v1 }
  0x81   :  { %816 = vmatmul.mubr.f32.gmra.mrb[28].mxu0 %v54_v54  ;;  %927 = vmatmul.mubr.f32.gmra.mrb[28].mxu1 %v91_v55 }
  0x82   :  { %818 = vmatprep.mubr.msk.f32.mxu0 %vm1117_vm0, %v1118_v1  ;;  %929 = vmatprep.mubr.msk.f32.mxu1 %vm1117_vm0, %v1118_v1 }
  0x85   :  { %819 = vmatmul.mubr.f32.gmra.mrb[30].mxu0 %v55_v56  ;;  %930 = vmatmul.mubr.f32.gmra.mrb[30].mxu1 %v92_v57 }
  0x86   :  { %821 = vmatprep.mubr.msk.f32.mxu0 %vm1117_vm0, %v1118_v1  ;;  %932 = vmatprep.mubr.msk.f32.mxu1 %vm1117_vm0, %v1118_v1 }
  0x89   :  { %822 = vmatmul.mubr.f32.gmra.mrb[32].mxu0 %v56_v58  ;;  %933 = vmatmul.mubr.f32.gmra.mrb[32].mxu1 %v93_v59 }
  0x8a   :  { %824 = vmatprep.mubr.msk.f32.mxu0 %vm1117_vm0, %v1118_v1  ;;  %935 = vmatprep.mubr.msk.f32.mxu1 %vm1117_vm0, %v1118_v1 }
  0x8d   :  { %825 = vmatmul.mubr.f32.gmra.mrb[34].mxu0 %v57_v60  ;;  %936 = vmatmul.mubr.f32.gmra.mrb[34].mxu1 %v94_v61 }
  0x8e   :  { %827 = vmatprep.mubr.msk.f32.mxu0 %vm1117_vm0, %v1118_v1  ;;  %938 = vmatprep.mubr.msk.f32.mxu1 %vm1117_vm0, %v1118_v1 }
  0x91   :  { %828 = vmatmul.mubr.f32.gmra.mrb[36].mxu0 %v58_v62  ;;  %939 = vmatmul.mubr.f32.gmra.mrb[36].mxu1 %v95_v63 }
  0x92   :  { %830 = vmatprep.mubr.msk.f32.mxu0 %vm1117_vm0, %v1118_v1  ;;  %941 = vmatprep.mubr.msk.f32.mxu1 %vm1117_vm0, %v1118_v1 }
  0x95   :  { %831 = vmatmul.mubr.f32.gmra.mrb[38].mxu0 %v59_v0  ;;  %942 = vmatmul.mubr.f32.gmra.mrb[38].mxu1 %v96_v2 }
  0x96   :  { %833 = vmatprep.mubr.msk.f32.mxu0 %vm1117_vm0, %v1118_v1  ;;  %944 = vmatprep.mubr.msk.f32.mxu1 %vm1117_vm0, %v1118_v1 }
  0x99   :  { %834 = vmatmul.mubr.f32.gmra.mrb[40].mxu0 %v60_v3  ;;  %945 = vmatmul.mubr.f32.gmra.mrb[40].mxu1 %v97_v4 }
  0x9a   :  { %836 = vmatprep.mubr.msk.f32.mxu0 %vm1117_vm0, %v1118_v1  ;;  %947 = vmatprep.mubr.msk.f32.mxu1 %vm1117_vm0, %v1118_v1 }
  0x9d   :  { %837 = vmatmul.mubr.f32.gmra.mrb[42].mxu0 %v61_v5  ;;  %948 = vmatmul.mubr.f32.gmra.mrb[42].mxu1 %v98_v6 }
  0x9e   :  { %839 = vmatprep.mubr.msk.f32.mxu0 %vm1117_vm0, %v1118_v1  ;;  %950 = vmatprep.mubr.msk.f32.mxu1 %vm1117_vm0, %v1118_v1 }
  0xa1   :  { %840 = vmatmul.mubr.f32.gmra.mrb[44].mxu0 %v62_v7  ;;  %951 = vmatmul.mubr.f32.gmra.mrb[44].mxu1 %v99_v8 }
  0xa2   :  { %842 = vmatprep.mubr.msk.f32.mxu0 %vm1117_vm0, %v1118_v1  ;;  %953 = vmatprep.mubr.msk.f32.mxu1 %vm1117_vm0, %v1118_v1 }
  0xa5   :  { %843 = vmatmul.mubr.f32.gmra.mrb[46].mxu0 %v63_v9  ;;  %954 = vmatmul.mubr.f32.gmra.mrb[46].mxu1 %v100_v10 }
  0xa6   :  { %845 = vmatprep.mubr.msk.f32.mxu0 %vm1117_vm0, %v1118_v1  ;;  %956 = vmatprep.mubr.msk.f32.mxu1 %vm1117_vm0, %v1118_v1 }
  0xa9   :  { %846 = vmatmul.mubr.f32.gmra.mrb[48].mxu0 %v64_v11  ;;  %957 = vmatmul.mubr.f32.gmra.mrb[48].mxu1 %v101_v12 }
  0xaa   :  { %848 = vmatprep.mubr.msk.f32.mxu0 %vm1117_vm0, %v1118_v1  ;;  %959 = vmatprep.mubr.msk.f32.mxu1 %vm1117_vm0, %v1118_v1 }
  0xad   :  { %849 = vmatmul.mubr.f32.gmra.mrb[50].mxu0 %v65_v13  ;;  %960 = vmatmul.mubr.f32.gmra.mrb[50].mxu1 %v102_v14 }
  0xae   :  { %851 = vmatprep.mubr.msk.f32.mxu0 %vm1117_vm0, %v1118_v1  ;;  %962 = vmatprep.mubr.msk.f32.mxu1 %vm1117_vm0, %v1118_v1 }
  0xb1   :  { %852 = vmatmul.mubr.f32.gmra.mrb[52].mxu0 %v66_v15  ;;  %963 = vmatmul.mubr.f32.gmra.mrb[52].mxu1 %v103_v16 }
  0xb2   :  { %854 = vmatprep.mubr.msk.f32.mxu0 %vm1117_vm0, %v1118_v1  ;;  %965 = vmatprep.mubr.msk.f32.mxu1 %vm1117_vm0, %v1118_v1 }
  0xb5   :  { %855 = vmatmul.mubr.f32.gmra.mrb[54].mxu0 %v67_v17  ;;  %966 = vmatmul.mubr.f32.gmra.mrb[54].mxu1 %v104_v18 }
  0xb6   :  { %857 = vmatprep.mubr.msk.f32.mxu0 %vm1117_vm0, %v1118_v1  ;;  %968 = vmatprep.mubr.msk.f32.mxu1 %vm1117_vm0, %v1118_v1 }
  0xb9   :  { %858 = vmatmul.mubr.f32.gmra.mrb[56].mxu0 %v68_v19  ;;  %969 = vmatmul.mubr.f32.gmra.mrb[56].mxu1 %v105_v20 }
  0xba   :  { %860 = vmatprep.mubr.msk.f32.mxu0 %vm1117_vm0, %v1118_v1  ;;  %971 = vmatprep.mubr.msk.f32.mxu1 %vm1117_vm0, %v1118_v1 }
  0xbd   :  { %861 = vmatmul.mubr.f32.gmra.mrb[58].mxu0 %v69_v21  ;;  %972 = vmatmul.mubr.f32.gmra.mrb[58].mxu1 %v106_v22 }
  0xbe   :  { %863 = vmatprep.mubr.msk.f32.mxu0 %vm1117_vm0, %v1118_v1  ;;  %974 = vmatprep.mubr.msk.f32.mxu1 %vm1117_vm0, %v1118_v1 }
  0xc1   :  { %864 = vmatmul.mubr.f32.gmra.mrb[60].mxu0 %v70_v23  ;;  %975 = vmatmul.mubr.f32.gmra.mrb[60].mxu1 %v107_v24 }
  0xc2   :  { %866 = vmatprep.mubr.msk.f32.mxu0 %vm1117_vm0, %v1118_v1  ;;  %977 = vmatprep.mubr.msk.f32.mxu1 %vm1117_vm0, %v1118_v1 }
  0xc5   :  { %867 = vmatmul.mubr.f32.gmra.mrb[62].mxu0 %v71_v25  ;;  %978 = vmatmul.mubr.f32.gmra.mrb[62].mxu1 %v108_v26 }
  0xc6   :  { %869 = vmatprep.mubr.msk.f32.mxu0 %vm1117_vm0, %v1118_v1  ;;  %980 = vmatprep.mubr.msk.f32.mxu1 %vm1117_vm0, %v1118_v1 }
  0xc9   :  { %870 = vmatmul.mubr.f32.gmra.mrb[64].mxu0 %v72_v27  ;;  %981 = vmatmul.mubr.f32.gmra.mrb[64].mxu1 %v109_v28 }
  0xca   :  { %872 = vmatprep.mubr.msk.f32.mxu0 %vm1117_vm0, %v1118_v1  ;;  %983 = vmatprep.mubr.msk.f32.mxu1 %vm1117_vm0, %v1118_v1 }
  0xcd   :  { %873 = vmatmul.mubr.f32.gmra.mrb[66].mxu0 %v73_v29  ;;  %984 = vmatmul.mubr.f32.gmra.mrb[66].mxu1 %v110_v30 }
  0xce   :  { %875 = vmatprep.mubr.msk.f32.mxu0 %vm1117_vm0, %v1118_v1  ;;  %986 = vmatprep.mubr.msk.f32.mxu1 %vm1117_vm0, %v1118_v1 }
  0xd1   :  { %876 = vmatmul.mubr.f32.gmra.mrb[68].mxu0 %v74_v31  ;;  %987 = vmatmul.mubr.f32.gmra.mrb[68].mxu1 %v111_v32 }
  0xd2   :  { %878 = vmatprep.mubr.msk.f32.mxu0 %vm1117_vm0, %v1118_v1  ;;  %989 = vmatprep.mubr.msk.f32.mxu1 %vm1117_vm0, %v1118_v1 }
  0xd5   :  { %879 = vmatmul.mubr.f32.gmra.mrb[70].mxu0 %v75_v33  ;;  %990 = vmatmul.mubr.f32.gmra.mrb[70].mxu1 %v112_v34 }
  0xd6   :  { %881 = vmatprep.mubr.msk.f32.mxu0 %vm1117_vm0, %v1118_v1 }
  0xd9   :  { %882 = vmatmul.mubr.f32.gmra.mrb[72].mxu0 %v76_v35 }
 0x11c   :  { %v195_v36 = vpop.f32.mrb[0].mxu0  ;;  %v380_v37 = vpop.f32.mrb[0].mxu1 }
 0x11d   :  { %560 = vst.msk [vmem:[#allocation7] sm:$0xff] %vm559_vm1, %v195_v36  ;;  %v775_v38 = vpop.f32.mrb[1].mxu0  ;;  %597 = vst.msk [vmem:[#allocation7 + $0x128] sm:$0xff] %vm559_vm1, %v380_v37  ;;  %v886_v39 = vpop.f32.mrb[1].mxu1 }
 0x120   :  { %v200_v40 = vpop.f32.mrb[2].mxu0  ;;  %v385_v41 = vpop.f32.mrb[2].mxu1 }
 0x121   :  { %561 = vst.msk [vmem:[#allocation7 + $0x8] sm:$0xff] %vm559_vm1, %v200_v40  ;;  %v778_v42 = vpop.f32.mrb[3].mxu0  ;;  %598 = vst.msk [vmem:[#allocation7 + $0x130] sm:$0xff] %vm559_vm1, %v385_v41  ;;  %v889_v43 = vpop.f32.mrb[3].mxu1 }
 0x124   :  { %v205_v1 = vpop.f32.mrb[4].mxu0  ;;  %v390_v44 = vpop.f32.mrb[4].mxu1 }
 0x125   :  { %562 = vst.msk [vmem:[#allocation7 + $0x10] sm:$0xff] %vm559_vm1, %v205_v1  ;;  %v781_v45 = vpop.f32.mrb[5].mxu0  ;;  %599 = vst.msk [vmem:[#allocation7 + $0x138] sm:$0xff] %vm559_vm1, %v390_v44  ;;  %v892_v46 = vpop.f32.mrb[5].mxu1 }
 0x128   :  { %v210_v47 = vpop.f32.mrb[6].mxu0  ;;  %v395_v48 = vpop.f32.mrb[6].mxu1 }
 0x129   :  { %563 = vst.msk [vmem:[#allocation7 + $0x18] sm:$0xff] %vm559_vm1, %v210_v47  ;;  %v784_v49 = vpop.f32.mrb[7].mxu0  ;;  %600 = vst.msk [vmem:[#allocation7 + $0x140] sm:$0xff] %vm559_vm1, %v395_v48  ;;  %v895_v50 = vpop.f32.mrb[7].mxu1 }
 0x12c   :  { %v215_v51 = vpop.f32.mrb[8].mxu0  ;;  %v400_v52 = vpop.f32.mrb[8].mxu1 }
 0x12d   :  { %564 = vst.msk [vmem:[#allocation7 + $0x20] sm:$0xff] %vm559_vm1, %v215_v51  ;;  %v787_v53 = vpop.f32.mrb[9].mxu0  ;;  %601 = vst.msk [vmem:[#allocation7 + $0x148] sm:$0xff] %vm559_vm1, %v400_v52  ;;  %v898_v54 = vpop.f32.mrb[9].mxu1 }
 0x130   :  { %v220_v55 = vpop.f32.mrb[10].mxu0  ;;  %v405_v56 = vpop.f32.mrb[10].mxu1 }
 0x131   :  { %565 = vst.msk [vmem:[#allocation7 + $0x28] sm:$0xff] %vm559_vm1, %v220_v55  ;;  %v790_v57 = vpop.f32.mrb[11].mxu0  ;;  %602 = vst.msk [vmem:[#allocation7 + $0x150] sm:$0xff] %vm559_vm1, %v405_v56  ;;  %v901_v58 = vpop.f32.mrb[11].mxu1 }
 0x134   :  { %v225_v59 = vpop.f32.mrb[12].mxu0  ;;  %v410_v60 = vpop.f32.mrb[12].mxu1 }
 0x135   :  { %566 = vst.msk [vmem:[#allocation7 + $0x30] sm:$0xff] %vm559_vm1, %v225_v59  ;;  %v793_v61 = vpop.f32.mrb[13].mxu0  ;;  %603 = vst.msk [vmem:[#allocation7 + $0x158] sm:$0xff] %vm559_vm1, %v410_v60  ;;  %v904_v62 = vpop.f32.mrb[13].mxu1 }
 0x138   :  { %v230_v63 = vpop.f32.mrb[14].mxu0  ;;  %v415_v0 = vpop.f32.mrb[14].mxu1 }
 0x139   :  { %567 = vst.msk [vmem:[#allocation7 + $0x38] sm:$0xff] %vm559_vm1, %v230_v63  ;;  %v796_v2 = vpop.f32.mrb[15].mxu0  ;;  %604 = vst.msk [vmem:[#allocation7 + $0x160] sm:$0xff] %vm559_vm1, %v415_v0  ;;  %v907_v3 = vpop.f32.mrb[15].mxu1 }
 0x13c   :  { %v235_v4 = vpop.f32.mrb[16].mxu0  ;;  %v420_v5 = vpop.f32.mrb[16].mxu1 }
 0x13d   :  { %568 = vst.msk [vmem:[#allocation7 + $0x40] sm:$0xff] %vm559_vm1, %v235_v4  ;;  %v799_v6 = vpop.f32.mrb[17].mxu0  ;;  %605 = vst.msk [vmem:[#allocation7 + $0x168] sm:$0xff] %vm559_vm1, %v420_v5  ;;  %v910_v7 = vpop.f32.mrb[17].mxu1 }
 0x140   :  { %v240_v8 = vpop.f32.mrb[18].mxu0  ;;  %v425_v9 = vpop.f32.mrb[18].mxu1 }
 0x141   :  { %569 = vst.msk [vmem:[#allocation7 + $0x48] sm:$0xff] %vm559_vm1, %v240_v8  ;;  %v802_v10 = vpop.f32.mrb[19].mxu0  ;;  %606 = vst.msk [vmem:[#allocation7 + $0x170] sm:$0xff] %vm559_vm1, %v425_v9  ;;  %v913_v11 = vpop.f32.mrb[19].mxu1 }
 0x144   :  { %v245_v12 = vpop.f32.mrb[20].mxu0  ;;  %v430_v13 = vpop.f32.mrb[20].mxu1 }
 0x145   :  { %570 = vst.msk [vmem:[#allocation7 + $0x50] sm:$0xff] %vm559_vm1, %v245_v12  ;;  %v805_v14 = vpop.f32.mrb[21].mxu0  ;;  %607 = vst.msk [vmem:[#allocation7 + $0x178] sm:$0xff] %vm559_vm1, %v430_v13  ;;  %v916_v15 = vpop.f32.mrb[21].mxu1 }
 0x148   :  { %v250_v16 = vpop.f32.mrb[22].mxu0  ;;  %v435_v17 = vpop.f32.mrb[22].mxu1 }
 0x149   :  { %571 = vst.msk [vmem:[#allocation7 + $0x58] sm:$0xff] %vm559_vm1, %v250_v16  ;;  %v808_v18 = vpop.f32.mrb[23].mxu0  ;;  %608 = vst.msk [vmem:[#allocation7 + $0x180] sm:$0xff] %vm559_vm1, %v435_v17  ;;  %v919_v19 = vpop.f32.mrb[23].mxu1 }
 0x14c   :  { %v255_v20 = vpop.f32.mrb[24].mxu0  ;;  %v440_v21 = vpop.f32.mrb[24].mxu1 }
 0x14d   :  { %572 = vst.msk [vmem:[#allocation7 + $0x60] sm:$0xff] %vm559_vm1, %v255_v20  ;;  %v811_v22 = vpop.f32.mrb[25].mxu0  ;;  %609 = vst.msk [vmem:[#allocation7 + $0x188] sm:$0xff] %vm559_vm1, %v440_v21  ;;  %v922_v23 = vpop.f32.mrb[25].mxu1 }
 0x150   :  { %v260_v24 = vpop.f32.mrb[26].mxu0  ;;  %v445_v25 = vpop.f32.mrb[26].mxu1 }
 0x151   :  { %573 = vst.msk [vmem:[#allocation7 + $0x68] sm:$0xff] %vm559_vm1, %v260_v24  ;;  %v814_v26 = vpop.f32.mrb[27].mxu0  ;;  %610 = vst.msk [vmem:[#allocation7 + $0x190] sm:$0xff] %vm559_vm1, %v445_v25  ;;  %v925_v27 = vpop.f32.mrb[27].mxu1 }
 0x154   :  { %v265_v28 = vpop.f32.mrb[28].mxu0  ;;  %v450_v29 = vpop.f32.mrb[28].mxu1 }
 0x155   :  { %574 = vst.msk [vmem:[#allocation7 + $0x70] sm:$0xff] %vm559_vm1, %v265_v28  ;;  %v817_v30 = vpop.f32.mrb[29].mxu0  ;;  %611 = vst.msk [vmem:[#allocation7 + $0x198] sm:$0xff] %vm559_vm1, %v450_v29  ;;  %v928_v31 = vpop.f32.mrb[29].mxu1 }
 0x158   :  { %v270_v32 = vpop.f32.mrb[30].mxu0  ;;  %v455_v33 = vpop.f32.mrb[30].mxu1 }
 0x159   :  { %575 = vst.msk [vmem:[#allocation7 + $0x78] sm:$0xff] %vm559_vm1, %v270_v32  ;;  %v820_v34 = vpop.f32.mrb[31].mxu0  ;;  %612 = vst.msk [vmem:[#allocation7 + $0x1a0] sm:$0xff] %vm559_vm1, %v455_v33  ;;  %v931_v35 = vpop.f32.mrb[31].mxu1 }
 0x15c   :  { %v275_v36 = vpop.f32.mrb[32].mxu0  ;;  %v460_v37 = vpop.f32.mrb[32].mxu1 }
 0x15d   :  { %576 = vst.msk [vmem:[#allocation7 + $0x80] sm:$0xff] %vm559_vm1, %v275_v36  ;;  %v823_v38 = vpop.f32.mrb[33].mxu0  ;;  %613 = vst.msk [vmem:[#allocation7 + $0x1a8] sm:$0xff] %vm559_vm1, %v460_v37  ;;  %v934_v39 = vpop.f32.mrb[33].mxu1 }
 0x160   :  { %v280_v40 = vpop.f32.mrb[34].mxu0  ;;  %v465_v41 = vpop.f32.mrb[34].mxu1 }
 0x161   :  { %577 = vst.msk [vmem:[#allocation7 + $0x88] sm:$0xff] %vm559_vm1, %v280_v40  ;;  %v826_v42 = vpop.f32.mrb[35].mxu0  ;;  %614 = vst.msk [vmem:[#allocation7 + $0x1b0] sm:$0xff] %vm559_vm1, %v465_v41  ;;  %v937_v43 = vpop.f32.mrb[35].mxu1 }
 0x164   :  { %v285_v1 = vpop.f32.mrb[36].mxu0  ;;  %v470_v44 = vpop.f32.mrb[36].mxu1 }
 0x165   :  { %578 = vst.msk [vmem:[#allocation7 + $0x90] sm:$0xff] %vm559_vm1, %v285_v1  ;;  %v829_v45 = vpop.f32.mrb[37].mxu0  ;;  %615 = vst.msk [vmem:[#allocation7 + $0x1b8] sm:$0xff] %vm559_vm1, %v470_v44  ;;  %v940_v46 = vpop.f32.mrb[37].mxu1 }
 0x168   :  { %v290_v47 = vpop.f32.mrb[38].mxu0  ;;  %v475_v48 = vpop.f32.mrb[38].mxu1 }
 0x169   :  { %579 = vst.msk [vmem:[#allocation7 + $0x98] sm:$0xff] %vm559_vm1, %v290_v47  ;;  %v832_v49 = vpop.f32.mrb[39].mxu0  ;;  %616 = vst.msk [vmem:[#allocation7 + $0x1c0] sm:$0xff] %vm559_vm1, %v475_v48  ;;  %v943_v50 = vpop.f32.mrb[39].mxu1 }
 0x16c   :  { %v295_v51 = vpop.f32.mrb[40].mxu0  ;;  %v480_v52 = vpop.f32.mrb[40].mxu1 }
 0x16d   :  { %580 = vst.msk [vmem:[#allocation7 + $0xa0] sm:$0xff] %vm559_vm1, %v295_v51  ;;  %v835_v53 = vpop.f32.mrb[41].mxu0  ;;  %617 = vst.msk [vmem:[#allocation7 + $0x1c8] sm:$0xff] %vm559_vm1, %v480_v52  ;;  %v946_v54 = vpop.f32.mrb[41].mxu1 }
 0x170   :  { %v300_v55 = vpop.f32.mrb[42].mxu0  ;;  %v485_v56 = vpop.f32.mrb[42].mxu1 }
 0x171   :  { %581 = vst.msk [vmem:[#allocation7 + $0xa8] sm:$0xff] %vm559_vm1, %v300_v55  ;;  %v838_v57 = vpop.f32.mrb[43].mxu0  ;;  %618 = vst.msk [vmem:[#allocation7 + $0x1d0] sm:$0xff] %vm559_vm1, %v485_v56  ;;  %v949_v58 = vpop.f32.mrb[43].mxu1 }
 0x174   :  { %v305_v59 = vpop.f32.mrb[44].mxu0  ;;  %v490_v60 = vpop.f32.mrb[44].mxu1 }
 0x175   :  { %582 = vst.msk [vmem:[#allocation7 + $0xb0] sm:$0xff] %vm559_vm1, %v305_v59  ;;  %v841_v61 = vpop.f32.mrb[45].mxu0  ;;  %619 = vst.msk [vmem:[#allocation7 + $0x1d8] sm:$0xff] %vm559_vm1, %v490_v60  ;;  %v952_v62 = vpop.f32.mrb[45].mxu1 }
 0x178   :  { %v310_v63 = vpop.f32.mrb[46].mxu0  ;;  %v495_v0 = vpop.f32.mrb[46].mxu1 }
 0x179   :  { %583 = vst.msk [vmem:[#allocation7 + $0xb8] sm:$0xff] %vm559_vm1, %v310_v63  ;;  %v844_v2 = vpop.f32.mrb[47].mxu0  ;;  %620 = vst.msk [vmem:[#allocation7 + $0x1e0] sm:$0xff] %vm559_vm1, %v495_v0  ;;  %v955_v3 = vpop.f32.mrb[47].mxu1 }
 0x17c   :  { %v315_v4 = vpop.f32.mrb[48].mxu0  ;;  %v500_v5 = vpop.f32.mrb[48].mxu1 }
 0x17d   :  { %584 = vst.msk [vmem:[#allocation7 + $0xc0] sm:$0xff] %vm559_vm1, %v315_v4  ;;  %v847_v6 = vpop.f32.mrb[49].mxu0  ;;  %621 = vst.msk [vmem:[#allocation7 + $0x1e8] sm:$0xff] %vm559_vm1, %v500_v5  ;;  %v958_v7 = vpop.f32.mrb[49].mxu1 }
 0x180   :  { %v320_v8 = vpop.f32.mrb[50].mxu0  ;;  %v505_v9 = vpop.f32.mrb[50].mxu1 }
 0x181   :  { %585 = vst.msk [vmem:[#allocation7 + $0xc8] sm:$0xff] %vm559_vm1, %v320_v8  ;;  %v850_v10 = vpop.f32.mrb[51].mxu0  ;;  %622 = vst.msk [vmem:[#allocation7 + $0x1f0] sm:$0xff] %vm559_vm1, %v505_v9  ;;  %v961_v11 = vpop.f32.mrb[51].mxu1 }
 0x184   :  { %v325_v12 = vpop.f32.mrb[52].mxu0  ;;  %v510_v13 = vpop.f32.mrb[52].mxu1 }
 0x185   :  { %586 = vst.msk [vmem:[#allocation7 + $0xd0] sm:$0xff] %vm559_vm1, %v325_v12  ;;  %v853_v14 = vpop.f32.mrb[53].mxu0  ;;  %623 = vst.msk [vmem:[#allocation7 + $0x1f8] sm:$0xff] %vm559_vm1, %v510_v13  ;;  %v964_v15 = vpop.f32.mrb[53].mxu1 }
 0x188   :  { %v330_v16 = vpop.f32.mrb[54].mxu0  ;;  %v515_v17 = vpop.f32.mrb[54].mxu1 }
 0x189   :  { %587 = vst.msk [vmem:[#allocation7 + $0xd8] sm:$0xff] %vm559_vm1, %v330_v16  ;;  %v856_v18 = vpop.f32.mrb[55].mxu0  ;;  %624 = vst.msk [vmem:[#allocation7 + $0x200] sm:$0xff] %vm559_vm1, %v515_v17  ;;  %v967_v19 = vpop.f32.mrb[55].mxu1 }
 0x18c   :  { %v335_v20 = vpop.f32.mrb[56].mxu0  ;;  %v520_v21 = vpop.f32.mrb[56].mxu1 }
 0x18d   :  { %588 = vst.msk [vmem:[#allocation7 + $0xe0] sm:$0xff] %vm559_vm1, %v335_v20  ;;  %v859_v22 = vpop.f32.mrb[57].mxu0  ;;  %625 = vst.msk [vmem:[#allocation7 + $0x208] sm:$0xff] %vm559_vm1, %v520_v21  ;;  %v970_v23 = vpop.f32.mrb[57].mxu1 }
 0x190   :  { %v340_v24 = vpop.f32.mrb[58].mxu0  ;;  %v525_v25 = vpop.f32.mrb[58].mxu1 }
 0x191   :  { %589 = vst.msk [vmem:[#allocation7 + $0xe8] sm:$0xff] %vm559_vm1, %v340_v24  ;;  %v862_v26 = vpop.f32.mrb[59].mxu0  ;;  %626 = vst.msk [vmem:[#allocation7 + $0x210] sm:$0xff] %vm559_vm1, %v525_v25  ;;  %v973_v27 = vpop.f32.mrb[59].mxu1 }
 0x194   :  { %v345_v28 = vpop.f32.mrb[60].mxu0  ;;  %v530_v29 = vpop.f32.mrb[60].mxu1 }
 0x195   :  { %590 = vst.msk [vmem:[#allocation7 + $0xf0] sm:$0xff] %vm559_vm1, %v345_v28  ;;  %v865_v30 = vpop.f32.mrb[61].mxu0  ;;  %627 = vst.msk [vmem:[#allocation7 + $0x218] sm:$0xff] %vm559_vm1, %v530_v29  ;;  %v976_v31 = vpop.f32.mrb[61].mxu1 }
 0x198   :  { %v350_v32 = vpop.f32.mrb[62].mxu0  ;;  %v535_v33 = vpop.f32.mrb[62].mxu1 }
 0x199   :  { %591 = vst.msk [vmem:[#allocation7 + $0xf8] sm:$0xff] %vm559_vm1, %v350_v32  ;;  %v868_v34 = vpop.f32.mrb[63].mxu0  ;;  %628 = vst.msk [vmem:[#allocation7 + $0x220] sm:$0xff] %vm559_vm1, %v535_v33  ;;  %v979_v35 = vpop.f32.mrb[63].mxu1 }
 0x19c   :  { %v355_v36 = vpop.f32.mrb[64].mxu0  ;;  %v540_v37 = vpop.f32.mrb[64].mxu1 }
 0x19d   :  { %592 = vst.msk [vmem:[#allocation7 + $0x100] sm:$0xff] %vm559_vm1, %v355_v36  ;;  %v871_v38 = vpop.f32.mrb[65].mxu0  ;;  %629 = vst.msk [vmem:[#allocation7 + $0x228] sm:$0xff] %vm559_vm1, %v540_v37  ;;  %v982_v39 = vpop.f32.mrb[65].mxu1 }
 0x1a0   :  { %v360_v40 = vpop.f32.mrb[66].mxu0  ;;  %v545_v41 = vpop.f32.mrb[66].mxu1 }
 0x1a1   :  { %593 = vst.msk [vmem:[#allocation7 + $0x108] sm:$0xff] %vm559_vm1, %v360_v40  ;;  %v874_v42 = vpop.f32.mrb[67].mxu0  ;;  %630 = vst.msk [vmem:[#allocation7 + $0x230] sm:$0xff] %vm559_vm1, %v545_v41  ;;  %v985_v43 = vpop.f32.mrb[67].mxu1 }
 0x1a4   :  { %v365_v1 = vpop.f32.mrb[68].mxu0  ;;  %v550_v44 = vpop.f32.mrb[68].mxu1 }
 0x1a5   :  { %594 = vst.msk [vmem:[#allocation7 + $0x110] sm:$0xff] %vm559_vm1, %v365_v1  ;;  %v877_v45 = vpop.f32.mrb[69].mxu0  ;;  %631 = vst.msk [vmem:[#allocation7 + $0x238] sm:$0xff] %vm559_vm1, %v550_v44  ;;  %v988_v46 = vpop.f32.mrb[69].mxu1 }
 0x1a8   :  { %v370_v47 = vpop.f32.mrb[70].mxu0  ;;  %v555_v48 = vpop.f32.mrb[70].mxu1 }
 0x1a9   :  { %595 = vst.msk [vmem:[#allocation7 + $0x118] sm:$0xff] %vm559_vm1, %v370_v47  ;;  %v880_v49 = vpop.f32.mrb[71].mxu0  ;;  %v991_v50 = vpop.f32.mrb[71].mxu1 }
 0x1aa   :  { %633 = vst.msk [vmem:[#allocation7 + $0x240] sm:$0x3] %vm632_vm2, %v555_v48 }
 0x1ac   :  { %v375_v51 = vpop.f32.mrb[72].mxu0 }
 0x1ad   :  { %596 = vst.msk [vmem:[#allocation7 + $0x120] sm:$0xff] %vm559_vm1, %v375_v51  ;;  %v883_v52 = vpop.f32.mrb[73].mxu0 }
 0x1ae   :  { %1095 = shalt.err (!%p1092_p6)
}
 0x1af   :  { %s1096_s10 = scalar_lea.hbm %s1400_s2, 9344 }
 0x1b0   :  { %p1097_p7 = scmp.ne.s32.totalorder %s1400_s2, %s1096_s10  ;;  %p1100_p8 = scmp.lt.u32.totalorder %s1096_s10, %s1400_s2 }
 0x1b2   :  { %p1102_p9 = pnand %p1100_p8, %p1097_p7 }
 0x1b4   :  { %1105 = shalt.err (!%p1102_p9)
}
 0x1b5   :  { %645 = dma.vmem_to_hbm [thread:$0]  %s640_s6, 9344, %s1400_s2, [#allocation4], %s1113_s19, %s1113_s19, %s1114_s20  }
 0x1b6   :  { %1110 = dma.done.wait [#allocation4], 9344  }
 0x1b7   :  { %1111 = vsyncadd [#allocation4], 4294957952 }
 0x1b8   :  { %649 = vsyncpa [#allocation3], 1 }
 0x1b9   :  { %650 = vsyncpa [#allocation6], 1 }
 0x1ba   :  { %651 = vsyncpa [#allocation4], 1 }

// kernel: tile.72
= control target key start
LH: loop header
LB: loop body
LE: loop exit
PB: predicated region body
PF: predicated region fallthrough
CT: control target
= control target key end

     0   :  { %s22_s0 = inlined_call_operand.vmem [shape: f32[16], index: 0, kind: input, shape index: {}]   ;;  %s23_s1 = inlined_call_operand.vmem [shape: f32[8,16], index: 1, kind: output, shape index: {}]  }
   0x1   :  { %v4_v0 = vld [vmem:[%s22_s0] ss:$0 sm:$0xff] }
   0x2   :  { %5 = vst [vmem:[%s23_s1] sm:$0xff] %v4_v0 }

// kernel: tile.73
= control target key start
LH: loop header
LB: loop body
LE: loop exit
PB: predicated region body
PF: predicated region fallthrough
CT: control target
= control target key end

     0   :  { %s103_s10 = smov 112   ;;  %s104_s11 = smov 80   ;;  %vm4_vm0 = vcmask 130048   ;;  %s157_s0 = inlined_call_operand.vmem [shape: f32[8,16], index: 0, kind: input, shape index: {}]   ;;  %s158_s1 = inlined_call_operand.hbm [shape: f32[1,128], index: 1, kind: output, shape index: {}]  }
   0x1   :  { %v64_v0 = vld [vmem:[%s157_s0 + $0x7] sm:$0x1]   ;;  %v66_v1 = vld [vmem:[%s157_s0 + $0x5] sm:$0x1]   ;;  %v65_v2 = vld [vmem:[%s157_s0 + $0x6] sm:$0x1]  }
   0x2   :  { %8 = vrot.lane.b32.xlu0 %v64_v0, %s103_s10  ;;  %20 = vrot.lane.b32.xlu1 %v66_v1, %s104_s11  ;;  %v67_v3 = vld [vmem:[%s157_s0 + $0x4] sm:$0x1]   ;;  %v3_v4 = vld [vmem:[%s157_s0] sm:$0x1]  }
   0x3   :  { %2 = vsyncpa [#allocation1], 0  ;;  %s105_s18 = smov 96   ;;  %s106_s19 = smov 64   ;;  %5 = vst.msk [vmem:[#allocation2] sm:$0x1] %vm4_vm0, %v3_v4  }
   0x4   :  { %v68_v5 = vld [vmem:[%s157_s0 + $0x3] sm:$0x1]   ;;  %v69_v6 = vld [vmem:[%s157_s0 + $0x2] sm:$0x1]   ;;  %s107_s24 = smov 48   ;;  %s108_s25 = smov 32  }
   0x5   :  { %v70_v7 = vld [vmem:[%s157_s0 + $0x1] sm:$0x1]   ;;  %s109_s0 = smov 16   ;;  %vm10_vm1 = vcmask 1048448   ;;  %vm16_vm2 = vcmask 917248   ;;  %vm22_vm3 = vcmask 786048  }
   0x6   :  { %14 = vrot.lane.b32.xlu0 %v65_v2, %s105_s18  ;;  %26 = vrot.lane.b32.xlu1 %v67_v3, %s106_s19  ;;  %vm28_vm4 = vcmask 654848   ;;  %vm34_vm5 = vcmask 523648   ;;  %vm40_vm6 = vcmask 392448   ;;  %vm46_vm7 = vcmask 261248   ;;  %s110_s28 = smov [#allocation0]  }
   0x7   :  { %s58_s29 = sshll.u32 %s110_s28, 4  ;;  %s59_s29 = int_to_ptr.vmem [resolvable:$true] %s58_s29 }
   0x8   :  { %s79_s30 = scalar_lea.vmem %s59_s29, 16  ;;  %s83_s2 = scalar_lea.vmem %s59_s29, 32 }
   0x9   :  { %p80_p0 = scmp.ne.s32.totalorder %s59_s29, %s79_s30  ;;  %p84_p1 = scmp.lt.s32.totalorder %s59_s29, %s59_s29 }
   0xa   :  { %32 = vrot.lane.b32.xlu0 %v68_v5, %s107_s24  ;;  %38 = vrot.lane.b32.xlu1 %v69_v6, %s108_s25  ;;  %p85_p2 = scmp.lt.s32.totalorder %s83_s2, %s79_s30 }
   0xc   :  { %p86_p3 = por %p85_p2, %p84_p1 }
   0xe   :  { %44 = vrot.lane.b32.xlu0 %v70_v7, %s109_s0  ;;  %p87_p4 = pnand %p86_p3, %p80_p0 }
  0x74   :  { %v9_v8 = vpop.permute.xlu0 %8   ;;  %v21_v9 = vpop.permute.xlu1 %20  }
  0x75   :  { %11 = vst.msk [vmem:[#allocation2] sm:$0x1] %vm10_vm1, %v9_v8  }
  0x78   :  { %v15_v10 = vpop.permute.xlu0 %14   ;;  %v27_v11 = vpop.permute.xlu1 %26  }
  0x79   :  { %17 = vst.msk [vmem:[#allocation2] sm:$0x1] %vm16_vm2, %v15_v10  }
  0x7a   :  { %23 = vst.msk [vmem:[#allocation2] sm:$0x1] %vm22_vm3, %v21_v9  }
  0x7b   :  { %29 = vst.msk [vmem:[#allocation2] sm:$0x1] %vm28_vm4, %v27_v11  }
  0x7c   :  { %v33_v12 = vpop.permute.xlu0 %32   ;;  %v39_v13 = vpop.permute.xlu1 %38  }
  0x7d   :  { %35 = vst.msk [vmem:[#allocation2] sm:$0x1] %vm34_vm5, %v33_v12  }
  0x7e   :  { %41 = vst.msk [vmem:[#allocation2] sm:$0x1] %vm40_vm6, %v39_v13  }
  0x80   :  { %v45_v14 = vpop.permute.xlu0 %44  }
  0x81   :  { %47 = vst.msk [vmem:[#allocation2] sm:$0x1] %vm46_vm7, %v45_v14  }
  0x88   :  { %v51_v15 = vld [vmem:[#allocation2] sm:$0x1] }
  0x89   :  { %53 = vst [vmem:[#allocation0] sm:$0x1] %v51_v15 }
  0x8a   :  { %90 = shalt.err (!%p87_p4)
}
  0x8b   :  { %s91_s5 = scalar_lea.hbm %s158_s1, 16 }
  0x8c   :  { %p92_p5 = scmp.ne.s32.totalorder %s158_s1, %s91_s5  ;;  %p95_p6 = scmp.lt.u32.totalorder %s91_s5, %s158_s1 }
  0x8e   :  { %p97_p7 = pnand %p95_p6, %p92_p5 }
  0x90   :  { %100 = shalt.err (!%p97_p7)
}
  0x91   :  { %61 = dma.vmem_to_hbm [thread:$0]  %s59_s29, 16, %s158_s1, [#allocation1]  }
  0x92   :  { %101 = dma.done.wait [#allocation1], 16  }
  0x93   :  { %102 = vsyncadd [#allocation1], 4294967280 }
  0x94   :  { %63 = vsyncpa [#allocation1], 1 }

// kernel: generator128.27
= control target key start
LH: loop header
LB: loop body
LE: loop exit
PB: predicated region body
PF: predicated region fallthrough
CT: control target
= control target key end

     0   :  { %8 = vsyncpa [#allocation3], 0  ;;  %s348_s0 = inlined_call_operand.hbm [shape: f32[256,128], index: 0, kind: input, shape index: {}]   ;;  %s349_s1 = inlined_call_operand.hbm [shape: f32[1,128], index: 1, kind: output, shape index: {0}]   ;;  %s350_s2 = inlined_call_operand.hbm [shape: f32[1,128], index: 2, kind: output, shape index: {1}]  }
   0x1   :  { %9 = vsyncpa [#allocation4], 0 }
   0x2   :  { %10 = vsyncpa [#allocation7], 0  ;;  %s283_s9 = smov [#allocation2]   ;;  %s211_s13 = scalar_lea.hbm %s348_s0, 4096 }
   0x3   :  { %s16_s10 = sshll.u32 %s283_s9, 4  ;;  %p212_p0 = scmp.ne.s32.totalorder %s348_s0, %s211_s13  ;;  %s17_s10 = int_to_ptr.vmem [resolvable:$true] %s16_s10 }
   0x4   :  { %p215_p1 = scmp.lt.u32.totalorder %s211_s13, %s348_s0 }
   0x6   :  { %p217_p2 = pnand %p215_p1, %p212_p0 }
   0x8   :  { %220 = shalt.err (!%p217_p2)
}
   0x9   :  { %s221_s18 = scalar_lea.vmem %s17_s10, 4096  ;;  %p226_p4 = scmp.lt.s32.totalorder %s17_s10, %s17_s10 }
   0xa   :  { %p222_p3 = scmp.ne.s32.totalorder %s17_s10, %s221_s18  ;;  %p227_p5 = scmp.lt.s32.totalorder %s221_s18, %s221_s18 }
   0xc   :  { %p228_p6 = por %p227_p5, %p226_p4 }
   0xe   :  { %p229_p7 = pnand %p228_p6, %p222_p3 }
  0x10   :  { %232 = shalt.err (!%p229_p7)
}
  0x11   :  { %s284_s19 = smov 128   ;;  %s285_s20 = smov 8  }
  0x12   :  { %22 = dma.hbm_to_vmem [thread:$0]  %s348_s0, 4096, %s17_s10, [#allocation3], %s284_s19, %s284_s19, %s285_s20  }
  0x13   :  { %277 = dma.done.wait [#allocation3], 4096  }
  0x14   :  { %278 = vsyncadd [#allocation3], 4294963200  ;;  %v286_v0 = vmov 0.0   ;;  %v32_v1 = vld [vmem:[#allocation2] sm:$0xff]  ;;  %v33_v2 = vld [vmem:[#allocation2 + $0x8] sm:$0xff]  ;;  %s287_s0 = smov [#allocation5]  }
  0x15   :  { %30 = vst [vmem:[#allocation5] sm:$0x1] %v286_v0  ;;  %31 = vst [vmem:[#allocation6] sm:$0x1] %v286_v0  ;;  %v34_v3 = vld [vmem:[#allocation2 + $0x10] sm:$0xff]  ;;  %v35_v4 = vld [vmem:[#allocation2 + $0x18] sm:$0xff]  ;;  %v65_v5 = vadd.f32 %v33_v2, %v32_v1  ;;  %v105_v6 = vmul.f32 %v32_v1, %v32_v1  ;;  %v106_v7 = vmul.f32 %v33_v2, %v33_v2 }
  0x16   :  { %v107_v8 = vmul.f32 %v34_v3, %v34_v3  ;;  %v36_v9 = vld [vmem:[#allocation2 + $0x20] sm:$0xff]  ;;  %v108_v11 = vmul.f32 %v35_v4, %v35_v4  ;;  %v37_v13 = vld [vmem:[#allocation2 + $0x28] sm:$0xff]  ;;  %v38_v17 = vld [vmem:[#allocation2 + $0x30] sm:$0xff]  ;;  %s182_s23 = sshll.u32 %s287_s0, 4  ;;  %s288_s24 = smov [#allocation6]   ;;  %s183_s23 = int_to_ptr.vmem [resolvable:$true] %s182_s23 }
  0x17   :  { %v66_v10 = vadd.f32 %v65_v5, %v34_v3  ;;  %v137_v12 = vadd.f32 %v106_v7, %v105_v6  ;;  %v109_v15 = vmul.f32 %v36_v9, %v36_v9  ;;  %v110_v19 = vmul.f32 %v37_v13, %v37_v13  ;;  %v39_v21 = vld [vmem:[#allocation2 + $0x38] sm:$0xff]  ;;  %v40_v25 = vld [vmem:[#allocation2 + $0x40] sm:$0xff]  ;;  %v41_v29 = vld [vmem:[#allocation2 + $0x48] sm:$0xff]  ;;  %s192_s25 = sshll.u32 %s288_s24, 4  ;;  %s233_s26 = scalar_lea.vmem %s183_s23, 16  ;;  %s316_s25 = int_to_ptr.vmem [resolvable:$true] %s192_s25 }
  0x18   :  { %v111_v23 = vmul.f32 %v38_v17, %v38_v17  ;;  %v112_v27 = vmul.f32 %v39_v21, %v39_v21  ;;  %v113_v31 = vmul.f32 %v40_v25, %v40_v25  ;;  %v42_v33 = vld [vmem:[#allocation2 + $0x50] sm:$0xff]  ;;  %v114_v35 = vmul.f32 %v41_v29, %v41_v29  ;;  %v43_v37 = vld [vmem:[#allocation2 + $0x58] sm:$0xff]  ;;  %v44_v41 = vld [vmem:[#allocation2 + $0x60] sm:$0xff]  ;;  %p234_p8 = scmp.ne.s32.totalorder %s183_s23, %s233_s26  ;;  %s237_s27 = scalar_lea.vmem %s183_s23, 32 }
  0x19   :  { %v67_v14 = vadd.f32 %v66_v10, %v35_v4  ;;  %v138_v16 = vadd.f32 %v137_v12, %v107_v8  ;;  %v115_v39 = vmul.f32 %v42_v33, %v42_v33  ;;  %v116_v43 = vmul.f32 %v43_v37, %v43_v37  ;;  %v45_v45 = vld [vmem:[#allocation2 + $0x68] sm:$0xff]  ;;  %v46_v49 = vld [vmem:[#allocation2 + $0x70] sm:$0xff]  ;;  %v47_v53 = vld [vmem:[#allocation2 + $0x78] sm:$0xff]  ;;  %p238_p9 = scmp.lt.s32.totalorder %s183_s23, %s183_s23  ;;  %p239_p10 = scmp.lt.s32.totalorder %s237_s27, %s233_s26 }
  0x1a   :  { %v117_v47 = vmul.f32 %v44_v41, %v44_v41  ;;  %v118_v51 = vmul.f32 %v45_v45, %v45_v45  ;;  %v119_v55 = vmul.f32 %v46_v49, %v46_v49  ;;  %v48_v57 = vld [vmem:[#allocation2 + $0x80] sm:$0xff]  ;;  %v120_v59 = vmul.f32 %v47_v53, %v47_v53  ;;  %v49_v61 = vld [vmem:[#allocation2 + $0x88] sm:$0xff]  ;;  %v50_v1 = vld [vmem:[#allocation2 + $0x90] sm:$0xff] }
  0x1b   :  { %v68_v18 = vadd.f32 %v67_v14, %v36_v9  ;;  %v139_v20 = vadd.f32 %v138_v16, %v108_v11  ;;  %v121_v63 = vmul.f32 %v48_v57, %v48_v57  ;;  %v122_v3 = vmul.f32 %v49_v61, %v49_v61  ;;  %v51_v5 = vld [vmem:[#allocation2 + $0x98] sm:$0xff]  ;;  %v52_v9 = vld [vmem:[#allocation2 + $0xa0] sm:$0xff]  ;;  %p240_p11 = por %p239_p10, %p238_p9 }
  0x1c   :  { %v123_v7 = vmul.f32 %v50_v1, %v50_v1  ;;  %v124_v11 = vmul.f32 %v51_v5, %v51_v5 }
  0x1d   :  { %v69_v22 = vadd.f32 %v68_v18, %v37_v13  ;;  %v140_v24 = vadd.f32 %v139_v20, %v109_v15  ;;  %v53_v13 = vld [vmem:[#allocation2 + $0xa8] sm:$0xff]  ;;  %v125_v15 = vmul.f32 %v52_v9, %v52_v9  ;;  %p241_p12 = pnand %p240_p11, %p234_p8 }
  0x1f   :  { %v70_v26 = vadd.f32 %v69_v22, %v38_v17  ;;  %v141_v28 = vadd.f32 %v140_v24, %v110_v19  ;;  %v54_v17 = vld [vmem:[#allocation2 + $0xb0] sm:$0xff]  ;;  %v126_v19 = vmul.f32 %v53_v13, %v53_v13 }
  0x21   :  { %v71_v30 = vadd.f32 %v70_v26, %v39_v21  ;;  %v142_v32 = vadd.f32 %v141_v28, %v111_v23  ;;  %v55_v21 = vld [vmem:[#allocation2 + $0xb8] sm:$0xff]  ;;  %v127_v23 = vmul.f32 %v54_v17, %v54_v17 }
  0x23   :  { %v72_v34 = vadd.f32 %v71_v30, %v40_v25  ;;  %v143_v36 = vadd.f32 %v142_v32, %v112_v27  ;;  %v56_v25 = vld [vmem:[#allocation2 + $0xc0] sm:$0xff]  ;;  %v128_v27 = vmul.f32 %v55_v21, %v55_v21 }
  0x25   :  { %v73_v38 = vadd.f32 %v72_v34, %v41_v29  ;;  %v144_v40 = vadd.f32 %v143_v36, %v113_v31  ;;  %v57_v29 = vld [vmem:[#allocation2 + $0xc8] sm:$0xff]  ;;  %v129_v31 = vmul.f32 %v56_v25, %v56_v25 }
  0x27   :  { %v74_v42 = vadd.f32 %v73_v38, %v42_v33  ;;  %v145_v44 = vadd.f32 %v144_v40, %v114_v35  ;;  %v58_v33 = vld [vmem:[#allocation2 + $0xd0] sm:$0xff]  ;;  %v130_v35 = vmul.f32 %v57_v29, %v57_v29 }
  0x29   :  { %v75_v46 = vadd.f32 %v74_v42, %v43_v37  ;;  %v146_v48 = vadd.f32 %v145_v44, %v115_v39  ;;  %v59_v37 = vld [vmem:[#allocation2 + $0xd8] sm:$0xff]  ;;  %v131_v39 = vmul.f32 %v58_v33, %v58_v33 }
  0x2b   :  { %v76_v50 = vadd.f32 %v75_v46, %v44_v41  ;;  %v147_v52 = vadd.f32 %v146_v48, %v116_v43  ;;  %v60_v41 = vld [vmem:[#allocation2 + $0xe0] sm:$0xff]  ;;  %v132_v43 = vmul.f32 %v59_v37, %v59_v37 }
  0x2d   :  { %v77_v54 = vadd.f32 %v76_v50, %v45_v45  ;;  %v148_v56 = vadd.f32 %v147_v52, %v117_v47  ;;  %v61_v45 = vld [vmem:[#allocation2 + $0xe8] sm:$0xff]  ;;  %v133_v47 = vmul.f32 %v60_v41, %v60_v41 }
  0x2f   :  { %v78_v58 = vadd.f32 %v77_v54, %v46_v49  ;;  %v149_v60 = vadd.f32 %v148_v56, %v118_v51  ;;  %v62_v49 = vld [vmem:[#allocation2 + $0xf0] sm:$0xff]  ;;  %v134_v51 = vmul.f32 %v61_v45, %v61_v45 }
  0x31   :  { %v79_v62 = vadd.f32 %v78_v58, %v47_v53  ;;  %v150_v0 = vadd.f32 %v149_v60, %v119_v55  ;;  %v63_v53 = vld [vmem:[#allocation2 + $0xf8] sm:$0xff]  ;;  %v135_v55 = vmul.f32 %v62_v49, %v62_v49 }
  0x32   :  { %v136_v58 = vmul.f32 %v63_v53, %v63_v53 }
  0x33   :  { %v80_v2 = vadd.f32 %v79_v62, %v48_v57  ;;  %v151_v4 = vadd.f32 %v150_v0, %v120_v59 }
  0x35   :  { %v81_v6 = vadd.f32 %v80_v2, %v49_v61  ;;  %v152_v8 = vadd.f32 %v151_v4, %v121_v63 }
  0x37   :  { %v82_v10 = vadd.f32 %v81_v6, %v50_v1  ;;  %v153_v12 = vadd.f32 %v152_v8, %v122_v3 }
  0x39   :  { %v83_v14 = vadd.f32 %v82_v10, %v51_v5  ;;  %v154_v16 = vadd.f32 %v153_v12, %v123_v7  ;;  %v64_v7 = vld [vmem:[#allocation5] sm:$0x1]  ;;  %v104_v12 = vld [vmem:[#allocation6] sm:$0x1] }
  0x3b   :  { %v84_v18 = vadd.f32 %v83_v14, %v52_v9  ;;  %v155_v20 = vadd.f32 %v154_v16, %v124_v11 }
  0x3d   :  { %v85_v22 = vadd.f32 %v84_v18, %v53_v13  ;;  %v156_v24 = vadd.f32 %v155_v20, %v125_v15 }
  0x3f   :  { %v86_v26 = vadd.f32 %v85_v22, %v54_v17  ;;  %v157_v28 = vadd.f32 %v156_v24, %v126_v19 }
  0x41   :  { %v87_v30 = vadd.f32 %v86_v26, %v55_v21  ;;  %v158_v32 = vadd.f32 %v157_v28, %v127_v23 }
  0x43   :  { %v88_v34 = vadd.f32 %v87_v30, %v56_v25  ;;  %v159_v36 = vadd.f32 %v158_v32, %v128_v27 }
  0x45   :  { %v89_v38 = vadd.f32 %v88_v34, %v57_v29  ;;  %v160_v40 = vadd.f32 %v159_v36, %v129_v31 }
  0x47   :  { %v90_v42 = vadd.f32 %v89_v38, %v58_v33  ;;  %v161_v44 = vadd.f32 %v160_v40, %v130_v35 }
  0x49   :  { %v91_v46 = vadd.f32 %v90_v42, %v59_v37  ;;  %v162_v48 = vadd.f32 %v161_v44, %v131_v39 }
  0x4b   :  { %v92_v50 = vadd.f32 %v91_v46, %v60_v41  ;;  %v163_v52 = vadd.f32 %v162_v48, %v132_v43 }
  0x4d   :  { %v93_v54 = vadd.f32 %v92_v50, %v61_v45  ;;  %v164_v56 = vadd.f32 %v163_v52, %v133_v47 }
  0x4f   :  { %v94_v57 = vadd.f32 %v93_v54, %v62_v49  ;;  %v165_v59 = vadd.f32 %v164_v56, %v134_v51 }
  0x51   :  { %v95_v60 = vadd.f32 %v94_v57, %v63_v53  ;;  %v166_v61 = vadd.f32 %v165_v59, %v135_v55 }
  0x53   :  { %v96_v62 = vrot.slane %v95_v60, 4  ;;  %v167_v63 = vadd.f32 %v166_v61, %v136_v58 }
  0x55   :  { %v97_v0 = vadd.f32 %v96_v62, %v95_v60  ;;  %v168_v1 = vrot.slane %v167_v63, 4 }
  0x57   :  { %v98_v2 = vrot.slane %v97_v0, 2  ;;  %v169_v3 = vadd.f32 %v168_v1, %v167_v63 }
  0x59   :  { %v99_v4 = vadd.f32 %v98_v2, %v97_v0  ;;  %v170_v5 = vrot.slane %v169_v3, 2 }
  0x5b   :  { %v100_v6 = vrot.slane %v99_v4, 1  ;;  %v171_v8 = vadd.f32 %v170_v5, %v169_v3 }
  0x5d   :  { %v101_v9 = vadd.f32 %v100_v6, %v99_v4  ;;  %v172_v10 = vrot.slane %v171_v8, 1 }
  0x5f   :  { %v102_v11 = vadd.f32 %v101_v9, %v64_v7  ;;  %v173_v13 = vadd.f32 %v172_v10, %v171_v8 }
  0x61   :  { %103 = vst [vmem:[#allocation5] sm:$0x1] %v102_v11  ;;  %v174_v14 = vadd.f32 %v173_v13, %v104_v12 }
  0x62   :  { %244 = shalt.err (!%p241_p12)
}
  0x63   :  { %s245_s30 = scalar_lea.hbm %s349_s1, 16 }
  0x64   :  { %p246_p13 = scmp.ne.s32.totalorder %s349_s1, %s245_s30  ;;  %p249_p0 = scmp.lt.u32.totalorder %s245_s30, %s349_s1 }
  0x66   :  { %p251_p1 = pnand %p249_p0, %p246_p13 }
  0x68   :  { %254 = shalt.err (!%p251_p1)
}
  0x69   :  { %185 = dma.vmem_to_hbm [thread:$0]  %s183_s23, 16, %s349_s1, [#allocation4]   ;;  %175 = vst [vmem:[#allocation6] sm:$0x1] %v174_v14 }
  0x6a   :  { %s255_s9 = scalar_lea.vmem %s316_s25, 16  ;;  %s259_s10 = scalar_lea.vmem %s316_s25, 32 }
  0x6b   :  { %p256_p2 = scmp.ne.s32.totalorder %s316_s25, %s255_s9  ;;  %p260_p3 = scmp.lt.s32.totalorder %s316_s25, %s316_s25 }
  0x6c   :  { %p261_p4 = scmp.lt.s32.totalorder %s259_s10, %s255_s9 }
  0x6e   :  { %p262_p5 = por %p261_p4, %p260_p3 }
  0x70   :  { %p263_p6 = pnand %p262_p5, %p256_p2 }
  0x72   :  { %266 = shalt.err (!%p263_p6)
}
  0x73   :  { %s267_s13 = scalar_lea.hbm %s350_s2, 16 }
  0x74   :  { %p268_p7 = scmp.ne.s32.totalorder %s350_s2, %s267_s13  ;;  %p271_p8 = scmp.lt.u32.totalorder %s267_s13, %s350_s2 }
  0x76   :  { %p273_p9 = pnand %p271_p8, %p268_p7 }
  0x78   :  { %276 = shalt.err (!%p273_p9)
}
  0x79   :  { %195 = dma.vmem_to_hbm [thread:$0]  %s316_s25, 16, %s350_s2, [#allocation7]  }
  0x7a   :  { %279 = dma.done.wait [#allocation4], 16  }
  0x7b   :  { %280 = vsyncadd [#allocation4], 4294967280 }
  0x7c   :  { %281 = dma.done.wait [#allocation7], 16  }
  0x7d   :  { %282 = vsyncadd [#allocation7], 4294967280 }
  0x7e   :  { %202 = vsyncpa [#allocation3], 1 }
  0x7f   :  { %203 = vsyncpa [#allocation4], 1 }
  0x80   :  { %204 = vsyncpa [#allocation7], 1 }

// kernel: generator128.28
= control target key start
LH: loop header
LB: loop body
LE: loop exit
PB: predicated region body
PF: predicated region fallthrough
CT: control target
= control target key end

     0   :  { %8 = vsyncpa [#allocation3], 0  ;;  %s501_s0 = inlined_call_operand.hbm [shape: f32[256,128], index: 0, kind: input, shape index: {}]   ;;  %s502_s1 = inlined_call_operand.hbm [shape: f32[1,128], index: 1, kind: input, shape index: {}]   ;;  %s503_s2 = inlined_call_operand.hbm [shape: f32[1,128], index: 2, kind: input, shape index: {}]   ;;  %s504_s3 = inlined_call_operand.hbm [shape: f32[256,128], index: 3, kind: output, shape index: {}]  }
   0x1   :  { %9 = vsyncpa [#allocation6], 0 }
   0x2   :  { %10 = vsyncpa [#allocation4], 0  ;;  %s346_s12 = smov [#allocation5]   ;;  %s347_s14 = smov [#allocation2]  }
   0x3   :  { %s29_s13 = sshll.u32 %s346_s12, 4  ;;  %s16_s15 = sshll.u32 %s347_s14, 4  ;;  %s30_s13 = int_to_ptr.vmem [resolvable:$true] %s29_s13  ;;  %s372_s15 = int_to_ptr.vmem [resolvable:$true] %s16_s15 }
   0x4   :  { %s252_s18 = scalar_lea.hbm %s502_s1, 16 }
   0x5   :  { %p253_p0 = scmp.ne.s32.totalorder %s502_s1, %s252_s18  ;;  %p256_p1 = scmp.lt.u32.totalorder %s252_s18, %s502_s1 }
   0x7   :  { %p258_p2 = pnand %p256_p1, %p253_p0 }
   0x9   :  { %261 = shalt.err (!%p258_p2)
}
   0xa   :  { %s262_s23 = scalar_lea.vmem %s30_s13, 16  ;;  %s266_s24 = scalar_lea.vmem %s30_s13, 32 }
   0xb   :  { %p263_p3 = scmp.ne.s32.totalorder %s30_s13, %s262_s23  ;;  %p267_p4 = scmp.lt.s32.totalorder %s30_s13, %s30_s13 }
   0xc   :  { %p268_p5 = scmp.lt.s32.totalorder %s266_s24, %s262_s23 }
   0xe   :  { %p269_p6 = por %p268_p5, %p267_p4 }
  0x10   :  { %p270_p7 = pnand %p269_p6, %p263_p3 }
  0x12   :  { %273 = shalt.err (!%p270_p7)
}
  0x13   :  { %32 = dma.hbm_to_vmem [thread:$0]  %s502_s1, 16, %s30_s13, [#allocation6]  }
  0x14   :  { %s274_s29 = scalar_lea.hbm %s501_s0, 4096 }
  0x15   :  { %p275_p8 = scmp.ne.s32.totalorder %s501_s0, %s274_s29  ;;  %p278_p9 = scmp.lt.u32.totalorder %s274_s29, %s501_s0 }
  0x17   :  { %p280_p10 = pnand %p278_p9, %p275_p8 }
  0x19   :  { %283 = shalt.err (!%p280_p10)
}
  0x1a   :  { %s284_s7 = scalar_lea.vmem %s372_s15, 4096  ;;  %p289_p12 = scmp.lt.s32.totalorder %s372_s15, %s372_s15 }
  0x1b   :  { %p285_p11 = scmp.ne.s32.totalorder %s372_s15, %s284_s7  ;;  %p290_p13 = scmp.lt.s32.totalorder %s284_s7, %s284_s7 }
  0x1d   :  { %p291_p0 = por %p290_p13, %p289_p12 }
  0x1f   :  { %p292_p1 = pnand %p291_p0, %p285_p11 }
  0x21   :  { %295 = shalt.err (!%p292_p1)
}
  0x22   :  { %s348_s1 = smov 128   ;;  %s349_s8 = smov 8  }
  0x23   :  { %22 = dma.hbm_to_vmem [thread:$0]  %s501_s0, 4096, %s372_s15, [#allocation3], %s348_s1, %s348_s1, %s349_s8  }
  0x24   :  { %s350_s11 = smov [#allocation7]   ;;  %s296_s16 = scalar_lea.hbm %s503_s2, 16 }
  0x25   :  { %s39_s12 = sshll.u32 %s350_s11, 4  ;;  %p297_p2 = scmp.ne.s32.totalorder %s503_s2, %s296_s16  ;;  %s40_s12 = int_to_ptr.vmem [resolvable:$true] %s39_s12 }
  0x26   :  { %p300_p3 = scmp.lt.u32.totalorder %s296_s16, %s503_s2 }
  0x28   :  { %p302_p4 = pnand %p300_p3, %p297_p2 }
  0x2a   :  { %305 = shalt.err (!%p302_p4)
}
  0x2b   :  { %s306_s21 = scalar_lea.vmem %s40_s12, 16  ;;  %s310_s0 = scalar_lea.vmem %s40_s12, 32 }
  0x2c   :  { %p307_p5 = scmp.ne.s32.totalorder %s40_s12, %s306_s21  ;;  %p311_p6 = scmp.lt.s32.totalorder %s40_s12, %s40_s12 }
  0x2d   :  { %p312_p7 = scmp.lt.s32.totalorder %s310_s0, %s306_s21 }
  0x2f   :  { %p313_p8 = por %p312_p7, %p311_p6 }
  0x31   :  { %p314_p9 = pnand %p313_p8, %p307_p5 }
  0x33   :  { %317 = shalt.err (!%p314_p9)
}
  0x34   :  { %42 = dma.hbm_to_vmem [thread:$0]  %s503_s2, 16, %s40_s12, [#allocation6]  }
  0x35   :  { %340 = dma.done.wait [#allocation3], 4096  }
  0x36   :  { %341 = vsyncadd [#allocation3], 4294963200 }
  0x37   :  { %342 = dma.done.wait [#allocation6], 32  }
  0x38   :  { %343 = vsyncadd [#allocation6], 4294967264  ;;  %v52_v0 = vld [vmem:[#allocation2] sm:$0xff]  ;;  %v53_v4 = vld [vmem:[#allocation2 + $0x8] sm:$0xff]  ;;  %s351_s2 = smov [#allocation8]  }
  0x39   :  { %v418_v1 = vld [vmem:[#allocation5] ss:$0 sm:$0xff]  ;;  %v420_v2 = vld [vmem:[#allocation7] ss:$0 sm:$0xff]  ;;  %v54_v5 = vld [vmem:[#allocation2 + $0x10] sm:$0xff]  ;;  %s231_s23 = sshll.u32 %s351_s2, 4  ;;  %s232_s23 = int_to_ptr.vmem [resolvable:$true] %s231_s23 }
  0x3a   :  { %v91_v3 = vmul.f32 %v418_v1, %v52_v0  ;;  %v55_v6 = vld [vmem:[#allocation2 + $0x18] sm:$0xff]  ;;  %v92_v7 = vmul.f32 %v418_v1, %v53_v4  ;;  %v93_v8 = vmul.f32 %v418_v1, %v54_v5  ;;  %v56_v10 = vld [vmem:[#allocation2 + $0x20] sm:$0xff]  ;;  %v57_v11 = vld [vmem:[#allocation2 + $0x28] sm:$0xff]  ;;  %s318_s24 = scalar_lea.vmem %s232_s23, 4096  ;;  %p323_p11 = scmp.lt.s32.totalorder %s232_s23, %s232_s23 }
  0x3b   :  { %v94_v9 = vmul.f32 %v418_v1, %v55_v6  ;;  %v58_v12 = vld [vmem:[#allocation2 + $0x30] sm:$0xff]  ;;  %v95_v14 = vmul.f32 %v418_v1, %v56_v10  ;;  %v96_v15 = vmul.f32 %v418_v1, %v57_v11  ;;  %v59_v17 = vld [vmem:[#allocation2 + $0x38] sm:$0xff]  ;;  %v60_v22 = vld [vmem:[#allocation2 + $0x40] sm:$0xff]  ;;  %p319_p10 = scmp.ne.s32.totalorder %s232_s23, %s318_s24  ;;  %p324_p12 = scmp.lt.s32.totalorder %s318_s24, %s318_s24 }
  0x3c   :  { %v130_v13 = vadd.f32 %v420_v2, %v91_v3  ;;  %v97_v16 = vmul.f32 %v418_v1, %v58_v12  ;;  %v131_v18 = vadd.f32 %v420_v2, %v92_v7  ;;  %v132_v19 = vadd.f32 %v420_v2, %v93_v8  ;;  %v61_v27 = vld [vmem:[#allocation2 + $0x48] sm:$0xff]  ;;  %v62_v28 = vld [vmem:[#allocation2 + $0x50] sm:$0xff]  ;;  %v63_v29 = vld [vmem:[#allocation2 + $0x58] sm:$0xff] }
  0x3d   :  { %v133_v20 = vadd.f32 %v420_v2, %v94_v9  ;;  %v98_v21 = vmul.f32 %v418_v1, %v59_v17  ;;  %v134_v24 = vadd.f32 %v420_v2, %v95_v14  ;;  %v135_v25 = vadd.f32 %v420_v2, %v96_v15  ;;  %v64_v34 = vld [vmem:[#allocation2 + $0x60] sm:$0xff]  ;;  %v65_v35 = vld [vmem:[#allocation2 + $0x68] sm:$0xff]  ;;  %v66_v36 = vld [vmem:[#allocation2 + $0x70] sm:$0xff]  ;;  %p325_p13 = por %p324_p12, %p323_p11 }
  0x3e   :  { %v162_v23 = vmax.f32 %v130_v13, 0.0  ;;  %v136_v26 = vadd.f32 %v420_v2, %v97_v16  ;;  %v163_v30 = vmax.f32 %v131_v18, 0.0  ;;  %v164_v31 = vmax.f32 %v132_v19, 0.0  ;;  %v67_v41 = vld [vmem:[#allocation2 + $0x78] sm:$0xff]  ;;  %v68_v54 = vld [vmem:[#allocation2 + $0x80] sm:$0xff]  ;;  %v69_v59 = vld [vmem:[#allocation2 + $0x88] sm:$0xff] }
  0x3f   :  { %v165_v32 = vmax.f32 %v133_v20, 0.0  ;;  %v137_v33 = vadd.f32 %v420_v2, %v98_v21  ;;  %v166_v37 = vmax.f32 %v134_v24, 0.0  ;;  %v167_v38 = vmax.f32 %v135_v25, 0.0  ;;  %v70_v60 = vld [vmem:[#allocation2 + $0x90] sm:$0xff]  ;;  %v71_v61 = vld [vmem:[#allocation2 + $0x98] sm:$0xff]  ;;  %v72_v4 = vld [vmem:[#allocation2 + $0xa0] sm:$0xff]  ;;  %p326_p0 = pnand %p325_p13, %p319_p10 }
  0x40   :  { %194 = vst [vmem:[#allocation8] sm:$0xff] %v162_v23  ;;  %v168_v39 = vmax.f32 %v136_v26, 0.0  ;;  %v99_v40 = vmul.f32 %v418_v1, %v60_v22  ;;  %195 = vst [vmem:[#allocation8 + $0x8] sm:$0xff] %v163_v30  ;;  %v100_v43 = vmul.f32 %v418_v1, %v61_v27  ;;  %v101_v44 = vmul.f32 %v418_v1, %v62_v28  ;;  %v73_v5 = vld [vmem:[#allocation2 + $0xa8] sm:$0xff]  ;;  %v74_v6 = vld [vmem:[#allocation2 + $0xb0] sm:$0xff] }
  0x41   :  { %196 = vst [vmem:[#allocation8 + $0x10] sm:$0xff] %v164_v31  ;;  %197 = vst [vmem:[#allocation8 + $0x18] sm:$0xff] %v165_v32  ;;  %v169_v42 = vmax.f32 %v137_v33, 0.0  ;;  %v102_v45 = vmul.f32 %v418_v1, %v63_v29  ;;  %v103_v47 = vmul.f32 %v418_v1, %v64_v34  ;;  %v104_v48 = vmul.f32 %v418_v1, %v65_v35  ;;  %v75_v11 = vld [vmem:[#allocation2 + $0xb8] sm:$0xff]  ;;  %v76_v24 = vld [vmem:[#allocation2 + $0xc0] sm:$0xff] }
  0x42   :  { %198 = vst [vmem:[#allocation8 + $0x20] sm:$0xff] %v166_v37  ;;  %199 = vst [vmem:[#allocation8 + $0x28] sm:$0xff] %v167_v38  ;;  %v138_v46 = vadd.f32 %v420_v2, %v99_v40  ;;  %v105_v49 = vmul.f32 %v418_v1, %v66_v36  ;;  %v139_v50 = vadd.f32 %v420_v2, %v100_v43  ;;  %v77_v29 = vld [vmem:[#allocation2 + $0xc8] sm:$0xff]  ;;  %v78_v30 = vld [vmem:[#allocation2 + $0xd0] sm:$0xff] }
  0x43   :  { %200 = vst [vmem:[#allocation8 + $0x30] sm:$0xff] %v168_v39  ;;  %201 = vst [vmem:[#allocation8 + $0x38] sm:$0xff] %v169_v42  ;;  %v140_v51 = vadd.f32 %v420_v2, %v101_v44  ;;  %v141_v52 = vadd.f32 %v420_v2, %v102_v45  ;;  %v106_v53 = vmul.f32 %v418_v1, %v67_v41  ;;  %v79_v31 = vld [vmem:[#allocation2 + $0xd8] sm:$0xff]  ;;  %v80_v36 = vld [vmem:[#allocation2 + $0xe0] sm:$0xff] }
  0x44   :  { %v170_v55 = vmax.f32 %v138_v46, 0.0  ;;  %v142_v56 = vadd.f32 %v420_v2, %v103_v47  ;;  %v143_v57 = vadd.f32 %v420_v2, %v104_v48  ;;  %v144_v58 = vadd.f32 %v420_v2, %v105_v49  ;;  %v81_v37 = vld [vmem:[#allocation2 + $0xe8] sm:$0xff]  ;;  %v82_v38 = vld [vmem:[#allocation2 + $0xf0] sm:$0xff]  ;;  %v83_v43 = vld [vmem:[#allocation2 + $0xf8] sm:$0xff] }
  0x45   :  { %v171_v62 = vmax.f32 %v139_v50, 0.0  ;;  %v172_v63 = vmax.f32 %v140_v51, 0.0  ;;  %v173_v0 = vmax.f32 %v141_v52, 0.0  ;;  %v145_v3 = vadd.f32 %v420_v2, %v106_v53 }
  0x46   :  { %202 = vst [vmem:[#allocation8 + $0x40] sm:$0xff] %v170_v55  ;;  %v174_v7 = vmax.f32 %v142_v56, 0.0  ;;  %v175_v8 = vmax.f32 %v143_v57, 0.0  ;;  %v176_v9 = vmax.f32 %v144_v58, 0.0  ;;  %v107_v10 = vmul.f32 %v418_v1, %v68_v54 }
  0x47   :  { %203 = vst [vmem:[#allocation8 + $0x48] sm:$0xff] %v171_v62  ;;  %204 = vst [vmem:[#allocation8 + $0x50] sm:$0xff] %v172_v63  ;;  %v177_v12 = vmax.f32 %v145_v3, 0.0  ;;  %v108_v13 = vmul.f32 %v418_v1, %v69_v59  ;;  %v109_v14 = vmul.f32 %v418_v1, %v70_v60  ;;  %v110_v15 = vmul.f32 %v418_v1, %v71_v61 }
  0x48   :  { %205 = vst [vmem:[#allocation8 + $0x58] sm:$0xff] %v173_v0  ;;  %206 = vst [vmem:[#allocation8 + $0x60] sm:$0xff] %v174_v7  ;;  %v146_v16 = vadd.f32 %v420_v2, %v107_v10  ;;  %v111_v17 = vmul.f32 %v418_v1, %v72_v4  ;;  %v112_v18 = vmul.f32 %v418_v1, %v73_v5 }
  0x49   :  { %207 = vst [vmem:[#allocation8 + $0x68] sm:$0xff] %v175_v8  ;;  %208 = vst [vmem:[#allocation8 + $0x70] sm:$0xff] %v176_v9  ;;  %v113_v19 = vmul.f32 %v418_v1, %v74_v6  ;;  %v147_v20 = vadd.f32 %v420_v2, %v108_v13  ;;  %v148_v21 = vadd.f32 %v420_v2, %v109_v14 }
  0x4a   :  { %209 = vst [vmem:[#allocation8 + $0x78] sm:$0xff] %v177_v12  ;;  %v149_v22 = vadd.f32 %v420_v2, %v110_v15  ;;  %v114_v23 = vmul.f32 %v418_v1, %v75_v11  ;;  %v178_v25 = vmax.f32 %v146_v16, 0.0  ;;  %v150_v26 = vadd.f32 %v420_v2, %v111_v17 }
  0x4b   :  { %v151_v27 = vadd.f32 %v420_v2, %v112_v18  ;;  %v152_v28 = vadd.f32 %v420_v2, %v113_v19  ;;  %v179_v32 = vmax.f32 %v147_v20, 0.0  ;;  %v180_v33 = vmax.f32 %v148_v21, 0.0 }
  0x4c   :  { %v181_v34 = vmax.f32 %v149_v22, 0.0  ;;  %v153_v35 = vadd.f32 %v420_v2, %v114_v23  ;;  %210 = vst [vmem:[#allocation8 + $0x80] sm:$0xff] %v178_v25  ;;  %v182_v39 = vmax.f32 %v150_v26, 0.0  ;;  %v115_v42 = vmul.f32 %v418_v1, %v76_v24 }
  0x4d   :  { %v183_v40 = vmax.f32 %v151_v27, 0.0  ;;  %v184_v41 = vmax.f32 %v152_v28, 0.0  ;;  %211 = vst [vmem:[#allocation8 + $0x88] sm:$0xff] %v179_v32  ;;  %212 = vst [vmem:[#allocation8 + $0x90] sm:$0xff] %v180_v33  ;;  %v116_v45 = vmul.f32 %v418_v1, %v77_v29  ;;  %v117_v46 = vmul.f32 %v418_v1, %v78_v30 }
  0x4e   :  { %213 = vst [vmem:[#allocation8 + $0x98] sm:$0xff] %v181_v34  ;;  %v185_v44 = vmax.f32 %v153_v35, 0.0  ;;  %v118_v47 = vmul.f32 %v418_v1, %v79_v31  ;;  %214 = vst [vmem:[#allocation8 + $0xa0] sm:$0xff] %v182_v39  ;;  %v154_v48 = vadd.f32 %v420_v2, %v115_v42  ;;  %v119_v49 = vmul.f32 %v418_v1, %v80_v36 }
  0x4f   :  { %215 = vst [vmem:[#allocation8 + $0xa8] sm:$0xff] %v183_v40  ;;  %216 = vst [vmem:[#allocation8 + $0xb0] sm:$0xff] %v184_v41  ;;  %v120_v50 = vmul.f32 %v418_v1, %v81_v37  ;;  %v121_v51 = vmul.f32 %v418_v1, %v82_v38  ;;  %v155_v52 = vadd.f32 %v420_v2, %v116_v45 }
  0x50   :  { %217 = vst [vmem:[#allocation8 + $0xb8] sm:$0xff] %v185_v44  ;;  %v156_v53 = vadd.f32 %v420_v2, %v117_v46  ;;  %v157_v54 = vadd.f32 %v420_v2, %v118_v47  ;;  %v122_v55 = vmul.f32 %v418_v1, %v83_v43  ;;  %v186_v56 = vmax.f32 %v154_v48, 0.0 }
  0x51   :  { %v158_v57 = vadd.f32 %v420_v2, %v119_v49  ;;  %v159_v58 = vadd.f32 %v420_v2, %v120_v50  ;;  %v160_v59 = vadd.f32 %v420_v2, %v121_v51  ;;  %v187_v60 = vmax.f32 %v155_v52, 0.0 }
  0x52   :  { %v188_v61 = vmax.f32 %v156_v53, 0.0  ;;  %v189_v62 = vmax.f32 %v157_v54, 0.0  ;;  %v161_v63 = vadd.f32 %v420_v2, %v122_v55  ;;  %218 = vst [vmem:[#allocation8 + $0xc0] sm:$0xff] %v186_v56 }
  0x53   :  { %v190_v0 = vmax.f32 %v158_v57, 0.0  ;;  %v191_v3 = vmax.f32 %v159_v58, 0.0  ;;  %v192_v4 = vmax.f32 %v160_v59, 0.0  ;;  %219 = vst [vmem:[#allocation8 + $0xc8] sm:$0xff] %v187_v60 }
  0x54   :  { %220 = vst [vmem:[#allocation8 + $0xd0] sm:$0xff] %v188_v61  ;;  %221 = vst [vmem:[#allocation8 + $0xd8] sm:$0xff] %v189_v62  ;;  %v193_v1 = vmax.f32 %v161_v63, 0.0 }
  0x55   :  { %222 = vst [vmem:[#allocation8 + $0xe0] sm:$0xff] %v190_v0  ;;  %223 = vst [vmem:[#allocation8 + $0xe8] sm:$0xff] %v191_v3 }
  0x56   :  { %224 = vst [vmem:[#allocation8 + $0xf0] sm:$0xff] %v192_v4  ;;  %225 = vst [vmem:[#allocation8 + $0xf8] sm:$0xff] %v193_v1 }
  0x57   :  { %329 = shalt.err (!%p326_p0)
}
  0x58   :  { %s330_s27 = scalar_lea.hbm %s504_s3, 4096 }
  0x59   :  { %p331_p1 = scmp.ne.s32.totalorder %s504_s3, %s330_s27  ;;  %p334_p2 = scmp.lt.u32.totalorder %s330_s27, %s504_s3 }
  0x5b   :  { %p336_p3 = pnand %p334_p2, %p331_p1 }
  0x5d   :  { %339 = shalt.err (!%p336_p3)
}
  0x5e   :  { %237 = dma.vmem_to_hbm [thread:$0]  %s232_s23, 4096, %s504_s3, [#allocation4], %s348_s1, %s348_s1, %s349_s8  }
  0x5f   :  { %344 = dma.done.wait [#allocation4], 4096  }
  0x60   :  { %345 = vsyncadd [#allocation4], 4294963200 }
  0x61   :  { %241 = vsyncpa [#allocation3], 1 }
  0x62   :  { %242 = vsyncpa [#allocation6], 1 }
  0x63   :  { %243 = vsyncpa [#allocation4], 1 }

// kernel: generator128.29
= control target key start
LH: loop header
LB: loop body
LE: loop exit
PB: predicated region body
PF: predicated region fallthrough
CT: control target
= control target key end

     0   :  { %7 = vsyncpa [#allocation3], 0  ;;  %s3721_s0 = inlined_call_operand.hbm [shape: f32[2192,64], index: 0, kind: input, shape index: {}]   ;;  %s3722_s1 = inlined_call_operand.hbm [shape: f32[64,32], index: 1, kind: input, shape index: {}]   ;;  %s3723_s2 = inlined_call_operand.hbm [shape: f32[2192,32], index: 2, kind: output, shape index: {}]  }
   0x1   :  { %9 = vsyncpa [#allocation3 + $0x1], 0 }
   0x2   :  { %10 = vsyncpa [#allocation6], 0 }
   0x3   :  { %11 = vsyncpa [#allocation4], 0 }
   0x4   :  { %13 = vsyncpa [#allocation4 + $0x1], 0  ;;  %s2683_s9 = smov 0   ;;  %s2685_s10 = smov 0  }
   0x5   :  { %s2687_s11 = smov 0   ;;  %s2689_s12 = smov 0  }
   0x6 LB: > { %s2704_s13 = sadd.s32 4294967295, %s2656_s12   ;;  %s1721_s14 = sadd.s32 4294967294, %s2656_s12   ;;  %s2656_s12 = sphi %s2689_s12, %s3743_s12   ;;  %s2652_s11 = sphi %s2687_s11, %s3742_s11   ;;  %s2648_s10 = sphi %s2685_s10, %s3741_s10   ;;  %s2644_s9 = sphi %s2683_s9, %s3740_s9  }
   0x7   : > { %p39_p0 = scmp.ne.s32.totalorder %s2648_s10, %s2644_s9  ;;  %p3724_p1 = scmp.eq.s32.totalorder %s2704_s13, 0 }
   0x8   : > { %p90_p3 = scmp.eq.s32.totalorder %s1721_s14, 1  ;;  %p1722_p5 = scmp.ge.s32.totalorder %s2656_s12, 1 }
   0x9   : > { %p2713_p4 = por %p3724_p1, %p39_p0  ;;  %p97_p7 = scmp.lt.s32.totalorder %s2656_s12, 3 }
   0xa   : > { %p2718_p6 = por %p90_p3, %p39_p0  ;;  %s2658_s18 = smov [#allocation5]  }
   0xb   : > { %s3727_s15 = scalar_select %p2713_p4, 1, 0 }
   0xc   : > { %s3728_s16 = scalar_select %p2718_p6, 1, 0 }
   0xd   : > { %p2723_p8 = pnand %p1722_p5, %p97_p7  ;;  %s109_s19 = sshll.u32 %s2658_s18, 4  ;;  %s2727_s19 = int_to_ptr.vmem [resolvable:$true] %s109_s19 }
   0xe   : > { %s2739_s21 = sadd.s32 1, %s2656_s12   ;;  %s26_s22 = sadd.s32 1, %s2652_s11 }
   0xf   : > { %s3729_s17 = scalar_select %p2723_p8, 1, 0 }
  0x10   : > { %p2472_p9 = pneg %p2723_p8  ;;  %s23_s23 = ssub.s32 %s2656_s12, %s2739_s21 }
  0x11   : > { %s2528_s26 = scalar_lea.hbm %s3722_s1, 1024 }
  0x12   : > { %p2734_p11 = pnand %p2472_p9, %p3724_p1  ;;  %p2529_p12 = scmp.ne.s32.totalorder %s3722_s1, %s2528_s26 }
  0x13   : > { %p2535_p5 = scmp.lt.u32.totalorder %s2528_s26, %s3722_s1 }
  0x14   : > { %p2530_p13 = pneg %p2734_p11 }
  0x16   : > { %p2531_p0 = pnand %p2530_p13, %p2529_p12 }
  0x18   : > { %p2532_p3 = pneg %p2531_p0 }
  0x1a   : > { %p2537_p7 = pnand %p2535_p5, %p2532_p3 }
  0x1c   : > { %2540 = shalt.err (!%p2537_p7)
}
  0x1d   : > { %s2541_s3 = scalar_lea.vmem %s2727_s19, 1024  ;;  %p2549_p2 = scmp.lt.s32.totalorder %s2727_s19, %s2727_s19 }
  0x1e   : > { %p2542_p9 = scmp.ne.s32.totalorder %s2727_s19, %s2541_s3  ;;  %p2550_p6 = scmp.lt.s32.totalorder %s2541_s3, %s2541_s3 }
  0x20   : > { %p2544_p10 = pnand %p2542_p9, %p2530_p13  ;;  %p2551_p4 = por %p2550_p6, %p2549_p2 }
  0x22   : > { %p2545_p1 = pneg %p2544_p10 }
  0x24   : > { %p2552_p8 = pnand %p2551_p4, %p2545_p1 }
  0x26   : > { %2555 = shalt.err (!%p2552_p8)
}
  0x27   : > { %s2659_s4 = smov 128   ;;  %s2660_s5 = smov 8  }
  0x28   : > { %2475 = dma.hbm_to_vmem [thread:$0]  (!%p2734_p11), %s3722_s1, 1024, %s2727_s19, [#allocation6], %s2659_s4, %s2659_s4, %s2660_s5  }
  0x29   : > { %p24_p1 = scmp.eq.s32.totalorder %s23_s23, 0  ;;  %p33_p2 = scmp.ne.s32.totalorder %s2652_s11, %s2648_s10 }
  0x2a   : > { %p34_p4 = scmp.eq.s32.totalorder %s2656_s12, 0  ;;  %p2485_p6 = scmp.lt.s32.totalorder %s2656_s12, 2 }
  0x2b   : > { %s2773_s8 = scalar_select %p24_p1, %s2652_s11, %s26_s22  }
  0x2c   : > { %p35_p8 = por %p34_p4, %p33_p2  ;;  %p3731_p10 = scmp.eq.s32.totalorder %s2704_s13, 1 }
  0x2d   : > { %s123_s18 = sand.u32 1, %s2652_s11   ;;  %s1868_s20 = smul.u32 17536, %s2656_s12 }
  0x2e   : > { %p2777_p12 = por %p3731_p10, %p33_p2  ;;  %s2462_s24 = smul.u32 1096, %s123_s18 }
  0x2f   : > { %p2783_p13 = pnand %p2485_p6, %p35_p8  ;;  %s2790_s22 = scalar_lea.hbm %s3721_s0, %s1868_s20 }
  0x30   : > { %s127_s26 = scalar_lea.vmem [#allocation2], %s2462_s24  ;;  %s2794_s28 = scalar_lea.sflag [#allocation3], %s123_s18 }
  0x31   : > { %s134_s27 = sshll.u32 %s127_s26, 4  ;;  %s2556_s29 = scalar_lea.hbm %s2790_s22, 17536  ;;  %s2792_s27 = int_to_ptr.vmem [resolvable:$true] %s134_s27 }
  0x32   : > { %p2557_p11 = scmp.ne.s32.totalorder %s2790_s22, %s2556_s29  ;;  %p2558_p0 = pneg %p2783_p13 }
  0x33   : > { %s2561_s6 = scalar_lea.hbm %s3721_s0, 35072  ;;  %p2562_p7 = scmp.lt.u32.totalorder %s2790_s22, %s3721_s0 }
  0x34   : > { %p2559_p3 = pnand %p2558_p0, %p2557_p11  ;;  %p2563_p9 = scmp.lt.u32.totalorder %s2561_s6, %s2556_s29 }
  0x35   : > { %p2565_p2 = scmp.lt.u32.totalorder %s2556_s29, %s2790_s22 }
  0x36   : > { %p2560_p5 = pneg %p2559_p3  ;;  %p2564_p1 = por %p2563_p9, %p2562_p7 }
  0x38   : > { %p2566_p4 = por %p2565_p2, %p2564_p1 }
  0x3a   : > { %p2567_p6 = pnand %p2566_p4, %p2560_p5 }
  0x3c   : > { %2570 = shalt.err (!%p2567_p6)
}
  0x3d   : > { %s2571_s18 = scalar_lea.vmem %s2792_s27, 17536  ;;  %s2661_s24 = smov [#allocation2]  }
  0x3e   : > { %p2572_p8 = scmp.ne.s32.totalorder %s2792_s27, %s2571_s18  ;;  %s2576_s19 = sshll.u32 %s2661_s24, 4  ;;  %s2577_s19 = int_to_ptr.vmem [resolvable:$false] %s2576_s19 }
  0x3f   : > { %s2578_s23 = scalar_lea.vmem %s2577_s19, 35072  ;;  %p2579_p3 = scmp.lt.s32.totalorder %s2792_s27, %s2577_s19 }
  0x40   : > { %p2574_p10 = pnand %p2572_p8, %p2558_p0  ;;  %p2580_p7 = scmp.lt.s32.totalorder %s2578_s23, %s2571_s18 }
  0x42   : > { %p2575_p11 = pneg %p2574_p10  ;;  %p2581_p9 = por %p2580_p7, %p2579_p3 }
  0x44   : > { %p2582_p1 = pnand %p2581_p9, %p2575_p11 }
  0x46   : > { %2585 = shalt.err (!%p2582_p1)
}
  0x47   : > { %2479 = dma.hbm_to_vmem [thread:$0]  (!%p2783_p13), %s2790_s22, 17536, %s2792_s27, %s2794_s28, %s2659_s4, %s2659_s4, %s2660_s5  }
  0x48   : > { %p3734_p0 = scmp.ne.s32.totalorder %s3729_s17, 0 }
  0x49   : > { %s2828_s26 = sand.u32 (!%p3734_p0), 1, %s2648_s10   ;;  %p3735_p5 = scmp.ne.s32.totalorder (!%p3734_p0), %s3727_s15, 0 }
  0x4a   : > { %146 = sbr.rel (%p3734_p0) target bundleno = 602 (0x25a), region = 28  ;;  %s149_s30 = scalar_lea.sflag (!%p3734_p0), [#allocation3], %s2828_s26 }
  0x4b   : > { %s2463_s29 = smul.u32 (!%p3734_p0), 1096, %s2828_s26 }
  0x4d   : > { %s2834_s25 = scalar_lea.vmem (!%p3734_p0), [#allocation2], %s2463_s29 }
  0x51   : > { %2631 = dma.done.wait (%p3735_p5), %s149_s30, 17536  }
  0x52   : > { %2633 = vsyncadd (%p3735_p5), %s149_s30, 4294949760  ;;  %p3736_p13 = scmp.eq.s32.totalorder %s2704_s13, 0 }
  0x54   : > { %2635 = dma.done.wait (%p3736_p13), [#allocation6], 1024   ;;  %p3737_p2 = pmov %p3736_p13 }
  0x55   : > { %v2662_v0 = vmov 0.0|0.0   ;;  %vm2663_vm0 = vmmov 0   ;;  %v2664_v1 = vmov 0.0   ;;  %v316_v2 = vld [vmem:[#allocation5] sm:$0xff]  ;;  %v317_v3 = vld [vmem:[#allocation5 + $0x8] sm:$0xff]  ;;  %v318_v4 = vld [vmem:[#allocation5 + $0x10] sm:$0xff] }
  0x56   : > { %2637 = vsyncadd (%p3737_p2), [#allocation6], 4294966272  ;;  %2442 = vmatprep.subr.bf16.mxu0 %v2662_v0  ;;  %2454 = vmatprep.subr.bf16.mxu1 %v2662_v0  ;;  %v2443_v5 = vpack.c.bf16 %v317_v3, %v316_v2  ;;  %v319_v6 = vld [vmem:[#allocation5 + $0x18] sm:$0xff]  ;;  %v320_v8 = vld [vmem:[#allocation5 + $0x20] sm:$0xff]  ;;  %vm324_vm1 = vcmask 523264   ;;  %vm1486_vm2 = vcmask 261120  }
  0x57   : > { %2031 = vmatprep.mubr.msk.f32.mxu0 %vm2663_vm0, %v2664_v1  ;;  %2238 = vmatprep.mubr.msk.f32.mxu1 %vm2663_vm0, %v2664_v1  ;;  %v2446_v7 = vpack.c.bf16 %v319_v6, %v318_v4  ;;  %v321_v9 = vld [vmem:[#allocation5 + $0x28] sm:$0xff]  ;;  %v322_v11 = vld [vmem:[#allocation5 + $0x30] sm:$0xff]  ;;  %v323_v12 = vld [vmem:[#allocation5 + $0x38] sm:$0xff]  ;;  %s3276_s15 = scalar_lea.vmem [#allocation7], %s2463_s29  ;;  %s1869_s17 = smul.u32 17536, %s2704_s13 }
  0x58   : > { %2444 = vmatpush3.bf16.msra.mxu0 %v2443_v5  ;;  %2458 = vmatpush3.bf16.msra.mxu1 %v2443_v5  ;;  %v2449_v10 = vpack.c.bf16 %v321_v9, %v320_v8  ;;  %v2452_v13 = vpack.c.bf16 %v323_v12, %v322_v11  ;;  %v179_v14 = vld [vmem:[%s2834_s25] sm:$0xff]  ;;  %v248_v15 = vld [vmem:[%s2834_s25 + $0x228] sm:$0xff]  ;;  %v249_v17 = vld [vmem:[%s2834_s25 + $0x230] sm:$0xff]  ;;  %s1638_s4 = sshll.u32 %s3276_s15, 4  ;;  %s1625_s13 = scalar_lea.sflag [#allocation4], %s2828_s26  ;;  %s3675_s4 = int_to_ptr.vmem [resolvable:$true] %s1638_s4 }
  0x59   : > { %2445 = vmatprep.subr.bf16.mxu0 %v2662_v0  ;;  %2455 = vmatprep.subr.bf16.mxu1 %v2662_v0  ;;  %v180_v16 = vld [vmem:[%s2834_s25 + $0x8] sm:$0xff]  ;;  %v181_v18 = vld [vmem:[%s2834_s25 + $0x10] sm:$0xff]  ;;  %v250_v19 = vld [vmem:[%s2834_s25 + $0x238] sm:$0xff]  ;;  %s3673_s27 = scalar_lea.hbm %s3723_s2, %s1869_s17  ;;  %s2586_s28 = scalar_lea.vmem %s3675_s4, 17536 }
  0x5a   : > { %v182_v20 = vld [vmem:[%s2834_s25 + $0x18] sm:$0xff]  ;;  %v251_v21 = vld [vmem:[%s2834_s25 + $0x240] sm:$0xff]  ;;  %v252_v23 = vld [vmem:[%s2834_s25 + $0x248] sm:$0xff]  ;;  %p2587_p4 = scmp.ne.s32.totalorder %s3675_s4, %s2586_s28  ;;  %s2665_s3 = smov [#allocation7]  }
  0x5b   : > { %v183_v22 = vld [vmem:[%s2834_s25 + $0x20] sm:$0xff]  ;;  %v184_v24 = vld [vmem:[%s2834_s25 + $0x28] sm:$0xff]  ;;  %v253_v25 = vld [vmem:[%s2834_s25 + $0x250] sm:$0xff]  ;;  %s2590_s6 = sshll.u32 %s2665_s3, 4  ;;  %s2591_s6 = int_to_ptr.vmem [resolvable:$false] %s2590_s6 }
  0x5c   : > { %2447 = vmatpush3.bf16.msra.mxu0 %v2446_v7  ;;  %2459 = vmatpush3.bf16.msra.mxu1 %v2446_v7  ;;  %v185_v26 = vld [vmem:[%s2834_s25 + $0x30] sm:$0xff]  ;;  %v254_v27 = vld [vmem:[%s2834_s25 + $0x258] sm:$0xff]  ;;  %v255_v29 = vld [vmem:[%s2834_s25 + $0x260] sm:$0xff]  ;;  %p2588_p6 = pnand %p2587_p4, %p2777_p12  ;;  %s2592_s7 = scalar_lea.vmem %s2591_s6, 35072 }
  0x5d   : > { %2448 = vmatprep.subr.bf16.mxu0 %v2662_v0  ;;  %2456 = vmatprep.subr.bf16.mxu1 %v2662_v0  ;;  %v186_v28 = vld [vmem:[%s2834_s25 + $0x38] sm:$0xff]  ;;  %v187_v30 = vld [vmem:[%s2834_s25 + $0x40] sm:$0xff]  ;;  %v256_v31 = vld [vmem:[%s2834_s25 + $0x268] sm:$0xff]  ;;  %p2593_p10 = scmp.lt.s32.totalorder %s3675_s4, %s2591_s6  ;;  %p2594_p11 = scmp.lt.s32.totalorder %s2592_s7, %s2586_s28 }
  0x5e   : > { %v188_v32 = vld [vmem:[%s2834_s25 + $0x48] sm:$0xff]  ;;  %v257_v33 = vld [vmem:[%s2834_s25 + $0x270] sm:$0xff]  ;;  %v258_v35 = vld [vmem:[%s2834_s25 + $0x278] sm:$0xff]  ;;  %p2589_p8 = pneg %p2588_p6 }
  0x5f   : > { %v189_v34 = vld [vmem:[%s2834_s25 + $0x50] sm:$0xff]  ;;  %v190_v36 = vld [vmem:[%s2834_s25 + $0x58] sm:$0xff]  ;;  %v259_v37 = vld [vmem:[%s2834_s25 + $0x280] sm:$0xff]  ;;  %p2595_p3 = por %p2594_p11, %p2593_p10 }
  0x60   : > { %2450 = vmatpush3.bf16.msra.mxu0 %v2449_v10  ;;  %2460 = vmatpush3.bf16.msra.mxu1 %v2449_v10  ;;  %v191_v38 = vld [vmem:[%s2834_s25 + $0x60] sm:$0xff]  ;;  %v260_v39 = vld [vmem:[%s2834_s25 + $0x288] sm:$0xff]  ;;  %v261_v41 = vld [vmem:[%s2834_s25 + $0x290] sm:$0xff] }
  0x61   : > { %2451 = vmatprep.subr.bf16.mxu0 %v2662_v0  ;;  %2457 = vmatprep.subr.bf16.mxu1 %v2662_v0  ;;  %v192_v40 = vld [vmem:[%s2834_s25 + $0x68] sm:$0xff]  ;;  %v193_v42 = vld [vmem:[%s2834_s25 + $0x70] sm:$0xff]  ;;  %v262_v43 = vld [vmem:[%s2834_s25 + $0x298] sm:$0xff]  ;;  %p2596_p7 = pnand %p2595_p3, %p2589_p8 }
  0x62   : > { %v194_v44 = vld [vmem:[%s2834_s25 + $0x78] sm:$0xff]  ;;  %v263_v45 = vld [vmem:[%s2834_s25 + $0x2a0] sm:$0xff]  ;;  %v264_v47 = vld [vmem:[%s2834_s25 + $0x2a8] sm:$0xff] }
  0x63   : > { %v195_v46 = vld [vmem:[%s2834_s25 + $0x80] sm:$0xff]  ;;  %v196_v48 = vld [vmem:[%s2834_s25 + $0x88] sm:$0xff]  ;;  %v265_v49 = vld [vmem:[%s2834_s25 + $0x2b0] sm:$0xff] }
  0x64   : > { %2453 = vmatpush3.bf16.msra.mxu0 %v2452_v13  ;;  %2461 = vmatpush3.bf16.msra.mxu1 %v2452_v13  ;;  %v197_v50 = vld [vmem:[%s2834_s25 + $0x90] sm:$0xff]  ;;  %v266_v51 = vld [vmem:[%s2834_s25 + $0x2b8] sm:$0xff]  ;;  %v267_v53 = vld [vmem:[%s2834_s25 + $0x2c0] sm:$0xff] }
  0x65   : > { %v198_v52 = vld [vmem:[%s2834_s25 + $0x98] sm:$0xff]  ;;  %v199_v54 = vld [vmem:[%s2834_s25 + $0xa0] sm:$0xff]  ;;  %v268_v55 = vld [vmem:[%s2834_s25 + $0x2c8] sm:$0xff] }
  0x66   : > { %v200_v56 = vld [vmem:[%s2834_s25 + $0xa8] sm:$0xff]  ;;  %v269_v57 = vld [vmem:[%s2834_s25 + $0x2d0] sm:$0xff]  ;;  %v270_v59 = vld [vmem:[%s2834_s25 + $0x2d8] sm:$0xff] }
  0x67   : > { %2032 = vmatmul.mubr.msk.f32.vlgmr.msra.gmra.mrb[0].mxu0 %vm324_vm1, %v179_v14  ;;  %2239 = vmatmul.mubr.msk.f32.vlgmr.msra.gmra.mrb[0].mxu1 %vm324_vm1, %v248_v15  ;;  %v201_v58 = vld [vmem:[%s2834_s25 + $0xb0] sm:$0xff]  ;;  %v202_v60 = vld [vmem:[%s2834_s25 + $0xb8] sm:$0xff]  ;;  %v271_v61 = vld [vmem:[%s2834_s25 + $0x2e0] sm:$0xff] }
  0x68   : > { %2034 = vmatprep.mubr.msk.f32.mxu0 %vm2663_vm0, %v2664_v1  ;;  %2241 = vmatprep.mubr.msk.f32.mxu1 %vm2663_vm0, %v2664_v1  ;;  %v203_v62 = vld [vmem:[%s2834_s25 + $0xc0] sm:$0xff]  ;;  %v272_v63 = vld [vmem:[%s2834_s25 + $0x2e8] sm:$0xff]  ;;  %v273_v2 = vld [vmem:[%s2834_s25 + $0x2f0] sm:$0xff] }
  0x69   : > { %v204_v0 = vld [vmem:[%s2834_s25 + $0xc8] sm:$0xff]  ;;  %v205_v3 = vld [vmem:[%s2834_s25 + $0xd0] sm:$0xff]  ;;  %v274_v4 = vld [vmem:[%s2834_s25 + $0x2f8] sm:$0xff] }
  0x6a   : > { %v206_v5 = vld [vmem:[%s2834_s25 + $0xd8] sm:$0xff]  ;;  %v275_v6 = vld [vmem:[%s2834_s25 + $0x300] sm:$0xff]  ;;  %v276_v8 = vld [vmem:[%s2834_s25 + $0x308] sm:$0xff] }
  0x6b   : > { %2035 = vmatmul.mubr.msk.f32.gmra.mrb[2].mxu0 %vm324_vm1, %v180_v16  ;;  %2242 = vmatmul.mubr.msk.f32.gmra.mrb[2].mxu1 %vm324_vm1, %v249_v17  ;;  %v207_v7 = vld [vmem:[%s2834_s25 + $0xe0] sm:$0xff]  ;;  %v208_v9 = vld [vmem:[%s2834_s25 + $0xe8] sm:$0xff]  ;;  %v277_v10 = vld [vmem:[%s2834_s25 + $0x310] sm:$0xff] }
  0x6c   : > { %2037 = vmatprep.mubr.msk.f32.mxu0 %vm2663_vm0, %v2664_v1  ;;  %2244 = vmatprep.mubr.msk.f32.mxu1 %vm2663_vm0, %v2664_v1  ;;  %v209_v11 = vld [vmem:[%s2834_s25 + $0xf0] sm:$0xff]  ;;  %v278_v12 = vld [vmem:[%s2834_s25 + $0x318] sm:$0xff]  ;;  %v279_v14 = vld [vmem:[%s2834_s25 + $0x320] sm:$0xff] }
  0x6d   : > { %v210_v13 = vld [vmem:[%s2834_s25 + $0xf8] sm:$0xff]  ;;  %v211_v15 = vld [vmem:[%s2834_s25 + $0x100] sm:$0xff]  ;;  %v280_v16 = vld [vmem:[%s2834_s25 + $0x328] sm:$0xff] }
  0x6e   : > { %v212_v17 = vld [vmem:[%s2834_s25 + $0x108] sm:$0xff] }
  0x6f   : > { %2038 = vmatmul.mubr.msk.f32.gmra.mrb[4].mxu0 %vm324_vm1, %v181_v18  ;;  %2245 = vmatmul.mubr.msk.f32.gmra.mrb[4].mxu1 %vm324_vm1, %v250_v19  ;;  %v281_v18 = vld [vmem:[%s2834_s25 + $0x330] sm:$0xff] }
  0x70   : > { %2040 = vmatprep.mubr.msk.f32.mxu0 %vm2663_vm0, %v2664_v1  ;;  %2247 = vmatprep.mubr.msk.f32.mxu1 %vm2663_vm0, %v2664_v1  ;;  %v213_v19 = vld [vmem:[%s2834_s25 + $0x110] sm:$0xff] }
  0x73   : > { %2041 = vmatmul.mubr.msk.f32.gmra.mrb[6].mxu0 %vm324_vm1, %v182_v20  ;;  %2248 = vmatmul.mubr.msk.f32.gmra.mrb[6].mxu1 %vm324_vm1, %v251_v21  ;;  %v282_v20 = vld [vmem:[%s2834_s25 + $0x338] sm:$0xff] }
  0x74   : > { %2043 = vmatprep.mubr.msk.f32.mxu0 %vm2663_vm0, %v2664_v1  ;;  %2250 = vmatprep.mubr.msk.f32.mxu1 %vm2663_vm0, %v2664_v1  ;;  %v214_v21 = vld [vmem:[%s2834_s25 + $0x118] sm:$0xff] }
  0x77   : > { %2044 = vmatmul.mubr.msk.f32.gmra.mrb[8].mxu0 %vm324_vm1, %v183_v22  ;;  %2251 = vmatmul.mubr.msk.f32.gmra.mrb[8].mxu1 %vm324_vm1, %v252_v23  ;;  %v283_v22 = vld [vmem:[%s2834_s25 + $0x340] sm:$0xff] }
  0x78   : > { %2046 = vmatprep.mubr.msk.f32.mxu0 %vm2663_vm0, %v2664_v1  ;;  %2253 = vmatprep.mubr.msk.f32.mxu1 %vm2663_vm0, %v2664_v1  ;;  %v215_v23 = vld [vmem:[%s2834_s25 + $0x120] sm:$0xff] }
  0x7b   : > { %2047 = vmatmul.mubr.msk.f32.gmra.mrb[10].mxu0 %vm324_vm1, %v184_v24  ;;  %2254 = vmatmul.mubr.msk.f32.gmra.mrb[10].mxu1 %vm324_vm1, %v253_v25  ;;  %v284_v24 = vld [vmem:[%s2834_s25 + $0x348] sm:$0xff] }
  0x7c   : > { %2049 = vmatprep.mubr.msk.f32.mxu0 %vm2663_vm0, %v2664_v1  ;;  %2256 = vmatprep.mubr.msk.f32.mxu1 %vm2663_vm0, %v2664_v1  ;;  %v216_v25 = vld [vmem:[%s2834_s25 + $0x128] sm:$0xff] }
  0x7f   : > { %2050 = vmatmul.mubr.msk.f32.gmra.mrb[12].mxu0 %vm324_vm1, %v185_v26  ;;  %2257 = vmatmul.mubr.msk.f32.gmra.mrb[12].mxu1 %vm324_vm1, %v254_v27  ;;  %v285_v26 = vld [vmem:[%s2834_s25 + $0x350] sm:$0xff] }
  0x80   : > { %2052 = vmatprep.mubr.msk.f32.mxu0 %vm2663_vm0, %v2664_v1  ;;  %2259 = vmatprep.mubr.msk.f32.mxu1 %vm2663_vm0, %v2664_v1  ;;  %v217_v27 = vld [vmem:[%s2834_s25 + $0x130] sm:$0xff] }
  0x83   : > { %2053 = vmatmul.mubr.msk.f32.gmra.mrb[14].mxu0 %vm324_vm1, %v186_v28  ;;  %2260 = vmatmul.mubr.msk.f32.gmra.mrb[14].mxu1 %vm324_vm1, %v255_v29  ;;  %v286_v28 = vld [vmem:[%s2834_s25 + $0x358] sm:$0xff] }
  0x84   : > { %2055 = vmatprep.mubr.msk.f32.mxu0 %vm2663_vm0, %v2664_v1  ;;  %2262 = vmatprep.mubr.msk.f32.mxu1 %vm2663_vm0, %v2664_v1  ;;  %v218_v29 = vld [vmem:[%s2834_s25 + $0x138] sm:$0xff] }
  0x87   : > { %2056 = vmatmul.mubr.msk.f32.gmra.mrb[16].mxu0 %vm324_vm1, %v187_v30  ;;  %2263 = vmatmul.mubr.msk.f32.gmra.mrb[16].mxu1 %vm324_vm1, %v256_v31  ;;  %v287_v30 = vld [vmem:[%s2834_s25 + $0x360] sm:$0xff] }
  0x88   : > { %2058 = vmatprep.mubr.msk.f32.mxu0 %vm2663_vm0, %v2664_v1  ;;  %2265 = vmatprep.mubr.msk.f32.mxu1 %vm2663_vm0, %v2664_v1  ;;  %v219_v31 = vld [vmem:[%s2834_s25 + $0x140] sm:$0xff] }
  0x8b   : > { %2059 = vmatmul.mubr.msk.f32.gmra.mrb[18].mxu0 %vm324_vm1, %v188_v32  ;;  %2266 = vmatmul.mubr.msk.f32.gmra.mrb[18].mxu1 %vm324_vm1, %v257_v33  ;;  %v288_v32 = vld [vmem:[%s2834_s25 + $0x368] sm:$0xff] }
  0x8c   : > { %2061 = vmatprep.mubr.msk.f32.mxu0 %vm2663_vm0, %v2664_v1  ;;  %2268 = vmatprep.mubr.msk.f32.mxu1 %vm2663_vm0, %v2664_v1  ;;  %v220_v33 = vld [vmem:[%s2834_s25 + $0x148] sm:$0xff] }
  0x8f   : > { %2062 = vmatmul.mubr.msk.f32.gmra.mrb[20].mxu0 %vm324_vm1, %v189_v34  ;;  %2269 = vmatmul.mubr.msk.f32.gmra.mrb[20].mxu1 %vm324_vm1, %v258_v35  ;;  %v289_v34 = vld [vmem:[%s2834_s25 + $0x370] sm:$0xff] }
  0x90   : > { %2064 = vmatprep.mubr.msk.f32.mxu0 %vm2663_vm0, %v2664_v1  ;;  %2271 = vmatprep.mubr.msk.f32.mxu1 %vm2663_vm0, %v2664_v1  ;;  %v221_v35 = vld [vmem:[%s2834_s25 + $0x150] sm:$0xff] }
  0x93   : > { %2065 = vmatmul.mubr.msk.f32.gmra.mrb[22].mxu0 %vm324_vm1, %v190_v36  ;;  %2272 = vmatmul.mubr.msk.f32.gmra.mrb[22].mxu1 %vm324_vm1, %v259_v37  ;;  %v290_v36 = vld [vmem:[%s2834_s25 + $0x378] sm:$0xff] }
  0x94   : > { %2067 = vmatprep.mubr.msk.f32.mxu0 %vm2663_vm0, %v2664_v1  ;;  %2274 = vmatprep.mubr.msk.f32.mxu1 %vm2663_vm0, %v2664_v1  ;;  %v222_v37 = vld [vmem:[%s2834_s25 + $0x158] sm:$0xff] }
  0x97   : > { %2068 = vmatmul.mubr.msk.f32.gmra.mrb[24].mxu0 %vm324_vm1, %v191_v38  ;;  %2275 = vmatmul.mubr.msk.f32.gmra.mrb[24].mxu1 %vm324_vm1, %v260_v39  ;;  %v291_v38 = vld [vmem:[%s2834_s25 + $0x380] sm:$0xff] }
  0x98   : > { %2070 = vmatprep.mubr.msk.f32.mxu0 %vm2663_vm0, %v2664_v1  ;;  %2277 = vmatprep.mubr.msk.f32.mxu1 %vm2663_vm0, %v2664_v1  ;;  %v223_v39 = vld [vmem:[%s2834_s25 + $0x160] sm:$0xff] }
  0x9b   : > { %2071 = vmatmul.mubr.msk.f32.gmra.mrb[26].mxu0 %vm324_vm1, %v192_v40  ;;  %2278 = vmatmul.mubr.msk.f32.gmra.mrb[26].mxu1 %vm324_vm1, %v261_v41  ;;  %v292_v40 = vld [vmem:[%s2834_s25 + $0x388] sm:$0xff] }
  0x9c   : > { %2073 = vmatprep.mubr.msk.f32.mxu0 %vm2663_vm0, %v2664_v1  ;;  %2280 = vmatprep.mubr.msk.f32.mxu1 %vm2663_vm0, %v2664_v1  ;;  %v224_v41 = vld [vmem:[%s2834_s25 + $0x168] sm:$0xff] }
  0x9f   : > { %2074 = vmatmul.mubr.msk.f32.gmra.mrb[28].mxu0 %vm324_vm1, %v193_v42  ;;  %2281 = vmatmul.mubr.msk.f32.gmra.mrb[28].mxu1 %vm324_vm1, %v262_v43  ;;  %v293_v42 = vld [vmem:[%s2834_s25 + $0x390] sm:$0xff] }
  0xa0   : > { %2076 = vmatprep.mubr.msk.f32.mxu0 %vm2663_vm0, %v2664_v1  ;;  %2283 = vmatprep.mubr.msk.f32.mxu1 %vm2663_vm0, %v2664_v1  ;;  %v225_v43 = vld [vmem:[%s2834_s25 + $0x170] sm:$0xff] }
  0xa3   : > { %2077 = vmatmul.mubr.msk.f32.gmra.mrb[30].mxu0 %vm324_vm1, %v194_v44  ;;  %2284 = vmatmul.mubr.msk.f32.gmra.mrb[30].mxu1 %vm324_vm1, %v263_v45  ;;  %v294_v44 = vld [vmem:[%s2834_s25 + $0x398] sm:$0xff] }
  0xa4   : > { %2079 = vmatprep.mubr.msk.f32.mxu0 %vm2663_vm0, %v2664_v1  ;;  %2286 = vmatprep.mubr.msk.f32.mxu1 %vm2663_vm0, %v2664_v1  ;;  %v226_v45 = vld [vmem:[%s2834_s25 + $0x178] sm:$0xff] }
  0xa7   : > { %2080 = vmatmul.mubr.msk.f32.gmra.mrb[32].mxu0 %vm324_vm1, %v195_v46  ;;  %2287 = vmatmul.mubr.msk.f32.gmra.mrb[32].mxu1 %vm324_vm1, %v264_v47  ;;  %v295_v46 = vld [vmem:[%s2834_s25 + $0x3a0] sm:$0xff] }
  0xa8   : > { %2082 = vmatprep.mubr.msk.f32.mxu0 %vm2663_vm0, %v2664_v1  ;;  %2289 = vmatprep.mubr.msk.f32.mxu1 %vm2663_vm0, %v2664_v1  ;;  %v227_v47 = vld [vmem:[%s2834_s25 + $0x180] sm:$0xff] }
  0xab   : > { %2083 = vmatmul.mubr.msk.f32.gmra.mrb[34].mxu0 %vm324_vm1, %v196_v48  ;;  %2290 = vmatmul.mubr.msk.f32.gmra.mrb[34].mxu1 %vm324_vm1, %v265_v49  ;;  %v296_v48 = vld [vmem:[%s2834_s25 + $0x3a8] sm:$0xff] }
  0xac   : > { %2085 = vmatprep.mubr.msk.f32.mxu0 %vm2663_vm0, %v2664_v1  ;;  %2292 = vmatprep.mubr.msk.f32.mxu1 %vm2663_vm0, %v2664_v1  ;;  %v228_v49 = vld [vmem:[%s2834_s25 + $0x188] sm:$0xff] }
  0xaf   : > { %2086 = vmatmul.mubr.msk.f32.gmra.mrb[36].mxu0 %vm324_vm1, %v197_v50  ;;  %2293 = vmatmul.mubr.msk.f32.gmra.mrb[36].mxu1 %vm324_vm1, %v266_v51  ;;  %v297_v50 = vld [vmem:[%s2834_s25 + $0x3b0] sm:$0xff] }
  0xb0   : > { %2088 = vmatprep.mubr.msk.f32.mxu0 %vm2663_vm0, %v2664_v1  ;;  %2295 = vmatprep.mubr.msk.f32.mxu1 %vm2663_vm0, %v2664_v1  ;;  %v229_v51 = vld [vmem:[%s2834_s25 + $0x190] sm:$0xff] }
  0xb3   : > { %2089 = vmatmul.mubr.msk.f32.gmra.mrb[38].mxu0 %vm324_vm1, %v198_v52  ;;  %2296 = vmatmul.mubr.msk.f32.gmra.mrb[38].mxu1 %vm324_vm1, %v267_v53  ;;  %v298_v52 = vld [vmem:[%s2834_s25 + $0x3b8] sm:$0xff] }
  0xb4   : > { %2091 = vmatprep.mubr.msk.f32.mxu0 %vm2663_vm0, %v2664_v1  ;;  %2298 = vmatprep.mubr.msk.f32.mxu1 %vm2663_vm0, %v2664_v1  ;;  %v230_v53 = vld [vmem:[%s2834_s25 + $0x198] sm:$0xff] }
  0xb7   : > { %2092 = vmatmul.mubr.msk.f32.gmra.mrb[40].mxu0 %vm324_vm1, %v199_v54  ;;  %2299 = vmatmul.mubr.msk.f32.gmra.mrb[40].mxu1 %vm324_vm1, %v268_v55  ;;  %v299_v54 = vld [vmem:[%s2834_s25 + $0x3c0] sm:$0xff] }
  0xb8   : > { %2094 = vmatprep.mubr.msk.f32.mxu0 %vm2663_vm0, %v2664_v1  ;;  %2301 = vmatprep.mubr.msk.f32.mxu1 %vm2663_vm0, %v2664_v1  ;;  %v231_v55 = vld [vmem:[%s2834_s25 + $0x1a0] sm:$0xff] }
  0xbb   : > { %2095 = vmatmul.mubr.msk.f32.gmra.mrb[42].mxu0 %vm324_vm1, %v200_v56  ;;  %2302 = vmatmul.mubr.msk.f32.gmra.mrb[42].mxu1 %vm324_vm1, %v269_v57  ;;  %v300_v56 = vld [vmem:[%s2834_s25 + $0x3c8] sm:$0xff] }
  0xbc   : > { %2097 = vmatprep.mubr.msk.f32.mxu0 %vm2663_vm0, %v2664_v1  ;;  %2304 = vmatprep.mubr.msk.f32.mxu1 %vm2663_vm0, %v2664_v1  ;;  %v232_v57 = vld [vmem:[%s2834_s25 + $0x1a8] sm:$0xff] }
  0xbf   : > { %2098 = vmatmul.mubr.msk.f32.gmra.mrb[44].mxu0 %vm324_vm1, %v201_v58  ;;  %2305 = vmatmul.mubr.msk.f32.gmra.mrb[44].mxu1 %vm324_vm1, %v270_v59  ;;  %v301_v58 = vld [vmem:[%s2834_s25 + $0x3d0] sm:$0xff] }
  0xc0   : > { %2100 = vmatprep.mubr.msk.f32.mxu0 %vm2663_vm0, %v2664_v1  ;;  %2307 = vmatprep.mubr.msk.f32.mxu1 %vm2663_vm0, %v2664_v1 }
  0xc3   : > { %2101 = vmatmul.mubr.msk.f32.gmra.mrb[46].mxu0 %vm324_vm1, %v202_v60  ;;  %2308 = vmatmul.mubr.msk.f32.gmra.mrb[46].mxu1 %vm324_vm1, %v271_v61 }
  0xc4   : > { %2103 = vmatprep.mubr.msk.f32.mxu0 %vm2663_vm0, %v2664_v1  ;;  %2310 = vmatprep.mubr.msk.f32.mxu1 %vm2663_vm0, %v2664_v1 }
  0xc7   : > { %2104 = vmatmul.mubr.msk.f32.gmra.mrb[48].mxu0 %vm324_vm1, %v203_v62  ;;  %2311 = vmatmul.mubr.msk.f32.gmra.mrb[48].mxu1 %vm324_vm1, %v272_v63  ;;  %v233_v63 = vld [vmem:[%s2834_s25 + $0x1b0] sm:$0xff] }
  0xc8   : > { %2106 = vmatprep.mubr.msk.f32.mxu0 %vm2663_vm0, %v2664_v1  ;;  %2313 = vmatprep.mubr.msk.f32.mxu1 %vm2663_vm0, %v2664_v1 }
  0xcb   : > { %2107 = vmatmul.mubr.msk.f32.gmra.mrb[50].mxu0 %vm324_vm1, %v204_v0  ;;  %2314 = vmatmul.mubr.msk.f32.gmra.mrb[50].mxu1 %vm324_vm1, %v273_v2  ;;  %v302_v0 = vld [vmem:[%s2834_s25 + $0x3d8] sm:$0xff] }
  0xcc   : > { %2109 = vmatprep.mubr.msk.f32.mxu0 %vm2663_vm0, %v2664_v1  ;;  %2316 = vmatprep.mubr.msk.f32.mxu1 %vm2663_vm0, %v2664_v1 }
  0xcf   : > { %2110 = vmatmul.mubr.msk.f32.gmra.mrb[52].mxu0 %vm324_vm1, %v205_v3  ;;  %2317 = vmatmul.mubr.msk.f32.gmra.mrb[52].mxu1 %vm324_vm1, %v274_v4 }
  0xd0   : > { %2112 = vmatprep.mubr.msk.f32.mxu0 %vm2663_vm0, %v2664_v1  ;;  %2319 = vmatprep.mubr.msk.f32.mxu1 %vm2663_vm0, %v2664_v1 }
  0xd3   : > { %2113 = vmatmul.mubr.msk.f32.gmra.mrb[54].mxu0 %vm324_vm1, %v206_v5  ;;  %2320 = vmatmul.mubr.msk.f32.gmra.mrb[54].mxu1 %vm324_vm1, %v275_v6  ;;  %v234_v6 = vld [vmem:[%s2834_s25 + $0x1b8] sm:$0xff] }
  0xd4   : > { %2115 = vmatprep.mubr.msk.f32.mxu0 %vm2663_vm0, %v2664_v1  ;;  %2322 = vmatprep.mubr.msk.f32.mxu1 %vm2663_vm0, %v2664_v1 }
  0xd7   : > { %2116 = vmatmul.mubr.msk.f32.gmra.mrb[56].mxu0 %vm324_vm1, %v207_v7  ;;  %2323 = vmatmul.mubr.msk.f32.gmra.mrb[56].mxu1 %vm324_vm1, %v276_v8  ;;  %v303_v7 = vld [vmem:[%s2834_s25 + $0x3e0] sm:$0xff] }
  0xd8   : > { %2118 = vmatprep.mubr.msk.f32.mxu0 %vm2663_vm0, %v2664_v1  ;;  %2325 = vmatprep.mubr.msk.f32.mxu1 %vm2663_vm0, %v2664_v1 }
  0xdb   : > { %2119 = vmatmul.mubr.msk.f32.gmra.mrb[58].mxu0 %vm324_vm1, %v208_v9  ;;  %2326 = vmatmul.mubr.msk.f32.gmra.mrb[58].mxu1 %vm324_vm1, %v277_v10 }
  0xdc   : > { %2121 = vmatprep.mubr.msk.f32.mxu0 %vm2663_vm0, %v2664_v1  ;;  %2328 = vmatprep.mubr.msk.f32.mxu1 %vm2663_vm0, %v2664_v1 }
  0xdf   : > { %2122 = vmatmul.mubr.msk.f32.gmra.mrb[60].mxu0 %vm324_vm1, %v209_v11  ;;  %2329 = vmatmul.mubr.msk.f32.gmra.mrb[60].mxu1 %vm324_vm1, %v278_v12  ;;  %v235_v12 = vld [vmem:[%s2834_s25 + $0x1c0] sm:$0xff] }
  0xe0   : > { %2124 = vmatprep.mubr.msk.f32.mxu0 %vm2663_vm0, %v2664_v1  ;;  %2331 = vmatprep.mubr.msk.f32.mxu1 %vm2663_vm0, %v2664_v1 }
  0xe3   : > { %2125 = vmatmul.mubr.msk.f32.gmra.mrb[62].mxu0 %vm324_vm1, %v210_v13  ;;  %2332 = vmatmul.mubr.msk.f32.gmra.mrb[62].mxu1 %vm324_vm1, %v279_v14  ;;  %v304_v13 = vld [vmem:[%s2834_s25 + $0x3e8] sm:$0xff] }
  0xe4   : > { %2127 = vmatprep.mubr.msk.f32.mxu0 %vm2663_vm0, %v2664_v1  ;;  %2334 = vmatprep.mubr.msk.f32.mxu1 %vm2663_vm0, %v2664_v1 }
  0xe7   : > { %2128 = vmatmul.mubr.msk.f32.gmra.mrb[64].mxu0 %vm324_vm1, %v211_v15  ;;  %2335 = vmatmul.mubr.msk.f32.gmra.mrb[64].mxu1 %vm324_vm1, %v280_v16 }
  0xe8   : > { %2130 = vmatprep.mubr.msk.f32.mxu0 %vm2663_vm0, %v2664_v1  ;;  %2337 = vmatprep.mubr.msk.f32.mxu1 %vm2663_vm0, %v2664_v1 }
  0xeb   : > { %2131 = vmatmul.mubr.msk.f32.gmra.mrb[66].mxu0 %vm324_vm1, %v212_v17  ;;  %2338 = vmatmul.mubr.msk.f32.gmra.mrb[66].mxu1 %vm324_vm1, %v281_v18  ;;  %v236_v18 = vld [vmem:[%s2834_s25 + $0x1c8] sm:$0xff] }
  0xec   : > { %2133 = vmatprep.mubr.msk.f32.mxu0 %vm2663_vm0, %v2664_v1  ;;  %2340 = vmatprep.mubr.msk.f32.mxu1 %vm2663_vm0, %v2664_v1 }
  0xef   : > { %2134 = vmatmul.mubr.msk.f32.gmra.mrb[68].mxu0 %vm324_vm1, %v213_v19  ;;  %2341 = vmatmul.mubr.msk.f32.gmra.mrb[68].mxu1 %vm324_vm1, %v282_v20  ;;  %v305_v19 = vld [vmem:[%s2834_s25 + $0x3f0] sm:$0xff] }
  0xf0   : > { %2136 = vmatprep.mubr.msk.f32.mxu0 %vm2663_vm0, %v2664_v1  ;;  %2343 = vmatprep.mubr.msk.f32.mxu1 %vm2663_vm0, %v2664_v1 }
  0xf3   : > { %2137 = vmatmul.mubr.msk.f32.gmra.mrb[70].mxu0 %vm324_vm1, %v214_v21  ;;  %2344 = vmatmul.mubr.msk.f32.gmra.mrb[70].mxu1 %vm324_vm1, %v283_v22 }
  0xf4   : > { %2139 = vmatprep.mubr.msk.f32.mxu0 %vm2663_vm0, %v2664_v1  ;;  %2346 = vmatprep.mubr.msk.f32.mxu1 %vm2663_vm0, %v2664_v1 }
  0xf7   : > { %2140 = vmatmul.mubr.msk.f32.gmra.mrb[72].mxu0 %vm324_vm1, %v215_v23  ;;  %2347 = vmatmul.mubr.msk.f32.gmra.mrb[72].mxu1 %vm324_vm1, %v284_v24  ;;  %v237_v24 = vld [vmem:[%s2834_s25 + $0x1d0] sm:$0xff] }
  0xf8   : > { %2142 = vmatprep.mubr.msk.f32.mxu0 %vm2663_vm0, %v2664_v1  ;;  %2349 = vmatprep.mubr.msk.f32.mxu1 %vm2663_vm0, %v2664_v1 }
  0xfb   : > { %2143 = vmatmul.mubr.msk.f32.gmra.mrb[74].mxu0 %vm324_vm1, %v216_v25  ;;  %2350 = vmatmul.mubr.msk.f32.gmra.mrb[74].mxu1 %vm324_vm1, %v285_v26  ;;  %v306_v25 = vld [vmem:[%s2834_s25 + $0x3f8] sm:$0xff] }
  0xfc   : > { %2145 = vmatprep.mubr.msk.f32.mxu0 %vm2663_vm0, %v2664_v1  ;;  %2352 = vmatprep.mubr.msk.f32.mxu1 %vm2663_vm0, %v2664_v1 }
  0xff   : > { %2146 = vmatmul.mubr.msk.f32.gmra.mrb[76].mxu0 %vm324_vm1, %v217_v27  ;;  %2353 = vmatmul.mubr.msk.f32.gmra.mrb[76].mxu1 %vm324_vm1, %v286_v28 }
 0x100   : > { %2148 = vmatprep.mubr.msk.f32.mxu0 %vm2663_vm0, %v2664_v1  ;;  %2355 = vmatprep.mubr.msk.f32.mxu1 %vm2663_vm0, %v2664_v1 }
 0x103   : > { %2149 = vmatmul.mubr.msk.f32.gmra.mrb[78].mxu0 %vm324_vm1, %v218_v29  ;;  %2356 = vmatmul.mubr.msk.f32.gmra.mrb[78].mxu1 %vm324_vm1, %v287_v30  ;;  %v238_v30 = vld [vmem:[%s2834_s25 + $0x1d8] sm:$0xff] }
 0x104   : > { %2151 = vmatprep.mubr.msk.f32.mxu0 %vm2663_vm0, %v2664_v1  ;;  %2358 = vmatprep.mubr.msk.f32.mxu1 %vm2663_vm0, %v2664_v1 }
 0x107   : > { %2152 = vmatmul.mubr.msk.f32.gmra.mrb[80].mxu0 %vm324_vm1, %v219_v31  ;;  %2359 = vmatmul.mubr.msk.f32.gmra.mrb[80].mxu1 %vm324_vm1, %v288_v32  ;;  %v307_v31 = vld [vmem:[%s2834_s25 + $0x400] sm:$0xff] }
 0x108   : > { %2154 = vmatprep.mubr.msk.f32.mxu0 %vm2663_vm0, %v2664_v1  ;;  %2361 = vmatprep.mubr.msk.f32.mxu1 %vm2663_vm0, %v2664_v1 }
 0x10b   : > { %2155 = vmatmul.mubr.msk.f32.gmra.mrb[82].mxu0 %vm324_vm1, %v220_v33  ;;  %2362 = vmatmul.mubr.msk.f32.gmra.mrb[82].mxu1 %vm324_vm1, %v289_v34 }
 0x10c   : > { %2157 = vmatprep.mubr.msk.f32.mxu0 %vm2663_vm0, %v2664_v1  ;;  %2364 = vmatprep.mubr.msk.f32.mxu1 %vm2663_vm0, %v2664_v1 }
 0x10f   : > { %2158 = vmatmul.mubr.msk.f32.gmra.mrb[84].mxu0 %vm324_vm1, %v221_v35  ;;  %2365 = vmatmul.mubr.msk.f32.gmra.mrb[84].mxu1 %vm324_vm1, %v290_v36  ;;  %v239_v36 = vld [vmem:[%s2834_s25 + $0x1e0] sm:$0xff] }
 0x110   : > { %2160 = vmatprep.mubr.msk.f32.mxu0 %vm2663_vm0, %v2664_v1  ;;  %2367 = vmatprep.mubr.msk.f32.mxu1 %vm2663_vm0, %v2664_v1 }
 0x113   : > { %2161 = vmatmul.mubr.msk.f32.gmra.mrb[86].mxu0 %vm324_vm1, %v222_v37  ;;  %2368 = vmatmul.mubr.msk.f32.gmra.mrb[86].mxu1 %vm324_vm1, %v291_v38  ;;  %v308_v37 = vld [vmem:[%s2834_s25 + $0x408] sm:$0xff] }
 0x114   : > { %2163 = vmatprep.mubr.msk.f32.mxu0 %vm2663_vm0, %v2664_v1  ;;  %2370 = vmatprep.mubr.msk.f32.mxu1 %vm2663_vm0, %v2664_v1 }
 0x117   : > { %2164 = vmatmul.mubr.msk.f32.gmra.mrb[88].mxu0 %vm324_vm1, %v223_v39  ;;  %2371 = vmatmul.mubr.msk.f32.gmra.mrb[88].mxu1 %vm324_vm1, %v292_v40 }
 0x118   : > { %2166 = vmatprep.mubr.msk.f32.mxu0 %vm2663_vm0, %v2664_v1  ;;  %2373 = vmatprep.mubr.msk.f32.mxu1 %vm2663_vm0, %v2664_v1 }
 0x11b   : > { %2167 = vmatmul.mubr.msk.f32.gmra.mrb[90].mxu0 %vm324_vm1, %v224_v41  ;;  %2374 = vmatmul.mubr.msk.f32.gmra.mrb[90].mxu1 %vm324_vm1, %v293_v42  ;;  %v240_v42 = vld [vmem:[%s2834_s25 + $0x1e8] sm:$0xff] }
 0x11c   : > { %2169 = vmatprep.mubr.msk.f32.mxu0 %vm2663_vm0, %v2664_v1  ;;  %2376 = vmatprep.mubr.msk.f32.mxu1 %vm2663_vm0, %v2664_v1 }
 0x11f   : > { %2170 = vmatmul.mubr.msk.f32.gmra.mrb[92].mxu0 %vm324_vm1, %v225_v43  ;;  %2377 = vmatmul.mubr.msk.f32.gmra.mrb[92].mxu1 %vm324_vm1, %v294_v44  ;;  %v309_v43 = vld [vmem:[%s2834_s25 + $0x410] sm:$0xff] }
 0x120   : > { %2172 = vmatprep.mubr.msk.f32.mxu0 %vm2663_vm0, %v2664_v1  ;;  %2379 = vmatprep.mubr.msk.f32.mxu1 %vm2663_vm0, %v2664_v1 }
 0x123   : > { %2173 = vmatmul.mubr.msk.f32.gmra.mrb[94].mxu0 %vm324_vm1, %v226_v45  ;;  %2380 = vmatmul.mubr.msk.f32.gmra.mrb[94].mxu1 %vm324_vm1, %v295_v46 }
 0x124   : > { %2175 = vmatprep.mubr.msk.f32.mxu0 %vm2663_vm0, %v2664_v1  ;;  %2382 = vmatprep.mubr.msk.f32.mxu1 %vm2663_vm0, %v2664_v1 }
 0x127   : > { %2176 = vmatmul.mubr.msk.f32.gmra.mrb[96].mxu0 %vm324_vm1, %v227_v47  ;;  %2383 = vmatmul.mubr.msk.f32.gmra.mrb[96].mxu1 %vm324_vm1, %v296_v48  ;;  %v241_v48 = vld [vmem:[%s2834_s25 + $0x1f0] sm:$0xff] }
 0x128   : > { %2178 = vmatprep.mubr.msk.f32.mxu0 %vm2663_vm0, %v2664_v1  ;;  %2385 = vmatprep.mubr.msk.f32.mxu1 %vm2663_vm0, %v2664_v1 }
 0x12b   : > { %2179 = vmatmul.mubr.msk.f32.gmra.mrb[98].mxu0 %vm324_vm1, %v228_v49  ;;  %2386 = vmatmul.mubr.msk.f32.gmra.mrb[98].mxu1 %vm324_vm1, %v297_v50  ;;  %v310_v49 = vld [vmem:[%s2834_s25 + $0x418] sm:$0xff] }
 0x12c   : > { %2181 = vmatprep.mubr.msk.f32.mxu0 %vm2663_vm0, %v2664_v1  ;;  %2388 = vmatprep.mubr.msk.f32.mxu1 %vm2663_vm0, %v2664_v1 }
 0x12f   : > { %2182 = vmatmul.mubr.msk.f32.gmra.mrb[100].mxu0 %vm324_vm1, %v229_v51  ;;  %2389 = vmatmul.mubr.msk.f32.gmra.mrb[100].mxu1 %vm324_vm1, %v298_v52 }
 0x130   : > { %2184 = vmatprep.mubr.msk.f32.mxu0 %vm2663_vm0, %v2664_v1  ;;  %2391 = vmatprep.mubr.msk.f32.mxu1 %vm2663_vm0, %v2664_v1 }
 0x133   : > { %2185 = vmatmul.mubr.msk.f32.gmra.mrb[102].mxu0 %vm324_vm1, %v230_v53  ;;  %2392 = vmatmul.mubr.msk.f32.gmra.mrb[102].mxu1 %vm324_vm1, %v299_v54  ;;  %v242_v54 = vld [vmem:[%s2834_s25 + $0x1f8] sm:$0xff] }
 0x134   : > { %2187 = vmatprep.mubr.msk.f32.mxu0 %vm2663_vm0, %v2664_v1  ;;  %2394 = vmatprep.mubr.msk.f32.mxu1 %vm2663_vm0, %v2664_v1 }
 0x137   : > { %2188 = vmatmul.mubr.msk.f32.gmra.mrb[104].mxu0 %vm324_vm1, %v231_v55  ;;  %2395 = vmatmul.mubr.msk.f32.gmra.mrb[104].mxu1 %vm324_vm1, %v300_v56  ;;  %v311_v55 = vld [vmem:[%s2834_s25 + $0x420] sm:$0xff] }
 0x138   : > { %2190 = vmatprep.mubr.msk.f32.mxu0 %vm2663_vm0, %v2664_v1  ;;  %2397 = vmatprep.mubr.msk.f32.mxu1 %vm2663_vm0, %v2664_v1 }
 0x13a   : > { %v802_v59 = vpop.f32.mrb[0].mxu0  ;;  %v1147_v60 = vpop.f32.mrb[0].mxu1 }
 0x13b   : > { %1487 = vst.msk [vmem:[%s3276_s15] sm:$0xff] %vm1486_vm2, %v802_v59  ;;  %v2033_v61 = vpop.f32.mrb[1].mxu0  ;;  %2191 = vmatmul.mubr.msk.f32.gmra.mrb[106].mxu0 %vm324_vm1, %v232_v57  ;;  %1556 = vst.msk [vmem:[%s3276_s15 + $0x228] sm:$0xff] %vm1486_vm2, %v1147_v60  ;;  %v2240_v62 = vpop.f32.mrb[1].mxu1  ;;  %2398 = vmatmul.mubr.msk.f32.gmra.mrb[106].mxu1 %vm324_vm1, %v301_v58  ;;  %v243_v60 = vld [vmem:[%s2834_s25 + $0x200] sm:$0xff] }
 0x13c   : > { %2193 = vmatprep.mubr.msk.f32.mxu0 %vm2663_vm0, %v2664_v1  ;;  %2400 = vmatprep.mubr.msk.f32.mxu1 %vm2663_vm0, %v2664_v1  ;;  %v312_v61 = vld [vmem:[%s2834_s25 + $0x428] sm:$0xff] }
 0x13e   : > { %v807_v2 = vpop.f32.mrb[2].mxu0  ;;  %v1152_v3 = vpop.f32.mrb[2].mxu1 }
 0x13f   : > { %1488 = vst.msk [vmem:[%s3276_s15 + $0x8] sm:$0xff] %vm1486_vm2, %v807_v2  ;;  %v2036_v4 = vpop.f32.mrb[3].mxu0  ;;  %2194 = vmatmul.mubr.msk.f32.gmra.mrb[108].mxu0 %vm324_vm1, %v233_v63  ;;  %1557 = vst.msk [vmem:[%s3276_s15 + $0x230] sm:$0xff] %vm1486_vm2, %v1152_v3  ;;  %v2243_v5 = vpop.f32.mrb[3].mxu1  ;;  %2401 = vmatmul.mubr.msk.f32.gmra.mrb[108].mxu1 %vm324_vm1, %v302_v0  ;;  %v244_v3 = vld [vmem:[%s2834_s25 + $0x208] sm:$0xff] }
 0x140   : > { %2196 = vmatprep.mubr.msk.f32.mxu0 %vm2663_vm0, %v2664_v1  ;;  %2403 = vmatprep.mubr.msk.f32.mxu1 %vm2663_vm0, %v2664_v1  ;;  %v313_v4 = vld [vmem:[%s2834_s25 + $0x430] sm:$0xff] }
 0x142   : > { %v812_v8 = vpop.f32.mrb[4].mxu0  ;;  %v1157_v9 = vpop.f32.mrb[4].mxu1 }
 0x143   : > { %1489 = vst.msk [vmem:[%s3276_s15 + $0x10] sm:$0xff] %vm1486_vm2, %v812_v8  ;;  %v2039_v10 = vpop.f32.mrb[5].mxu0  ;;  %2197 = vmatmul.mubr.msk.f32.gmra.mrb[110].mxu0 %vm324_vm1, %v234_v6  ;;  %1558 = vst.msk [vmem:[%s3276_s15 + $0x238] sm:$0xff] %vm1486_vm2, %v1157_v9  ;;  %v2246_v11 = vpop.f32.mrb[5].mxu1  ;;  %2404 = vmatmul.mubr.msk.f32.gmra.mrb[110].mxu1 %vm324_vm1, %v303_v7  ;;  %v245_v9 = vld [vmem:[%s2834_s25 + $0x210] sm:$0xff] }
 0x144   : > { %2199 = vmatprep.mubr.msk.f32.mxu0 %vm2663_vm0, %v2664_v1  ;;  %2406 = vmatprep.mubr.msk.f32.mxu1 %vm2663_vm0, %v2664_v1  ;;  %v314_v10 = vld [vmem:[%s2834_s25 + $0x438] sm:$0xff] }
 0x146   : > { %v817_v14 = vpop.f32.mrb[6].mxu0  ;;  %v1162_v15 = vpop.f32.mrb[6].mxu1 }
 0x147   : > { %1490 = vst.msk [vmem:[%s3276_s15 + $0x18] sm:$0xff] %vm1486_vm2, %v817_v14  ;;  %v2042_v16 = vpop.f32.mrb[7].mxu0  ;;  %2200 = vmatmul.mubr.msk.f32.gmra.mrb[112].mxu0 %vm324_vm1, %v235_v12  ;;  %1559 = vst.msk [vmem:[%s3276_s15 + $0x240] sm:$0xff] %vm1486_vm2, %v1162_v15  ;;  %v2249_v17 = vpop.f32.mrb[7].mxu1  ;;  %2407 = vmatmul.mubr.msk.f32.gmra.mrb[112].mxu1 %vm324_vm1, %v304_v13  ;;  %v246_v15 = vld [vmem:[%s2834_s25 + $0x218] sm:$0xff] }
 0x148   : > { %2202 = vmatprep.mubr.msk.f32.mxu0 %vm2663_vm0, %v2664_v1  ;;  %2409 = vmatprep.mubr.msk.f32.mxu1 %vm2663_vm0, %v2664_v1  ;;  %v315_v16 = vld [vmem:[%s2834_s25 + $0x440] sm:$0xff] }
 0x14a   : > { %v822_v20 = vpop.f32.mrb[8].mxu0  ;;  %v1167_v21 = vpop.f32.mrb[8].mxu1 }
 0x14b   : > { %1491 = vst.msk [vmem:[%s3276_s15 + $0x20] sm:$0xff] %vm1486_vm2, %v822_v20  ;;  %v2045_v22 = vpop.f32.mrb[9].mxu0  ;;  %2203 = vmatmul.mubr.msk.f32.gmra.mrb[114].mxu0 %vm324_vm1, %v236_v18  ;;  %1560 = vst.msk [vmem:[%s3276_s15 + $0x248] sm:$0xff] %vm1486_vm2, %v1167_v21  ;;  %v2252_v23 = vpop.f32.mrb[9].mxu1  ;;  %2410 = vmatmul.mubr.msk.f32.gmra.mrb[114].mxu1 %vm324_vm1, %v305_v19  ;;  %v247_v21 = vld [vmem:[%s2834_s25 + $0x220] sm:$0xff] }
 0x14c   : > { %2205 = vmatprep.mubr.msk.f32.mxu0 %vm2663_vm0, %v2664_v1  ;;  %2412 = vmatprep.mubr.msk.f32.mxu1 %vm2663_vm0, %v2664_v1 }
 0x14e   : > { %v827_v26 = vpop.f32.mrb[10].mxu0  ;;  %v1172_v27 = vpop.f32.mrb[10].mxu1 }
 0x14f   : > { %1492 = vst.msk [vmem:[%s3276_s15 + $0x28] sm:$0xff] %vm1486_vm2, %v827_v26  ;;  %v2048_v28 = vpop.f32.mrb[11].mxu0  ;;  %2206 = vmatmul.mubr.msk.f32.gmra.mrb[116].mxu0 %vm324_vm1, %v237_v24  ;;  %1561 = vst.msk [vmem:[%s3276_s15 + $0x250] sm:$0xff] %vm1486_vm2, %v1172_v27  ;;  %v2255_v29 = vpop.f32.mrb[11].mxu1  ;;  %2413 = vmatmul.mubr.msk.f32.gmra.mrb[116].mxu1 %vm324_vm1, %v306_v25 }
 0x150   : > { %2208 = vmatprep.mubr.msk.f32.mxu0 %vm2663_vm0, %v2664_v1  ;;  %2415 = vmatprep.mubr.msk.f32.mxu1 %vm2663_vm0, %v2664_v1 }
 0x152   : > { %v832_v32 = vpop.f32.mrb[12].mxu0  ;;  %v1177_v33 = vpop.f32.mrb[12].mxu1 }
 0x153   : > { %1493 = vst.msk [vmem:[%s3276_s15 + $0x30] sm:$0xff] %vm1486_vm2, %v832_v32  ;;  %v2051_v34 = vpop.f32.mrb[13].mxu0  ;;  %2209 = vmatmul.mubr.msk.f32.gmra.mrb[118].mxu0 %vm324_vm1, %v238_v30  ;;  %1562 = vst.msk [vmem:[%s3276_s15 + $0x258] sm:$0xff] %vm1486_vm2, %v1177_v33  ;;  %v2258_v35 = vpop.f32.mrb[13].mxu1  ;;  %2416 = vmatmul.mubr.msk.f32.gmra.mrb[118].mxu1 %vm324_vm1, %v307_v31 }
 0x154   : > { %2211 = vmatprep.mubr.msk.f32.mxu0 %vm2663_vm0, %v2664_v1  ;;  %2418 = vmatprep.mubr.msk.f32.mxu1 %vm2663_vm0, %v2664_v1 }
 0x156   : > { %v837_v38 = vpop.f32.mrb[14].mxu0  ;;  %v1182_v39 = vpop.f32.mrb[14].mxu1 }
 0x157   : > { %1494 = vst.msk [vmem:[%s3276_s15 + $0x38] sm:$0xff] %vm1486_vm2, %v837_v38  ;;  %v2054_v40 = vpop.f32.mrb[15].mxu0  ;;  %2212 = vmatmul.mubr.msk.f32.gmra.mrb[120].mxu0 %vm324_vm1, %v239_v36  ;;  %1563 = vst.msk [vmem:[%s3276_s15 + $0x260] sm:$0xff] %vm1486_vm2, %v1182_v39  ;;  %v2261_v41 = vpop.f32.mrb[15].mxu1  ;;  %2419 = vmatmul.mubr.msk.f32.gmra.mrb[120].mxu1 %vm324_vm1, %v308_v37 }
 0x158   : > { %2214 = vmatprep.mubr.msk.f32.mxu0 %vm2663_vm0, %v2664_v1  ;;  %2421 = vmatprep.mubr.msk.f32.mxu1 %vm2663_vm0, %v2664_v1 }
 0x15a   : > { %v842_v44 = vpop.f32.mrb[16].mxu0  ;;  %v1187_v45 = vpop.f32.mrb[16].mxu1 }
 0x15b   : > { %1495 = vst.msk [vmem:[%s3276_s15 + $0x40] sm:$0xff] %vm1486_vm2, %v842_v44  ;;  %v2057_v46 = vpop.f32.mrb[17].mxu0  ;;  %2215 = vmatmul.mubr.msk.f32.gmra.mrb[122].mxu0 %vm324_vm1, %v240_v42  ;;  %1564 = vst.msk [vmem:[%s3276_s15 + $0x268] sm:$0xff] %vm1486_vm2, %v1187_v45  ;;  %v2264_v47 = vpop.f32.mrb[17].mxu1  ;;  %2422 = vmatmul.mubr.msk.f32.gmra.mrb[122].mxu1 %vm324_vm1, %v309_v43 }
 0x15c   : > { %2217 = vmatprep.mubr.msk.f32.mxu0 %vm2663_vm0, %v2664_v1  ;;  %2424 = vmatprep.mubr.msk.f32.mxu1 %vm2663_vm0, %v2664_v1 }
 0x15e   : > { %v847_v50 = vpop.f32.mrb[18].mxu0  ;;  %v1192_v51 = vpop.f32.mrb[18].mxu1 }
 0x15f   : > { %1496 = vst.msk [vmem:[%s3276_s15 + $0x48] sm:$0xff] %vm1486_vm2, %v847_v50  ;;  %v2060_v52 = vpop.f32.mrb[19].mxu0  ;;  %2218 = vmatmul.mubr.msk.f32.gmra.mrb[124].mxu0 %vm324_vm1, %v241_v48  ;;  %1565 = vst.msk [vmem:[%s3276_s15 + $0x270] sm:$0xff] %vm1486_vm2, %v1192_v51  ;;  %v2267_v53 = vpop.f32.mrb[19].mxu1  ;;  %2425 = vmatmul.mubr.msk.f32.gmra.mrb[124].mxu1 %vm324_vm1, %v310_v49 }
 0x160   : > { %2220 = vmatprep.mubr.msk.f32.mxu0 %vm2663_vm0, %v2664_v1  ;;  %2427 = vmatprep.mubr.msk.f32.mxu1 %vm2663_vm0, %v2664_v1 }
 0x162   : > { %v852_v56 = vpop.f32.mrb[20].mxu0  ;;  %v1197_v57 = vpop.f32.mrb[20].mxu1 }
 0x163   : > { %1497 = vst.msk [vmem:[%s3276_s15 + $0x50] sm:$0xff] %vm1486_vm2, %v852_v56  ;;  %v2063_v58 = vpop.f32.mrb[21].mxu0  ;;  %2221 = vmatmul.mubr.msk.f32.gmra.mrb[126].mxu0 %vm324_vm1, %v242_v54  ;;  %1566 = vst.msk [vmem:[%s3276_s15 + $0x278] sm:$0xff] %vm1486_vm2, %v1197_v57  ;;  %v2270_v59 = vpop.f32.mrb[21].mxu1  ;;  %2428 = vmatmul.mubr.msk.f32.gmra.mrb[126].mxu1 %vm324_vm1, %v311_v55 }
 0x164   : > { %2223 = vmatprep.mubr.msk.f32.mxu0 %vm2663_vm0, %v2664_v1  ;;  %2430 = vmatprep.mubr.msk.f32.mxu1 %vm2663_vm0, %v2664_v1 }
 0x166   : > { %v857_v62 = vpop.f32.mrb[22].mxu0  ;;  %v1202_v63 = vpop.f32.mrb[22].mxu1 }
 0x167   : > { %1498 = vst.msk [vmem:[%s3276_s15 + $0x58] sm:$0xff] %vm1486_vm2, %v857_v62  ;;  %v2066_v0 = vpop.f32.mrb[23].mxu0  ;;  %2224 = vmatmul.mubr.msk.f32.gmra.mrb[128].mxu0 %vm324_vm1, %v243_v60  ;;  %1567 = vst.msk [vmem:[%s3276_s15 + $0x280] sm:$0xff] %vm1486_vm2, %v1202_v63  ;;  %v2273_v2 = vpop.f32.mrb[23].mxu1  ;;  %2431 = vmatmul.mubr.msk.f32.gmra.mrb[128].mxu1 %vm324_vm1, %v312_v61 }
 0x168   : > { %2226 = vmatprep.mubr.msk.f32.mxu0 %vm2663_vm0, %v2664_v1  ;;  %2433 = vmatprep.mubr.msk.f32.mxu1 %vm2663_vm0, %v2664_v1 }
 0x16a   : > { %v862_v5 = vpop.f32.mrb[24].mxu0  ;;  %v1207_v6 = vpop.f32.mrb[24].mxu1 }
 0x16b   : > { %1499 = vst.msk [vmem:[%s3276_s15 + $0x60] sm:$0xff] %vm1486_vm2, %v862_v5  ;;  %v2069_v7 = vpop.f32.mrb[25].mxu0  ;;  %2227 = vmatmul.mubr.msk.f32.gmra.mrb[130].mxu0 %vm324_vm1, %v244_v3  ;;  %1568 = vst.msk [vmem:[%s3276_s15 + $0x288] sm:$0xff] %vm1486_vm2, %v1207_v6  ;;  %v2276_v8 = vpop.f32.mrb[25].mxu1  ;;  %2434 = vmatmul.mubr.msk.f32.gmra.mrb[130].mxu1 %vm324_vm1, %v313_v4 }
 0x16c   : > { %2229 = vmatprep.mubr.msk.f32.mxu0 %vm2663_vm0, %v2664_v1  ;;  %2436 = vmatprep.mubr.msk.f32.mxu1 %vm2663_vm0, %v2664_v1 }
 0x16e   : > { %v867_v11 = vpop.f32.mrb[26].mxu0  ;;  %v1212_v12 = vpop.f32.mrb[26].mxu1 }
 0x16f   : > { %1500 = vst.msk [vmem:[%s3276_s15 + $0x68] sm:$0xff] %vm1486_vm2, %v867_v11  ;;  %v2072_v13 = vpop.f32.mrb[27].mxu0  ;;  %2230 = vmatmul.mubr.msk.f32.gmra.mrb[132].mxu0 %vm324_vm1, %v245_v9  ;;  %1569 = vst.msk [vmem:[%s3276_s15 + $0x290] sm:$0xff] %vm1486_vm2, %v1212_v12  ;;  %v2279_v14 = vpop.f32.mrb[27].mxu1  ;;  %2437 = vmatmul.mubr.msk.f32.gmra.mrb[132].mxu1 %vm324_vm1, %v314_v10 }
 0x170   : > { %2232 = vmatprep.mubr.msk.f32.mxu0 %vm2663_vm0, %v2664_v1  ;;  %2439 = vmatprep.mubr.msk.f32.mxu1 %vm2663_vm0, %v2664_v1 }
 0x172   : > { %v872_v17 = vpop.f32.mrb[28].mxu0  ;;  %v1217_v18 = vpop.f32.mrb[28].mxu1 }
 0x173   : > { %1501 = vst.msk [vmem:[%s3276_s15 + $0x70] sm:$0xff] %vm1486_vm2, %v872_v17  ;;  %v2075_v19 = vpop.f32.mrb[29].mxu0  ;;  %2233 = vmatmul.mubr.msk.f32.gmra.mrb[134].mxu0 %vm324_vm1, %v246_v15  ;;  %1570 = vst.msk [vmem:[%s3276_s15 + $0x298] sm:$0xff] %vm1486_vm2, %v1217_v18  ;;  %v2282_v20 = vpop.f32.mrb[29].mxu1  ;;  %2440 = vmatmul.mubr.msk.f32.gmra.mrb[134].mxu1 %vm324_vm1, %v315_v16 }
 0x174   : > { %2235 = vmatprep.mubr.msk.f32.mxu0 %vm2663_vm0, %v2664_v1 }
 0x176   : > { %v877_v22 = vpop.f32.mrb[30].mxu0  ;;  %v1222_v23 = vpop.f32.mrb[30].mxu1 }
 0x177   : > { %1502 = vst.msk [vmem:[%s3276_s15 + $0x78] sm:$0xff] %vm1486_vm2, %v877_v22  ;;  %v2078_v24 = vpop.f32.mrb[31].mxu0  ;;  %2236 = vmatmul.mubr.msk.f32.gmra.mrb[136].mxu0 %vm324_vm1, %v247_v21  ;;  %1571 = vst.msk [vmem:[%s3276_s15 + $0x2a0] sm:$0xff] %vm1486_vm2, %v1222_v23  ;;  %v2285_v25 = vpop.f32.mrb[31].mxu1 }
 0x17a   : > { %v882_v26 = vpop.f32.mrb[32].mxu0  ;;  %v1227_v27 = vpop.f32.mrb[32].mxu1 }
 0x17b   : > { %1503 = vst.msk [vmem:[%s3276_s15 + $0x80] sm:$0xff] %vm1486_vm2, %v882_v26  ;;  %v2081_v1 = vpop.f32.mrb[33].mxu0  ;;  %1572 = vst.msk [vmem:[%s3276_s15 + $0x2a8] sm:$0xff] %vm1486_vm2, %v1227_v27  ;;  %v2288_v28 = vpop.f32.mrb[33].mxu1 }
 0x17e   : > { %v887_v29 = vpop.f32.mrb[34].mxu0  ;;  %v1232_v30 = vpop.f32.mrb[34].mxu1 }
 0x17f   : > { %1504 = vst.msk [vmem:[%s3276_s15 + $0x88] sm:$0xff] %vm1486_vm2, %v887_v29  ;;  %v2084_v31 = vpop.f32.mrb[35].mxu0  ;;  %1573 = vst.msk [vmem:[%s3276_s15 + $0x2b0] sm:$0xff] %vm1486_vm2, %v1232_v30  ;;  %v2291_v32 = vpop.f32.mrb[35].mxu1 }
 0x182   : > { %v892_v33 = vpop.f32.mrb[36].mxu0  ;;  %v1237_v34 = vpop.f32.mrb[36].mxu1 }
 0x183   : > { %1505 = vst.msk [vmem:[%s3276_s15 + $0x90] sm:$0xff] %vm1486_vm2, %v892_v33  ;;  %v2087_v35 = vpop.f32.mrb[37].mxu0  ;;  %1574 = vst.msk [vmem:[%s3276_s15 + $0x2b8] sm:$0xff] %vm1486_vm2, %v1237_v34  ;;  %v2294_v36 = vpop.f32.mrb[37].mxu1 }
 0x186   : > { %v897_v37 = vpop.f32.mrb[38].mxu0  ;;  %v1242_v38 = vpop.f32.mrb[38].mxu1 }
 0x187   : > { %1506 = vst.msk [vmem:[%s3276_s15 + $0x98] sm:$0xff] %vm1486_vm2, %v897_v37  ;;  %v2090_v39 = vpop.f32.mrb[39].mxu0  ;;  %1575 = vst.msk [vmem:[%s3276_s15 + $0x2c0] sm:$0xff] %vm1486_vm2, %v1242_v38  ;;  %v2297_v40 = vpop.f32.mrb[39].mxu1 }
 0x18a   : > { %v902_v41 = vpop.f32.mrb[40].mxu0  ;;  %v1247_v42 = vpop.f32.mrb[40].mxu1 }
 0x18b   : > { %1507 = vst.msk [vmem:[%s3276_s15 + $0xa0] sm:$0xff] %vm1486_vm2, %v902_v41  ;;  %v2093_v43 = vpop.f32.mrb[41].mxu0  ;;  %1576 = vst.msk [vmem:[%s3276_s15 + $0x2c8] sm:$0xff] %vm1486_vm2, %v1247_v42  ;;  %v2300_v44 = vpop.f32.mrb[41].mxu1 }
 0x18e   : > { %v907_v45 = vpop.f32.mrb[42].mxu0  ;;  %v1252_v46 = vpop.f32.mrb[42].mxu1 }
 0x18f   : > { %1508 = vst.msk [vmem:[%s3276_s15 + $0xa8] sm:$0xff] %vm1486_vm2, %v907_v45  ;;  %v2096_v47 = vpop.f32.mrb[43].mxu0  ;;  %1577 = vst.msk [vmem:[%s3276_s15 + $0x2d0] sm:$0xff] %vm1486_vm2, %v1252_v46  ;;  %v2303_v48 = vpop.f32.mrb[43].mxu1 }
 0x192   : > { %v912_v49 = vpop.f32.mrb[44].mxu0  ;;  %v1257_v50 = vpop.f32.mrb[44].mxu1 }
 0x193   : > { %1509 = vst.msk [vmem:[%s3276_s15 + $0xb0] sm:$0xff] %vm1486_vm2, %v912_v49  ;;  %v2099_v51 = vpop.f32.mrb[45].mxu0  ;;  %1578 = vst.msk [vmem:[%s3276_s15 + $0x2d8] sm:$0xff] %vm1486_vm2, %v1257_v50  ;;  %v2306_v52 = vpop.f32.mrb[45].mxu1 }
 0x196   : > { %v917_v53 = vpop.f32.mrb[46].mxu0  ;;  %v1262_v54 = vpop.f32.mrb[46].mxu1 }
 0x197   : > { %1510 = vst.msk [vmem:[%s3276_s15 + $0xb8] sm:$0xff] %vm1486_vm2, %v917_v53  ;;  %v2102_v55 = vpop.f32.mrb[47].mxu0  ;;  %1579 = vst.msk [vmem:[%s3276_s15 + $0x2e0] sm:$0xff] %vm1486_vm2, %v1262_v54  ;;  %v2309_v56 = vpop.f32.mrb[47].mxu1 }
 0x19a   : > { %v922_v57 = vpop.f32.mrb[48].mxu0  ;;  %v1267_v58 = vpop.f32.mrb[48].mxu1 }
 0x19b   : > { %1511 = vst.msk [vmem:[%s3276_s15 + $0xc0] sm:$0xff] %vm1486_vm2, %v922_v57  ;;  %v2105_v59 = vpop.f32.mrb[49].mxu0  ;;  %1580 = vst.msk [vmem:[%s3276_s15 + $0x2e8] sm:$0xff] %vm1486_vm2, %v1267_v58  ;;  %v2312_v60 = vpop.f32.mrb[49].mxu1 }
 0x19e   : > { %v927_v61 = vpop.f32.mrb[50].mxu0  ;;  %v1272_v62 = vpop.f32.mrb[50].mxu1 }
 0x19f   : > { %1512 = vst.msk [vmem:[%s3276_s15 + $0xc8] sm:$0xff] %vm1486_vm2, %v927_v61  ;;  %v2108_v63 = vpop.f32.mrb[51].mxu0  ;;  %1581 = vst.msk [vmem:[%s3276_s15 + $0x2f0] sm:$0xff] %vm1486_vm2, %v1272_v62  ;;  %v2315_v0 = vpop.f32.mrb[51].mxu1 }
 0x1a2   : > { %v932_v2 = vpop.f32.mrb[52].mxu0  ;;  %v1277_v3 = vpop.f32.mrb[52].mxu1 }
 0x1a3   : > { %1513 = vst.msk [vmem:[%s3276_s15 + $0xd0] sm:$0xff] %vm1486_vm2, %v932_v2  ;;  %v2111_v4 = vpop.f32.mrb[53].mxu0  ;;  %1582 = vst.msk [vmem:[%s3276_s15 + $0x2f8] sm:$0xff] %vm1486_vm2, %v1277_v3  ;;  %v2318_v5 = vpop.f32.mrb[53].mxu1 }
 0x1a6   : > { %v937_v6 = vpop.f32.mrb[54].mxu0  ;;  %v1282_v7 = vpop.f32.mrb[54].mxu1 }
 0x1a7   : > { %1514 = vst.msk [vmem:[%s3276_s15 + $0xd8] sm:$0xff] %vm1486_vm2, %v937_v6  ;;  %v2114_v8 = vpop.f32.mrb[55].mxu0  ;;  %1583 = vst.msk [vmem:[%s3276_s15 + $0x300] sm:$0xff] %vm1486_vm2, %v1282_v7  ;;  %v2321_v9 = vpop.f32.mrb[55].mxu1 }
 0x1aa   : > { %v942_v10 = vpop.f32.mrb[56].mxu0  ;;  %v1287_v11 = vpop.f32.mrb[56].mxu1 }
 0x1ab   : > { %1515 = vst.msk [vmem:[%s3276_s15 + $0xe0] sm:$0xff] %vm1486_vm2, %v942_v10  ;;  %v2117_v12 = vpop.f32.mrb[57].mxu0  ;;  %1584 = vst.msk [vmem:[%s3276_s15 + $0x308] sm:$0xff] %vm1486_vm2, %v1287_v11  ;;  %v2324_v13 = vpop.f32.mrb[57].mxu1 }
 0x1ae   : > { %v947_v14 = vpop.f32.mrb[58].mxu0  ;;  %v1292_v15 = vpop.f32.mrb[58].mxu1 }
 0x1af   : > { %1516 = vst.msk [vmem:[%s3276_s15 + $0xe8] sm:$0xff] %vm1486_vm2, %v947_v14  ;;  %v2120_v16 = vpop.f32.mrb[59].mxu0  ;;  %1585 = vst.msk [vmem:[%s3276_s15 + $0x310] sm:$0xff] %vm1486_vm2, %v1292_v15  ;;  %v2327_v17 = vpop.f32.mrb[59].mxu1 }
 0x1b2   : > { %v952_v18 = vpop.f32.mrb[60].mxu0  ;;  %v1297_v19 = vpop.f32.mrb[60].mxu1 }
 0x1b3   : > { %1517 = vst.msk [vmem:[%s3276_s15 + $0xf0] sm:$0xff] %vm1486_vm2, %v952_v18  ;;  %v2123_v20 = vpop.f32.mrb[61].mxu0  ;;  %1586 = vst.msk [vmem:[%s3276_s15 + $0x318] sm:$0xff] %vm1486_vm2, %v1297_v19  ;;  %v2330_v21 = vpop.f32.mrb[61].mxu1 }
 0x1b6   : > { %v957_v22 = vpop.f32.mrb[62].mxu0  ;;  %v1302_v23 = vpop.f32.mrb[62].mxu1 }
 0x1b7   : > { %1518 = vst.msk [vmem:[%s3276_s15 + $0xf8] sm:$0xff] %vm1486_vm2, %v957_v22  ;;  %v2126_v24 = vpop.f32.mrb[63].mxu0  ;;  %1587 = vst.msk [vmem:[%s3276_s15 + $0x320] sm:$0xff] %vm1486_vm2, %v1302_v23  ;;  %v2333_v25 = vpop.f32.mrb[63].mxu1 }
 0x1ba   : > { %v962_v26 = vpop.f32.mrb[64].mxu0  ;;  %v1307_v27 = vpop.f32.mrb[64].mxu1 }
 0x1bb   : > { %1519 = vst.msk [vmem:[%s3276_s15 + $0x100] sm:$0xff] %vm1486_vm2, %v962_v26  ;;  %v2129_v1 = vpop.f32.mrb[65].mxu0  ;;  %1588 = vst.msk [vmem:[%s3276_s15 + $0x328] sm:$0xff] %vm1486_vm2, %v1307_v27  ;;  %v2336_v28 = vpop.f32.mrb[65].mxu1 }
 0x1be   : > { %v967_v29 = vpop.f32.mrb[66].mxu0  ;;  %v1312_v30 = vpop.f32.mrb[66].mxu1 }
 0x1bf   : > { %1520 = vst.msk [vmem:[%s3276_s15 + $0x108] sm:$0xff] %vm1486_vm2, %v967_v29  ;;  %v2132_v31 = vpop.f32.mrb[67].mxu0  ;;  %1589 = vst.msk [vmem:[%s3276_s15 + $0x330] sm:$0xff] %vm1486_vm2, %v1312_v30  ;;  %v2339_v32 = vpop.f32.mrb[67].mxu1 }
 0x1c2   : > { %v972_v33 = vpop.f32.mrb[68].mxu0  ;;  %v1317_v34 = vpop.f32.mrb[68].mxu1 }
 0x1c3   : > { %1521 = vst.msk [vmem:[%s3276_s15 + $0x110] sm:$0xff] %vm1486_vm2, %v972_v33  ;;  %v2135_v35 = vpop.f32.mrb[69].mxu0  ;;  %1590 = vst.msk [vmem:[%s3276_s15 + $0x338] sm:$0xff] %vm1486_vm2, %v1317_v34  ;;  %v2342_v36 = vpop.f32.mrb[69].mxu1 }
 0x1c6   : > { %v977_v37 = vpop.f32.mrb[70].mxu0  ;;  %v1322_v38 = vpop.f32.mrb[70].mxu1 }
 0x1c7   : > { %1522 = vst.msk [vmem:[%s3276_s15 + $0x118] sm:$0xff] %vm1486_vm2, %v977_v37  ;;  %v2138_v39 = vpop.f32.mrb[71].mxu0  ;;  %1591 = vst.msk [vmem:[%s3276_s15 + $0x340] sm:$0xff] %vm1486_vm2, %v1322_v38  ;;  %v2345_v40 = vpop.f32.mrb[71].mxu1 }
 0x1ca   : > { %v982_v41 = vpop.f32.mrb[72].mxu0  ;;  %v1327_v42 = vpop.f32.mrb[72].mxu1 }
 0x1cb   : > { %1523 = vst.msk [vmem:[%s3276_s15 + $0x120] sm:$0xff] %vm1486_vm2, %v982_v41  ;;  %v2141_v43 = vpop.f32.mrb[73].mxu0  ;;  %1592 = vst.msk [vmem:[%s3276_s15 + $0x348] sm:$0xff] %vm1486_vm2, %v1327_v42  ;;  %v2348_v44 = vpop.f32.mrb[73].mxu1 }
 0x1ce   : > { %v987_v45 = vpop.f32.mrb[74].mxu0  ;;  %v1332_v46 = vpop.f32.mrb[74].mxu1 }
 0x1cf   : > { %1524 = vst.msk [vmem:[%s3276_s15 + $0x128] sm:$0xff] %vm1486_vm2, %v987_v45  ;;  %v2144_v47 = vpop.f32.mrb[75].mxu0  ;;  %1593 = vst.msk [vmem:[%s3276_s15 + $0x350] sm:$0xff] %vm1486_vm2, %v1332_v46  ;;  %v2351_v48 = vpop.f32.mrb[75].mxu1 }
 0x1d2   : > { %v992_v49 = vpop.f32.mrb[76].mxu0  ;;  %v1337_v50 = vpop.f32.mrb[76].mxu1 }
 0x1d3   : > { %1525 = vst.msk [vmem:[%s3276_s15 + $0x130] sm:$0xff] %vm1486_vm2, %v992_v49  ;;  %v2147_v51 = vpop.f32.mrb[77].mxu0  ;;  %1594 = vst.msk [vmem:[%s3276_s15 + $0x358] sm:$0xff] %vm1486_vm2, %v1337_v50  ;;  %v2354_v52 = vpop.f32.mrb[77].mxu1 }
 0x1d6   : > { %v997_v53 = vpop.f32.mrb[78].mxu0  ;;  %v1342_v54 = vpop.f32.mrb[78].mxu1 }
 0x1d7   : > { %1526 = vst.msk [vmem:[%s3276_s15 + $0x138] sm:$0xff] %vm1486_vm2, %v997_v53  ;;  %v2150_v55 = vpop.f32.mrb[79].mxu0  ;;  %1595 = vst.msk [vmem:[%s3276_s15 + $0x360] sm:$0xff] %vm1486_vm2, %v1342_v54  ;;  %v2357_v56 = vpop.f32.mrb[79].mxu1 }
 0x1da   : > { %v1002_v57 = vpop.f32.mrb[80].mxu0  ;;  %v1347_v58 = vpop.f32.mrb[80].mxu1 }
 0x1db   : > { %1527 = vst.msk [vmem:[%s3276_s15 + $0x140] sm:$0xff] %vm1486_vm2, %v1002_v57  ;;  %v2153_v59 = vpop.f32.mrb[81].mxu0  ;;  %1596 = vst.msk [vmem:[%s3276_s15 + $0x368] sm:$0xff] %vm1486_vm2, %v1347_v58  ;;  %v2360_v60 = vpop.f32.mrb[81].mxu1 }
 0x1de   : > { %v1007_v61 = vpop.f32.mrb[82].mxu0  ;;  %v1352_v62 = vpop.f32.mrb[82].mxu1 }
 0x1df   : > { %1528 = vst.msk [vmem:[%s3276_s15 + $0x148] sm:$0xff] %vm1486_vm2, %v1007_v61  ;;  %v2156_v63 = vpop.f32.mrb[83].mxu0  ;;  %1597 = vst.msk [vmem:[%s3276_s15 + $0x370] sm:$0xff] %vm1486_vm2, %v1352_v62  ;;  %v2363_v0 = vpop.f32.mrb[83].mxu1 }
 0x1e2   : > { %v1012_v2 = vpop.f32.mrb[84].mxu0  ;;  %v1357_v3 = vpop.f32.mrb[84].mxu1 }
 0x1e3   : > { %1529 = vst.msk [vmem:[%s3276_s15 + $0x150] sm:$0xff] %vm1486_vm2, %v1012_v2  ;;  %v2159_v4 = vpop.f32.mrb[85].mxu0  ;;  %1598 = vst.msk [vmem:[%s3276_s15 + $0x378] sm:$0xff] %vm1486_vm2, %v1357_v3  ;;  %v2366_v5 = vpop.f32.mrb[85].mxu1 }
 0x1e6   : > { %v1017_v6 = vpop.f32.mrb[86].mxu0  ;;  %v1362_v7 = vpop.f32.mrb[86].mxu1 }
 0x1e7   : > { %1530 = vst.msk [vmem:[%s3276_s15 + $0x158] sm:$0xff] %vm1486_vm2, %v1017_v6  ;;  %v2162_v8 = vpop.f32.mrb[87].mxu0  ;;  %1599 = vst.msk [vmem:[%s3276_s15 + $0x380] sm:$0xff] %vm1486_vm2, %v1362_v7  ;;  %v2369_v9 = vpop.f32.mrb[87].mxu1 }
 0x1ea   : > { %v1022_v10 = vpop.f32.mrb[88].mxu0  ;;  %v1367_v11 = vpop.f32.mrb[88].mxu1 }
 0x1eb   : > { %1531 = vst.msk [vmem:[%s3276_s15 + $0x160] sm:$0xff] %vm1486_vm2, %v1022_v10  ;;  %v2165_v12 = vpop.f32.mrb[89].mxu0  ;;  %1600 = vst.msk [vmem:[%s3276_s15 + $0x388] sm:$0xff] %vm1486_vm2, %v1367_v11  ;;  %v2372_v13 = vpop.f32.mrb[89].mxu1 }
 0x1ee   : > { %v1027_v14 = vpop.f32.mrb[90].mxu0  ;;  %v1372_v15 = vpop.f32.mrb[90].mxu1 }
 0x1ef   : > { %1532 = vst.msk [vmem:[%s3276_s15 + $0x168] sm:$0xff] %vm1486_vm2, %v1027_v14  ;;  %v2168_v16 = vpop.f32.mrb[91].mxu0  ;;  %1601 = vst.msk [vmem:[%s3276_s15 + $0x390] sm:$0xff] %vm1486_vm2, %v1372_v15  ;;  %v2375_v17 = vpop.f32.mrb[91].mxu1 }
 0x1f2   : > { %v1032_v18 = vpop.f32.mrb[92].mxu0  ;;  %v1377_v19 = vpop.f32.mrb[92].mxu1 }
 0x1f3   : > { %1533 = vst.msk [vmem:[%s3276_s15 + $0x170] sm:$0xff] %vm1486_vm2, %v1032_v18  ;;  %v2171_v20 = vpop.f32.mrb[93].mxu0  ;;  %1602 = vst.msk [vmem:[%s3276_s15 + $0x398] sm:$0xff] %vm1486_vm2, %v1377_v19  ;;  %v2378_v21 = vpop.f32.mrb[93].mxu1 }
 0x1f6   : > { %v1037_v22 = vpop.f32.mrb[94].mxu0  ;;  %v1382_v23 = vpop.f32.mrb[94].mxu1 }
 0x1f7   : > { %1534 = vst.msk [vmem:[%s3276_s15 + $0x178] sm:$0xff] %vm1486_vm2, %v1037_v22  ;;  %v2174_v24 = vpop.f32.mrb[95].mxu0  ;;  %1603 = vst.msk [vmem:[%s3276_s15 + $0x3a0] sm:$0xff] %vm1486_vm2, %v1382_v23  ;;  %v2381_v25 = vpop.f32.mrb[95].mxu1 }
 0x1fa   : > { %v1042_v26 = vpop.f32.mrb[96].mxu0  ;;  %v1387_v27 = vpop.f32.mrb[96].mxu1 }
 0x1fb   : > { %1535 = vst.msk [vmem:[%s3276_s15 + $0x180] sm:$0xff] %vm1486_vm2, %v1042_v26  ;;  %v2177_v1 = vpop.f32.mrb[97].mxu0  ;;  %1604 = vst.msk [vmem:[%s3276_s15 + $0x3a8] sm:$0xff] %vm1486_vm2, %v1387_v27  ;;  %v2384_v28 = vpop.f32.mrb[97].mxu1 }
 0x1fe   : > { %v1047_v29 = vpop.f32.mrb[98].mxu0  ;;  %v1392_v30 = vpop.f32.mrb[98].mxu1 }
 0x1ff   : > { %1536 = vst.msk [vmem:[%s3276_s15 + $0x188] sm:$0xff] %vm1486_vm2, %v1047_v29  ;;  %v2180_v31 = vpop.f32.mrb[99].mxu0  ;;  %1605 = vst.msk [vmem:[%s3276_s15 + $0x3b0] sm:$0xff] %vm1486_vm2, %v1392_v30  ;;  %v2387_v32 = vpop.f32.mrb[99].mxu1 }
 0x202   : > { %v1052_v33 = vpop.f32.mrb[100].mxu0  ;;  %v1397_v34 = vpop.f32.mrb[100].mxu1 }
 0x203   : > { %1537 = vst.msk [vmem:[%s3276_s15 + $0x190] sm:$0xff] %vm1486_vm2, %v1052_v33  ;;  %v2183_v35 = vpop.f32.mrb[101].mxu0  ;;  %1606 = vst.msk [vmem:[%s3276_s15 + $0x3b8] sm:$0xff] %vm1486_vm2, %v1397_v34  ;;  %v2390_v36 = vpop.f32.mrb[101].mxu1 }
 0x206   : > { %v1057_v37 = vpop.f32.mrb[102].mxu0  ;;  %v1402_v38 = vpop.f32.mrb[102].mxu1 }
 0x207   : > { %1538 = vst.msk [vmem:[%s3276_s15 + $0x198] sm:$0xff] %vm1486_vm2, %v1057_v37  ;;  %v2186_v39 = vpop.f32.mrb[103].mxu0  ;;  %1607 = vst.msk [vmem:[%s3276_s15 + $0x3c0] sm:$0xff] %vm1486_vm2, %v1402_v38  ;;  %v2393_v40 = vpop.f32.mrb[103].mxu1 }
 0x20a   : > { %v1062_v41 = vpop.f32.mrb[104].mxu0  ;;  %v1407_v42 = vpop.f32.mrb[104].mxu1 }
 0x20b   : > { %1539 = vst.msk [vmem:[%s3276_s15 + $0x1a0] sm:$0xff] %vm1486_vm2, %v1062_v41  ;;  %v2189_v43 = vpop.f32.mrb[105].mxu0  ;;  %1608 = vst.msk [vmem:[%s3276_s15 + $0x3c8] sm:$0xff] %vm1486_vm2, %v1407_v42  ;;  %v2396_v44 = vpop.f32.mrb[105].mxu1 }
 0x20e   : > { %v1067_v45 = vpop.f32.mrb[106].mxu0  ;;  %v1412_v46 = vpop.f32.mrb[106].mxu1 }
 0x20f   : > { %1540 = vst.msk [vmem:[%s3276_s15 + $0x1a8] sm:$0xff] %vm1486_vm2, %v1067_v45  ;;  %v2192_v47 = vpop.f32.mrb[107].mxu0  ;;  %1609 = vst.msk [vmem:[%s3276_s15 + $0x3d0] sm:$0xff] %vm1486_vm2, %v1412_v46  ;;  %v2399_v48 = vpop.f32.mrb[107].mxu1 }
 0x212   : > { %v1072_v49 = vpop.f32.mrb[108].mxu0  ;;  %v1417_v50 = vpop.f32.mrb[108].mxu1 }
 0x213   : > { %1541 = vst.msk [vmem:[%s3276_s15 + $0x1b0] sm:$0xff] %vm1486_vm2, %v1072_v49  ;;  %v2195_v51 = vpop.f32.mrb[109].mxu0  ;;  %1610 = vst.msk [vmem:[%s3276_s15 + $0x3d8] sm:$0xff] %vm1486_vm2, %v1417_v50  ;;  %v2402_v52 = vpop.f32.mrb[109].mxu1 }
 0x216   : > { %v1077_v53 = vpop.f32.mrb[110].mxu0  ;;  %v1422_v54 = vpop.f32.mrb[110].mxu1 }
 0x217   : > { %1542 = vst.msk [vmem:[%s3276_s15 + $0x1b8] sm:$0xff] %vm1486_vm2, %v1077_v53  ;;  %v2198_v55 = vpop.f32.mrb[111].mxu0  ;;  %1611 = vst.msk [vmem:[%s3276_s15 + $0x3e0] sm:$0xff] %vm1486_vm2, %v1422_v54  ;;  %v2405_v56 = vpop.f32.mrb[111].mxu1 }
 0x21a   : > { %v1082_v57 = vpop.f32.mrb[112].mxu0  ;;  %v1427_v58 = vpop.f32.mrb[112].mxu1 }
 0x21b   : > { %1543 = vst.msk [vmem:[%s3276_s15 + $0x1c0] sm:$0xff] %vm1486_vm2, %v1082_v57  ;;  %v2201_v59 = vpop.f32.mrb[113].mxu0  ;;  %1612 = vst.msk [vmem:[%s3276_s15 + $0x3e8] sm:$0xff] %vm1486_vm2, %v1427_v58  ;;  %v2408_v60 = vpop.f32.mrb[113].mxu1 }
 0x21e   : > { %v1087_v61 = vpop.f32.mrb[114].mxu0  ;;  %v1432_v62 = vpop.f32.mrb[114].mxu1 }
 0x21f   : > { %1544 = vst.msk [vmem:[%s3276_s15 + $0x1c8] sm:$0xff] %vm1486_vm2, %v1087_v61  ;;  %v2204_v63 = vpop.f32.mrb[115].mxu0  ;;  %1613 = vst.msk [vmem:[%s3276_s15 + $0x3f0] sm:$0xff] %vm1486_vm2, %v1432_v62  ;;  %v2411_v0 = vpop.f32.mrb[115].mxu1 }
 0x222   : > { %v1092_v2 = vpop.f32.mrb[116].mxu0  ;;  %v1437_v3 = vpop.f32.mrb[116].mxu1 }
 0x223   : > { %1545 = vst.msk [vmem:[%s3276_s15 + $0x1d0] sm:$0xff] %vm1486_vm2, %v1092_v2  ;;  %v2207_v4 = vpop.f32.mrb[117].mxu0  ;;  %1614 = vst.msk [vmem:[%s3276_s15 + $0x3f8] sm:$0xff] %vm1486_vm2, %v1437_v3  ;;  %v2414_v5 = vpop.f32.mrb[117].mxu1 }
 0x226   : > { %v1097_v6 = vpop.f32.mrb[118].mxu0  ;;  %v1442_v7 = vpop.f32.mrb[118].mxu1 }
 0x227   : > { %1546 = vst.msk [vmem:[%s3276_s15 + $0x1d8] sm:$0xff] %vm1486_vm2, %v1097_v6  ;;  %v2210_v8 = vpop.f32.mrb[119].mxu0  ;;  %1615 = vst.msk [vmem:[%s3276_s15 + $0x400] sm:$0xff] %vm1486_vm2, %v1442_v7  ;;  %v2417_v9 = vpop.f32.mrb[119].mxu1 }
 0x22a   : > { %v1102_v10 = vpop.f32.mrb[120].mxu0  ;;  %v1447_v11 = vpop.f32.mrb[120].mxu1 }
 0x22b   : > { %1547 = vst.msk [vmem:[%s3276_s15 + $0x1e0] sm:$0xff] %vm1486_vm2, %v1102_v10  ;;  %v2213_v12 = vpop.f32.mrb[121].mxu0  ;;  %1616 = vst.msk [vmem:[%s3276_s15 + $0x408] sm:$0xff] %vm1486_vm2, %v1447_v11  ;;  %v2420_v13 = vpop.f32.mrb[121].mxu1 }
 0x22e   : > { %v1107_v14 = vpop.f32.mrb[122].mxu0  ;;  %v1452_v15 = vpop.f32.mrb[122].mxu1 }
 0x22f   : > { %1548 = vst.msk [vmem:[%s3276_s15 + $0x1e8] sm:$0xff] %vm1486_vm2, %v1107_v14  ;;  %v2216_v16 = vpop.f32.mrb[123].mxu0  ;;  %1617 = vst.msk [vmem:[%s3276_s15 + $0x410] sm:$0xff] %vm1486_vm2, %v1452_v15  ;;  %v2423_v17 = vpop.f32.mrb[123].mxu1 }
 0x232   : > { %v1112_v18 = vpop.f32.mrb[124].mxu0  ;;  %v1457_v19 = vpop.f32.mrb[124].mxu1 }
 0x233   : > { %1549 = vst.msk [vmem:[%s3276_s15 + $0x1f0] sm:$0xff] %vm1486_vm2, %v1112_v18  ;;  %v2219_v20 = vpop.f32.mrb[125].mxu0  ;;  %1618 = vst.msk [vmem:[%s3276_s15 + $0x418] sm:$0xff] %vm1486_vm2, %v1457_v19  ;;  %v2426_v21 = vpop.f32.mrb[125].mxu1 }
 0x236   : > { %v1117_v22 = vpop.f32.mrb[126].mxu0  ;;  %v1462_v23 = vpop.f32.mrb[126].mxu1 }
 0x237   : > { %1550 = vst.msk [vmem:[%s3276_s15 + $0x1f8] sm:$0xff] %vm1486_vm2, %v1117_v22  ;;  %v2222_v24 = vpop.f32.mrb[127].mxu0  ;;  %1619 = vst.msk [vmem:[%s3276_s15 + $0x420] sm:$0xff] %vm1486_vm2, %v1462_v23  ;;  %v2429_v25 = vpop.f32.mrb[127].mxu1 }
 0x23a   : > { %v1122_v26 = vpop.f32.mrb[128].mxu0  ;;  %v1467_v27 = vpop.f32.mrb[128].mxu1 }
 0x23b   : > { %1551 = vst.msk [vmem:[%s3276_s15 + $0x200] sm:$0xff] %vm1486_vm2, %v1122_v26  ;;  %v2225_v1 = vpop.f32.mrb[129].mxu0  ;;  %1620 = vst.msk [vmem:[%s3276_s15 + $0x428] sm:$0xff] %vm1486_vm2, %v1467_v27  ;;  %v2432_v28 = vpop.f32.mrb[129].mxu1 }
 0x23e   : > { %v1127_v29 = vpop.f32.mrb[130].mxu0  ;;  %v1472_v30 = vpop.f32.mrb[130].mxu1 }
 0x23f   : > { %1552 = vst.msk [vmem:[%s3276_s15 + $0x208] sm:$0xff] %vm1486_vm2, %v1127_v29  ;;  %v2228_v31 = vpop.f32.mrb[131].mxu0  ;;  %1621 = vst.msk [vmem:[%s3276_s15 + $0x430] sm:$0xff] %vm1486_vm2, %v1472_v30  ;;  %v2435_v32 = vpop.f32.mrb[131].mxu1 }
 0x242   : > { %v1132_v33 = vpop.f32.mrb[132].mxu0  ;;  %v1477_v34 = vpop.f32.mrb[132].mxu1 }
 0x243   : > { %1553 = vst.msk [vmem:[%s3276_s15 + $0x210] sm:$0xff] %vm1486_vm2, %v1132_v33  ;;  %v2231_v35 = vpop.f32.mrb[133].mxu0  ;;  %1622 = vst.msk [vmem:[%s3276_s15 + $0x438] sm:$0xff] %vm1486_vm2, %v1477_v34  ;;  %v2438_v36 = vpop.f32.mrb[133].mxu1 }
 0x246   : > { %v1137_v37 = vpop.f32.mrb[134].mxu0  ;;  %v1482_v38 = vpop.f32.mrb[134].mxu1 }
 0x247   : > { %1554 = vst.msk [vmem:[%s3276_s15 + $0x218] sm:$0xff] %vm1486_vm2, %v1137_v37  ;;  %v2234_v39 = vpop.f32.mrb[135].mxu0  ;;  %1623 = vst.msk [vmem:[%s3276_s15 + $0x440] sm:$0xff] %vm1486_vm2, %v1482_v38  ;;  %v2441_v40 = vpop.f32.mrb[135].mxu1 }
 0x24a   : > { %v1142_v41 = vpop.f32.mrb[136].mxu0 }
 0x24b   : > { %1555 = vst.msk [vmem:[%s3276_s15 + $0x220] sm:$0xff] %vm1486_vm2, %v1142_v41  ;;  %v2237_v42 = vpop.f32.mrb[137].mxu0 }
 0x24c   : > { %2599 = shalt.err (!%p2596_p7)
}
 0x24d   : > { %s2600_s20 = scalar_lea.hbm %s3673_s27, 17536  ;;  %s2604_s19 = scalar_lea.hbm %s3723_s2, 35072 }
 0x24e   : > { %p2601_p9 = scmp.ne.s32.totalorder %s3673_s27, %s2600_s20  ;;  %p2605_p5 = scmp.lt.u32.totalorder %s3673_s27, %s3723_s2 }
 0x24f   : > { %p2606_p13 = scmp.lt.u32.totalorder %s2604_s19, %s2600_s20  ;;  %p2608_p4 = scmp.lt.u32.totalorder %s2600_s20, %s3673_s27 }
 0x250   : > { %p2602_p1 = pnand %p2601_p9, %p2777_p12 }
 0x251   : > { %p2607_p2 = por %p2606_p13, %p2605_p5 }
 0x252   : > { %p2603_p0 = pneg %p2602_p1 }
 0x253   : > { %p2609_p6 = por %p2608_p4, %p2607_p2 }
 0x255   : > { %p2610_p8 = pnand %p2609_p6, %p2603_p0 }
 0x257   : > { %2613 = shalt.err (!%p2610_p8)
}
 0x258   : > { %s2666_s30 = smov 128   ;;  %s2667_s25 = smov 8  }
 0x259   : > { %2470 = dma.vmem_to_hbm [thread:$0]  (%p2777_p12), %s3675_s4, 17536, %s3673_s27, %s1625_s13, %s2666_s30, %s2666_s30, %s2667_s25  }
 0x25a PF: > { %s1653_s15 = sand.u32 1, %s2644_s9   ;;  %p3738_p10 = scmp.ne.s32.totalorder %s3728_s16, 0 }
 0x25b   : > { %p3739_p11 = scmp.ge.s32.totalorder %s2656_s12, 2  ;;  %s1654_s17 = scalar_lea.sflag [#allocation4], %s1653_s15 }
 0x25d   : > { %p2481_p3 = pnand %p3739_p11, %p3738_p10 }
 0x25f   : > { %2639 = dma.done.wait (!%p2481_p3), %s1654_s17, 17536  }
 0x260   : > { %2641 = vsyncadd (!%p2481_p3), %s1654_s17, 4294949760  ;;  %p16_p7 = scmp.ge.s32.totalorder %s2739_s21, 4   ;;  %s3740_s9 = smov %s2648_s10 }
 0x261   : > { %s3741_s10 = smov %s2652_s11  ;;  %s3742_s11 = smov %s2773_s8 }
 0x262   : > { %s3743_s12 = smov %s2739_s21  ;;  %18 = sbr.rel (!%p16_p7) target bundleno = 6 (0x6), region = 77 }
 0x269   :  { %1659 = vsyncpa [#allocation3], 1 }
 0x26a   :  { %1661 = vsyncpa [#allocation3 + $0x1], 1 }
 0x26b   :  { %1662 = vsyncpa [#allocation6], 1 }
 0x26c   :  { %1663 = vsyncpa [#allocation4], 1 }
 0x26d   :  { %1665 = vsyncpa [#allocation4 + $0x1], 1 }

// kernel: generator128.30
= control target key start
LH: loop header
LB: loop body
LE: loop exit
PB: predicated region body
PF: predicated region fallthrough
CT: control target
= control target key end

     0   :  { %8 = vsyncpa [#allocation3], 0  ;;  %s476_s0 = inlined_call_operand.hbm [shape: f32[512,128], index: 0, kind: input, shape index: {}]   ;;  %s477_s1 = inlined_call_operand.hbm [shape: f32[1,128], index: 1, kind: output, shape index: {0}]   ;;  %s478_s2 = inlined_call_operand.hbm [shape: f32[1,128], index: 2, kind: output, shape index: {1}]  }
   0x1   :  { %9 = vsyncpa [#allocation4], 0 }
   0x2   :  { %10 = vsyncpa [#allocation7], 0  ;;  %s411_s9 = smov [#allocation2]   ;;  %s339_s13 = scalar_lea.hbm %s476_s0, 8192 }
   0x3   :  { %s16_s10 = sshll.u32 %s411_s9, 4  ;;  %p340_p0 = scmp.ne.s32.totalorder %s476_s0, %s339_s13  ;;  %s17_s10 = int_to_ptr.vmem [resolvable:$true] %s16_s10 }
   0x4   :  { %p343_p1 = scmp.lt.u32.totalorder %s339_s13, %s476_s0 }
   0x6   :  { %p345_p2 = pnand %p343_p1, %p340_p0 }
   0x8   :  { %348 = shalt.err (!%p345_p2)
}
   0x9   :  { %s349_s18 = scalar_lea.vmem %s17_s10, 8192  ;;  %p354_p4 = scmp.lt.s32.totalorder %s17_s10, %s17_s10 }
   0xa   :  { %p350_p3 = scmp.ne.s32.totalorder %s17_s10, %s349_s18  ;;  %p355_p5 = scmp.lt.s32.totalorder %s349_s18, %s349_s18 }
   0xc   :  { %p356_p6 = por %p355_p5, %p354_p4 }
   0xe   :  { %p357_p7 = pnand %p356_p6, %p350_p3 }
  0x10   :  { %360 = shalt.err (!%p357_p7)
}
  0x11   :  { %s412_s19 = smov 128   ;;  %s413_s20 = smov 8  }
  0x12   :  { %22 = dma.hbm_to_vmem [thread:$0]  %s476_s0, 8192, %s17_s10, [#allocation3], %s412_s19, %s412_s19, %s413_s20  }
  0x13   :  { %405 = dma.done.wait [#allocation3], 8192  }
  0x14   :  { %406 = vsyncadd [#allocation3], 4294959104  ;;  %v414_v0 = vmov 0.0   ;;  %v32_v1 = vld [vmem:[#allocation2] sm:$0xff]  ;;  %v33_v2 = vld [vmem:[#allocation2 + $0x8] sm:$0xff]  ;;  %s415_s0 = smov [#allocation5]  }
  0x15   :  { %30 = vst [vmem:[#allocation5] sm:$0x1] %v414_v0  ;;  %31 = vst [vmem:[#allocation6] sm:$0x1] %v414_v0  ;;  %v34_v3 = vld [vmem:[#allocation2 + $0x10] sm:$0xff]  ;;  %v35_v4 = vld [vmem:[#allocation2 + $0x18] sm:$0xff]  ;;  %v97_v5 = vadd.f32 %v33_v2, %v32_v1  ;;  %v169_v6 = vmul.f32 %v32_v1, %v32_v1  ;;  %v170_v7 = vmul.f32 %v33_v2, %v33_v2 }
  0x16   :  { %v171_v8 = vmul.f32 %v34_v3, %v34_v3  ;;  %v36_v9 = vld [vmem:[#allocation2 + $0x20] sm:$0xff]  ;;  %v172_v11 = vmul.f32 %v35_v4, %v35_v4  ;;  %v37_v13 = vld [vmem:[#allocation2 + $0x28] sm:$0xff]  ;;  %v38_v17 = vld [vmem:[#allocation2 + $0x30] sm:$0xff]  ;;  %s310_s23 = sshll.u32 %s415_s0, 4  ;;  %s416_s24 = smov [#allocation6]   ;;  %s311_s23 = int_to_ptr.vmem [resolvable:$true] %s310_s23 }
  0x17   :  { %v98_v10 = vadd.f32 %v97_v5, %v34_v3  ;;  %v233_v12 = vadd.f32 %v170_v7, %v169_v6  ;;  %v173_v15 = vmul.f32 %v36_v9, %v36_v9  ;;  %v174_v19 = vmul.f32 %v37_v13, %v37_v13  ;;  %v39_v21 = vld [vmem:[#allocation2 + $0x38] sm:$0xff]  ;;  %v40_v25 = vld [vmem:[#allocation2 + $0x40] sm:$0xff]  ;;  %v41_v29 = vld [vmem:[#allocation2 + $0x48] sm:$0xff]  ;;  %s320_s25 = sshll.u32 %s416_s24, 4  ;;  %s361_s26 = scalar_lea.vmem %s311_s23, 16  ;;  %s444_s25 = int_to_ptr.vmem [resolvable:$true] %s320_s25 }
  0x18   :  { %v175_v23 = vmul.f32 %v38_v17, %v38_v17  ;;  %v176_v27 = vmul.f32 %v39_v21, %v39_v21  ;;  %v177_v31 = vmul.f32 %v40_v25, %v40_v25  ;;  %v42_v33 = vld [vmem:[#allocation2 + $0x50] sm:$0xff]  ;;  %v178_v35 = vmul.f32 %v41_v29, %v41_v29  ;;  %v43_v37 = vld [vmem:[#allocation2 + $0x58] sm:$0xff]  ;;  %v44_v41 = vld [vmem:[#allocation2 + $0x60] sm:$0xff]  ;;  %p362_p8 = scmp.ne.s32.totalorder %s311_s23, %s361_s26  ;;  %s365_s27 = scalar_lea.vmem %s311_s23, 32 }
  0x19   :  { %v99_v14 = vadd.f32 %v98_v10, %v35_v4  ;;  %v234_v16 = vadd.f32 %v233_v12, %v171_v8  ;;  %v179_v39 = vmul.f32 %v42_v33, %v42_v33  ;;  %v180_v43 = vmul.f32 %v43_v37, %v43_v37  ;;  %v45_v45 = vld [vmem:[#allocation2 + $0x68] sm:$0xff]  ;;  %v46_v49 = vld [vmem:[#allocation2 + $0x70] sm:$0xff]  ;;  %v47_v53 = vld [vmem:[#allocation2 + $0x78] sm:$0xff]  ;;  %p366_p9 = scmp.lt.s32.totalorder %s311_s23, %s311_s23  ;;  %p367_p10 = scmp.lt.s32.totalorder %s365_s27, %s361_s26 }
  0x1a   :  { %v181_v47 = vmul.f32 %v44_v41, %v44_v41  ;;  %v182_v51 = vmul.f32 %v45_v45, %v45_v45  ;;  %v183_v55 = vmul.f32 %v46_v49, %v46_v49  ;;  %v48_v57 = vld [vmem:[#allocation2 + $0x80] sm:$0xff]  ;;  %v184_v59 = vmul.f32 %v47_v53, %v47_v53  ;;  %v49_v61 = vld [vmem:[#allocation2 + $0x88] sm:$0xff]  ;;  %v50_v1 = vld [vmem:[#allocation2 + $0x90] sm:$0xff] }
  0x1b   :  { %v100_v18 = vadd.f32 %v99_v14, %v36_v9  ;;  %v235_v20 = vadd.f32 %v234_v16, %v172_v11  ;;  %v185_v63 = vmul.f32 %v48_v57, %v48_v57  ;;  %v186_v3 = vmul.f32 %v49_v61, %v49_v61  ;;  %v51_v5 = vld [vmem:[#allocation2 + $0x98] sm:$0xff]  ;;  %v52_v9 = vld [vmem:[#allocation2 + $0xa0] sm:$0xff]  ;;  %p368_p11 = por %p367_p10, %p366_p9 }
  0x1c   :  { %v187_v7 = vmul.f32 %v50_v1, %v50_v1  ;;  %v188_v11 = vmul.f32 %v51_v5, %v51_v5 }
  0x1d   :  { %v101_v22 = vadd.f32 %v100_v18, %v37_v13  ;;  %v236_v24 = vadd.f32 %v235_v20, %v173_v15  ;;  %v53_v13 = vld [vmem:[#allocation2 + $0xa8] sm:$0xff]  ;;  %v189_v15 = vmul.f32 %v52_v9, %v52_v9  ;;  %p369_p12 = pnand %p368_p11, %p362_p8 }
  0x1f   :  { %v102_v26 = vadd.f32 %v101_v22, %v38_v17  ;;  %v237_v28 = vadd.f32 %v236_v24, %v174_v19  ;;  %v54_v17 = vld [vmem:[#allocation2 + $0xb0] sm:$0xff]  ;;  %v190_v19 = vmul.f32 %v53_v13, %v53_v13 }
  0x21   :  { %v103_v30 = vadd.f32 %v102_v26, %v39_v21  ;;  %v238_v32 = vadd.f32 %v237_v28, %v175_v23  ;;  %v55_v21 = vld [vmem:[#allocation2 + $0xb8] sm:$0xff]  ;;  %v191_v23 = vmul.f32 %v54_v17, %v54_v17 }
  0x23   :  { %v104_v34 = vadd.f32 %v103_v30, %v40_v25  ;;  %v239_v36 = vadd.f32 %v238_v32, %v176_v27  ;;  %v56_v25 = vld [vmem:[#allocation2 + $0xc0] sm:$0xff]  ;;  %v192_v27 = vmul.f32 %v55_v21, %v55_v21 }
  0x25   :  { %v105_v38 = vadd.f32 %v104_v34, %v41_v29  ;;  %v240_v40 = vadd.f32 %v239_v36, %v177_v31  ;;  %v57_v29 = vld [vmem:[#allocation2 + $0xc8] sm:$0xff]  ;;  %v193_v31 = vmul.f32 %v56_v25, %v56_v25 }
  0x27   :  { %v106_v42 = vadd.f32 %v105_v38, %v42_v33  ;;  %v241_v44 = vadd.f32 %v240_v40, %v178_v35  ;;  %v58_v33 = vld [vmem:[#allocation2 + $0xd0] sm:$0xff]  ;;  %v194_v35 = vmul.f32 %v57_v29, %v57_v29 }
  0x29   :  { %v107_v46 = vadd.f32 %v106_v42, %v43_v37  ;;  %v242_v48 = vadd.f32 %v241_v44, %v179_v39  ;;  %v59_v37 = vld [vmem:[#allocation2 + $0xd8] sm:$0xff]  ;;  %v195_v39 = vmul.f32 %v58_v33, %v58_v33 }
  0x2b   :  { %v108_v50 = vadd.f32 %v107_v46, %v44_v41  ;;  %v243_v52 = vadd.f32 %v242_v48, %v180_v43  ;;  %v60_v41 = vld [vmem:[#allocation2 + $0xe0] sm:$0xff]  ;;  %v196_v43 = vmul.f32 %v59_v37, %v59_v37 }
  0x2d   :  { %v109_v54 = vadd.f32 %v108_v50, %v45_v45  ;;  %v244_v56 = vadd.f32 %v243_v52, %v181_v47  ;;  %v61_v45 = vld [vmem:[#allocation2 + $0xe8] sm:$0xff]  ;;  %v197_v47 = vmul.f32 %v60_v41, %v60_v41 }
  0x2f   :  { %v110_v58 = vadd.f32 %v109_v54, %v46_v49  ;;  %v245_v60 = vadd.f32 %v244_v56, %v182_v51  ;;  %v62_v49 = vld [vmem:[#allocation2 + $0xf0] sm:$0xff]  ;;  %v198_v51 = vmul.f32 %v61_v45, %v61_v45 }
  0x31   :  { %v111_v62 = vadd.f32 %v110_v58, %v47_v53  ;;  %v246_v0 = vadd.f32 %v245_v60, %v183_v55  ;;  %v63_v53 = vld [vmem:[#allocation2 + $0xf8] sm:$0xff]  ;;  %v199_v55 = vmul.f32 %v62_v49, %v62_v49 }
  0x33   :  { %v112_v2 = vadd.f32 %v111_v62, %v48_v57  ;;  %v247_v4 = vadd.f32 %v246_v0, %v184_v59  ;;  %v64_v57 = vld [vmem:[#allocation2 + $0x100] sm:$0xff]  ;;  %v200_v59 = vmul.f32 %v63_v53, %v63_v53 }
  0x35   :  { %v113_v6 = vadd.f32 %v112_v2, %v49_v61  ;;  %v248_v8 = vadd.f32 %v247_v4, %v185_v63  ;;  %v65_v61 = vld [vmem:[#allocation2 + $0x108] sm:$0xff]  ;;  %v201_v63 = vmul.f32 %v64_v57, %v64_v57 }
  0x37   :  { %v114_v10 = vadd.f32 %v113_v6, %v50_v1  ;;  %v249_v12 = vadd.f32 %v248_v8, %v186_v3  ;;  %v66_v1 = vld [vmem:[#allocation2 + $0x110] sm:$0xff]  ;;  %v202_v3 = vmul.f32 %v65_v61, %v65_v61 }
  0x39   :  { %v115_v14 = vadd.f32 %v114_v10, %v51_v5  ;;  %v250_v16 = vadd.f32 %v249_v12, %v187_v7  ;;  %v67_v5 = vld [vmem:[#allocation2 + $0x118] sm:$0xff]  ;;  %v203_v7 = vmul.f32 %v66_v1, %v66_v1 }
  0x3b   :  { %v116_v18 = vadd.f32 %v115_v14, %v52_v9  ;;  %v251_v20 = vadd.f32 %v250_v16, %v188_v11  ;;  %v68_v9 = vld [vmem:[#allocation2 + $0x120] sm:$0xff]  ;;  %v204_v11 = vmul.f32 %v67_v5, %v67_v5 }
  0x3d   :  { %v117_v22 = vadd.f32 %v116_v18, %v53_v13  ;;  %v252_v24 = vadd.f32 %v251_v20, %v189_v15  ;;  %v69_v13 = vld [vmem:[#allocation2 + $0x128] sm:$0xff]  ;;  %v205_v15 = vmul.f32 %v68_v9, %v68_v9 }
  0x3f   :  { %v118_v26 = vadd.f32 %v117_v22, %v54_v17  ;;  %v253_v28 = vadd.f32 %v252_v24, %v190_v19  ;;  %v70_v17 = vld [vmem:[#allocation2 + $0x130] sm:$0xff]  ;;  %v206_v19 = vmul.f32 %v69_v13, %v69_v13 }
  0x41   :  { %v119_v30 = vadd.f32 %v118_v26, %v55_v21  ;;  %v254_v32 = vadd.f32 %v253_v28, %v191_v23  ;;  %v71_v21 = vld [vmem:[#allocation2 + $0x138] sm:$0xff]  ;;  %v207_v23 = vmul.f32 %v70_v17, %v70_v17 }
  0x43   :  { %v120_v34 = vadd.f32 %v119_v30, %v56_v25  ;;  %v255_v36 = vadd.f32 %v254_v32, %v192_v27  ;;  %v72_v25 = vld [vmem:[#allocation2 + $0x140] sm:$0xff]  ;;  %v208_v27 = vmul.f32 %v71_v21, %v71_v21 }
  0x45   :  { %v121_v38 = vadd.f32 %v120_v34, %v57_v29  ;;  %v256_v40 = vadd.f32 %v255_v36, %v193_v31  ;;  %v73_v29 = vld [vmem:[#allocation2 + $0x148] sm:$0xff]  ;;  %v209_v31 = vmul.f32 %v72_v25, %v72_v25 }
  0x47   :  { %v122_v42 = vadd.f32 %v121_v38, %v58_v33  ;;  %v257_v44 = vadd.f32 %v256_v40, %v194_v35  ;;  %v74_v33 = vld [vmem:[#allocation2 + $0x150] sm:$0xff]  ;;  %v210_v35 = vmul.f32 %v73_v29, %v73_v29 }
  0x49   :  { %v123_v46 = vadd.f32 %v122_v42, %v59_v37  ;;  %v258_v48 = vadd.f32 %v257_v44, %v195_v39  ;;  %v75_v37 = vld [vmem:[#allocation2 + $0x158] sm:$0xff]  ;;  %v211_v39 = vmul.f32 %v74_v33, %v74_v33 }
  0x4b   :  { %v124_v50 = vadd.f32 %v123_v46, %v60_v41  ;;  %v259_v52 = vadd.f32 %v258_v48, %v196_v43  ;;  %v76_v41 = vld [vmem:[#allocation2 + $0x160] sm:$0xff]  ;;  %v212_v43 = vmul.f32 %v75_v37, %v75_v37 }
  0x4d   :  { %v125_v54 = vadd.f32 %v124_v50, %v61_v45  ;;  %v260_v56 = vadd.f32 %v259_v52, %v197_v47  ;;  %v77_v45 = vld [vmem:[#allocation2 + $0x168] sm:$0xff]  ;;  %v213_v47 = vmul.f32 %v76_v41, %v76_v41 }
  0x4f   :  { %v126_v58 = vadd.f32 %v125_v54, %v62_v49  ;;  %v261_v60 = vadd.f32 %v260_v56, %v198_v51  ;;  %v78_v49 = vld [vmem:[#allocation2 + $0x170] sm:$0xff]  ;;  %v214_v51 = vmul.f32 %v77_v45, %v77_v45 }
  0x51   :  { %v127_v62 = vadd.f32 %v126_v58, %v63_v53  ;;  %v262_v0 = vadd.f32 %v261_v60, %v199_v55  ;;  %v79_v53 = vld [vmem:[#allocation2 + $0x178] sm:$0xff]  ;;  %v215_v55 = vmul.f32 %v78_v49, %v78_v49 }
  0x53   :  { %v128_v2 = vadd.f32 %v127_v62, %v64_v57  ;;  %v263_v4 = vadd.f32 %v262_v0, %v200_v59  ;;  %v80_v57 = vld [vmem:[#allocation2 + $0x180] sm:$0xff]  ;;  %v216_v59 = vmul.f32 %v79_v53, %v79_v53 }
  0x55   :  { %v129_v6 = vadd.f32 %v128_v2, %v65_v61  ;;  %v264_v8 = vadd.f32 %v263_v4, %v201_v63  ;;  %v81_v61 = vld [vmem:[#allocation2 + $0x188] sm:$0xff]  ;;  %v217_v63 = vmul.f32 %v80_v57, %v80_v57 }
  0x57   :  { %v130_v10 = vadd.f32 %v129_v6, %v66_v1  ;;  %v265_v12 = vadd.f32 %v264_v8, %v202_v3  ;;  %v82_v1 = vld [vmem:[#allocation2 + $0x190] sm:$0xff]  ;;  %v218_v3 = vmul.f32 %v81_v61, %v81_v61 }
  0x59   :  { %v131_v14 = vadd.f32 %v130_v10, %v67_v5  ;;  %v266_v16 = vadd.f32 %v265_v12, %v203_v7  ;;  %v83_v5 = vld [vmem:[#allocation2 + $0x198] sm:$0xff]  ;;  %v219_v7 = vmul.f32 %v82_v1, %v82_v1 }
  0x5b   :  { %v132_v18 = vadd.f32 %v131_v14, %v68_v9  ;;  %v267_v20 = vadd.f32 %v266_v16, %v204_v11  ;;  %v84_v9 = vld [vmem:[#allocation2 + $0x1a0] sm:$0xff]  ;;  %v220_v11 = vmul.f32 %v83_v5, %v83_v5 }
  0x5d   :  { %v133_v22 = vadd.f32 %v132_v18, %v69_v13  ;;  %v268_v24 = vadd.f32 %v267_v20, %v205_v15  ;;  %v85_v13 = vld [vmem:[#allocation2 + $0x1a8] sm:$0xff]  ;;  %v221_v15 = vmul.f32 %v84_v9, %v84_v9 }
  0x5f   :  { %v134_v26 = vadd.f32 %v133_v22, %v70_v17  ;;  %v269_v28 = vadd.f32 %v268_v24, %v206_v19  ;;  %v86_v17 = vld [vmem:[#allocation2 + $0x1b0] sm:$0xff]  ;;  %v222_v19 = vmul.f32 %v85_v13, %v85_v13 }
  0x61   :  { %v135_v30 = vadd.f32 %v134_v26, %v71_v21  ;;  %v270_v32 = vadd.f32 %v269_v28, %v207_v23  ;;  %v87_v21 = vld [vmem:[#allocation2 + $0x1b8] sm:$0xff]  ;;  %v223_v23 = vmul.f32 %v86_v17, %v86_v17 }
  0x63   :  { %v136_v34 = vadd.f32 %v135_v30, %v72_v25  ;;  %v271_v36 = vadd.f32 %v270_v32, %v208_v27  ;;  %v88_v25 = vld [vmem:[#allocation2 + $0x1c0] sm:$0xff]  ;;  %v224_v27 = vmul.f32 %v87_v21, %v87_v21 }
  0x65   :  { %v137_v38 = vadd.f32 %v136_v34, %v73_v29  ;;  %v272_v40 = vadd.f32 %v271_v36, %v209_v31  ;;  %v89_v29 = vld [vmem:[#allocation2 + $0x1c8] sm:$0xff]  ;;  %v225_v31 = vmul.f32 %v88_v25, %v88_v25 }
  0x67   :  { %v138_v42 = vadd.f32 %v137_v38, %v74_v33  ;;  %v273_v44 = vadd.f32 %v272_v40, %v210_v35  ;;  %v90_v33 = vld [vmem:[#allocation2 + $0x1d0] sm:$0xff]  ;;  %v226_v35 = vmul.f32 %v89_v29, %v89_v29 }
  0x69   :  { %v139_v46 = vadd.f32 %v138_v42, %v75_v37  ;;  %v274_v48 = vadd.f32 %v273_v44, %v211_v39  ;;  %v91_v37 = vld [vmem:[#allocation2 + $0x1d8] sm:$0xff]  ;;  %v227_v39 = vmul.f32 %v90_v33, %v90_v33 }
  0x6b   :  { %v140_v50 = vadd.f32 %v139_v46, %v76_v41  ;;  %v275_v52 = vadd.f32 %v274_v48, %v212_v43  ;;  %v92_v41 = vld [vmem:[#allocation2 + $0x1e0] sm:$0xff]  ;;  %v228_v43 = vmul.f32 %v91_v37, %v91_v37 }
  0x6d   :  { %v141_v54 = vadd.f32 %v140_v50, %v77_v45  ;;  %v276_v56 = vadd.f32 %v275_v52, %v213_v47  ;;  %v93_v45 = vld [vmem:[#allocation2 + $0x1e8] sm:$0xff]  ;;  %v229_v47 = vmul.f32 %v92_v41, %v92_v41 }
  0x6f   :  { %v142_v58 = vadd.f32 %v141_v54, %v78_v49  ;;  %v277_v60 = vadd.f32 %v276_v56, %v214_v51  ;;  %v94_v49 = vld [vmem:[#allocation2 + $0x1f0] sm:$0xff]  ;;  %v230_v51 = vmul.f32 %v93_v45, %v93_v45 }
  0x71   :  { %v143_v62 = vadd.f32 %v142_v58, %v79_v53  ;;  %v278_v0 = vadd.f32 %v277_v60, %v215_v55  ;;  %v95_v53 = vld [vmem:[#allocation2 + $0x1f8] sm:$0xff]  ;;  %v231_v55 = vmul.f32 %v94_v49, %v94_v49 }
  0x72   :  { %v232_v58 = vmul.f32 %v95_v53, %v95_v53 }
  0x73   :  { %v144_v2 = vadd.f32 %v143_v62, %v80_v57  ;;  %v279_v4 = vadd.f32 %v278_v0, %v216_v59 }
  0x75   :  { %v145_v6 = vadd.f32 %v144_v2, %v81_v61  ;;  %v280_v8 = vadd.f32 %v279_v4, %v217_v63 }
  0x77   :  { %v146_v10 = vadd.f32 %v145_v6, %v82_v1  ;;  %v281_v12 = vadd.f32 %v280_v8, %v218_v3 }
  0x79   :  { %v147_v14 = vadd.f32 %v146_v10, %v83_v5  ;;  %v282_v16 = vadd.f32 %v281_v12, %v219_v7  ;;  %v96_v7 = vld [vmem:[#allocation5] sm:$0x1]  ;;  %v168_v12 = vld [vmem:[#allocation6] sm:$0x1] }
  0x7b   :  { %v148_v18 = vadd.f32 %v147_v14, %v84_v9  ;;  %v283_v20 = vadd.f32 %v282_v16, %v220_v11 }
  0x7d   :  { %v149_v22 = vadd.f32 %v148_v18, %v85_v13  ;;  %v284_v24 = vadd.f32 %v283_v20, %v221_v15 }
  0x7f   :  { %v150_v26 = vadd.f32 %v149_v22, %v86_v17  ;;  %v285_v28 = vadd.f32 %v284_v24, %v222_v19 }
  0x81   :  { %v151_v30 = vadd.f32 %v150_v26, %v87_v21  ;;  %v286_v32 = vadd.f32 %v285_v28, %v223_v23 }
  0x83   :  { %v152_v34 = vadd.f32 %v151_v30, %v88_v25  ;;  %v287_v36 = vadd.f32 %v286_v32, %v224_v27 }
  0x85   :  { %v153_v38 = vadd.f32 %v152_v34, %v89_v29  ;;  %v288_v40 = vadd.f32 %v287_v36, %v225_v31 }
  0x87   :  { %v154_v42 = vadd.f32 %v153_v38, %v90_v33  ;;  %v289_v44 = vadd.f32 %v288_v40, %v226_v35 }
  0x89   :  { %v155_v46 = vadd.f32 %v154_v42, %v91_v37  ;;  %v290_v48 = vadd.f32 %v289_v44, %v227_v39 }
  0x8b   :  { %v156_v50 = vadd.f32 %v155_v46, %v92_v41  ;;  %v291_v52 = vadd.f32 %v290_v48, %v228_v43 }
  0x8d   :  { %v157_v54 = vadd.f32 %v156_v50, %v93_v45  ;;  %v292_v56 = vadd.f32 %v291_v52, %v229_v47 }
  0x8f   :  { %v158_v57 = vadd.f32 %v157_v54, %v94_v49  ;;  %v293_v59 = vadd.f32 %v292_v56, %v230_v51 }
  0x91   :  { %v159_v60 = vadd.f32 %v158_v57, %v95_v53  ;;  %v294_v61 = vadd.f32 %v293_v59, %v231_v55 }
  0x93   :  { %v160_v62 = vrot.slane %v159_v60, 4  ;;  %v295_v63 = vadd.f32 %v294_v61, %v232_v58 }
  0x95   :  { %v161_v0 = vadd.f32 %v160_v62, %v159_v60  ;;  %v296_v1 = vrot.slane %v295_v63, 4 }
  0x97   :  { %v162_v2 = vrot.slane %v161_v0, 2  ;;  %v297_v3 = vadd.f32 %v296_v1, %v295_v63 }
  0x99   :  { %v163_v4 = vadd.f32 %v162_v2, %v161_v0  ;;  %v298_v5 = vrot.slane %v297_v3, 2 }
  0x9b   :  { %v164_v6 = vrot.slane %v163_v4, 1  ;;  %v299_v8 = vadd.f32 %v298_v5, %v297_v3 }
  0x9d   :  { %v165_v9 = vadd.f32 %v164_v6, %v163_v4  ;;  %v300_v10 = vrot.slane %v299_v8, 1 }
  0x9f   :  { %v166_v11 = vadd.f32 %v165_v9, %v96_v7  ;;  %v301_v13 = vadd.f32 %v300_v10, %v299_v8 }
  0xa1   :  { %167 = vst [vmem:[#allocation5] sm:$0x1] %v166_v11  ;;  %v302_v14 = vadd.f32 %v301_v13, %v168_v12 }
  0xa2   :  { %372 = shalt.err (!%p369_p12)
}
  0xa3   :  { %s373_s30 = scalar_lea.hbm %s477_s1, 16 }
  0xa4   :  { %p374_p13 = scmp.ne.s32.totalorder %s477_s1, %s373_s30  ;;  %p377_p0 = scmp.lt.u32.totalorder %s373_s30, %s477_s1 }
  0xa6   :  { %p379_p1 = pnand %p377_p0, %p374_p13 }
  0xa8   :  { %382 = shalt.err (!%p379_p1)
}
  0xa9   :  { %313 = dma.vmem_to_hbm [thread:$0]  %s311_s23, 16, %s477_s1, [#allocation4]   ;;  %303 = vst [vmem:[#allocation6] sm:$0x1] %v302_v14 }
  0xaa   :  { %s383_s9 = scalar_lea.vmem %s444_s25, 16  ;;  %s387_s10 = scalar_lea.vmem %s444_s25, 32 }
  0xab   :  { %p384_p2 = scmp.ne.s32.totalorder %s444_s25, %s383_s9  ;;  %p388_p3 = scmp.lt.s32.totalorder %s444_s25, %s444_s25 }
  0xac   :  { %p389_p4 = scmp.lt.s32.totalorder %s387_s10, %s383_s9 }
  0xae   :  { %p390_p5 = por %p389_p4, %p388_p3 }
  0xb0   :  { %p391_p6 = pnand %p390_p5, %p384_p2 }
  0xb2   :  { %394 = shalt.err (!%p391_p6)
}
  0xb3   :  { %s395_s13 = scalar_lea.hbm %s478_s2, 16 }
  0xb4   :  { %p396_p7 = scmp.ne.s32.totalorder %s478_s2, %s395_s13  ;;  %p399_p8 = scmp.lt.u32.totalorder %s395_s13, %s478_s2 }
  0xb6   :  { %p401_p9 = pnand %p399_p8, %p396_p7 }
  0xb8   :  { %404 = shalt.err (!%p401_p9)
}
  0xb9   :  { %323 = dma.vmem_to_hbm [thread:$0]  %s444_s25, 16, %s478_s2, [#allocation7]  }
  0xba   :  { %407 = dma.done.wait [#allocation4], 16  }
  0xbb   :  { %408 = vsyncadd [#allocation4], 4294967280 }
  0xbc   :  { %409 = dma.done.wait [#allocation7], 16  }
  0xbd   :  { %410 = vsyncadd [#allocation7], 4294967280 }
  0xbe   :  { %330 = vsyncpa [#allocation3], 1 }
  0xbf   :  { %331 = vsyncpa [#allocation4], 1 }
  0xc0   :  { %332 = vsyncpa [#allocation7], 1 }

// kernel: tile.82
= control target key start
LH: loop header
LB: loop body
LE: loop exit
PB: predicated region body
PF: predicated region fallthrough
CT: control target
= control target key end

     0   :  { %s28_s0 = inlined_call_operand.vmem [shape: f32[8], index: 0, kind: input, shape index: {}]   ;;  %s29_s1 = inlined_call_operand.vmem [shape: f32[16,8], index: 1, kind: output, shape index: {}]  }
   0x1   :  { %v4_v0 = vld [vmem:[%s28_s0] ss:$0 sm:$0xff] }
   0x2   :  { %5 = vst [vmem:[%s29_s1] sm:$0xff] %v4_v0  ;;  %8 = vst [vmem:[%s29_s1 + $0x8] sm:$0xff] %v4_v0 }

// kernel: tile.83
= control target key start
LH: loop header
LB: loop body
LE: loop exit
PB: predicated region body
PF: predicated region fallthrough
CT: control target
= control target key end

     0   :  { %s167_s10 = smov 120   ;;  %s168_s11 = smov 104   ;;  %vm4_vm0 = vcmask 64512   ;;  %s253_s0 = inlined_call_operand.vmem [shape: f32[16,8], index: 0, kind: input, shape index: {}]   ;;  %s254_s1 = inlined_call_operand.hbm [shape: f32[1,128], index: 1, kind: output, shape index: {}]  }
   0x1   :  { %v112_v0 = vld [vmem:[%s253_s0 + $0xf] sm:$0x1]   ;;  %v114_v1 = vld [vmem:[%s253_s0 + $0xd] sm:$0x1]   ;;  %v113_v2 = vld [vmem:[%s253_s0 + $0xe] sm:$0x1]  }
   0x2   :  { %8 = vrot.lane.b32.xlu0 %v112_v0, %s167_s10  ;;  %20 = vrot.lane.b32.xlu1 %v114_v1, %s168_s11  ;;  %v115_v3 = vld [vmem:[%s253_s0 + $0xc] sm:$0x1]   ;;  %s169_s16 = smov 112   ;;  %s170_s17 = smov 96   ;;  %v116_v4 = vld [vmem:[%s253_s0 + $0xb] sm:$0x1]  }
   0x3   :  { %v117_v5 = vld [vmem:[%s253_s0 + $0xa] sm:$0x1]   ;;  %v3_v6 = vld [vmem:[%s253_s0] sm:$0x1]  }
   0x6   :  { %14 = vrot.lane.b32.xlu0 %v113_v2, %s169_s16  ;;  %26 = vrot.lane.b32.xlu1 %v115_v3, %s170_s17 }
   0x7   :  { %2 = vsyncpa [#allocation1], 0  ;;  %s171_s24 = smov 88   ;;  %s172_s25 = smov 80   ;;  %5 = vst.msk [vmem:[#allocation2] sm:$0x1] %vm4_vm0, %v3_v6  }
   0x8   :  { %v118_v7 = vld [vmem:[%s253_s0 + $0x9] sm:$0x1]   ;;  %v119_v8 = vld [vmem:[%s253_s0 + $0x8] sm:$0x1]   ;;  %s173_s30 = smov 72   ;;  %s174_s2 = smov 64  }
   0x9   :  { %v120_v9 = vld [vmem:[%s253_s0 + $0x7] sm:$0x1]   ;;  %v121_v10 = vld [vmem:[%s253_s0 + $0x6] sm:$0x1]   ;;  %s175_s7 = smov 56   ;;  %s176_s8 = smov 48  }
   0xa   :  { %32 = vrot.lane.b32.xlu0 %v116_v4, %s171_s24  ;;  %38 = vrot.lane.b32.xlu1 %v117_v5, %s172_s25  ;;  %v122_v11 = vld [vmem:[%s253_s0 + $0x5] sm:$0x1]   ;;  %v123_v12 = vld [vmem:[%s253_s0 + $0x4] sm:$0x1]   ;;  %s177_s13 = smov 40   ;;  %s178_s14 = smov 32  }
   0xb   :  { %v124_v13 = vld [vmem:[%s253_s0 + $0x3] sm:$0x1]   ;;  %v125_v14 = vld [vmem:[%s253_s0 + $0x2] sm:$0x1]   ;;  %s179_s19 = smov 24   ;;  %s180_s20 = smov 16  }
   0xc   :  { %v126_v15 = vld [vmem:[%s253_s0 + $0x1] sm:$0x1]   ;;  %s181_s0 = smov 8   ;;  %vm10_vm1 = vcmask 1048512   ;;  %vm16_vm2 = vcmask 982912   ;;  %vm22_vm3 = vcmask 917312  }
   0xd   :  { %vm28_vm4 = vcmask 851712   ;;  %vm34_vm5 = vcmask 786112   ;;  %vm40_vm6 = vcmask 720512   ;;  %vm46_vm7 = vcmask 654912   ;;  %s182_s23 = smov [#allocation0]  }
   0xe   :  { %44 = vrot.lane.b32.xlu0 %v118_v7, %s173_s30  ;;  %50 = vrot.lane.b32.xlu1 %v119_v8, %s174_s2  ;;  %vm52_vm8 = vcmask 589312   ;;  %vm58_vm9 = vcmask 523712   ;;  %vm64_vm10 = vcmask 458112   ;;  %vm70_vm11 = vcmask 392512   ;;  %s106_s24 = sshll.u32 %s182_s23, 4  ;;  %s107_s24 = int_to_ptr.vmem [resolvable:$true] %s106_s24 }
   0xf   :  { %vm76_vm12 = vcmask 326912   ;;  %vm82_vm13 = vcmask 261312   ;;  %vm88_vm14 = vcmask 195712   ;;  %vm94_vm15 = vcmask 130112   ;;  %s143_s25 = scalar_lea.vmem %s107_s24, 16  ;;  %s147_s26 = scalar_lea.vmem %s107_s24, 32 }
  0x10   :  { %p144_p0 = scmp.ne.s32.totalorder %s107_s24, %s143_s25  ;;  %p148_p1 = scmp.lt.s32.totalorder %s107_s24, %s107_s24 }
  0x11   :  { %p149_p2 = scmp.lt.s32.totalorder %s147_s26, %s143_s25 }
  0x12   :  { %56 = vrot.lane.b32.xlu0 %v120_v9, %s175_s7  ;;  %62 = vrot.lane.b32.xlu1 %v121_v10, %s176_s8 }
  0x13   :  { %p150_p3 = por %p149_p2, %p148_p1 }
  0x15   :  { %p151_p4 = pnand %p150_p3, %p144_p0 }
  0x16   :  { %68 = vrot.lane.b32.xlu0 %v122_v11, %s177_s13  ;;  %74 = vrot.lane.b32.xlu1 %v123_v12, %s178_s14 }
  0x1a   :  { %80 = vrot.lane.b32.xlu0 %v124_v13, %s179_s19  ;;  %86 = vrot.lane.b32.xlu1 %v125_v14, %s180_s20 }
  0x1e   :  { %92 = vrot.lane.b32.xlu0 %v126_v15, %s181_s0 }
  0x74   :  { %v9_v16 = vpop.permute.xlu0 %8   ;;  %v21_v17 = vpop.permute.xlu1 %20  }
  0x75   :  { %11 = vst.msk [vmem:[#allocation2] sm:$0x1] %vm10_vm1, %v9_v16  }
  0x78   :  { %v15_v18 = vpop.permute.xlu0 %14   ;;  %v27_v19 = vpop.permute.xlu1 %26  }
  0x79   :  { %17 = vst.msk [vmem:[#allocation2] sm:$0x1] %vm16_vm2, %v15_v18  }
  0x7a   :  { %23 = vst.msk [vmem:[#allocation2] sm:$0x1] %vm22_vm3, %v21_v17  }
  0x7b   :  { %29 = vst.msk [vmem:[#allocation2] sm:$0x1] %vm28_vm4, %v27_v19  }
  0x7c   :  { %v33_v20 = vpop.permute.xlu0 %32   ;;  %v39_v21 = vpop.permute.xlu1 %38  }
  0x7d   :  { %35 = vst.msk [vmem:[#allocation2] sm:$0x1] %vm34_vm5, %v33_v20  }
  0x7e   :  { %41 = vst.msk [vmem:[#allocation2] sm:$0x1] %vm40_vm6, %v39_v21  }
  0x80   :  { %v45_v22 = vpop.permute.xlu0 %44   ;;  %v51_v23 = vpop.permute.xlu1 %50  }
  0x81   :  { %47 = vst.msk [vmem:[#allocation2] sm:$0x1] %vm46_vm7, %v45_v22  }
  0x82   :  { %53 = vst.msk [vmem:[#allocation2] sm:$0x1] %vm52_vm8, %v51_v23  }
  0x84   :  { %v57_v24 = vpop.permute.xlu0 %56   ;;  %v63_v25 = vpop.permute.xlu1 %62  }
  0x85   :  { %59 = vst.msk [vmem:[#allocation2] sm:$0x1] %vm58_vm9, %v57_v24  }
  0x86   :  { %65 = vst.msk [vmem:[#allocation2] sm:$0x1] %vm64_vm10, %v63_v25  }
  0x88   :  { %v69_v26 = vpop.permute.xlu0 %68   ;;  %v75_v27 = vpop.permute.xlu1 %74  }
  0x89   :  { %71 = vst.msk [vmem:[#allocation2] sm:$0x1] %vm70_vm11, %v69_v26  }
  0x8a   :  { %77 = vst.msk [vmem:[#allocation2] sm:$0x1] %vm76_vm12, %v75_v27  }
  0x8c   :  { %v81_v28 = vpop.permute.xlu0 %80   ;;  %v87_v29 = vpop.permute.xlu1 %86  }
  0x8d   :  { %83 = vst.msk [vmem:[#allocation2] sm:$0x1] %vm82_vm13, %v81_v28  }
  0x8e   :  { %89 = vst.msk [vmem:[#allocation2] sm:$0x1] %vm88_vm14, %v87_v29  }
  0x90   :  { %v93_v30 = vpop.permute.xlu0 %92  }
  0x91   :  { %95 = vst.msk [vmem:[#allocation2] sm:$0x1] %vm94_vm15, %v93_v30  }
  0x98   :  { %v99_v31 = vld [vmem:[#allocation2] sm:$0x1] }
  0x99   :  { %101 = vst [vmem:[#allocation0] sm:$0x1] %v99_v31 }
  0x9a   :  { %154 = shalt.err (!%p151_p4)
}
  0x9b   :  { %s155_s29 = scalar_lea.hbm %s254_s1, 16 }
  0x9c   :  { %p156_p5 = scmp.ne.s32.totalorder %s254_s1, %s155_s29  ;;  %p159_p6 = scmp.lt.u32.totalorder %s155_s29, %s254_s1 }
  0x9e   :  { %p161_p7 = pnand %p159_p6, %p156_p5 }
  0xa0   :  { %164 = shalt.err (!%p161_p7)
}
  0xa1   :  { %109 = dma.vmem_to_hbm [thread:$0]  %s107_s24, 16, %s254_s1, [#allocation1]  }
  0xa2   :  { %165 = dma.done.wait [#allocation1], 16  }
  0xa3   :  { %166 = vsyncadd [#allocation1], 4294967280 }
  0xa4   :  { %111 = vsyncpa [#allocation1], 1 }

// kernel: generator128.31
= control target key start
LH: loop header
LB: loop body
LE: loop exit
PB: predicated region body
PF: predicated region fallthrough
CT: control target
= control target key end

     0   :  { %8 = vsyncpa [#allocation3], 0  ;;  %s725_s0 = inlined_call_operand.hbm [shape: f32[512,128], index: 0, kind: input, shape index: {}]   ;;  %s726_s1 = inlined_call_operand.hbm [shape: f32[1,128], index: 1, kind: input, shape index: {}]   ;;  %s727_s2 = inlined_call_operand.hbm [shape: f32[1,128], index: 2, kind: input, shape index: {}]   ;;  %s728_s3 = inlined_call_operand.hbm [shape: f32[512,128], index: 3, kind: output, shape index: {}]  }
   0x1   :  { %9 = vsyncpa [#allocation6], 0 }
   0x2   :  { %10 = vsyncpa [#allocation4], 0  ;;  %s506_s12 = smov [#allocation5]   ;;  %s507_s14 = smov [#allocation2]  }
   0x3   :  { %s29_s13 = sshll.u32 %s506_s12, 4  ;;  %s16_s15 = sshll.u32 %s507_s14, 4  ;;  %s30_s13 = int_to_ptr.vmem [resolvable:$true] %s29_s13  ;;  %s532_s15 = int_to_ptr.vmem [resolvable:$true] %s16_s15 }
   0x4   :  { %s412_s18 = scalar_lea.hbm %s726_s1, 16 }
   0x5   :  { %p413_p0 = scmp.ne.s32.totalorder %s726_s1, %s412_s18  ;;  %p416_p1 = scmp.lt.u32.totalorder %s412_s18, %s726_s1 }
   0x7   :  { %p418_p2 = pnand %p416_p1, %p413_p0 }
   0x9   :  { %421 = shalt.err (!%p418_p2)
}
   0xa   :  { %s422_s23 = scalar_lea.vmem %s30_s13, 16  ;;  %s426_s24 = scalar_lea.vmem %s30_s13, 32 }
   0xb   :  { %p423_p3 = scmp.ne.s32.totalorder %s30_s13, %s422_s23  ;;  %p427_p4 = scmp.lt.s32.totalorder %s30_s13, %s30_s13 }
   0xc   :  { %p428_p5 = scmp.lt.s32.totalorder %s426_s24, %s422_s23 }
   0xe   :  { %p429_p6 = por %p428_p5, %p427_p4 }
  0x10   :  { %p430_p7 = pnand %p429_p6, %p423_p3 }
  0x12   :  { %433 = shalt.err (!%p430_p7)
}
  0x13   :  { %32 = dma.hbm_to_vmem [thread:$0]  %s726_s1, 16, %s30_s13, [#allocation6]  }
  0x14   :  { %s434_s29 = scalar_lea.hbm %s725_s0, 8192 }
  0x15   :  { %p435_p8 = scmp.ne.s32.totalorder %s725_s0, %s434_s29  ;;  %p438_p9 = scmp.lt.u32.totalorder %s434_s29, %s725_s0 }
  0x17   :  { %p440_p10 = pnand %p438_p9, %p435_p8 }
  0x19   :  { %443 = shalt.err (!%p440_p10)
}
  0x1a   :  { %s444_s7 = scalar_lea.vmem %s532_s15, 8192  ;;  %p449_p12 = scmp.lt.s32.totalorder %s532_s15, %s532_s15 }
  0x1b   :  { %p445_p11 = scmp.ne.s32.totalorder %s532_s15, %s444_s7  ;;  %p450_p13 = scmp.lt.s32.totalorder %s444_s7, %s444_s7 }
  0x1d   :  { %p451_p0 = por %p450_p13, %p449_p12 }
  0x1f   :  { %p452_p1 = pnand %p451_p0, %p445_p11 }
  0x21   :  { %455 = shalt.err (!%p452_p1)
}
  0x22   :  { %s508_s1 = smov 128   ;;  %s509_s8 = smov 8  }
  0x23   :  { %22 = dma.hbm_to_vmem [thread:$0]  %s725_s0, 8192, %s532_s15, [#allocation3], %s508_s1, %s508_s1, %s509_s8  }
  0x24   :  { %s510_s11 = smov [#allocation7]   ;;  %s456_s16 = scalar_lea.hbm %s727_s2, 16 }
  0x25   :  { %s39_s12 = sshll.u32 %s510_s11, 4  ;;  %p457_p2 = scmp.ne.s32.totalorder %s727_s2, %s456_s16  ;;  %s40_s12 = int_to_ptr.vmem [resolvable:$true] %s39_s12 }
  0x26   :  { %p460_p3 = scmp.lt.u32.totalorder %s456_s16, %s727_s2 }
  0x28   :  { %p462_p4 = pnand %p460_p3, %p457_p2 }
  0x2a   :  { %465 = shalt.err (!%p462_p4)
}
  0x2b   :  { %s466_s21 = scalar_lea.vmem %s40_s12, 16  ;;  %s470_s0 = scalar_lea.vmem %s40_s12, 32 }
  0x2c   :  { %p467_p5 = scmp.ne.s32.totalorder %s40_s12, %s466_s21  ;;  %p471_p6 = scmp.lt.s32.totalorder %s40_s12, %s40_s12 }
  0x2d   :  { %p472_p7 = scmp.lt.s32.totalorder %s470_s0, %s466_s21 }
  0x2f   :  { %p473_p8 = por %p472_p7, %p471_p6 }
  0x31   :  { %p474_p9 = pnand %p473_p8, %p467_p5 }
  0x33   :  { %477 = shalt.err (!%p474_p9)
}
  0x34   :  { %42 = dma.hbm_to_vmem [thread:$0]  %s727_s2, 16, %s40_s12, [#allocation6]  }
  0x35   :  { %500 = dma.done.wait [#allocation3], 8192  }
  0x36   :  { %501 = vsyncadd [#allocation3], 4294959104 }
  0x37   :  { %502 = dma.done.wait [#allocation6], 32  }
  0x38   :  { %503 = vsyncadd [#allocation6], 4294967264  ;;  %v52_v0 = vld [vmem:[#allocation2] sm:$0xff]  ;;  %v53_v4 = vld [vmem:[#allocation2 + $0x8] sm:$0xff]  ;;  %s511_s2 = smov [#allocation8]  }
  0x39   :  { %v578_v1 = vld [vmem:[#allocation5] ss:$0 sm:$0xff]  ;;  %v580_v2 = vld [vmem:[#allocation7] ss:$0 sm:$0xff]  ;;  %v54_v5 = vld [vmem:[#allocation2 + $0x10] sm:$0xff]  ;;  %s391_s23 = sshll.u32 %s511_s2, 4  ;;  %s392_s23 = int_to_ptr.vmem [resolvable:$true] %s391_s23 }
  0x3a   :  { %v123_v3 = vmul.f32 %v578_v1, %v52_v0  ;;  %v55_v6 = vld [vmem:[#allocation2 + $0x18] sm:$0xff]  ;;  %v124_v7 = vmul.f32 %v578_v1, %v53_v4  ;;  %v125_v8 = vmul.f32 %v578_v1, %v54_v5  ;;  %v56_v10 = vld [vmem:[#allocation2 + $0x20] sm:$0xff]  ;;  %v57_v11 = vld [vmem:[#allocation2 + $0x28] sm:$0xff]  ;;  %s478_s24 = scalar_lea.vmem %s392_s23, 8192  ;;  %p483_p11 = scmp.lt.s32.totalorder %s392_s23, %s392_s23 }
  0x3b   :  { %v126_v9 = vmul.f32 %v578_v1, %v55_v6  ;;  %v58_v12 = vld [vmem:[#allocation2 + $0x30] sm:$0xff]  ;;  %v127_v14 = vmul.f32 %v578_v1, %v56_v10  ;;  %v128_v15 = vmul.f32 %v578_v1, %v57_v11  ;;  %v59_v17 = vld [vmem:[#allocation2 + $0x38] sm:$0xff]  ;;  %v60_v22 = vld [vmem:[#allocation2 + $0x40] sm:$0xff]  ;;  %p479_p10 = scmp.ne.s32.totalorder %s392_s23, %s478_s24  ;;  %p484_p12 = scmp.lt.s32.totalorder %s478_s24, %s478_s24 }
  0x3c   :  { %v194_v13 = vadd.f32 %v580_v2, %v123_v3  ;;  %v129_v16 = vmul.f32 %v578_v1, %v58_v12  ;;  %v195_v18 = vadd.f32 %v580_v2, %v124_v7  ;;  %v196_v19 = vadd.f32 %v580_v2, %v125_v8  ;;  %v61_v27 = vld [vmem:[#allocation2 + $0x48] sm:$0xff]  ;;  %v62_v28 = vld [vmem:[#allocation2 + $0x50] sm:$0xff]  ;;  %v63_v29 = vld [vmem:[#allocation2 + $0x58] sm:$0xff] }
  0x3d   :  { %v197_v20 = vadd.f32 %v580_v2, %v126_v9  ;;  %v130_v21 = vmul.f32 %v578_v1, %v59_v17  ;;  %v198_v24 = vadd.f32 %v580_v2, %v127_v14  ;;  %v199_v25 = vadd.f32 %v580_v2, %v128_v15  ;;  %v64_v34 = vld [vmem:[#allocation2 + $0x60] sm:$0xff]  ;;  %v65_v35 = vld [vmem:[#allocation2 + $0x68] sm:$0xff]  ;;  %v66_v36 = vld [vmem:[#allocation2 + $0x70] sm:$0xff]  ;;  %p485_p13 = por %p484_p12, %p483_p11 }
  0x3e   :  { %v258_v23 = vmax.f32 %v194_v13, 0.0  ;;  %v200_v26 = vadd.f32 %v580_v2, %v129_v16  ;;  %v259_v30 = vmax.f32 %v195_v18, 0.0  ;;  %v260_v31 = vmax.f32 %v196_v19, 0.0  ;;  %v67_v41 = vld [vmem:[#allocation2 + $0x78] sm:$0xff]  ;;  %v68_v54 = vld [vmem:[#allocation2 + $0x80] sm:$0xff]  ;;  %v69_v59 = vld [vmem:[#allocation2 + $0x88] sm:$0xff] }
  0x3f   :  { %v261_v32 = vmax.f32 %v197_v20, 0.0  ;;  %v201_v33 = vadd.f32 %v580_v2, %v130_v21  ;;  %v262_v37 = vmax.f32 %v198_v24, 0.0  ;;  %v263_v38 = vmax.f32 %v199_v25, 0.0  ;;  %v70_v60 = vld [vmem:[#allocation2 + $0x90] sm:$0xff]  ;;  %v71_v61 = vld [vmem:[#allocation2 + $0x98] sm:$0xff]  ;;  %v72_v4 = vld [vmem:[#allocation2 + $0xa0] sm:$0xff]  ;;  %p486_p0 = pnand %p485_p13, %p479_p10 }
  0x40   :  { %322 = vst [vmem:[#allocation8] sm:$0xff] %v258_v23  ;;  %v264_v39 = vmax.f32 %v200_v26, 0.0  ;;  %v131_v40 = vmul.f32 %v578_v1, %v60_v22  ;;  %323 = vst [vmem:[#allocation8 + $0x8] sm:$0xff] %v259_v30  ;;  %v132_v43 = vmul.f32 %v578_v1, %v61_v27  ;;  %v133_v44 = vmul.f32 %v578_v1, %v62_v28  ;;  %v73_v5 = vld [vmem:[#allocation2 + $0xa8] sm:$0xff]  ;;  %v74_v6 = vld [vmem:[#allocation2 + $0xb0] sm:$0xff] }
  0x41   :  { %324 = vst [vmem:[#allocation8 + $0x10] sm:$0xff] %v260_v31  ;;  %325 = vst [vmem:[#allocation8 + $0x18] sm:$0xff] %v261_v32  ;;  %v265_v42 = vmax.f32 %v201_v33, 0.0  ;;  %v134_v45 = vmul.f32 %v578_v1, %v63_v29  ;;  %v135_v47 = vmul.f32 %v578_v1, %v64_v34  ;;  %v136_v48 = vmul.f32 %v578_v1, %v65_v35  ;;  %v75_v11 = vld [vmem:[#allocation2 + $0xb8] sm:$0xff]  ;;  %v76_v24 = vld [vmem:[#allocation2 + $0xc0] sm:$0xff] }
  0x42   :  { %326 = vst [vmem:[#allocation8 + $0x20] sm:$0xff] %v262_v37  ;;  %327 = vst [vmem:[#allocation8 + $0x28] sm:$0xff] %v263_v38  ;;  %v202_v46 = vadd.f32 %v580_v2, %v131_v40  ;;  %v137_v49 = vmul.f32 %v578_v1, %v66_v36  ;;  %v203_v50 = vadd.f32 %v580_v2, %v132_v43  ;;  %v77_v29 = vld [vmem:[#allocation2 + $0xc8] sm:$0xff]  ;;  %v78_v30 = vld [vmem:[#allocation2 + $0xd0] sm:$0xff] }
  0x43   :  { %328 = vst [vmem:[#allocation8 + $0x30] sm:$0xff] %v264_v39  ;;  %329 = vst [vmem:[#allocation8 + $0x38] sm:$0xff] %v265_v42  ;;  %v204_v51 = vadd.f32 %v580_v2, %v133_v44  ;;  %v205_v52 = vadd.f32 %v580_v2, %v134_v45  ;;  %v138_v53 = vmul.f32 %v578_v1, %v67_v41  ;;  %v79_v31 = vld [vmem:[#allocation2 + $0xd8] sm:$0xff]  ;;  %v80_v36 = vld [vmem:[#allocation2 + $0xe0] sm:$0xff] }
  0x44   :  { %v266_v55 = vmax.f32 %v202_v46, 0.0  ;;  %v206_v56 = vadd.f32 %v580_v2, %v135_v47  ;;  %v207_v57 = vadd.f32 %v580_v2, %v136_v48  ;;  %v208_v58 = vadd.f32 %v580_v2, %v137_v49  ;;  %v81_v37 = vld [vmem:[#allocation2 + $0xe8] sm:$0xff]  ;;  %v82_v38 = vld [vmem:[#allocation2 + $0xf0] sm:$0xff]  ;;  %v83_v43 = vld [vmem:[#allocation2 + $0xf8] sm:$0xff] }
  0x45   :  { %v267_v62 = vmax.f32 %v203_v50, 0.0  ;;  %v268_v63 = vmax.f32 %v204_v51, 0.0  ;;  %v269_v0 = vmax.f32 %v205_v52, 0.0  ;;  %v209_v3 = vadd.f32 %v580_v2, %v138_v53 }
  0x46   :  { %330 = vst [vmem:[#allocation8 + $0x40] sm:$0xff] %v266_v55  ;;  %v270_v7 = vmax.f32 %v206_v56, 0.0  ;;  %v271_v8 = vmax.f32 %v207_v57, 0.0  ;;  %v272_v9 = vmax.f32 %v208_v58, 0.0  ;;  %v139_v10 = vmul.f32 %v578_v1, %v68_v54  ;;  %v84_v56 = vld [vmem:[#allocation2 + $0x100] sm:$0xff] }
  0x47   :  { %331 = vst [vmem:[#allocation8 + $0x48] sm:$0xff] %v267_v62  ;;  %332 = vst [vmem:[#allocation8 + $0x50] sm:$0xff] %v268_v63  ;;  %v273_v12 = vmax.f32 %v209_v3, 0.0  ;;  %v140_v13 = vmul.f32 %v578_v1, %v69_v59  ;;  %v141_v14 = vmul.f32 %v578_v1, %v70_v60  ;;  %v142_v15 = vmul.f32 %v578_v1, %v71_v61  ;;  %v85_v61 = vld [vmem:[#allocation2 + $0x108] sm:$0xff]  ;;  %v86_v62 = vld [vmem:[#allocation2 + $0x110] sm:$0xff] }
  0x48   :  { %333 = vst [vmem:[#allocation8 + $0x58] sm:$0xff] %v269_v0  ;;  %334 = vst [vmem:[#allocation8 + $0x60] sm:$0xff] %v270_v7  ;;  %v210_v16 = vadd.f32 %v580_v2, %v139_v10  ;;  %v143_v17 = vmul.f32 %v578_v1, %v72_v4  ;;  %v144_v18 = vmul.f32 %v578_v1, %v73_v5  ;;  %v87_v63 = vld [vmem:[#allocation2 + $0x118] sm:$0xff]  ;;  %v89_v7 = vld [vmem:[#allocation2 + $0x128] sm:$0xff] }
  0x49   :  { %335 = vst [vmem:[#allocation8 + $0x68] sm:$0xff] %v271_v8  ;;  %336 = vst [vmem:[#allocation8 + $0x70] sm:$0xff] %v272_v9  ;;  %v145_v19 = vmul.f32 %v578_v1, %v74_v6  ;;  %v211_v20 = vadd.f32 %v580_v2, %v140_v13  ;;  %v212_v21 = vadd.f32 %v580_v2, %v141_v14  ;;  %v88_v6 = vld [vmem:[#allocation2 + $0x120] sm:$0xff]  ;;  %v90_v8 = vld [vmem:[#allocation2 + $0x130] sm:$0xff] }
  0x4a   :  { %337 = vst [vmem:[#allocation8 + $0x78] sm:$0xff] %v273_v12  ;;  %v213_v22 = vadd.f32 %v580_v2, %v142_v15  ;;  %v146_v23 = vmul.f32 %v578_v1, %v75_v11  ;;  %v274_v25 = vmax.f32 %v210_v16, 0.0  ;;  %v214_v26 = vadd.f32 %v580_v2, %v143_v17  ;;  %v91_v13 = vld [vmem:[#allocation2 + $0x138] sm:$0xff] }
  0x4b   :  { %v215_v27 = vadd.f32 %v580_v2, %v144_v18  ;;  %v216_v28 = vadd.f32 %v580_v2, %v145_v19  ;;  %v275_v32 = vmax.f32 %v211_v20, 0.0  ;;  %v276_v33 = vmax.f32 %v212_v21, 0.0 }
  0x4c   :  { %v277_v34 = vmax.f32 %v213_v22, 0.0  ;;  %v217_v35 = vadd.f32 %v580_v2, %v146_v23  ;;  %338 = vst [vmem:[#allocation8 + $0x80] sm:$0xff] %v274_v25  ;;  %v278_v39 = vmax.f32 %v214_v26, 0.0  ;;  %v147_v42 = vmul.f32 %v578_v1, %v76_v24  ;;  %v92_v26 = vld [vmem:[#allocation2 + $0x140] sm:$0xff] }
  0x4d   :  { %v279_v40 = vmax.f32 %v215_v27, 0.0  ;;  %v280_v41 = vmax.f32 %v216_v28, 0.0  ;;  %339 = vst [vmem:[#allocation8 + $0x88] sm:$0xff] %v275_v32  ;;  %340 = vst [vmem:[#allocation8 + $0x90] sm:$0xff] %v276_v33  ;;  %v148_v45 = vmul.f32 %v578_v1, %v77_v29  ;;  %v149_v46 = vmul.f32 %v578_v1, %v78_v30  ;;  %v94_v32 = vld [vmem:[#allocation2 + $0x150] sm:$0xff]  ;;  %v95_v33 = vld [vmem:[#allocation2 + $0x158] sm:$0xff] }
  0x4e   :  { %341 = vst [vmem:[#allocation8 + $0x98] sm:$0xff] %v277_v34  ;;  %v281_v44 = vmax.f32 %v217_v35, 0.0  ;;  %v150_v47 = vmul.f32 %v578_v1, %v79_v31  ;;  %342 = vst [vmem:[#allocation8 + $0xa0] sm:$0xff] %v278_v39  ;;  %v218_v48 = vadd.f32 %v580_v2, %v147_v42  ;;  %v151_v49 = vmul.f32 %v578_v1, %v80_v36  ;;  %v93_v31 = vld [vmem:[#allocation2 + $0x148] sm:$0xff] }
  0x4f   :  { %343 = vst [vmem:[#allocation8 + $0xa8] sm:$0xff] %v279_v40  ;;  %344 = vst [vmem:[#allocation8 + $0xb0] sm:$0xff] %v280_v41  ;;  %v152_v50 = vmul.f32 %v578_v1, %v81_v37  ;;  %v153_v51 = vmul.f32 %v578_v1, %v82_v38  ;;  %v219_v52 = vadd.f32 %v580_v2, %v148_v45  ;;  %v96_v38 = vld [vmem:[#allocation2 + $0x160] sm:$0xff]  ;;  %v97_v39 = vld [vmem:[#allocation2 + $0x168] sm:$0xff] }
  0x50   :  { %345 = vst [vmem:[#allocation8 + $0xb8] sm:$0xff] %v281_v44  ;;  %v220_v53 = vadd.f32 %v580_v2, %v149_v46  ;;  %v221_v54 = vadd.f32 %v580_v2, %v150_v47  ;;  %v154_v55 = vmul.f32 %v578_v1, %v83_v43  ;;  %v282_v57 = vmax.f32 %v218_v48, 0.0  ;;  %v98_v40 = vld [vmem:[#allocation2 + $0x170] sm:$0xff]  ;;  %v99_v45 = vld [vmem:[#allocation2 + $0x178] sm:$0xff] }
  0x51   :  { %v222_v58 = vadd.f32 %v580_v2, %v151_v49  ;;  %v223_v59 = vadd.f32 %v580_v2, %v152_v50  ;;  %v224_v60 = vadd.f32 %v580_v2, %v153_v51  ;;  %v283_v0 = vmax.f32 %v219_v52, 0.0 }
  0x52   :  { %v284_v3 = vmax.f32 %v220_v53, 0.0  ;;  %v285_v4 = vmax.f32 %v221_v54, 0.0  ;;  %v225_v5 = vadd.f32 %v580_v2, %v154_v55  ;;  %346 = vst [vmem:[#allocation8 + $0xc0] sm:$0xff] %v282_v57  ;;  %v155_v12 = vmul.f32 %v578_v1, %v84_v56 }
  0x53   :  { %v286_v9 = vmax.f32 %v222_v58, 0.0  ;;  %v287_v10 = vmax.f32 %v223_v59, 0.0  ;;  %v288_v11 = vmax.f32 %v224_v60, 0.0  ;;  %347 = vst [vmem:[#allocation8 + $0xc8] sm:$0xff] %v283_v0  ;;  %v156_v15 = vmul.f32 %v578_v1, %v85_v61  ;;  %v100_v58 = vld [vmem:[#allocation2 + $0x180] sm:$0xff]  ;;  %v102_v0 = vld [vmem:[#allocation2 + $0x190] sm:$0xff] }
  0x54   :  { %348 = vst [vmem:[#allocation8 + $0xd0] sm:$0xff] %v284_v3  ;;  %349 = vst [vmem:[#allocation8 + $0xd8] sm:$0xff] %v285_v4  ;;  %v289_v14 = vmax.f32 %v225_v5, 0.0  ;;  %v157_v16 = vmul.f32 %v578_v1, %v86_v62  ;;  %v158_v17 = vmul.f32 %v578_v1, %v87_v63  ;;  %v226_v18 = vadd.f32 %v580_v2, %v155_v12  ;;  %v101_v63 = vld [vmem:[#allocation2 + $0x188] sm:$0xff]  ;;  %v103_v3 = vld [vmem:[#allocation2 + $0x198] sm:$0xff] }
  0x55   :  { %350 = vst [vmem:[#allocation8 + $0xe0] sm:$0xff] %v286_v9  ;;  %351 = vst [vmem:[#allocation8 + $0xe8] sm:$0xff] %v287_v10  ;;  %v159_v19 = vmul.f32 %v578_v1, %v88_v6  ;;  %v160_v20 = vmul.f32 %v578_v1, %v89_v7  ;;  %v161_v21 = vmul.f32 %v578_v1, %v90_v8  ;;  %v104_v8 = vld [vmem:[#allocation2 + $0x1a0] sm:$0xff]  ;;  %v105_v9 = vld [vmem:[#allocation2 + $0x1a8] sm:$0xff] }
  0x56   :  { %352 = vst [vmem:[#allocation8 + $0xf0] sm:$0xff] %v288_v11  ;;  %353 = vst [vmem:[#allocation8 + $0xf8] sm:$0xff] %v289_v14  ;;  %v227_v22 = vadd.f32 %v580_v2, %v156_v15  ;;  %v228_v23 = vadd.f32 %v580_v2, %v157_v16  ;;  %v229_v24 = vadd.f32 %v580_v2, %v158_v17  ;;  %v290_v27 = vmax.f32 %v226_v18, 0.0  ;;  %v106_v10 = vld [vmem:[#allocation2 + $0x1b0] sm:$0xff]  ;;  %v107_v15 = vld [vmem:[#allocation2 + $0x1b8] sm:$0xff] }
  0x57   :  { %v162_v25 = vmul.f32 %v578_v1, %v91_v13  ;;  %v230_v28 = vadd.f32 %v580_v2, %v159_v19  ;;  %v231_v29 = vadd.f32 %v580_v2, %v160_v20  ;;  %v232_v30 = vadd.f32 %v580_v2, %v161_v21 }
  0x58   :  { %v291_v34 = vmax.f32 %v227_v22, 0.0  ;;  %v292_v35 = vmax.f32 %v228_v23, 0.0  ;;  %v293_v36 = vmax.f32 %v229_v24, 0.0  ;;  %354 = vst [vmem:[#allocation8 + $0x100] sm:$0xff] %v290_v27  ;;  %v163_v44 = vmul.f32 %v578_v1, %v92_v26 }
  0x59   :  { %v233_v37 = vadd.f32 %v580_v2, %v162_v25  ;;  %v294_v41 = vmax.f32 %v230_v28, 0.0  ;;  %v295_v42 = vmax.f32 %v231_v29, 0.0  ;;  %v296_v43 = vmax.f32 %v232_v30, 0.0  ;;  %v108_v28 = vld [vmem:[#allocation2 + $0x1c0] sm:$0xff] }
  0x5a   :  { %355 = vst [vmem:[#allocation8 + $0x108] sm:$0xff] %v291_v34  ;;  %356 = vst [vmem:[#allocation8 + $0x110] sm:$0xff] %v292_v35  ;;  %v164_v47 = vmul.f32 %v578_v1, %v93_v31  ;;  %v165_v48 = vmul.f32 %v578_v1, %v94_v32  ;;  %v166_v49 = vmul.f32 %v578_v1, %v95_v33  ;;  %v109_v33 = vld [vmem:[#allocation2 + $0x1c8] sm:$0xff]  ;;  %v110_v34 = vld [vmem:[#allocation2 + $0x1d0] sm:$0xff] }
  0x5b   :  { %357 = vst [vmem:[#allocation8 + $0x118] sm:$0xff] %v293_v36  ;;  %v297_v46 = vmax.f32 %v233_v37, 0.0  ;;  %358 = vst [vmem:[#allocation8 + $0x120] sm:$0xff] %v294_v41  ;;  %v234_v50 = vadd.f32 %v580_v2, %v163_v44  ;;  %v167_v51 = vmul.f32 %v578_v1, %v96_v38  ;;  %v168_v52 = vmul.f32 %v578_v1, %v97_v39  ;;  %v111_v35 = vld [vmem:[#allocation2 + $0x1d8] sm:$0xff]  ;;  %v113_v41 = vld [vmem:[#allocation2 + $0x1e8] sm:$0xff] }
  0x5c   :  { %359 = vst [vmem:[#allocation8 + $0x128] sm:$0xff] %v295_v42  ;;  %360 = vst [vmem:[#allocation8 + $0x130] sm:$0xff] %v296_v43  ;;  %v169_v53 = vmul.f32 %v578_v1, %v98_v40  ;;  %v235_v54 = vadd.f32 %v580_v2, %v164_v47  ;;  %v236_v55 = vadd.f32 %v580_v2, %v165_v48  ;;  %v112_v40 = vld [vmem:[#allocation2 + $0x1e0] sm:$0xff]  ;;  %v114_v42 = vld [vmem:[#allocation2 + $0x1f0] sm:$0xff] }
  0x5d   :  { %361 = vst [vmem:[#allocation8 + $0x138] sm:$0xff] %v297_v46  ;;  %v237_v56 = vadd.f32 %v580_v2, %v166_v49  ;;  %v170_v57 = vmul.f32 %v578_v1, %v99_v45  ;;  %v298_v59 = vmax.f32 %v234_v50, 0.0  ;;  %v238_v60 = vadd.f32 %v580_v2, %v167_v51  ;;  %v115_v47 = vld [vmem:[#allocation2 + $0x1f8] sm:$0xff] }
  0x5e   :  { %v239_v61 = vadd.f32 %v580_v2, %v168_v52  ;;  %v240_v62 = vadd.f32 %v580_v2, %v169_v53  ;;  %v299_v4 = vmax.f32 %v235_v54, 0.0  ;;  %v300_v5 = vmax.f32 %v236_v55, 0.0 }
  0x5f   :  { %v301_v6 = vmax.f32 %v237_v56, 0.0  ;;  %v241_v7 = vadd.f32 %v580_v2, %v170_v57  ;;  %362 = vst [vmem:[#allocation8 + $0x140] sm:$0xff] %v298_v59  ;;  %v302_v11 = vmax.f32 %v238_v60, 0.0  ;;  %v171_v14 = vmul.f32 %v578_v1, %v100_v58 }
  0x60   :  { %v303_v12 = vmax.f32 %v239_v61, 0.0  ;;  %v304_v13 = vmax.f32 %v240_v62, 0.0  ;;  %363 = vst [vmem:[#allocation8 + $0x148] sm:$0xff] %v299_v4  ;;  %364 = vst [vmem:[#allocation8 + $0x150] sm:$0xff] %v300_v5  ;;  %v172_v17 = vmul.f32 %v578_v1, %v101_v63  ;;  %v173_v18 = vmul.f32 %v578_v1, %v102_v0 }
  0x61   :  { %365 = vst [vmem:[#allocation8 + $0x158] sm:$0xff] %v301_v6  ;;  %v305_v16 = vmax.f32 %v241_v7, 0.0  ;;  %v174_v19 = vmul.f32 %v578_v1, %v103_v3  ;;  %366 = vst [vmem:[#allocation8 + $0x160] sm:$0xff] %v302_v11  ;;  %v242_v20 = vadd.f32 %v580_v2, %v171_v14  ;;  %v175_v21 = vmul.f32 %v578_v1, %v104_v8 }
  0x62   :  { %367 = vst [vmem:[#allocation8 + $0x168] sm:$0xff] %v303_v12  ;;  %368 = vst [vmem:[#allocation8 + $0x170] sm:$0xff] %v304_v13  ;;  %v176_v22 = vmul.f32 %v578_v1, %v105_v9  ;;  %v177_v23 = vmul.f32 %v578_v1, %v106_v10  ;;  %v243_v24 = vadd.f32 %v580_v2, %v172_v17 }
  0x63   :  { %369 = vst [vmem:[#allocation8 + $0x178] sm:$0xff] %v305_v16  ;;  %v244_v25 = vadd.f32 %v580_v2, %v173_v18  ;;  %v245_v26 = vadd.f32 %v580_v2, %v174_v19  ;;  %v178_v27 = vmul.f32 %v578_v1, %v107_v15  ;;  %v306_v29 = vmax.f32 %v242_v20, 0.0 }
  0x64   :  { %v246_v30 = vadd.f32 %v580_v2, %v175_v21  ;;  %v247_v31 = vadd.f32 %v580_v2, %v176_v22  ;;  %v248_v32 = vadd.f32 %v580_v2, %v177_v23  ;;  %v307_v36 = vmax.f32 %v243_v24, 0.0 }
  0x65   :  { %v308_v37 = vmax.f32 %v244_v25, 0.0  ;;  %v309_v38 = vmax.f32 %v245_v26, 0.0  ;;  %v249_v39 = vadd.f32 %v580_v2, %v178_v27  ;;  %370 = vst [vmem:[#allocation8 + $0x180] sm:$0xff] %v306_v29  ;;  %v179_v46 = vmul.f32 %v578_v1, %v108_v28 }
  0x66   :  { %v310_v43 = vmax.f32 %v246_v30, 0.0  ;;  %v311_v44 = vmax.f32 %v247_v31, 0.0  ;;  %v312_v45 = vmax.f32 %v248_v32, 0.0  ;;  %371 = vst [vmem:[#allocation8 + $0x188] sm:$0xff] %v307_v36  ;;  %v180_v49 = vmul.f32 %v578_v1, %v109_v33 }
  0x67   :  { %372 = vst [vmem:[#allocation8 + $0x190] sm:$0xff] %v308_v37  ;;  %373 = vst [vmem:[#allocation8 + $0x198] sm:$0xff] %v309_v38  ;;  %v313_v48 = vmax.f32 %v249_v39, 0.0  ;;  %v181_v50 = vmul.f32 %v578_v1, %v110_v34  ;;  %v182_v51 = vmul.f32 %v578_v1, %v111_v35  ;;  %v250_v52 = vadd.f32 %v580_v2, %v179_v46 }
  0x68   :  { %374 = vst [vmem:[#allocation8 + $0x1a0] sm:$0xff] %v310_v43  ;;  %375 = vst [vmem:[#allocation8 + $0x1a8] sm:$0xff] %v311_v44  ;;  %v183_v53 = vmul.f32 %v578_v1, %v112_v40  ;;  %v184_v54 = vmul.f32 %v578_v1, %v113_v41  ;;  %v185_v55 = vmul.f32 %v578_v1, %v114_v42 }
  0x69   :  { %376 = vst [vmem:[#allocation8 + $0x1b0] sm:$0xff] %v312_v45  ;;  %377 = vst [vmem:[#allocation8 + $0x1b8] sm:$0xff] %v313_v48  ;;  %v251_v56 = vadd.f32 %v580_v2, %v180_v49  ;;  %v252_v57 = vadd.f32 %v580_v2, %v181_v50  ;;  %v253_v58 = vadd.f32 %v580_v2, %v182_v51  ;;  %v314_v60 = vmax.f32 %v250_v52, 0.0 }
  0x6a   :  { %v186_v59 = vmul.f32 %v578_v1, %v115_v47  ;;  %v254_v61 = vadd.f32 %v580_v2, %v183_v53  ;;  %v255_v62 = vadd.f32 %v580_v2, %v184_v54  ;;  %v256_v63 = vadd.f32 %v580_v2, %v185_v55 }
  0x6b   :  { %v315_v0 = vmax.f32 %v251_v56, 0.0  ;;  %v316_v3 = vmax.f32 %v252_v57, 0.0  ;;  %v317_v4 = vmax.f32 %v253_v58, 0.0  ;;  %378 = vst [vmem:[#allocation8 + $0x1c0] sm:$0xff] %v314_v60 }
  0x6c   :  { %v257_v5 = vadd.f32 %v580_v2, %v186_v59  ;;  %v318_v6 = vmax.f32 %v254_v61, 0.0  ;;  %v319_v7 = vmax.f32 %v255_v62, 0.0  ;;  %v320_v8 = vmax.f32 %v256_v63, 0.0 }
  0x6d   :  { %379 = vst [vmem:[#allocation8 + $0x1c8] sm:$0xff] %v315_v0  ;;  %380 = vst [vmem:[#allocation8 + $0x1d0] sm:$0xff] %v316_v3 }
  0x6e   :  { %381 = vst [vmem:[#allocation8 + $0x1d8] sm:$0xff] %v317_v4  ;;  %v321_v1 = vmax.f32 %v257_v5, 0.0  ;;  %382 = vst [vmem:[#allocation8 + $0x1e0] sm:$0xff] %v318_v6 }
  0x6f   :  { %383 = vst [vmem:[#allocation8 + $0x1e8] sm:$0xff] %v319_v7  ;;  %384 = vst [vmem:[#allocation8 + $0x1f0] sm:$0xff] %v320_v8 }
  0x70   :  { %385 = vst [vmem:[#allocation8 + $0x1f8] sm:$0xff] %v321_v1 }
  0x71   :  { %489 = shalt.err (!%p486_p0)
}
  0x72   :  { %s490_s27 = scalar_lea.hbm %s728_s3, 8192 }
  0x73   :  { %p491_p1 = scmp.ne.s32.totalorder %s728_s3, %s490_s27  ;;  %p494_p2 = scmp.lt.u32.totalorder %s490_s27, %s728_s3 }
  0x75   :  { %p496_p3 = pnand %p494_p2, %p491_p1 }
  0x77   :  { %499 = shalt.err (!%p496_p3)
}
  0x78   :  { %397 = dma.vmem_to_hbm [thread:$0]  %s392_s23, 8192, %s728_s3, [#allocation4], %s508_s1, %s508_s1, %s509_s8  }
  0x79   :  { %504 = dma.done.wait [#allocation4], 8192  }
  0x7a   :  { %505 = vsyncadd [#allocation4], 4294959104 }
  0x7b   :  { %401 = vsyncpa [#allocation3], 1 }
  0x7c   :  { %402 = vsyncpa [#allocation6], 1 }
  0x7d   :  { %403 = vsyncpa [#allocation4], 1 }

// kernel: generator128.32
= control target key start
LH: loop header
LB: loop body
LE: loop exit
PB: predicated region body
PF: predicated region fallthrough
CT: control target
= control target key end

     0   :  { %7 = vsyncpa [#allocation3], 0  ;;  %s4515_s0 = inlined_call_operand.hbm [shape: f32[8480,32], index: 0, kind: input, shape index: {}]   ;;  %s4516_s1 = inlined_call_operand.hbm [shape: f32[32,12], index: 1, kind: input, shape index: {}]   ;;  %s4517_s2 = inlined_call_operand.hbm [shape: f32[8480,12], index: 2, kind: output, shape index: {}]  }
   0x1   :  { %9 = vsyncpa [#allocation3 + $0x1], 0 }
   0x2   :  { %10 = vsyncpa [#allocation6], 0 }
   0x3   :  { %11 = vsyncpa [#allocation4], 0 }
   0x4   :  { %13 = vsyncpa [#allocation4 + $0x1], 0  ;;  %s3460_s9 = smov 0   ;;  %s3462_s10 = smov 0  }
   0x5   :  { %s3464_s11 = smov 0   ;;  %s3466_s12 = smov 0  }
   0x6 LB: > { %s3481_s13 = sadd.s32 4294967295, %s3436_s12   ;;  %s2467_s14 = sadd.s32 4294967294, %s3436_s12   ;;  %s3436_s12 = sphi %s3466_s12, %s4536_s12   ;;  %s3432_s11 = sphi %s3464_s11, %s4535_s11   ;;  %s3428_s10 = sphi %s3462_s10, %s4534_s10   ;;  %s3424_s9 = sphi %s3460_s9, %s4533_s9  }
   0x7   : > { %p39_p0 = scmp.ne.s32.totalorder %s3428_s10, %s3424_s9  ;;  %p4518_p1 = scmp.eq.s32.totalorder %s3481_s13, 0 }
   0x8   : > { %p90_p3 = scmp.eq.s32.totalorder %s2467_s14, 4  ;;  %p2468_p5 = scmp.ge.s32.totalorder %s3436_s12, 1 }
   0x9   : > { %p3490_p4 = por %p4518_p1, %p39_p0  ;;  %p97_p7 = scmp.lt.s32.totalorder %s3436_s12, 6 }
   0xa   : > { %p3495_p6 = por %p90_p3, %p39_p0  ;;  %s3438_s18 = smov [#allocation5]  }
   0xb   : > { %s4521_s15 = scalar_select %p3490_p4, 1, 0 }
   0xc   : > { %s4522_s16 = scalar_select %p3495_p6, 1, 0 }
   0xd   : > { %p3500_p8 = pnand %p2468_p5, %p97_p7  ;;  %s109_s19 = sshll.u32 %s3438_s18, 4  ;;  %s110_s19 = int_to_ptr.vmem [resolvable:$true] %s109_s19 }
   0xe   : > { %s3513_s21 = sadd.s32 1, %s3436_s12   ;;  %s26_s22 = sadd.s32 1, %s3432_s11 }
   0xf   : > { %s4523_s17 = scalar_select %p3500_p8, 1, 0 }
  0x10   : > { %p3255_p9 = pneg %p3500_p8  ;;  %s23_s23 = ssub.s32 %s3436_s12, %s3513_s21 }
  0x11   : > { %s3308_s26 = scalar_lea.hbm %s4516_s1, 512 }
  0x12   : > { %p3508_p10 = pnand %p3255_p9, %p4518_p1  ;;  %p3309_p11 = scmp.ne.s32.totalorder %s4516_s1, %s3308_s26 }
  0x13   : > { %p3315_p3 = scmp.lt.u32.totalorder %s3308_s26, %s4516_s1 }
  0x14   : > { %p3310_p12 = pneg %p3508_p10 }
  0x16   : > { %p3311_p13 = pnand %p3310_p12, %p3309_p11 }
  0x18   : > { %p3312_p0 = pneg %p3311_p13 }
  0x1a   : > { %p3317_p5 = pnand %p3315_p3, %p3312_p0 }
  0x1c   : > { %3320 = shalt.err (!%p3317_p5)
}
  0x1d   : > { %s3321_s3 = scalar_lea.vmem %s110_s19, 512  ;;  %p3329_p2 = scmp.lt.s32.totalorder %s110_s19, %s110_s19 }
  0x1e   : > { %p3322_p7 = scmp.ne.s32.totalorder %s110_s19, %s3321_s3  ;;  %p3330_p6 = scmp.lt.s32.totalorder %s3321_s3, %s3321_s3 }
  0x20   : > { %p3324_p9 = pnand %p3322_p7, %p3310_p12  ;;  %p3331_p4 = por %p3330_p6, %p3329_p2 }
  0x22   : > { %p3325_p1 = pneg %p3324_p9 }
  0x24   : > { %p3332_p8 = pnand %p3331_p4, %p3325_p1 }
  0x26   : > { %3335 = shalt.err (!%p3332_p8)
}
  0x27   : > { %s3439_s4 = smov 128   ;;  %s3440_s5 = smov 8  }
  0x28   : > { %3258 = dma.hbm_to_vmem [thread:$0]  (!%p3508_p10), %s4516_s1, 512, %s110_s19, [#allocation6], %s3439_s4, %s3439_s4, %s3440_s5  }
  0x29   : > { %p24_p1 = scmp.eq.s32.totalorder %s23_s23, 0  ;;  %p33_p2 = scmp.ne.s32.totalorder %s3432_s11, %s3428_s10 }
  0x2a   : > { %p34_p4 = scmp.eq.s32.totalorder %s3436_s12, 0  ;;  %p3268_p6 = scmp.lt.s32.totalorder %s3436_s12, 5 }
  0x2b   : > { %s3542_s8 = scalar_select %p24_p1, %s3432_s11, %s26_s22  }
  0x2c   : > { %p35_p8 = por %p34_p4, %p33_p2  ;;  %p4525_p11 = scmp.eq.s32.totalorder %s3481_s13, 4 }
  0x2d   : > { %s123_s18 = sand.u32 1, %s3432_s11   ;;  %s2689_s20 = smul.u32 27136, %s3436_s12 }
  0x2e   : > { %p3546_p12 = por %p4525_p11, %p33_p2  ;;  %s3245_s24 = smul.u32 1696, %s123_s18 }
  0x2f   : > { %p3552_p13 = pnand %p3268_p6, %p35_p8  ;;  %s3559_s22 = scalar_lea.hbm %s4515_s0, %s2689_s20 }
  0x30   : > { %s127_s26 = scalar_lea.vmem [#allocation2], %s3245_s24  ;;  %s3563_s28 = scalar_lea.sflag [#allocation3], %s123_s18 }
  0x31   : > { %s134_s27 = sshll.u32 %s127_s26, 4  ;;  %s3336_s29 = scalar_lea.hbm %s3559_s22, 27136  ;;  %s3561_s27 = int_to_ptr.vmem [resolvable:$true] %s134_s27 }
  0x32   : > { %p3337_p10 = scmp.ne.s32.totalorder %s3559_s22, %s3336_s29  ;;  %p3338_p0 = pneg %p3552_p13 }
  0x33   : > { %s3341_s6 = scalar_lea.hbm %s4515_s0, 135680  ;;  %p3342_p7 = scmp.lt.u32.totalorder %s3559_s22, %s4515_s0 }
  0x34   : > { %p3339_p3 = pnand %p3338_p0, %p3337_p10  ;;  %p3343_p9 = scmp.lt.u32.totalorder %s3341_s6, %s3336_s29 }
  0x35   : > { %p3345_p2 = scmp.lt.u32.totalorder %s3336_s29, %s3559_s22 }
  0x36   : > { %p3340_p5 = pneg %p3339_p3  ;;  %p3344_p1 = por %p3343_p9, %p3342_p7 }
  0x38   : > { %p3346_p4 = por %p3345_p2, %p3344_p1 }
  0x3a   : > { %p3347_p6 = pnand %p3346_p4, %p3340_p5 }
  0x3c   : > { %3350 = shalt.err (!%p3347_p6)
}
  0x3d   : > { %s3351_s18 = scalar_lea.vmem %s3561_s27, 27136  ;;  %s3441_s24 = smov [#allocation2]  }
  0x3e   : > { %p3352_p8 = scmp.ne.s32.totalorder %s3561_s27, %s3351_s18  ;;  %s3356_s19 = sshll.u32 %s3441_s24, 4  ;;  %s3357_s19 = int_to_ptr.vmem [resolvable:$false] %s3356_s19 }
  0x3f   : > { %s3358_s23 = scalar_lea.vmem %s3357_s19, 54272  ;;  %p3359_p3 = scmp.lt.s32.totalorder %s3561_s27, %s3357_s19 }
  0x40   : > { %p3354_p11 = pnand %p3352_p8, %p3338_p0  ;;  %p3360_p7 = scmp.lt.s32.totalorder %s3358_s23, %s3351_s18 }
  0x42   : > { %p3355_p10 = pneg %p3354_p11  ;;  %p3361_p9 = por %p3360_p7, %p3359_p3 }
  0x44   : > { %p3362_p1 = pnand %p3361_p9, %p3355_p10 }
  0x46   : > { %3365 = shalt.err (!%p3362_p1)
}
  0x47   : > { %3262 = dma.hbm_to_vmem [thread:$0]  (!%p3552_p13), %s3559_s22, 27136, %s3561_s27, %s3563_s28, %s3439_s4, %s3439_s4, %s3440_s5  }
  0x48   : > { %p4528_p0 = scmp.ne.s32.totalorder %s4523_s17, 0 }
  0x49   : > { %s3597_s26 = sand.u32 (!%p4528_p0), 1, %s3428_s10   ;;  %p4529_p5 = scmp.ne.s32.totalorder (!%p4528_p0), %s4521_s15, 0 }
  0x4a   : > { %146 = sbr.rel (%p4528_p0) target bundleno = 533 (0x215), region = 28  ;;  %s149_s30 = scalar_lea.sflag (!%p4528_p0), [#allocation3], %s3597_s26 }
  0x4b   : > { %s3246_s29 = smul.u32 (!%p4528_p0), 1696, %s3597_s26 }
  0x4d   : > { %s3603_s25 = scalar_lea.vmem (!%p4528_p0), [#allocation2], %s3246_s29 }
  0x51   : > { %3411 = dma.done.wait (%p4529_p5), %s149_s30, 27136  }
  0x52   : > { %3413 = vsyncadd (%p4529_p5), %s149_s30, 4294940160  ;;  %p4530_p13 = scmp.eq.s32.totalorder %s3481_s13, 0 }
  0x54   : > { %3415 = dma.done.wait (%p4530_p13), [#allocation6], 512   ;;  %p4531_p2 = pmov %p4530_p13 }
  0x55   : > { %vm395_vm0 = vcmask 261120   ;;  %v391_v0 = vld [vmem:[#allocation5] sm:$0xff]  ;;  %v392_v1 = vld [vmem:[#allocation5 + $0x8] sm:$0xff]  ;;  %v393_v2 = vld [vmem:[#allocation5 + $0x10] sm:$0xff]  ;;  %vm2157_vm1 = vcmask 97280   ;;  %s4039_s15 = scalar_lea.vmem [#allocation7], %s3246_s29 }
  0x56   : > { %3417 = vsyncadd (%p4531_p2), [#allocation6], 4294966784  ;;  %v3233_v3 = vpack.c.bf16 %v392_v1, %v391_v0  ;;  %v394_v4 = vld [vmem:[#allocation5 + $0x18] sm:$0xff]  ;;  %v179_v5 = vld [vmem:[%s3603_s25] sm:$0xff]  ;;  %s2690_s17 = smul.u32 27136, %s3481_s13  ;;  %s2384_s4 = sshll.u32 %s4039_s15, 4  ;;  %s4464_s4 = int_to_ptr.vmem [resolvable:$true] %s2384_s4 }
  0x57   : > { %v285_v6 = vld [vmem:[%s3603_s25 + $0x350] sm:$0xff]  ;;  %v3237_v7 = vpack.c.bf16 %v394_v4, %v393_v2  ;;  %2915 = vmatprep.mubr.msk.f32.mxu0 %vm395_vm0, %v179_v5  ;;  %v180_v8 = vld [vmem:[%s3603_s25 + $0x8] sm:$0xff]  ;;  %v286_v9 = vld [vmem:[%s3603_s25 + $0x358] sm:$0xff]  ;;  %s2371_s27 = scalar_lea.sflag [#allocation4], %s3597_s26  ;;  %s3366_s28 = scalar_lea.vmem %s4464_s4, 27136 }
  0x58   : > { %3074 = vmatprep.mubr.msk.f32.mxu1 %vm395_vm0, %v285_v6  ;;  %3234 = vmatprep.subr.bf16.mxu0 %v3233_v3  ;;  %v181_v10 = vld [vmem:[%s3603_s25 + $0x10] sm:$0xff]  ;;  %v287_v11 = vld [vmem:[%s3603_s25 + $0x360] sm:$0xff]  ;;  %v182_v12 = vld [vmem:[%s3603_s25 + $0x18] sm:$0xff]  ;;  %s4462_s13 = scalar_lea.hbm %s4517_s2, %s2690_s17  ;;  %p3367_p4 = scmp.ne.s32.totalorder %s4464_s4, %s3366_s28 }
  0x59   : > { %3241 = vmatprep.subr.bf16.mxu1 %v3233_v3  ;;  %3236 = vmatpush3.bf16.msra.mxu0 %v3233_v3  ;;  %v288_v13 = vld [vmem:[%s3603_s25 + $0x368] sm:$0xff]  ;;  %v183_v14 = vld [vmem:[%s3603_s25 + $0x20] sm:$0xff]  ;;  %v289_v15 = vld [vmem:[%s3603_s25 + $0x370] sm:$0xff]  ;;  %s3442_s3 = smov [#allocation7]  }
  0x5a   : > { %3243 = vmatpush3.bf16.msra.mxu1 %v3233_v3  ;;  %3238 = vmatprep.subr.bf16.mxu0 %v3237_v7  ;;  %v184_v16 = vld [vmem:[%s3603_s25 + $0x28] sm:$0xff]  ;;  %v290_v17 = vld [vmem:[%s3603_s25 + $0x378] sm:$0xff]  ;;  %v185_v18 = vld [vmem:[%s3603_s25 + $0x30] sm:$0xff]  ;;  %p3368_p6 = pnand %p3367_p4, %p3546_p12  ;;  %s3370_s6 = sshll.u32 %s3442_s3, 4  ;;  %s3371_s6 = int_to_ptr.vmem [resolvable:$false] %s3370_s6 }
  0x5b   : > { %3242 = vmatprep.subr.bf16.mxu1 %v3237_v7  ;;  %v291_v19 = vld [vmem:[%s3603_s25 + $0x380] sm:$0xff]  ;;  %v186_v20 = vld [vmem:[%s3603_s25 + $0x38] sm:$0xff]  ;;  %v292_v21 = vld [vmem:[%s3603_s25 + $0x388] sm:$0xff]  ;;  %s3372_s7 = scalar_lea.vmem %s3371_s6, 54272  ;;  %p3373_p11 = scmp.lt.s32.totalorder %s4464_s4, %s3371_s6 }
  0x5c   : > { %v187_v22 = vld [vmem:[%s3603_s25 + $0x40] sm:$0xff]  ;;  %v293_v23 = vld [vmem:[%s3603_s25 + $0x390] sm:$0xff]  ;;  %v188_v24 = vld [vmem:[%s3603_s25 + $0x48] sm:$0xff]  ;;  %p3369_p8 = pneg %p3368_p6  ;;  %p3374_p10 = scmp.lt.s32.totalorder %s3372_s7, %s3366_s28 }
  0x5d   : > { %3240 = vmatpush3.bf16.msra.mxu0 %v3237_v7  ;;  %v294_v25 = vld [vmem:[%s3603_s25 + $0x398] sm:$0xff]  ;;  %v189_v26 = vld [vmem:[%s3603_s25 + $0x50] sm:$0xff]  ;;  %v295_v27 = vld [vmem:[%s3603_s25 + $0x3a0] sm:$0xff] }
  0x5e   : > { %3244 = vmatpush3.bf16.msra.mxu1 %v3237_v7  ;;  %v190_v28 = vld [vmem:[%s3603_s25 + $0x58] sm:$0xff]  ;;  %v296_v29 = vld [vmem:[%s3603_s25 + $0x3a8] sm:$0xff]  ;;  %v191_v30 = vld [vmem:[%s3603_s25 + $0x60] sm:$0xff]  ;;  %p3375_p3 = por %p3374_p10, %p3373_p11 }
  0x5f   : > { %v297_v31 = vld [vmem:[%s3603_s25 + $0x3b0] sm:$0xff]  ;;  %v192_v32 = vld [vmem:[%s3603_s25 + $0x68] sm:$0xff]  ;;  %v298_v33 = vld [vmem:[%s3603_s25 + $0x3b8] sm:$0xff] }
  0x60   : > { %2916 = vmatmul.mubr.msk.f32.vlgmr.msra.gmra.mrb[0].mxu0 %vm395_vm0, %v180_v8  ;;  %v193_v34 = vld [vmem:[%s3603_s25 + $0x70] sm:$0xff]  ;;  %v299_v35 = vld [vmem:[%s3603_s25 + $0x3c0] sm:$0xff]  ;;  %v194_v36 = vld [vmem:[%s3603_s25 + $0x78] sm:$0xff]  ;;  %p3376_p7 = pnand %p3375_p3, %p3369_p8 }
  0x61   : > { %3075 = vmatmul.mubr.msk.f32.vlgmr.msra.gmra.mrb[0].mxu1 %vm395_vm0, %v286_v9  ;;  %2918 = vmatprep.mubr.msk.f32.mxu0 %vm395_vm0, %v181_v10  ;;  %v300_v37 = vld [vmem:[%s3603_s25 + $0x3c8] sm:$0xff]  ;;  %v195_v38 = vld [vmem:[%s3603_s25 + $0x80] sm:$0xff]  ;;  %v301_v39 = vld [vmem:[%s3603_s25 + $0x3d0] sm:$0xff] }
  0x62   : > { %3077 = vmatprep.mubr.msk.f32.mxu1 %vm395_vm0, %v287_v11  ;;  %v196_v40 = vld [vmem:[%s3603_s25 + $0x88] sm:$0xff]  ;;  %v302_v41 = vld [vmem:[%s3603_s25 + $0x3d8] sm:$0xff]  ;;  %v197_v42 = vld [vmem:[%s3603_s25 + $0x90] sm:$0xff] }
  0x63   : > { %v303_v43 = vld [vmem:[%s3603_s25 + $0x3e0] sm:$0xff]  ;;  %v198_v44 = vld [vmem:[%s3603_s25 + $0x98] sm:$0xff]  ;;  %v304_v45 = vld [vmem:[%s3603_s25 + $0x3e8] sm:$0xff] }
  0x64   : > { %2919 = vmatmul.mubr.msk.f32.gmra.mrb[2].mxu0 %vm395_vm0, %v182_v12  ;;  %v199_v46 = vld [vmem:[%s3603_s25 + $0xa0] sm:$0xff]  ;;  %v305_v47 = vld [vmem:[%s3603_s25 + $0x3f0] sm:$0xff]  ;;  %v200_v48 = vld [vmem:[%s3603_s25 + $0xa8] sm:$0xff] }
  0x65   : > { %3078 = vmatmul.mubr.msk.f32.gmra.mrb[2].mxu1 %vm395_vm0, %v288_v13  ;;  %2921 = vmatprep.mubr.msk.f32.mxu0 %vm395_vm0, %v183_v14  ;;  %v306_v49 = vld [vmem:[%s3603_s25 + $0x3f8] sm:$0xff]  ;;  %v201_v50 = vld [vmem:[%s3603_s25 + $0xb0] sm:$0xff]  ;;  %v307_v51 = vld [vmem:[%s3603_s25 + $0x400] sm:$0xff] }
  0x66   : > { %3080 = vmatprep.mubr.msk.f32.mxu1 %vm395_vm0, %v289_v15  ;;  %v202_v52 = vld [vmem:[%s3603_s25 + $0xb8] sm:$0xff]  ;;  %v308_v53 = vld [vmem:[%s3603_s25 + $0x408] sm:$0xff]  ;;  %v203_v54 = vld [vmem:[%s3603_s25 + $0xc0] sm:$0xff] }
  0x67   : > { %v309_v55 = vld [vmem:[%s3603_s25 + $0x410] sm:$0xff]  ;;  %v204_v56 = vld [vmem:[%s3603_s25 + $0xc8] sm:$0xff]  ;;  %v310_v57 = vld [vmem:[%s3603_s25 + $0x418] sm:$0xff] }
  0x68   : > { %2922 = vmatmul.mubr.msk.f32.gmra.mrb[4].mxu0 %vm395_vm0, %v184_v16  ;;  %v205_v58 = vld [vmem:[%s3603_s25 + $0xd0] sm:$0xff]  ;;  %v311_v59 = vld [vmem:[%s3603_s25 + $0x420] sm:$0xff]  ;;  %v206_v60 = vld [vmem:[%s3603_s25 + $0xd8] sm:$0xff] }
  0x69   : > { %3081 = vmatmul.mubr.msk.f32.gmra.mrb[4].mxu1 %vm395_vm0, %v290_v17  ;;  %2924 = vmatprep.mubr.msk.f32.mxu0 %vm395_vm0, %v185_v18  ;;  %v312_v61 = vld [vmem:[%s3603_s25 + $0x428] sm:$0xff]  ;;  %v207_v62 = vld [vmem:[%s3603_s25 + $0xe0] sm:$0xff]  ;;  %v313_v63 = vld [vmem:[%s3603_s25 + $0x430] sm:$0xff] }
  0x6a   : > { %3083 = vmatprep.mubr.msk.f32.mxu1 %vm395_vm0, %v291_v19  ;;  %v208_v0 = vld [vmem:[%s3603_s25 + $0xe8] sm:$0xff]  ;;  %v314_v1 = vld [vmem:[%s3603_s25 + $0x438] sm:$0xff]  ;;  %v209_v2 = vld [vmem:[%s3603_s25 + $0xf0] sm:$0xff] }
  0x6b   : > { %v315_v3 = vld [vmem:[%s3603_s25 + $0x440] sm:$0xff]  ;;  %v210_v4 = vld [vmem:[%s3603_s25 + $0xf8] sm:$0xff]  ;;  %v316_v5 = vld [vmem:[%s3603_s25 + $0x448] sm:$0xff] }
  0x6c   : > { %2925 = vmatmul.mubr.msk.f32.gmra.mrb[6].mxu0 %vm395_vm0, %v186_v20  ;;  %v211_v6 = vld [vmem:[%s3603_s25 + $0x100] sm:$0xff]  ;;  %v317_v7 = vld [vmem:[%s3603_s25 + $0x450] sm:$0xff]  ;;  %v212_v8 = vld [vmem:[%s3603_s25 + $0x108] sm:$0xff] }
  0x6d   : > { %3084 = vmatmul.mubr.msk.f32.gmra.mrb[6].mxu1 %vm395_vm0, %v292_v21  ;;  %2927 = vmatprep.mubr.msk.f32.mxu0 %vm395_vm0, %v187_v22  ;;  %v318_v9 = vld [vmem:[%s3603_s25 + $0x458] sm:$0xff]  ;;  %v213_v10 = vld [vmem:[%s3603_s25 + $0x110] sm:$0xff]  ;;  %v319_v11 = vld [vmem:[%s3603_s25 + $0x460] sm:$0xff] }
  0x6e   : > { %3086 = vmatprep.mubr.msk.f32.mxu1 %vm395_vm0, %v293_v23  ;;  %v214_v12 = vld [vmem:[%s3603_s25 + $0x118] sm:$0xff]  ;;  %v320_v13 = vld [vmem:[%s3603_s25 + $0x468] sm:$0xff]  ;;  %v215_v14 = vld [vmem:[%s3603_s25 + $0x120] sm:$0xff] }
  0x6f   : > { %v321_v15 = vld [vmem:[%s3603_s25 + $0x470] sm:$0xff]  ;;  %v216_v16 = vld [vmem:[%s3603_s25 + $0x128] sm:$0xff]  ;;  %v322_v17 = vld [vmem:[%s3603_s25 + $0x478] sm:$0xff] }
  0x70   : > { %2928 = vmatmul.mubr.msk.f32.gmra.mrb[8].mxu0 %vm395_vm0, %v188_v24  ;;  %v217_v18 = vld [vmem:[%s3603_s25 + $0x130] sm:$0xff]  ;;  %v323_v19 = vld [vmem:[%s3603_s25 + $0x480] sm:$0xff]  ;;  %v218_v20 = vld [vmem:[%s3603_s25 + $0x138] sm:$0xff] }
  0x71   : > { %3087 = vmatmul.mubr.msk.f32.gmra.mrb[8].mxu1 %vm395_vm0, %v294_v25  ;;  %2930 = vmatprep.mubr.msk.f32.mxu0 %vm395_vm0, %v189_v26  ;;  %v324_v21 = vld [vmem:[%s3603_s25 + $0x488] sm:$0xff]  ;;  %v219_v22 = vld [vmem:[%s3603_s25 + $0x140] sm:$0xff]  ;;  %v325_v23 = vld [vmem:[%s3603_s25 + $0x490] sm:$0xff] }
  0x72   : > { %3089 = vmatprep.mubr.msk.f32.mxu1 %vm395_vm0, %v295_v27  ;;  %v220_v24 = vld [vmem:[%s3603_s25 + $0x148] sm:$0xff]  ;;  %v326_v25 = vld [vmem:[%s3603_s25 + $0x498] sm:$0xff]  ;;  %v221_v26 = vld [vmem:[%s3603_s25 + $0x150] sm:$0xff] }
  0x73   : > { %v327_v27 = vld [vmem:[%s3603_s25 + $0x4a0] sm:$0xff] }
  0x74   : > { %2931 = vmatmul.mubr.msk.f32.gmra.mrb[10].mxu0 %vm395_vm0, %v190_v28  ;;  %v222_v28 = vld [vmem:[%s3603_s25 + $0x158] sm:$0xff] }
  0x75   : > { %3090 = vmatmul.mubr.msk.f32.gmra.mrb[10].mxu1 %vm395_vm0, %v296_v29  ;;  %2933 = vmatprep.mubr.msk.f32.mxu0 %vm395_vm0, %v191_v30  ;;  %v328_v29 = vld [vmem:[%s3603_s25 + $0x4a8] sm:$0xff]  ;;  %v223_v30 = vld [vmem:[%s3603_s25 + $0x160] sm:$0xff] }
  0x76   : > { %3092 = vmatprep.mubr.msk.f32.mxu1 %vm395_vm0, %v297_v31  ;;  %v329_v31 = vld [vmem:[%s3603_s25 + $0x4b0] sm:$0xff] }
  0x78   : > { %2934 = vmatmul.mubr.msk.f32.gmra.mrb[12].mxu0 %vm395_vm0, %v192_v32  ;;  %v224_v32 = vld [vmem:[%s3603_s25 + $0x168] sm:$0xff] }
  0x79   : > { %3093 = vmatmul.mubr.msk.f32.gmra.mrb[12].mxu1 %vm395_vm0, %v298_v33  ;;  %2936 = vmatprep.mubr.msk.f32.mxu0 %vm395_vm0, %v193_v34  ;;  %v330_v33 = vld [vmem:[%s3603_s25 + $0x4b8] sm:$0xff]  ;;  %v225_v34 = vld [vmem:[%s3603_s25 + $0x170] sm:$0xff] }
  0x7a   : > { %3095 = vmatprep.mubr.msk.f32.mxu1 %vm395_vm0, %v299_v35  ;;  %v331_v35 = vld [vmem:[%s3603_s25 + $0x4c0] sm:$0xff] }
  0x7c   : > { %2937 = vmatmul.mubr.msk.f32.gmra.mrb[14].mxu0 %vm395_vm0, %v194_v36  ;;  %v226_v36 = vld [vmem:[%s3603_s25 + $0x178] sm:$0xff] }
  0x7d   : > { %3096 = vmatmul.mubr.msk.f32.gmra.mrb[14].mxu1 %vm395_vm0, %v300_v37  ;;  %2939 = vmatprep.mubr.msk.f32.mxu0 %vm395_vm0, %v195_v38  ;;  %v332_v37 = vld [vmem:[%s3603_s25 + $0x4c8] sm:$0xff]  ;;  %v227_v38 = vld [vmem:[%s3603_s25 + $0x180] sm:$0xff] }
  0x7e   : > { %3098 = vmatprep.mubr.msk.f32.mxu1 %vm395_vm0, %v301_v39  ;;  %v333_v39 = vld [vmem:[%s3603_s25 + $0x4d0] sm:$0xff] }
  0x80   : > { %2940 = vmatmul.mubr.msk.f32.gmra.mrb[16].mxu0 %vm395_vm0, %v196_v40  ;;  %v228_v40 = vld [vmem:[%s3603_s25 + $0x188] sm:$0xff] }
  0x81   : > { %3099 = vmatmul.mubr.msk.f32.gmra.mrb[16].mxu1 %vm395_vm0, %v302_v41  ;;  %2942 = vmatprep.mubr.msk.f32.mxu0 %vm395_vm0, %v197_v42  ;;  %v334_v41 = vld [vmem:[%s3603_s25 + $0x4d8] sm:$0xff]  ;;  %v229_v42 = vld [vmem:[%s3603_s25 + $0x190] sm:$0xff] }
  0x82   : > { %3101 = vmatprep.mubr.msk.f32.mxu1 %vm395_vm0, %v303_v43  ;;  %v335_v43 = vld [vmem:[%s3603_s25 + $0x4e0] sm:$0xff] }
  0x84   : > { %2943 = vmatmul.mubr.msk.f32.gmra.mrb[18].mxu0 %vm395_vm0, %v198_v44  ;;  %v230_v44 = vld [vmem:[%s3603_s25 + $0x198] sm:$0xff] }
  0x85   : > { %3102 = vmatmul.mubr.msk.f32.gmra.mrb[18].mxu1 %vm395_vm0, %v304_v45  ;;  %2945 = vmatprep.mubr.msk.f32.mxu0 %vm395_vm0, %v199_v46  ;;  %v336_v45 = vld [vmem:[%s3603_s25 + $0x4e8] sm:$0xff]  ;;  %v231_v46 = vld [vmem:[%s3603_s25 + $0x1a0] sm:$0xff] }
  0x86   : > { %3104 = vmatprep.mubr.msk.f32.mxu1 %vm395_vm0, %v305_v47  ;;  %v337_v47 = vld [vmem:[%s3603_s25 + $0x4f0] sm:$0xff] }
  0x88   : > { %2946 = vmatmul.mubr.msk.f32.gmra.mrb[20].mxu0 %vm395_vm0, %v200_v48  ;;  %v232_v48 = vld [vmem:[%s3603_s25 + $0x1a8] sm:$0xff] }
  0x89   : > { %3105 = vmatmul.mubr.msk.f32.gmra.mrb[20].mxu1 %vm395_vm0, %v306_v49  ;;  %2948 = vmatprep.mubr.msk.f32.mxu0 %vm395_vm0, %v201_v50  ;;  %v338_v49 = vld [vmem:[%s3603_s25 + $0x4f8] sm:$0xff]  ;;  %v233_v50 = vld [vmem:[%s3603_s25 + $0x1b0] sm:$0xff] }
  0x8a   : > { %3107 = vmatprep.mubr.msk.f32.mxu1 %vm395_vm0, %v307_v51  ;;  %v339_v51 = vld [vmem:[%s3603_s25 + $0x500] sm:$0xff] }
  0x8c   : > { %2949 = vmatmul.mubr.msk.f32.gmra.mrb[22].mxu0 %vm395_vm0, %v202_v52  ;;  %v234_v52 = vld [vmem:[%s3603_s25 + $0x1b8] sm:$0xff] }
  0x8d   : > { %3108 = vmatmul.mubr.msk.f32.gmra.mrb[22].mxu1 %vm395_vm0, %v308_v53  ;;  %2951 = vmatprep.mubr.msk.f32.mxu0 %vm395_vm0, %v203_v54  ;;  %v340_v53 = vld [vmem:[%s3603_s25 + $0x508] sm:$0xff]  ;;  %v235_v54 = vld [vmem:[%s3603_s25 + $0x1c0] sm:$0xff] }
  0x8e   : > { %3110 = vmatprep.mubr.msk.f32.mxu1 %vm395_vm0, %v309_v55  ;;  %v341_v55 = vld [vmem:[%s3603_s25 + $0x510] sm:$0xff] }
  0x90   : > { %2952 = vmatmul.mubr.msk.f32.gmra.mrb[24].mxu0 %vm395_vm0, %v204_v56  ;;  %v236_v56 = vld [vmem:[%s3603_s25 + $0x1c8] sm:$0xff] }
  0x91   : > { %3111 = vmatmul.mubr.msk.f32.gmra.mrb[24].mxu1 %vm395_vm0, %v310_v57  ;;  %2954 = vmatprep.mubr.msk.f32.mxu0 %vm395_vm0, %v205_v58  ;;  %v342_v57 = vld [vmem:[%s3603_s25 + $0x518] sm:$0xff]  ;;  %v237_v58 = vld [vmem:[%s3603_s25 + $0x1d0] sm:$0xff] }
  0x92   : > { %3113 = vmatprep.mubr.msk.f32.mxu1 %vm395_vm0, %v311_v59  ;;  %v343_v59 = vld [vmem:[%s3603_s25 + $0x520] sm:$0xff] }
  0x94   : > { %2955 = vmatmul.mubr.msk.f32.gmra.mrb[26].mxu0 %vm395_vm0, %v206_v60  ;;  %v238_v60 = vld [vmem:[%s3603_s25 + $0x1d8] sm:$0xff] }
  0x95   : > { %3114 = vmatmul.mubr.msk.f32.gmra.mrb[26].mxu1 %vm395_vm0, %v312_v61  ;;  %2957 = vmatprep.mubr.msk.f32.mxu0 %vm395_vm0, %v207_v62  ;;  %v344_v61 = vld [vmem:[%s3603_s25 + $0x528] sm:$0xff]  ;;  %v239_v62 = vld [vmem:[%s3603_s25 + $0x1e0] sm:$0xff] }
  0x96   : > { %3116 = vmatprep.mubr.msk.f32.mxu1 %vm395_vm0, %v313_v63  ;;  %v345_v63 = vld [vmem:[%s3603_s25 + $0x530] sm:$0xff] }
  0x98   : > { %2958 = vmatmul.mubr.msk.f32.gmra.mrb[28].mxu0 %vm395_vm0, %v208_v0  ;;  %v240_v0 = vld [vmem:[%s3603_s25 + $0x1e8] sm:$0xff] }
  0x99   : > { %3117 = vmatmul.mubr.msk.f32.gmra.mrb[28].mxu1 %vm395_vm0, %v314_v1  ;;  %2960 = vmatprep.mubr.msk.f32.mxu0 %vm395_vm0, %v209_v2  ;;  %v346_v1 = vld [vmem:[%s3603_s25 + $0x538] sm:$0xff]  ;;  %v241_v2 = vld [vmem:[%s3603_s25 + $0x1f0] sm:$0xff] }
  0x9a   : > { %3119 = vmatprep.mubr.msk.f32.mxu1 %vm395_vm0, %v315_v3  ;;  %v347_v3 = vld [vmem:[%s3603_s25 + $0x540] sm:$0xff] }
  0x9c   : > { %2961 = vmatmul.mubr.msk.f32.gmra.mrb[30].mxu0 %vm395_vm0, %v210_v4  ;;  %v242_v4 = vld [vmem:[%s3603_s25 + $0x1f8] sm:$0xff] }
  0x9d   : > { %3120 = vmatmul.mubr.msk.f32.gmra.mrb[30].mxu1 %vm395_vm0, %v316_v5  ;;  %2963 = vmatprep.mubr.msk.f32.mxu0 %vm395_vm0, %v211_v6  ;;  %v348_v5 = vld [vmem:[%s3603_s25 + $0x548] sm:$0xff]  ;;  %v243_v6 = vld [vmem:[%s3603_s25 + $0x200] sm:$0xff] }
  0x9e   : > { %3122 = vmatprep.mubr.msk.f32.mxu1 %vm395_vm0, %v317_v7  ;;  %v349_v7 = vld [vmem:[%s3603_s25 + $0x550] sm:$0xff] }
  0xa0   : > { %2964 = vmatmul.mubr.msk.f32.gmra.mrb[32].mxu0 %vm395_vm0, %v212_v8  ;;  %v244_v8 = vld [vmem:[%s3603_s25 + $0x208] sm:$0xff] }
  0xa1   : > { %3123 = vmatmul.mubr.msk.f32.gmra.mrb[32].mxu1 %vm395_vm0, %v318_v9  ;;  %2966 = vmatprep.mubr.msk.f32.mxu0 %vm395_vm0, %v213_v10  ;;  %v350_v9 = vld [vmem:[%s3603_s25 + $0x558] sm:$0xff]  ;;  %v245_v10 = vld [vmem:[%s3603_s25 + $0x210] sm:$0xff] }
  0xa2   : > { %3125 = vmatprep.mubr.msk.f32.mxu1 %vm395_vm0, %v319_v11  ;;  %v351_v11 = vld [vmem:[%s3603_s25 + $0x560] sm:$0xff] }
  0xa4   : > { %2967 = vmatmul.mubr.msk.f32.gmra.mrb[34].mxu0 %vm395_vm0, %v214_v12  ;;  %v246_v12 = vld [vmem:[%s3603_s25 + $0x218] sm:$0xff] }
  0xa5   : > { %3126 = vmatmul.mubr.msk.f32.gmra.mrb[34].mxu1 %vm395_vm0, %v320_v13  ;;  %2969 = vmatprep.mubr.msk.f32.mxu0 %vm395_vm0, %v215_v14  ;;  %v352_v13 = vld [vmem:[%s3603_s25 + $0x568] sm:$0xff]  ;;  %v247_v14 = vld [vmem:[%s3603_s25 + $0x220] sm:$0xff] }
  0xa6   : > { %3128 = vmatprep.mubr.msk.f32.mxu1 %vm395_vm0, %v321_v15  ;;  %v353_v15 = vld [vmem:[%s3603_s25 + $0x570] sm:$0xff] }
  0xa8   : > { %2970 = vmatmul.mubr.msk.f32.gmra.mrb[36].mxu0 %vm395_vm0, %v216_v16  ;;  %v248_v16 = vld [vmem:[%s3603_s25 + $0x228] sm:$0xff] }
  0xa9   : > { %3129 = vmatmul.mubr.msk.f32.gmra.mrb[36].mxu1 %vm395_vm0, %v322_v17  ;;  %2972 = vmatprep.mubr.msk.f32.mxu0 %vm395_vm0, %v217_v18  ;;  %v354_v17 = vld [vmem:[%s3603_s25 + $0x578] sm:$0xff]  ;;  %v249_v18 = vld [vmem:[%s3603_s25 + $0x230] sm:$0xff] }
  0xaa   : > { %3131 = vmatprep.mubr.msk.f32.mxu1 %vm395_vm0, %v323_v19  ;;  %v355_v19 = vld [vmem:[%s3603_s25 + $0x580] sm:$0xff] }
  0xac   : > { %2973 = vmatmul.mubr.msk.f32.gmra.mrb[38].mxu0 %vm395_vm0, %v218_v20  ;;  %v250_v20 = vld [vmem:[%s3603_s25 + $0x238] sm:$0xff] }
  0xad   : > { %3132 = vmatmul.mubr.msk.f32.gmra.mrb[38].mxu1 %vm395_vm0, %v324_v21  ;;  %2975 = vmatprep.mubr.msk.f32.mxu0 %vm395_vm0, %v219_v22  ;;  %v356_v21 = vld [vmem:[%s3603_s25 + $0x588] sm:$0xff]  ;;  %v251_v22 = vld [vmem:[%s3603_s25 + $0x240] sm:$0xff] }
  0xae   : > { %3134 = vmatprep.mubr.msk.f32.mxu1 %vm395_vm0, %v325_v23  ;;  %v357_v23 = vld [vmem:[%s3603_s25 + $0x590] sm:$0xff] }
  0xb0   : > { %2976 = vmatmul.mubr.msk.f32.gmra.mrb[40].mxu0 %vm395_vm0, %v220_v24  ;;  %v252_v24 = vld [vmem:[%s3603_s25 + $0x248] sm:$0xff] }
  0xb1   : > { %3135 = vmatmul.mubr.msk.f32.gmra.mrb[40].mxu1 %vm395_vm0, %v326_v25  ;;  %2978 = vmatprep.mubr.msk.f32.mxu0 %vm395_vm0, %v221_v26  ;;  %v358_v25 = vld [vmem:[%s3603_s25 + $0x598] sm:$0xff]  ;;  %v253_v26 = vld [vmem:[%s3603_s25 + $0x250] sm:$0xff] }
  0xb2   : > { %3137 = vmatprep.mubr.msk.f32.mxu1 %vm395_vm0, %v327_v27  ;;  %v359_v27 = vld [vmem:[%s3603_s25 + $0x5a0] sm:$0xff] }
  0xb4   : > { %2979 = vmatmul.mubr.msk.f32.gmra.mrb[42].mxu0 %vm395_vm0, %v222_v28  ;;  %v254_v28 = vld [vmem:[%s3603_s25 + $0x258] sm:$0xff] }
  0xb5   : > { %3138 = vmatmul.mubr.msk.f32.gmra.mrb[42].mxu1 %vm395_vm0, %v328_v29  ;;  %2981 = vmatprep.mubr.msk.f32.mxu0 %vm395_vm0, %v223_v30  ;;  %v360_v29 = vld [vmem:[%s3603_s25 + $0x5a8] sm:$0xff]  ;;  %v255_v30 = vld [vmem:[%s3603_s25 + $0x260] sm:$0xff] }
  0xb6   : > { %3140 = vmatprep.mubr.msk.f32.mxu1 %vm395_vm0, %v329_v31  ;;  %v361_v31 = vld [vmem:[%s3603_s25 + $0x5b0] sm:$0xff] }
  0xb8   : > { %2982 = vmatmul.mubr.msk.f32.gmra.mrb[44].mxu0 %vm395_vm0, %v224_v32  ;;  %v256_v32 = vld [vmem:[%s3603_s25 + $0x268] sm:$0xff] }
  0xb9   : > { %3141 = vmatmul.mubr.msk.f32.gmra.mrb[44].mxu1 %vm395_vm0, %v330_v33  ;;  %2984 = vmatprep.mubr.msk.f32.mxu0 %vm395_vm0, %v225_v34  ;;  %v362_v33 = vld [vmem:[%s3603_s25 + $0x5b8] sm:$0xff]  ;;  %v257_v34 = vld [vmem:[%s3603_s25 + $0x270] sm:$0xff] }
  0xba   : > { %3143 = vmatprep.mubr.msk.f32.mxu1 %vm395_vm0, %v331_v35  ;;  %v363_v35 = vld [vmem:[%s3603_s25 + $0x5c0] sm:$0xff] }
  0xbc   : > { %2985 = vmatmul.mubr.msk.f32.gmra.mrb[46].mxu0 %vm395_vm0, %v226_v36  ;;  %v258_v36 = vld [vmem:[%s3603_s25 + $0x278] sm:$0xff] }
  0xbd   : > { %3144 = vmatmul.mubr.msk.f32.gmra.mrb[46].mxu1 %vm395_vm0, %v332_v37  ;;  %2987 = vmatprep.mubr.msk.f32.mxu0 %vm395_vm0, %v227_v38  ;;  %v364_v37 = vld [vmem:[%s3603_s25 + $0x5c8] sm:$0xff]  ;;  %v259_v38 = vld [vmem:[%s3603_s25 + $0x280] sm:$0xff] }
  0xbe   : > { %3146 = vmatprep.mubr.msk.f32.mxu1 %vm395_vm0, %v333_v39  ;;  %v365_v39 = vld [vmem:[%s3603_s25 + $0x5d0] sm:$0xff] }
  0xc0   : > { %2988 = vmatmul.mubr.msk.f32.gmra.mrb[48].mxu0 %vm395_vm0, %v228_v40  ;;  %v260_v40 = vld [vmem:[%s3603_s25 + $0x288] sm:$0xff] }
  0xc1   : > { %3147 = vmatmul.mubr.msk.f32.gmra.mrb[48].mxu1 %vm395_vm0, %v334_v41  ;;  %2990 = vmatprep.mubr.msk.f32.mxu0 %vm395_vm0, %v229_v42  ;;  %v366_v41 = vld [vmem:[%s3603_s25 + $0x5d8] sm:$0xff]  ;;  %v261_v42 = vld [vmem:[%s3603_s25 + $0x290] sm:$0xff] }
  0xc2   : > { %3149 = vmatprep.mubr.msk.f32.mxu1 %vm395_vm0, %v335_v43  ;;  %v367_v43 = vld [vmem:[%s3603_s25 + $0x5e0] sm:$0xff] }
  0xc4   : > { %2991 = vmatmul.mubr.msk.f32.gmra.mrb[50].mxu0 %vm395_vm0, %v230_v44  ;;  %v262_v44 = vld [vmem:[%s3603_s25 + $0x298] sm:$0xff] }
  0xc5   : > { %3150 = vmatmul.mubr.msk.f32.gmra.mrb[50].mxu1 %vm395_vm0, %v336_v45  ;;  %2993 = vmatprep.mubr.msk.f32.mxu0 %vm395_vm0, %v231_v46  ;;  %v368_v45 = vld [vmem:[%s3603_s25 + $0x5e8] sm:$0xff]  ;;  %v263_v46 = vld [vmem:[%s3603_s25 + $0x2a0] sm:$0xff] }
  0xc6   : > { %3152 = vmatprep.mubr.msk.f32.mxu1 %vm395_vm0, %v337_v47  ;;  %v369_v47 = vld [vmem:[%s3603_s25 + $0x5f0] sm:$0xff] }
  0xc8   : > { %2994 = vmatmul.mubr.msk.f32.gmra.mrb[52].mxu0 %vm395_vm0, %v232_v48  ;;  %v264_v48 = vld [vmem:[%s3603_s25 + $0x2a8] sm:$0xff] }
  0xc9   : > { %3153 = vmatmul.mubr.msk.f32.gmra.mrb[52].mxu1 %vm395_vm0, %v338_v49  ;;  %2996 = vmatprep.mubr.msk.f32.mxu0 %vm395_vm0, %v233_v50  ;;  %v370_v49 = vld [vmem:[%s3603_s25 + $0x5f8] sm:$0xff]  ;;  %v265_v50 = vld [vmem:[%s3603_s25 + $0x2b0] sm:$0xff] }
  0xca   : > { %3155 = vmatprep.mubr.msk.f32.mxu1 %vm395_vm0, %v339_v51  ;;  %v371_v51 = vld [vmem:[%s3603_s25 + $0x600] sm:$0xff] }
  0xcc   : > { %2997 = vmatmul.mubr.msk.f32.gmra.mrb[54].mxu0 %vm395_vm0, %v234_v52  ;;  %v266_v52 = vld [vmem:[%s3603_s25 + $0x2b8] sm:$0xff] }
  0xcd   : > { %3156 = vmatmul.mubr.msk.f32.gmra.mrb[54].mxu1 %vm395_vm0, %v340_v53  ;;  %2999 = vmatprep.mubr.msk.f32.mxu0 %vm395_vm0, %v235_v54  ;;  %v372_v53 = vld [vmem:[%s3603_s25 + $0x608] sm:$0xff]  ;;  %v267_v54 = vld [vmem:[%s3603_s25 + $0x2c0] sm:$0xff] }
  0xce   : > { %3158 = vmatprep.mubr.msk.f32.mxu1 %vm395_vm0, %v341_v55  ;;  %v373_v55 = vld [vmem:[%s3603_s25 + $0x610] sm:$0xff] }
  0xd0   : > { %3000 = vmatmul.mubr.msk.f32.gmra.mrb[56].mxu0 %vm395_vm0, %v236_v56  ;;  %v268_v56 = vld [vmem:[%s3603_s25 + $0x2c8] sm:$0xff] }
  0xd1   : > { %3159 = vmatmul.mubr.msk.f32.gmra.mrb[56].mxu1 %vm395_vm0, %v342_v57  ;;  %3002 = vmatprep.mubr.msk.f32.mxu0 %vm395_vm0, %v237_v58  ;;  %v374_v57 = vld [vmem:[%s3603_s25 + $0x618] sm:$0xff]  ;;  %v269_v58 = vld [vmem:[%s3603_s25 + $0x2d0] sm:$0xff] }
  0xd2   : > { %3161 = vmatprep.mubr.msk.f32.mxu1 %vm395_vm0, %v343_v59  ;;  %v375_v59 = vld [vmem:[%s3603_s25 + $0x620] sm:$0xff] }
  0xd4   : > { %3003 = vmatmul.mubr.msk.f32.gmra.mrb[58].mxu0 %vm395_vm0, %v238_v60  ;;  %v270_v60 = vld [vmem:[%s3603_s25 + $0x2d8] sm:$0xff] }
  0xd5   : > { %3162 = vmatmul.mubr.msk.f32.gmra.mrb[58].mxu1 %vm395_vm0, %v344_v61  ;;  %3005 = vmatprep.mubr.msk.f32.mxu0 %vm395_vm0, %v239_v62  ;;  %v376_v61 = vld [vmem:[%s3603_s25 + $0x628] sm:$0xff]  ;;  %v271_v62 = vld [vmem:[%s3603_s25 + $0x2e0] sm:$0xff] }
  0xd6   : > { %3164 = vmatprep.mubr.msk.f32.mxu1 %vm395_vm0, %v345_v63  ;;  %v377_v63 = vld [vmem:[%s3603_s25 + $0x630] sm:$0xff] }
  0xd8   : > { %3006 = vmatmul.mubr.msk.f32.gmra.mrb[60].mxu0 %vm395_vm0, %v240_v0  ;;  %v272_v0 = vld [vmem:[%s3603_s25 + $0x2e8] sm:$0xff] }
  0xd9   : > { %3165 = vmatmul.mubr.msk.f32.gmra.mrb[60].mxu1 %vm395_vm0, %v346_v1  ;;  %3008 = vmatprep.mubr.msk.f32.mxu0 %vm395_vm0, %v241_v2  ;;  %v378_v1 = vld [vmem:[%s3603_s25 + $0x638] sm:$0xff]  ;;  %v273_v2 = vld [vmem:[%s3603_s25 + $0x2f0] sm:$0xff] }
  0xda   : > { %3167 = vmatprep.mubr.msk.f32.mxu1 %vm395_vm0, %v347_v3  ;;  %v379_v3 = vld [vmem:[%s3603_s25 + $0x640] sm:$0xff] }
  0xdc   : > { %3009 = vmatmul.mubr.msk.f32.gmra.mrb[62].mxu0 %vm395_vm0, %v242_v4  ;;  %v274_v4 = vld [vmem:[%s3603_s25 + $0x2f8] sm:$0xff] }
  0xdd   : > { %3168 = vmatmul.mubr.msk.f32.gmra.mrb[62].mxu1 %vm395_vm0, %v348_v5  ;;  %3011 = vmatprep.mubr.msk.f32.mxu0 %vm395_vm0, %v243_v6  ;;  %v380_v5 = vld [vmem:[%s3603_s25 + $0x648] sm:$0xff]  ;;  %v275_v6 = vld [vmem:[%s3603_s25 + $0x300] sm:$0xff] }
  0xde   : > { %3170 = vmatprep.mubr.msk.f32.mxu1 %vm395_vm0, %v349_v7  ;;  %v381_v7 = vld [vmem:[%s3603_s25 + $0x650] sm:$0xff] }
  0xe0   : > { %3012 = vmatmul.mubr.msk.f32.gmra.mrb[64].mxu0 %vm395_vm0, %v244_v8  ;;  %v276_v8 = vld [vmem:[%s3603_s25 + $0x308] sm:$0xff] }
  0xe1   : > { %3171 = vmatmul.mubr.msk.f32.gmra.mrb[64].mxu1 %vm395_vm0, %v350_v9  ;;  %3014 = vmatprep.mubr.msk.f32.mxu0 %vm395_vm0, %v245_v10  ;;  %v382_v9 = vld [vmem:[%s3603_s25 + $0x658] sm:$0xff]  ;;  %v277_v10 = vld [vmem:[%s3603_s25 + $0x310] sm:$0xff] }
  0xe2   : > { %3173 = vmatprep.mubr.msk.f32.mxu1 %vm395_vm0, %v351_v11  ;;  %v383_v11 = vld [vmem:[%s3603_s25 + $0x660] sm:$0xff] }
  0xe4   : > { %3015 = vmatmul.mubr.msk.f32.gmra.mrb[66].mxu0 %vm395_vm0, %v246_v12  ;;  %v278_v12 = vld [vmem:[%s3603_s25 + $0x318] sm:$0xff] }
  0xe5   : > { %3174 = vmatmul.mubr.msk.f32.gmra.mrb[66].mxu1 %vm395_vm0, %v352_v13  ;;  %3017 = vmatprep.mubr.msk.f32.mxu0 %vm395_vm0, %v247_v14  ;;  %v384_v13 = vld [vmem:[%s3603_s25 + $0x668] sm:$0xff]  ;;  %v279_v14 = vld [vmem:[%s3603_s25 + $0x320] sm:$0xff] }
  0xe6   : > { %3176 = vmatprep.mubr.msk.f32.mxu1 %vm395_vm0, %v353_v15  ;;  %v385_v15 = vld [vmem:[%s3603_s25 + $0x670] sm:$0xff] }
  0xe8   : > { %3018 = vmatmul.mubr.msk.f32.gmra.mrb[68].mxu0 %vm395_vm0, %v248_v16  ;;  %v280_v16 = vld [vmem:[%s3603_s25 + $0x328] sm:$0xff] }
  0xe9   : > { %3177 = vmatmul.mubr.msk.f32.gmra.mrb[68].mxu1 %vm395_vm0, %v354_v17  ;;  %3020 = vmatprep.mubr.msk.f32.mxu0 %vm395_vm0, %v249_v18  ;;  %v386_v17 = vld [vmem:[%s3603_s25 + $0x678] sm:$0xff]  ;;  %v281_v18 = vld [vmem:[%s3603_s25 + $0x330] sm:$0xff] }
  0xea   : > { %3179 = vmatprep.mubr.msk.f32.mxu1 %vm395_vm0, %v355_v19  ;;  %v387_v19 = vld [vmem:[%s3603_s25 + $0x680] sm:$0xff] }
  0xec   : > { %3021 = vmatmul.mubr.msk.f32.gmra.mrb[70].mxu0 %vm395_vm0, %v250_v20  ;;  %v282_v20 = vld [vmem:[%s3603_s25 + $0x338] sm:$0xff] }
  0xed   : > { %3180 = vmatmul.mubr.msk.f32.gmra.mrb[70].mxu1 %vm395_vm0, %v356_v21  ;;  %3023 = vmatprep.mubr.msk.f32.mxu0 %vm395_vm0, %v251_v22  ;;  %v388_v21 = vld [vmem:[%s3603_s25 + $0x688] sm:$0xff]  ;;  %v283_v22 = vld [vmem:[%s3603_s25 + $0x340] sm:$0xff] }
  0xee   : > { %3182 = vmatprep.mubr.msk.f32.mxu1 %vm395_vm0, %v357_v23  ;;  %v389_v23 = vld [vmem:[%s3603_s25 + $0x690] sm:$0xff] }
  0xf0   : > { %3024 = vmatmul.mubr.msk.f32.gmra.mrb[72].mxu0 %vm395_vm0, %v252_v24  ;;  %v284_v24 = vld [vmem:[%s3603_s25 + $0x348] sm:$0xff] }
  0xf1   : > { %3183 = vmatmul.mubr.msk.f32.gmra.mrb[72].mxu1 %vm395_vm0, %v358_v25  ;;  %3026 = vmatprep.mubr.msk.f32.mxu0 %vm395_vm0, %v253_v26  ;;  %v390_v25 = vld [vmem:[%s3603_s25 + $0x698] sm:$0xff] }
  0xf2   : > { %3185 = vmatprep.mubr.msk.f32.mxu1 %vm395_vm0, %v359_v27 }
  0xf4   : > { %3027 = vmatmul.mubr.msk.f32.gmra.mrb[74].mxu0 %vm395_vm0, %v254_v28 }
  0xf5   : > { %3186 = vmatmul.mubr.msk.f32.gmra.mrb[74].mxu1 %vm395_vm0, %v360_v29  ;;  %3029 = vmatprep.mubr.msk.f32.mxu0 %vm395_vm0, %v255_v30 }
  0xf6   : > { %3188 = vmatprep.mubr.msk.f32.mxu1 %vm395_vm0, %v361_v31 }
  0xf8   : > { %3030 = vmatmul.mubr.msk.f32.gmra.mrb[76].mxu0 %vm395_vm0, %v256_v32 }
  0xf9   : > { %3189 = vmatmul.mubr.msk.f32.gmra.mrb[76].mxu1 %vm395_vm0, %v362_v33  ;;  %3032 = vmatprep.mubr.msk.f32.mxu0 %vm395_vm0, %v257_v34 }
  0xfa   : > { %3191 = vmatprep.mubr.msk.f32.mxu1 %vm395_vm0, %v363_v35 }
  0xfc   : > { %3033 = vmatmul.mubr.msk.f32.gmra.mrb[78].mxu0 %vm395_vm0, %v258_v36 }
  0xfd   : > { %3192 = vmatmul.mubr.msk.f32.gmra.mrb[78].mxu1 %vm395_vm0, %v364_v37  ;;  %3035 = vmatprep.mubr.msk.f32.mxu0 %vm395_vm0, %v259_v38 }
  0xfe   : > { %3194 = vmatprep.mubr.msk.f32.mxu1 %vm395_vm0, %v365_v39 }
 0x100   : > { %3036 = vmatmul.mubr.msk.f32.gmra.mrb[80].mxu0 %vm395_vm0, %v260_v40 }
 0x101   : > { %3195 = vmatmul.mubr.msk.f32.gmra.mrb[80].mxu1 %vm395_vm0, %v366_v41  ;;  %3038 = vmatprep.mubr.msk.f32.mxu0 %vm395_vm0, %v261_v42 }
 0x102   : > { %3197 = vmatprep.mubr.msk.f32.mxu1 %vm395_vm0, %v367_v43 }
 0x104   : > { %3039 = vmatmul.mubr.msk.f32.gmra.mrb[82].mxu0 %vm395_vm0, %v262_v44 }
 0x105   : > { %3198 = vmatmul.mubr.msk.f32.gmra.mrb[82].mxu1 %vm395_vm0, %v368_v45  ;;  %3041 = vmatprep.mubr.msk.f32.mxu0 %vm395_vm0, %v263_v46 }
 0x106   : > { %3200 = vmatprep.mubr.msk.f32.mxu1 %vm395_vm0, %v369_v47 }
 0x108   : > { %3042 = vmatmul.mubr.msk.f32.gmra.mrb[84].mxu0 %vm395_vm0, %v264_v48 }
 0x109   : > { %3201 = vmatmul.mubr.msk.f32.gmra.mrb[84].mxu1 %vm395_vm0, %v370_v49  ;;  %3044 = vmatprep.mubr.msk.f32.mxu0 %vm395_vm0, %v265_v50 }
 0x10a   : > { %3203 = vmatprep.mubr.msk.f32.mxu1 %vm395_vm0, %v371_v51 }
 0x10c   : > { %3045 = vmatmul.mubr.msk.f32.gmra.mrb[86].mxu0 %vm395_vm0, %v266_v52 }
 0x10d   : > { %3204 = vmatmul.mubr.msk.f32.gmra.mrb[86].mxu1 %vm395_vm0, %v372_v53  ;;  %3047 = vmatprep.mubr.msk.f32.mxu0 %vm395_vm0, %v267_v54 }
 0x10e   : > { %3206 = vmatprep.mubr.msk.f32.mxu1 %vm395_vm0, %v373_v55 }
 0x110   : > { %3048 = vmatmul.mubr.msk.f32.gmra.mrb[88].mxu0 %vm395_vm0, %v268_v56 }
 0x111   : > { %3207 = vmatmul.mubr.msk.f32.gmra.mrb[88].mxu1 %vm395_vm0, %v374_v57  ;;  %3050 = vmatprep.mubr.msk.f32.mxu0 %vm395_vm0, %v269_v58 }
 0x112   : > { %3209 = vmatprep.mubr.msk.f32.mxu1 %vm395_vm0, %v375_v59 }
 0x114   : > { %3051 = vmatmul.mubr.msk.f32.gmra.mrb[90].mxu0 %vm395_vm0, %v270_v60 }
 0x115   : > { %3210 = vmatmul.mubr.msk.f32.gmra.mrb[90].mxu1 %vm395_vm0, %v376_v61  ;;  %3053 = vmatprep.mubr.msk.f32.mxu0 %vm395_vm0, %v271_v62 }
 0x116   : > { %3212 = vmatprep.mubr.msk.f32.mxu1 %vm395_vm0, %v377_v63 }
 0x118   : > { %3054 = vmatmul.mubr.msk.f32.gmra.mrb[92].mxu0 %vm395_vm0, %v272_v0 }
 0x119   : > { %3213 = vmatmul.mubr.msk.f32.gmra.mrb[92].mxu1 %vm395_vm0, %v378_v1  ;;  %3056 = vmatprep.mubr.msk.f32.mxu0 %vm395_vm0, %v273_v2 }
 0x11a   : > { %3215 = vmatprep.mubr.msk.f32.mxu1 %vm395_vm0, %v379_v3 }
 0x11c   : > { %3057 = vmatmul.mubr.msk.f32.gmra.mrb[94].mxu0 %vm395_vm0, %v274_v4 }
 0x11d   : > { %3216 = vmatmul.mubr.msk.f32.gmra.mrb[94].mxu1 %vm395_vm0, %v380_v5  ;;  %3059 = vmatprep.mubr.msk.f32.mxu0 %vm395_vm0, %v275_v6 }
 0x11e   : > { %3218 = vmatprep.mubr.msk.f32.mxu1 %vm395_vm0, %v381_v7 }
 0x120   : > { %3060 = vmatmul.mubr.msk.f32.gmra.mrb[96].mxu0 %vm395_vm0, %v276_v8 }
 0x121   : > { %3219 = vmatmul.mubr.msk.f32.gmra.mrb[96].mxu1 %vm395_vm0, %v382_v9  ;;  %3062 = vmatprep.mubr.msk.f32.mxu0 %vm395_vm0, %v277_v10 }
 0x122   : > { %3221 = vmatprep.mubr.msk.f32.mxu1 %vm395_vm0, %v383_v11 }
 0x124   : > { %3063 = vmatmul.mubr.msk.f32.gmra.mrb[98].mxu0 %vm395_vm0, %v278_v12 }
 0x125   : > { %3222 = vmatmul.mubr.msk.f32.gmra.mrb[98].mxu1 %vm395_vm0, %v384_v13  ;;  %3065 = vmatprep.mubr.msk.f32.mxu0 %vm395_vm0, %v279_v14 }
 0x126   : > { %3224 = vmatprep.mubr.msk.f32.mxu1 %vm395_vm0, %v385_v15 }
 0x128   : > { %3066 = vmatmul.mubr.msk.f32.gmra.mrb[100].mxu0 %vm395_vm0, %v280_v16 }
 0x129   : > { %3225 = vmatmul.mubr.msk.f32.gmra.mrb[100].mxu1 %vm395_vm0, %v386_v17  ;;  %3068 = vmatprep.mubr.msk.f32.mxu0 %vm395_vm0, %v281_v18 }
 0x12a   : > { %3227 = vmatprep.mubr.msk.f32.mxu1 %vm395_vm0, %v387_v19 }
 0x12c   : > { %3069 = vmatmul.mubr.msk.f32.gmra.mrb[102].mxu0 %vm395_vm0, %v282_v20 }
 0x12d   : > { %3228 = vmatmul.mubr.msk.f32.gmra.mrb[102].mxu1 %vm395_vm0, %v388_v21  ;;  %3071 = vmatprep.mubr.msk.f32.mxu0 %vm395_vm0, %v283_v22 }
 0x12e   : > { %3230 = vmatprep.mubr.msk.f32.mxu1 %vm395_vm0, %v389_v23 }
 0x130   : > { %3072 = vmatmul.mubr.msk.f32.gmra.mrb[104].mxu0 %vm395_vm0, %v284_v24 }
 0x131   : > { %3231 = vmatmul.mubr.msk.f32.gmra.mrb[104].mxu1 %vm395_vm0, %v390_v25 }
 0x133   : > { %v2917_v26 = vpop.f32.mrb[0].mxu0 }
 0x134   : > { %v3076_v27 = vpop.f32.mrb[0].mxu1  ;;  %2159 = vst.msk [vmem:[%s4039_s15 + $0x8] sm:$0xff] %vm2157_vm1, %v2917_v26  ;;  %v1098_v28 = vpop.f32.mrb[1].mxu0 }
 0x135   : > { %2265 = vst.msk [vmem:[%s4039_s15 + $0x358] sm:$0xff] %vm2157_vm1, %v3076_v27  ;;  %v1628_v29 = vpop.f32.mrb[1].mxu1  ;;  %2158 = vst.msk [vmem:[%s4039_s15] sm:$0xff] %vm2157_vm1, %v1098_v28 }
 0x136   : > { %2264 = vst.msk [vmem:[%s4039_s15 + $0x350] sm:$0xff] %vm2157_vm1, %v1628_v29 }
 0x137   : > { %v2920_v30 = vpop.f32.mrb[2].mxu0 }
 0x138   : > { %v3079_v31 = vpop.f32.mrb[2].mxu1  ;;  %2161 = vst.msk [vmem:[%s4039_s15 + $0x18] sm:$0xff] %vm2157_vm1, %v2920_v30  ;;  %v1108_v32 = vpop.f32.mrb[3].mxu0 }
 0x139   : > { %2267 = vst.msk [vmem:[%s4039_s15 + $0x368] sm:$0xff] %vm2157_vm1, %v3079_v31  ;;  %v1638_v33 = vpop.f32.mrb[3].mxu1  ;;  %2160 = vst.msk [vmem:[%s4039_s15 + $0x10] sm:$0xff] %vm2157_vm1, %v1108_v32 }
 0x13a   : > { %2266 = vst.msk [vmem:[%s4039_s15 + $0x360] sm:$0xff] %vm2157_vm1, %v1638_v33 }
 0x13b   : > { %v2923_v34 = vpop.f32.mrb[4].mxu0 }
 0x13c   : > { %v3082_v35 = vpop.f32.mrb[4].mxu1  ;;  %2163 = vst.msk [vmem:[%s4039_s15 + $0x28] sm:$0xff] %vm2157_vm1, %v2923_v34  ;;  %v1118_v36 = vpop.f32.mrb[5].mxu0 }
 0x13d   : > { %2269 = vst.msk [vmem:[%s4039_s15 + $0x378] sm:$0xff] %vm2157_vm1, %v3082_v35  ;;  %v1648_v37 = vpop.f32.mrb[5].mxu1  ;;  %2162 = vst.msk [vmem:[%s4039_s15 + $0x20] sm:$0xff] %vm2157_vm1, %v1118_v36 }
 0x13e   : > { %2268 = vst.msk [vmem:[%s4039_s15 + $0x370] sm:$0xff] %vm2157_vm1, %v1648_v37 }
 0x13f   : > { %v2926_v38 = vpop.f32.mrb[6].mxu0 }
 0x140   : > { %v3085_v39 = vpop.f32.mrb[6].mxu1  ;;  %2165 = vst.msk [vmem:[%s4039_s15 + $0x38] sm:$0xff] %vm2157_vm1, %v2926_v38  ;;  %v1128_v40 = vpop.f32.mrb[7].mxu0 }
 0x141   : > { %2271 = vst.msk [vmem:[%s4039_s15 + $0x388] sm:$0xff] %vm2157_vm1, %v3085_v39  ;;  %v1658_v41 = vpop.f32.mrb[7].mxu1  ;;  %2164 = vst.msk [vmem:[%s4039_s15 + $0x30] sm:$0xff] %vm2157_vm1, %v1128_v40 }
 0x142   : > { %2270 = vst.msk [vmem:[%s4039_s15 + $0x380] sm:$0xff] %vm2157_vm1, %v1658_v41 }
 0x143   : > { %v2929_v42 = vpop.f32.mrb[8].mxu0 }
 0x144   : > { %v3088_v43 = vpop.f32.mrb[8].mxu1  ;;  %2167 = vst.msk [vmem:[%s4039_s15 + $0x48] sm:$0xff] %vm2157_vm1, %v2929_v42  ;;  %v1138_v44 = vpop.f32.mrb[9].mxu0 }
 0x145   : > { %2273 = vst.msk [vmem:[%s4039_s15 + $0x398] sm:$0xff] %vm2157_vm1, %v3088_v43  ;;  %v1668_v45 = vpop.f32.mrb[9].mxu1  ;;  %2166 = vst.msk [vmem:[%s4039_s15 + $0x40] sm:$0xff] %vm2157_vm1, %v1138_v44 }
 0x146   : > { %2272 = vst.msk [vmem:[%s4039_s15 + $0x390] sm:$0xff] %vm2157_vm1, %v1668_v45 }
 0x147   : > { %v2932_v46 = vpop.f32.mrb[10].mxu0 }
 0x148   : > { %v3091_v47 = vpop.f32.mrb[10].mxu1  ;;  %2169 = vst.msk [vmem:[%s4039_s15 + $0x58] sm:$0xff] %vm2157_vm1, %v2932_v46  ;;  %v1148_v48 = vpop.f32.mrb[11].mxu0 }
 0x149   : > { %2275 = vst.msk [vmem:[%s4039_s15 + $0x3a8] sm:$0xff] %vm2157_vm1, %v3091_v47  ;;  %v1678_v49 = vpop.f32.mrb[11].mxu1  ;;  %2168 = vst.msk [vmem:[%s4039_s15 + $0x50] sm:$0xff] %vm2157_vm1, %v1148_v48 }
 0x14a   : > { %2274 = vst.msk [vmem:[%s4039_s15 + $0x3a0] sm:$0xff] %vm2157_vm1, %v1678_v49 }
 0x14b   : > { %v2935_v50 = vpop.f32.mrb[12].mxu0 }
 0x14c   : > { %v3094_v51 = vpop.f32.mrb[12].mxu1  ;;  %2171 = vst.msk [vmem:[%s4039_s15 + $0x68] sm:$0xff] %vm2157_vm1, %v2935_v50  ;;  %v1158_v52 = vpop.f32.mrb[13].mxu0 }
 0x14d   : > { %2277 = vst.msk [vmem:[%s4039_s15 + $0x3b8] sm:$0xff] %vm2157_vm1, %v3094_v51  ;;  %v1688_v53 = vpop.f32.mrb[13].mxu1  ;;  %2170 = vst.msk [vmem:[%s4039_s15 + $0x60] sm:$0xff] %vm2157_vm1, %v1158_v52 }
 0x14e   : > { %2276 = vst.msk [vmem:[%s4039_s15 + $0x3b0] sm:$0xff] %vm2157_vm1, %v1688_v53 }
 0x14f   : > { %v2938_v54 = vpop.f32.mrb[14].mxu0 }
 0x150   : > { %v3097_v55 = vpop.f32.mrb[14].mxu1  ;;  %2173 = vst.msk [vmem:[%s4039_s15 + $0x78] sm:$0xff] %vm2157_vm1, %v2938_v54  ;;  %v1168_v56 = vpop.f32.mrb[15].mxu0 }
 0x151   : > { %2279 = vst.msk [vmem:[%s4039_s15 + $0x3c8] sm:$0xff] %vm2157_vm1, %v3097_v55  ;;  %v1698_v57 = vpop.f32.mrb[15].mxu1  ;;  %2172 = vst.msk [vmem:[%s4039_s15 + $0x70] sm:$0xff] %vm2157_vm1, %v1168_v56 }
 0x152   : > { %2278 = vst.msk [vmem:[%s4039_s15 + $0x3c0] sm:$0xff] %vm2157_vm1, %v1698_v57 }
 0x153   : > { %v2941_v58 = vpop.f32.mrb[16].mxu0 }
 0x154   : > { %v3100_v59 = vpop.f32.mrb[16].mxu1  ;;  %2175 = vst.msk [vmem:[%s4039_s15 + $0x88] sm:$0xff] %vm2157_vm1, %v2941_v58  ;;  %v1178_v60 = vpop.f32.mrb[17].mxu0 }
 0x155   : > { %2281 = vst.msk [vmem:[%s4039_s15 + $0x3d8] sm:$0xff] %vm2157_vm1, %v3100_v59  ;;  %v1708_v61 = vpop.f32.mrb[17].mxu1  ;;  %2174 = vst.msk [vmem:[%s4039_s15 + $0x80] sm:$0xff] %vm2157_vm1, %v1178_v60 }
 0x156   : > { %2280 = vst.msk [vmem:[%s4039_s15 + $0x3d0] sm:$0xff] %vm2157_vm1, %v1708_v61 }
 0x157   : > { %v2944_v62 = vpop.f32.mrb[18].mxu0 }
 0x158   : > { %v3103_v63 = vpop.f32.mrb[18].mxu1  ;;  %2177 = vst.msk [vmem:[%s4039_s15 + $0x98] sm:$0xff] %vm2157_vm1, %v2944_v62  ;;  %v1188_v0 = vpop.f32.mrb[19].mxu0 }
 0x159   : > { %2283 = vst.msk [vmem:[%s4039_s15 + $0x3e8] sm:$0xff] %vm2157_vm1, %v3103_v63  ;;  %v1718_v1 = vpop.f32.mrb[19].mxu1  ;;  %2176 = vst.msk [vmem:[%s4039_s15 + $0x90] sm:$0xff] %vm2157_vm1, %v1188_v0 }
 0x15a   : > { %2282 = vst.msk [vmem:[%s4039_s15 + $0x3e0] sm:$0xff] %vm2157_vm1, %v1718_v1 }
 0x15b   : > { %v2947_v2 = vpop.f32.mrb[20].mxu0 }
 0x15c   : > { %v3106_v3 = vpop.f32.mrb[20].mxu1  ;;  %2179 = vst.msk [vmem:[%s4039_s15 + $0xa8] sm:$0xff] %vm2157_vm1, %v2947_v2  ;;  %v1198_v4 = vpop.f32.mrb[21].mxu0 }
 0x15d   : > { %2285 = vst.msk [vmem:[%s4039_s15 + $0x3f8] sm:$0xff] %vm2157_vm1, %v3106_v3  ;;  %v1728_v5 = vpop.f32.mrb[21].mxu1  ;;  %2178 = vst.msk [vmem:[%s4039_s15 + $0xa0] sm:$0xff] %vm2157_vm1, %v1198_v4 }
 0x15e   : > { %2284 = vst.msk [vmem:[%s4039_s15 + $0x3f0] sm:$0xff] %vm2157_vm1, %v1728_v5 }
 0x15f   : > { %v2950_v6 = vpop.f32.mrb[22].mxu0 }
 0x160   : > { %v3109_v7 = vpop.f32.mrb[22].mxu1  ;;  %2181 = vst.msk [vmem:[%s4039_s15 + $0xb8] sm:$0xff] %vm2157_vm1, %v2950_v6  ;;  %v1208_v8 = vpop.f32.mrb[23].mxu0 }
 0x161   : > { %2287 = vst.msk [vmem:[%s4039_s15 + $0x408] sm:$0xff] %vm2157_vm1, %v3109_v7  ;;  %v1738_v9 = vpop.f32.mrb[23].mxu1  ;;  %2180 = vst.msk [vmem:[%s4039_s15 + $0xb0] sm:$0xff] %vm2157_vm1, %v1208_v8 }
 0x162   : > { %2286 = vst.msk [vmem:[%s4039_s15 + $0x400] sm:$0xff] %vm2157_vm1, %v1738_v9 }
 0x163   : > { %v2953_v10 = vpop.f32.mrb[24].mxu0 }
 0x164   : > { %v3112_v11 = vpop.f32.mrb[24].mxu1  ;;  %2183 = vst.msk [vmem:[%s4039_s15 + $0xc8] sm:$0xff] %vm2157_vm1, %v2953_v10  ;;  %v1218_v12 = vpop.f32.mrb[25].mxu0 }
 0x165   : > { %2289 = vst.msk [vmem:[%s4039_s15 + $0x418] sm:$0xff] %vm2157_vm1, %v3112_v11  ;;  %v1748_v13 = vpop.f32.mrb[25].mxu1  ;;  %2182 = vst.msk [vmem:[%s4039_s15 + $0xc0] sm:$0xff] %vm2157_vm1, %v1218_v12 }
 0x166   : > { %2288 = vst.msk [vmem:[%s4039_s15 + $0x410] sm:$0xff] %vm2157_vm1, %v1748_v13 }
 0x167   : > { %v2956_v14 = vpop.f32.mrb[26].mxu0 }
 0x168   : > { %v3115_v15 = vpop.f32.mrb[26].mxu1  ;;  %2185 = vst.msk [vmem:[%s4039_s15 + $0xd8] sm:$0xff] %vm2157_vm1, %v2956_v14  ;;  %v1228_v16 = vpop.f32.mrb[27].mxu0 }
 0x169   : > { %2291 = vst.msk [vmem:[%s4039_s15 + $0x428] sm:$0xff] %vm2157_vm1, %v3115_v15  ;;  %v1758_v17 = vpop.f32.mrb[27].mxu1  ;;  %2184 = vst.msk [vmem:[%s4039_s15 + $0xd0] sm:$0xff] %vm2157_vm1, %v1228_v16 }
 0x16a   : > { %2290 = vst.msk [vmem:[%s4039_s15 + $0x420] sm:$0xff] %vm2157_vm1, %v1758_v17 }
 0x16b   : > { %v2959_v18 = vpop.f32.mrb[28].mxu0 }
 0x16c   : > { %v3118_v19 = vpop.f32.mrb[28].mxu1  ;;  %2187 = vst.msk [vmem:[%s4039_s15 + $0xe8] sm:$0xff] %vm2157_vm1, %v2959_v18  ;;  %v1238_v20 = vpop.f32.mrb[29].mxu0 }
 0x16d   : > { %2293 = vst.msk [vmem:[%s4039_s15 + $0x438] sm:$0xff] %vm2157_vm1, %v3118_v19  ;;  %v1768_v21 = vpop.f32.mrb[29].mxu1  ;;  %2186 = vst.msk [vmem:[%s4039_s15 + $0xe0] sm:$0xff] %vm2157_vm1, %v1238_v20 }
 0x16e   : > { %2292 = vst.msk [vmem:[%s4039_s15 + $0x430] sm:$0xff] %vm2157_vm1, %v1768_v21 }
 0x16f   : > { %v2962_v22 = vpop.f32.mrb[30].mxu0 }
 0x170   : > { %v3121_v23 = vpop.f32.mrb[30].mxu1  ;;  %2189 = vst.msk [vmem:[%s4039_s15 + $0xf8] sm:$0xff] %vm2157_vm1, %v2962_v22  ;;  %v1248_v24 = vpop.f32.mrb[31].mxu0 }
 0x171   : > { %2295 = vst.msk [vmem:[%s4039_s15 + $0x448] sm:$0xff] %vm2157_vm1, %v3121_v23  ;;  %v1778_v25 = vpop.f32.mrb[31].mxu1  ;;  %2188 = vst.msk [vmem:[%s4039_s15 + $0xf0] sm:$0xff] %vm2157_vm1, %v1248_v24 }
 0x172   : > { %2294 = vst.msk [vmem:[%s4039_s15 + $0x440] sm:$0xff] %vm2157_vm1, %v1778_v25 }
 0x173   : > { %v2965_v26 = vpop.f32.mrb[32].mxu0 }
 0x174   : > { %v3124_v27 = vpop.f32.mrb[32].mxu1  ;;  %2191 = vst.msk [vmem:[%s4039_s15 + $0x108] sm:$0xff] %vm2157_vm1, %v2965_v26  ;;  %v1258_v28 = vpop.f32.mrb[33].mxu0 }
 0x175   : > { %2297 = vst.msk [vmem:[%s4039_s15 + $0x458] sm:$0xff] %vm2157_vm1, %v3124_v27  ;;  %v1788_v29 = vpop.f32.mrb[33].mxu1  ;;  %2190 = vst.msk [vmem:[%s4039_s15 + $0x100] sm:$0xff] %vm2157_vm1, %v1258_v28 }
 0x176   : > { %2296 = vst.msk [vmem:[%s4039_s15 + $0x450] sm:$0xff] %vm2157_vm1, %v1788_v29 }
 0x177   : > { %v2968_v30 = vpop.f32.mrb[34].mxu0 }
 0x178   : > { %v3127_v31 = vpop.f32.mrb[34].mxu1  ;;  %2193 = vst.msk [vmem:[%s4039_s15 + $0x118] sm:$0xff] %vm2157_vm1, %v2968_v30  ;;  %v1268_v32 = vpop.f32.mrb[35].mxu0 }
 0x179   : > { %2299 = vst.msk [vmem:[%s4039_s15 + $0x468] sm:$0xff] %vm2157_vm1, %v3127_v31  ;;  %v1798_v33 = vpop.f32.mrb[35].mxu1  ;;  %2192 = vst.msk [vmem:[%s4039_s15 + $0x110] sm:$0xff] %vm2157_vm1, %v1268_v32 }
 0x17a   : > { %2298 = vst.msk [vmem:[%s4039_s15 + $0x460] sm:$0xff] %vm2157_vm1, %v1798_v33 }
 0x17b   : > { %v2971_v34 = vpop.f32.mrb[36].mxu0 }
 0x17c   : > { %v3130_v35 = vpop.f32.mrb[36].mxu1  ;;  %2195 = vst.msk [vmem:[%s4039_s15 + $0x128] sm:$0xff] %vm2157_vm1, %v2971_v34  ;;  %v1278_v36 = vpop.f32.mrb[37].mxu0 }
 0x17d   : > { %2301 = vst.msk [vmem:[%s4039_s15 + $0x478] sm:$0xff] %vm2157_vm1, %v3130_v35  ;;  %v1808_v37 = vpop.f32.mrb[37].mxu1  ;;  %2194 = vst.msk [vmem:[%s4039_s15 + $0x120] sm:$0xff] %vm2157_vm1, %v1278_v36 }
 0x17e   : > { %2300 = vst.msk [vmem:[%s4039_s15 + $0x470] sm:$0xff] %vm2157_vm1, %v1808_v37 }
 0x17f   : > { %v2974_v38 = vpop.f32.mrb[38].mxu0 }
 0x180   : > { %v3133_v39 = vpop.f32.mrb[38].mxu1  ;;  %2197 = vst.msk [vmem:[%s4039_s15 + $0x138] sm:$0xff] %vm2157_vm1, %v2974_v38  ;;  %v1288_v40 = vpop.f32.mrb[39].mxu0 }
 0x181   : > { %2303 = vst.msk [vmem:[%s4039_s15 + $0x488] sm:$0xff] %vm2157_vm1, %v3133_v39  ;;  %v1818_v41 = vpop.f32.mrb[39].mxu1  ;;  %2196 = vst.msk [vmem:[%s4039_s15 + $0x130] sm:$0xff] %vm2157_vm1, %v1288_v40 }
 0x182   : > { %2302 = vst.msk [vmem:[%s4039_s15 + $0x480] sm:$0xff] %vm2157_vm1, %v1818_v41 }
 0x183   : > { %v2977_v42 = vpop.f32.mrb[40].mxu0 }
 0x184   : > { %v3136_v43 = vpop.f32.mrb[40].mxu1  ;;  %2199 = vst.msk [vmem:[%s4039_s15 + $0x148] sm:$0xff] %vm2157_vm1, %v2977_v42  ;;  %v1298_v44 = vpop.f32.mrb[41].mxu0 }
 0x185   : > { %2305 = vst.msk [vmem:[%s4039_s15 + $0x498] sm:$0xff] %vm2157_vm1, %v3136_v43  ;;  %v1828_v45 = vpop.f32.mrb[41].mxu1  ;;  %2198 = vst.msk [vmem:[%s4039_s15 + $0x140] sm:$0xff] %vm2157_vm1, %v1298_v44 }
 0x186   : > { %2304 = vst.msk [vmem:[%s4039_s15 + $0x490] sm:$0xff] %vm2157_vm1, %v1828_v45 }
 0x187   : > { %v2980_v46 = vpop.f32.mrb[42].mxu0 }
 0x188   : > { %v3139_v47 = vpop.f32.mrb[42].mxu1  ;;  %2201 = vst.msk [vmem:[%s4039_s15 + $0x158] sm:$0xff] %vm2157_vm1, %v2980_v46  ;;  %v1308_v48 = vpop.f32.mrb[43].mxu0 }
 0x189   : > { %2307 = vst.msk [vmem:[%s4039_s15 + $0x4a8] sm:$0xff] %vm2157_vm1, %v3139_v47  ;;  %v1838_v49 = vpop.f32.mrb[43].mxu1  ;;  %2200 = vst.msk [vmem:[%s4039_s15 + $0x150] sm:$0xff] %vm2157_vm1, %v1308_v48 }
 0x18a   : > { %2306 = vst.msk [vmem:[%s4039_s15 + $0x4a0] sm:$0xff] %vm2157_vm1, %v1838_v49 }
 0x18b   : > { %v2983_v50 = vpop.f32.mrb[44].mxu0 }
 0x18c   : > { %v3142_v51 = vpop.f32.mrb[44].mxu1  ;;  %2203 = vst.msk [vmem:[%s4039_s15 + $0x168] sm:$0xff] %vm2157_vm1, %v2983_v50  ;;  %v1318_v52 = vpop.f32.mrb[45].mxu0 }
 0x18d   : > { %2309 = vst.msk [vmem:[%s4039_s15 + $0x4b8] sm:$0xff] %vm2157_vm1, %v3142_v51  ;;  %v1848_v53 = vpop.f32.mrb[45].mxu1  ;;  %2202 = vst.msk [vmem:[%s4039_s15 + $0x160] sm:$0xff] %vm2157_vm1, %v1318_v52 }
 0x18e   : > { %2308 = vst.msk [vmem:[%s4039_s15 + $0x4b0] sm:$0xff] %vm2157_vm1, %v1848_v53 }
 0x18f   : > { %v2986_v54 = vpop.f32.mrb[46].mxu0 }
 0x190   : > { %v3145_v55 = vpop.f32.mrb[46].mxu1  ;;  %2205 = vst.msk [vmem:[%s4039_s15 + $0x178] sm:$0xff] %vm2157_vm1, %v2986_v54  ;;  %v1328_v56 = vpop.f32.mrb[47].mxu0 }
 0x191   : > { %2311 = vst.msk [vmem:[%s4039_s15 + $0x4c8] sm:$0xff] %vm2157_vm1, %v3145_v55  ;;  %v1858_v57 = vpop.f32.mrb[47].mxu1  ;;  %2204 = vst.msk [vmem:[%s4039_s15 + $0x170] sm:$0xff] %vm2157_vm1, %v1328_v56 }
 0x192   : > { %2310 = vst.msk [vmem:[%s4039_s15 + $0x4c0] sm:$0xff] %vm2157_vm1, %v1858_v57 }
 0x193   : > { %v2989_v58 = vpop.f32.mrb[48].mxu0 }
 0x194   : > { %v3148_v59 = vpop.f32.mrb[48].mxu1  ;;  %2207 = vst.msk [vmem:[%s4039_s15 + $0x188] sm:$0xff] %vm2157_vm1, %v2989_v58  ;;  %v1338_v60 = vpop.f32.mrb[49].mxu0 }
 0x195   : > { %2313 = vst.msk [vmem:[%s4039_s15 + $0x4d8] sm:$0xff] %vm2157_vm1, %v3148_v59  ;;  %v1868_v61 = vpop.f32.mrb[49].mxu1  ;;  %2206 = vst.msk [vmem:[%s4039_s15 + $0x180] sm:$0xff] %vm2157_vm1, %v1338_v60 }
 0x196   : > { %2312 = vst.msk [vmem:[%s4039_s15 + $0x4d0] sm:$0xff] %vm2157_vm1, %v1868_v61 }
 0x197   : > { %v2992_v62 = vpop.f32.mrb[50].mxu0 }
 0x198   : > { %v3151_v63 = vpop.f32.mrb[50].mxu1  ;;  %2209 = vst.msk [vmem:[%s4039_s15 + $0x198] sm:$0xff] %vm2157_vm1, %v2992_v62  ;;  %v1348_v0 = vpop.f32.mrb[51].mxu0 }
 0x199   : > { %2315 = vst.msk [vmem:[%s4039_s15 + $0x4e8] sm:$0xff] %vm2157_vm1, %v3151_v63  ;;  %v1878_v1 = vpop.f32.mrb[51].mxu1  ;;  %2208 = vst.msk [vmem:[%s4039_s15 + $0x190] sm:$0xff] %vm2157_vm1, %v1348_v0 }
 0x19a   : > { %2314 = vst.msk [vmem:[%s4039_s15 + $0x4e0] sm:$0xff] %vm2157_vm1, %v1878_v1 }
 0x19b   : > { %v2995_v2 = vpop.f32.mrb[52].mxu0 }
 0x19c   : > { %v3154_v3 = vpop.f32.mrb[52].mxu1  ;;  %2211 = vst.msk [vmem:[%s4039_s15 + $0x1a8] sm:$0xff] %vm2157_vm1, %v2995_v2  ;;  %v1358_v4 = vpop.f32.mrb[53].mxu0 }
 0x19d   : > { %2317 = vst.msk [vmem:[%s4039_s15 + $0x4f8] sm:$0xff] %vm2157_vm1, %v3154_v3  ;;  %v1888_v5 = vpop.f32.mrb[53].mxu1  ;;  %2210 = vst.msk [vmem:[%s4039_s15 + $0x1a0] sm:$0xff] %vm2157_vm1, %v1358_v4 }
 0x19e   : > { %2316 = vst.msk [vmem:[%s4039_s15 + $0x4f0] sm:$0xff] %vm2157_vm1, %v1888_v5 }
 0x19f   : > { %v2998_v6 = vpop.f32.mrb[54].mxu0 }
 0x1a0   : > { %v3157_v7 = vpop.f32.mrb[54].mxu1  ;;  %2213 = vst.msk [vmem:[%s4039_s15 + $0x1b8] sm:$0xff] %vm2157_vm1, %v2998_v6  ;;  %v1368_v8 = vpop.f32.mrb[55].mxu0 }
 0x1a1   : > { %2319 = vst.msk [vmem:[%s4039_s15 + $0x508] sm:$0xff] %vm2157_vm1, %v3157_v7  ;;  %v1898_v9 = vpop.f32.mrb[55].mxu1  ;;  %2212 = vst.msk [vmem:[%s4039_s15 + $0x1b0] sm:$0xff] %vm2157_vm1, %v1368_v8 }
 0x1a2   : > { %2318 = vst.msk [vmem:[%s4039_s15 + $0x500] sm:$0xff] %vm2157_vm1, %v1898_v9 }
 0x1a3   : > { %v3001_v10 = vpop.f32.mrb[56].mxu0 }
 0x1a4   : > { %v3160_v11 = vpop.f32.mrb[56].mxu1  ;;  %2215 = vst.msk [vmem:[%s4039_s15 + $0x1c8] sm:$0xff] %vm2157_vm1, %v3001_v10  ;;  %v1378_v12 = vpop.f32.mrb[57].mxu0 }
 0x1a5   : > { %2321 = vst.msk [vmem:[%s4039_s15 + $0x518] sm:$0xff] %vm2157_vm1, %v3160_v11  ;;  %v1908_v13 = vpop.f32.mrb[57].mxu1  ;;  %2214 = vst.msk [vmem:[%s4039_s15 + $0x1c0] sm:$0xff] %vm2157_vm1, %v1378_v12 }
 0x1a6   : > { %2320 = vst.msk [vmem:[%s4039_s15 + $0x510] sm:$0xff] %vm2157_vm1, %v1908_v13 }
 0x1a7   : > { %v3004_v14 = vpop.f32.mrb[58].mxu0 }
 0x1a8   : > { %v3163_v15 = vpop.f32.mrb[58].mxu1  ;;  %2217 = vst.msk [vmem:[%s4039_s15 + $0x1d8] sm:$0xff] %vm2157_vm1, %v3004_v14  ;;  %v1388_v16 = vpop.f32.mrb[59].mxu0 }
 0x1a9   : > { %2323 = vst.msk [vmem:[%s4039_s15 + $0x528] sm:$0xff] %vm2157_vm1, %v3163_v15  ;;  %v1918_v17 = vpop.f32.mrb[59].mxu1  ;;  %2216 = vst.msk [vmem:[%s4039_s15 + $0x1d0] sm:$0xff] %vm2157_vm1, %v1388_v16 }
 0x1aa   : > { %2322 = vst.msk [vmem:[%s4039_s15 + $0x520] sm:$0xff] %vm2157_vm1, %v1918_v17 }
 0x1ab   : > { %v3007_v18 = vpop.f32.mrb[60].mxu0 }
 0x1ac   : > { %v3166_v19 = vpop.f32.mrb[60].mxu1  ;;  %2219 = vst.msk [vmem:[%s4039_s15 + $0x1e8] sm:$0xff] %vm2157_vm1, %v3007_v18  ;;  %v1398_v20 = vpop.f32.mrb[61].mxu0 }
 0x1ad   : > { %2325 = vst.msk [vmem:[%s4039_s15 + $0x538] sm:$0xff] %vm2157_vm1, %v3166_v19  ;;  %v1928_v21 = vpop.f32.mrb[61].mxu1  ;;  %2218 = vst.msk [vmem:[%s4039_s15 + $0x1e0] sm:$0xff] %vm2157_vm1, %v1398_v20 }
 0x1ae   : > { %2324 = vst.msk [vmem:[%s4039_s15 + $0x530] sm:$0xff] %vm2157_vm1, %v1928_v21 }
 0x1af   : > { %v3010_v22 = vpop.f32.mrb[62].mxu0 }
 0x1b0   : > { %v3169_v23 = vpop.f32.mrb[62].mxu1  ;;  %2221 = vst.msk [vmem:[%s4039_s15 + $0x1f8] sm:$0xff] %vm2157_vm1, %v3010_v22  ;;  %v1408_v24 = vpop.f32.mrb[63].mxu0 }
 0x1b1   : > { %2327 = vst.msk [vmem:[%s4039_s15 + $0x548] sm:$0xff] %vm2157_vm1, %v3169_v23  ;;  %v1938_v25 = vpop.f32.mrb[63].mxu1  ;;  %2220 = vst.msk [vmem:[%s4039_s15 + $0x1f0] sm:$0xff] %vm2157_vm1, %v1408_v24 }
 0x1b2   : > { %2326 = vst.msk [vmem:[%s4039_s15 + $0x540] sm:$0xff] %vm2157_vm1, %v1938_v25 }
 0x1b3   : > { %v3013_v26 = vpop.f32.mrb[64].mxu0 }
 0x1b4   : > { %v3172_v27 = vpop.f32.mrb[64].mxu1  ;;  %2223 = vst.msk [vmem:[%s4039_s15 + $0x208] sm:$0xff] %vm2157_vm1, %v3013_v26  ;;  %v1418_v28 = vpop.f32.mrb[65].mxu0 }
 0x1b5   : > { %2329 = vst.msk [vmem:[%s4039_s15 + $0x558] sm:$0xff] %vm2157_vm1, %v3172_v27  ;;  %v1948_v29 = vpop.f32.mrb[65].mxu1  ;;  %2222 = vst.msk [vmem:[%s4039_s15 + $0x200] sm:$0xff] %vm2157_vm1, %v1418_v28 }
 0x1b6   : > { %2328 = vst.msk [vmem:[%s4039_s15 + $0x550] sm:$0xff] %vm2157_vm1, %v1948_v29 }
 0x1b7   : > { %v3016_v30 = vpop.f32.mrb[66].mxu0 }
 0x1b8   : > { %v3175_v31 = vpop.f32.mrb[66].mxu1  ;;  %2225 = vst.msk [vmem:[%s4039_s15 + $0x218] sm:$0xff] %vm2157_vm1, %v3016_v30  ;;  %v1428_v32 = vpop.f32.mrb[67].mxu0 }
 0x1b9   : > { %2331 = vst.msk [vmem:[%s4039_s15 + $0x568] sm:$0xff] %vm2157_vm1, %v3175_v31  ;;  %v1958_v33 = vpop.f32.mrb[67].mxu1  ;;  %2224 = vst.msk [vmem:[%s4039_s15 + $0x210] sm:$0xff] %vm2157_vm1, %v1428_v32 }
 0x1ba   : > { %2330 = vst.msk [vmem:[%s4039_s15 + $0x560] sm:$0xff] %vm2157_vm1, %v1958_v33 }
 0x1bb   : > { %v3019_v34 = vpop.f32.mrb[68].mxu0 }
 0x1bc   : > { %v3178_v35 = vpop.f32.mrb[68].mxu1  ;;  %2227 = vst.msk [vmem:[%s4039_s15 + $0x228] sm:$0xff] %vm2157_vm1, %v3019_v34  ;;  %v1438_v36 = vpop.f32.mrb[69].mxu0 }
 0x1bd   : > { %2333 = vst.msk [vmem:[%s4039_s15 + $0x578] sm:$0xff] %vm2157_vm1, %v3178_v35  ;;  %v1968_v37 = vpop.f32.mrb[69].mxu1  ;;  %2226 = vst.msk [vmem:[%s4039_s15 + $0x220] sm:$0xff] %vm2157_vm1, %v1438_v36 }
 0x1be   : > { %2332 = vst.msk [vmem:[%s4039_s15 + $0x570] sm:$0xff] %vm2157_vm1, %v1968_v37 }
 0x1bf   : > { %v3022_v38 = vpop.f32.mrb[70].mxu0 }
 0x1c0   : > { %v3181_v39 = vpop.f32.mrb[70].mxu1  ;;  %2229 = vst.msk [vmem:[%s4039_s15 + $0x238] sm:$0xff] %vm2157_vm1, %v3022_v38  ;;  %v1448_v40 = vpop.f32.mrb[71].mxu0 }
 0x1c1   : > { %2335 = vst.msk [vmem:[%s4039_s15 + $0x588] sm:$0xff] %vm2157_vm1, %v3181_v39  ;;  %v1978_v41 = vpop.f32.mrb[71].mxu1  ;;  %2228 = vst.msk [vmem:[%s4039_s15 + $0x230] sm:$0xff] %vm2157_vm1, %v1448_v40 }
 0x1c2   : > { %2334 = vst.msk [vmem:[%s4039_s15 + $0x580] sm:$0xff] %vm2157_vm1, %v1978_v41 }
 0x1c3   : > { %v3025_v42 = vpop.f32.mrb[72].mxu0 }
 0x1c4   : > { %v3184_v43 = vpop.f32.mrb[72].mxu1  ;;  %2231 = vst.msk [vmem:[%s4039_s15 + $0x248] sm:$0xff] %vm2157_vm1, %v3025_v42  ;;  %v1458_v44 = vpop.f32.mrb[73].mxu0 }
 0x1c5   : > { %2337 = vst.msk [vmem:[%s4039_s15 + $0x598] sm:$0xff] %vm2157_vm1, %v3184_v43  ;;  %v1988_v45 = vpop.f32.mrb[73].mxu1  ;;  %2230 = vst.msk [vmem:[%s4039_s15 + $0x240] sm:$0xff] %vm2157_vm1, %v1458_v44 }
 0x1c6   : > { %2336 = vst.msk [vmem:[%s4039_s15 + $0x590] sm:$0xff] %vm2157_vm1, %v1988_v45 }
 0x1c7   : > { %v3028_v46 = vpop.f32.mrb[74].mxu0 }
 0x1c8   : > { %v3187_v47 = vpop.f32.mrb[74].mxu1  ;;  %2233 = vst.msk [vmem:[%s4039_s15 + $0x258] sm:$0xff] %vm2157_vm1, %v3028_v46  ;;  %v1468_v48 = vpop.f32.mrb[75].mxu0 }
 0x1c9   : > { %2339 = vst.msk [vmem:[%s4039_s15 + $0x5a8] sm:$0xff] %vm2157_vm1, %v3187_v47  ;;  %v1998_v49 = vpop.f32.mrb[75].mxu1  ;;  %2232 = vst.msk [vmem:[%s4039_s15 + $0x250] sm:$0xff] %vm2157_vm1, %v1468_v48 }
 0x1ca   : > { %2338 = vst.msk [vmem:[%s4039_s15 + $0x5a0] sm:$0xff] %vm2157_vm1, %v1998_v49 }
 0x1cb   : > { %v3031_v50 = vpop.f32.mrb[76].mxu0 }
 0x1cc   : > { %v3190_v51 = vpop.f32.mrb[76].mxu1  ;;  %2235 = vst.msk [vmem:[%s4039_s15 + $0x268] sm:$0xff] %vm2157_vm1, %v3031_v50  ;;  %v1478_v52 = vpop.f32.mrb[77].mxu0 }
 0x1cd   : > { %2341 = vst.msk [vmem:[%s4039_s15 + $0x5b8] sm:$0xff] %vm2157_vm1, %v3190_v51  ;;  %v2008_v53 = vpop.f32.mrb[77].mxu1  ;;  %2234 = vst.msk [vmem:[%s4039_s15 + $0x260] sm:$0xff] %vm2157_vm1, %v1478_v52 }
 0x1ce   : > { %2340 = vst.msk [vmem:[%s4039_s15 + $0x5b0] sm:$0xff] %vm2157_vm1, %v2008_v53 }
 0x1cf   : > { %v3034_v54 = vpop.f32.mrb[78].mxu0 }
 0x1d0   : > { %v3193_v55 = vpop.f32.mrb[78].mxu1  ;;  %2237 = vst.msk [vmem:[%s4039_s15 + $0x278] sm:$0xff] %vm2157_vm1, %v3034_v54  ;;  %v1488_v56 = vpop.f32.mrb[79].mxu0 }
 0x1d1   : > { %2343 = vst.msk [vmem:[%s4039_s15 + $0x5c8] sm:$0xff] %vm2157_vm1, %v3193_v55  ;;  %v2018_v57 = vpop.f32.mrb[79].mxu1  ;;  %2236 = vst.msk [vmem:[%s4039_s15 + $0x270] sm:$0xff] %vm2157_vm1, %v1488_v56 }
 0x1d2   : > { %2342 = vst.msk [vmem:[%s4039_s15 + $0x5c0] sm:$0xff] %vm2157_vm1, %v2018_v57 }
 0x1d3   : > { %v3037_v58 = vpop.f32.mrb[80].mxu0 }
 0x1d4   : > { %v3196_v59 = vpop.f32.mrb[80].mxu1  ;;  %2239 = vst.msk [vmem:[%s4039_s15 + $0x288] sm:$0xff] %vm2157_vm1, %v3037_v58  ;;  %v1498_v60 = vpop.f32.mrb[81].mxu0 }
 0x1d5   : > { %2345 = vst.msk [vmem:[%s4039_s15 + $0x5d8] sm:$0xff] %vm2157_vm1, %v3196_v59  ;;  %v2028_v61 = vpop.f32.mrb[81].mxu1  ;;  %2238 = vst.msk [vmem:[%s4039_s15 + $0x280] sm:$0xff] %vm2157_vm1, %v1498_v60 }
 0x1d6   : > { %2344 = vst.msk [vmem:[%s4039_s15 + $0x5d0] sm:$0xff] %vm2157_vm1, %v2028_v61 }
 0x1d7   : > { %v3040_v62 = vpop.f32.mrb[82].mxu0 }
 0x1d8   : > { %v3199_v63 = vpop.f32.mrb[82].mxu1  ;;  %2241 = vst.msk [vmem:[%s4039_s15 + $0x298] sm:$0xff] %vm2157_vm1, %v3040_v62  ;;  %v1508_v0 = vpop.f32.mrb[83].mxu0 }
 0x1d9   : > { %2347 = vst.msk [vmem:[%s4039_s15 + $0x5e8] sm:$0xff] %vm2157_vm1, %v3199_v63  ;;  %v2038_v1 = vpop.f32.mrb[83].mxu1  ;;  %2240 = vst.msk [vmem:[%s4039_s15 + $0x290] sm:$0xff] %vm2157_vm1, %v1508_v0 }
 0x1da   : > { %2346 = vst.msk [vmem:[%s4039_s15 + $0x5e0] sm:$0xff] %vm2157_vm1, %v2038_v1 }
 0x1db   : > { %v3043_v2 = vpop.f32.mrb[84].mxu0 }
 0x1dc   : > { %v3202_v3 = vpop.f32.mrb[84].mxu1  ;;  %2243 = vst.msk [vmem:[%s4039_s15 + $0x2a8] sm:$0xff] %vm2157_vm1, %v3043_v2  ;;  %v1518_v4 = vpop.f32.mrb[85].mxu0 }
 0x1dd   : > { %2349 = vst.msk [vmem:[%s4039_s15 + $0x5f8] sm:$0xff] %vm2157_vm1, %v3202_v3  ;;  %v2048_v5 = vpop.f32.mrb[85].mxu1  ;;  %2242 = vst.msk [vmem:[%s4039_s15 + $0x2a0] sm:$0xff] %vm2157_vm1, %v1518_v4 }
 0x1de   : > { %2348 = vst.msk [vmem:[%s4039_s15 + $0x5f0] sm:$0xff] %vm2157_vm1, %v2048_v5 }
 0x1df   : > { %v3046_v6 = vpop.f32.mrb[86].mxu0 }
 0x1e0   : > { %v3205_v7 = vpop.f32.mrb[86].mxu1  ;;  %2245 = vst.msk [vmem:[%s4039_s15 + $0x2b8] sm:$0xff] %vm2157_vm1, %v3046_v6  ;;  %v1528_v8 = vpop.f32.mrb[87].mxu0 }
 0x1e1   : > { %2351 = vst.msk [vmem:[%s4039_s15 + $0x608] sm:$0xff] %vm2157_vm1, %v3205_v7  ;;  %v2058_v9 = vpop.f32.mrb[87].mxu1  ;;  %2244 = vst.msk [vmem:[%s4039_s15 + $0x2b0] sm:$0xff] %vm2157_vm1, %v1528_v8 }
 0x1e2   : > { %2350 = vst.msk [vmem:[%s4039_s15 + $0x600] sm:$0xff] %vm2157_vm1, %v2058_v9 }
 0x1e3   : > { %v3049_v10 = vpop.f32.mrb[88].mxu0 }
 0x1e4   : > { %v3208_v11 = vpop.f32.mrb[88].mxu1  ;;  %2247 = vst.msk [vmem:[%s4039_s15 + $0x2c8] sm:$0xff] %vm2157_vm1, %v3049_v10  ;;  %v1538_v12 = vpop.f32.mrb[89].mxu0 }
 0x1e5   : > { %2353 = vst.msk [vmem:[%s4039_s15 + $0x618] sm:$0xff] %vm2157_vm1, %v3208_v11  ;;  %v2068_v13 = vpop.f32.mrb[89].mxu1  ;;  %2246 = vst.msk [vmem:[%s4039_s15 + $0x2c0] sm:$0xff] %vm2157_vm1, %v1538_v12 }
 0x1e6   : > { %2352 = vst.msk [vmem:[%s4039_s15 + $0x610] sm:$0xff] %vm2157_vm1, %v2068_v13 }
 0x1e7   : > { %v3052_v14 = vpop.f32.mrb[90].mxu0 }
 0x1e8   : > { %v3211_v15 = vpop.f32.mrb[90].mxu1  ;;  %2249 = vst.msk [vmem:[%s4039_s15 + $0x2d8] sm:$0xff] %vm2157_vm1, %v3052_v14  ;;  %v1548_v16 = vpop.f32.mrb[91].mxu0 }
 0x1e9   : > { %2355 = vst.msk [vmem:[%s4039_s15 + $0x628] sm:$0xff] %vm2157_vm1, %v3211_v15  ;;  %v2078_v17 = vpop.f32.mrb[91].mxu1  ;;  %2248 = vst.msk [vmem:[%s4039_s15 + $0x2d0] sm:$0xff] %vm2157_vm1, %v1548_v16 }
 0x1ea   : > { %2354 = vst.msk [vmem:[%s4039_s15 + $0x620] sm:$0xff] %vm2157_vm1, %v2078_v17 }
 0x1eb   : > { %v3055_v18 = vpop.f32.mrb[92].mxu0 }
 0x1ec   : > { %v3214_v19 = vpop.f32.mrb[92].mxu1  ;;  %2251 = vst.msk [vmem:[%s4039_s15 + $0x2e8] sm:$0xff] %vm2157_vm1, %v3055_v18  ;;  %v1558_v20 = vpop.f32.mrb[93].mxu0 }
 0x1ed   : > { %2357 = vst.msk [vmem:[%s4039_s15 + $0x638] sm:$0xff] %vm2157_vm1, %v3214_v19  ;;  %v2088_v21 = vpop.f32.mrb[93].mxu1  ;;  %2250 = vst.msk [vmem:[%s4039_s15 + $0x2e0] sm:$0xff] %vm2157_vm1, %v1558_v20 }
 0x1ee   : > { %2356 = vst.msk [vmem:[%s4039_s15 + $0x630] sm:$0xff] %vm2157_vm1, %v2088_v21 }
 0x1ef   : > { %v3058_v22 = vpop.f32.mrb[94].mxu0 }
 0x1f0   : > { %v3217_v23 = vpop.f32.mrb[94].mxu1  ;;  %2253 = vst.msk [vmem:[%s4039_s15 + $0x2f8] sm:$0xff] %vm2157_vm1, %v3058_v22  ;;  %v1568_v24 = vpop.f32.mrb[95].mxu0 }
 0x1f1   : > { %2359 = vst.msk [vmem:[%s4039_s15 + $0x648] sm:$0xff] %vm2157_vm1, %v3217_v23  ;;  %v2098_v25 = vpop.f32.mrb[95].mxu1  ;;  %2252 = vst.msk [vmem:[%s4039_s15 + $0x2f0] sm:$0xff] %vm2157_vm1, %v1568_v24 }
 0x1f2   : > { %2358 = vst.msk [vmem:[%s4039_s15 + $0x640] sm:$0xff] %vm2157_vm1, %v2098_v25 }
 0x1f3   : > { %v3061_v26 = vpop.f32.mrb[96].mxu0 }
 0x1f4   : > { %v3220_v27 = vpop.f32.mrb[96].mxu1  ;;  %2255 = vst.msk [vmem:[%s4039_s15 + $0x308] sm:$0xff] %vm2157_vm1, %v3061_v26  ;;  %v1578_v28 = vpop.f32.mrb[97].mxu0 }
 0x1f5   : > { %2361 = vst.msk [vmem:[%s4039_s15 + $0x658] sm:$0xff] %vm2157_vm1, %v3220_v27  ;;  %v2108_v29 = vpop.f32.mrb[97].mxu1  ;;  %2254 = vst.msk [vmem:[%s4039_s15 + $0x300] sm:$0xff] %vm2157_vm1, %v1578_v28 }
 0x1f6   : > { %2360 = vst.msk [vmem:[%s4039_s15 + $0x650] sm:$0xff] %vm2157_vm1, %v2108_v29 }
 0x1f7   : > { %v3064_v30 = vpop.f32.mrb[98].mxu0 }
 0x1f8   : > { %v3223_v31 = vpop.f32.mrb[98].mxu1  ;;  %2257 = vst.msk [vmem:[%s4039_s15 + $0x318] sm:$0xff] %vm2157_vm1, %v3064_v30  ;;  %v1588_v32 = vpop.f32.mrb[99].mxu0 }
 0x1f9   : > { %2363 = vst.msk [vmem:[%s4039_s15 + $0x668] sm:$0xff] %vm2157_vm1, %v3223_v31  ;;  %v2118_v33 = vpop.f32.mrb[99].mxu1  ;;  %2256 = vst.msk [vmem:[%s4039_s15 + $0x310] sm:$0xff] %vm2157_vm1, %v1588_v32 }
 0x1fa   : > { %2362 = vst.msk [vmem:[%s4039_s15 + $0x660] sm:$0xff] %vm2157_vm1, %v2118_v33 }
 0x1fb   : > { %v3067_v34 = vpop.f32.mrb[100].mxu0 }
 0x1fc   : > { %v3226_v35 = vpop.f32.mrb[100].mxu1  ;;  %2259 = vst.msk [vmem:[%s4039_s15 + $0x328] sm:$0xff] %vm2157_vm1, %v3067_v34  ;;  %v1598_v36 = vpop.f32.mrb[101].mxu0 }
 0x1fd   : > { %2365 = vst.msk [vmem:[%s4039_s15 + $0x678] sm:$0xff] %vm2157_vm1, %v3226_v35  ;;  %v2128_v37 = vpop.f32.mrb[101].mxu1  ;;  %2258 = vst.msk [vmem:[%s4039_s15 + $0x320] sm:$0xff] %vm2157_vm1, %v1598_v36 }
 0x1fe   : > { %2364 = vst.msk [vmem:[%s4039_s15 + $0x670] sm:$0xff] %vm2157_vm1, %v2128_v37 }
 0x1ff   : > { %v3070_v38 = vpop.f32.mrb[102].mxu0 }
 0x200   : > { %v3229_v39 = vpop.f32.mrb[102].mxu1  ;;  %2261 = vst.msk [vmem:[%s4039_s15 + $0x338] sm:$0xff] %vm2157_vm1, %v3070_v38  ;;  %v1608_v40 = vpop.f32.mrb[103].mxu0 }
 0x201   : > { %2367 = vst.msk [vmem:[%s4039_s15 + $0x688] sm:$0xff] %vm2157_vm1, %v3229_v39  ;;  %v2138_v41 = vpop.f32.mrb[103].mxu1  ;;  %2260 = vst.msk [vmem:[%s4039_s15 + $0x330] sm:$0xff] %vm2157_vm1, %v1608_v40 }
 0x202   : > { %2366 = vst.msk [vmem:[%s4039_s15 + $0x680] sm:$0xff] %vm2157_vm1, %v2138_v41 }
 0x203   : > { %v3073_v42 = vpop.f32.mrb[104].mxu0 }
 0x204   : > { %v3232_v43 = vpop.f32.mrb[104].mxu1  ;;  %2263 = vst.msk [vmem:[%s4039_s15 + $0x348] sm:$0xff] %vm2157_vm1, %v3073_v42  ;;  %v1618_v44 = vpop.f32.mrb[105].mxu0 }
 0x205   : > { %2369 = vst.msk [vmem:[%s4039_s15 + $0x698] sm:$0xff] %vm2157_vm1, %v3232_v43  ;;  %v2148_v45 = vpop.f32.mrb[105].mxu1  ;;  %2262 = vst.msk [vmem:[%s4039_s15 + $0x340] sm:$0xff] %vm2157_vm1, %v1618_v44 }
 0x206   : > { %2368 = vst.msk [vmem:[%s4039_s15 + $0x690] sm:$0xff] %vm2157_vm1, %v2148_v45 }
 0x207   : > { %3379 = shalt.err (!%p3376_p7)
}
 0x208   : > { %s3380_s20 = scalar_lea.hbm %s4462_s13, 27136  ;;  %s3384_s19 = scalar_lea.hbm %s4517_s2, 135680 }
 0x209   : > { %p3381_p9 = scmp.ne.s32.totalorder %s4462_s13, %s3380_s20  ;;  %p3385_p5 = scmp.lt.u32.totalorder %s4462_s13, %s4517_s2 }
 0x20a   : > { %p3386_p13 = scmp.lt.u32.totalorder %s3384_s19, %s3380_s20  ;;  %p3388_p4 = scmp.lt.u32.totalorder %s3380_s20, %s4462_s13 }
 0x20b   : > { %p3382_p1 = pnand %p3381_p9, %p3546_p12 }
 0x20c   : > { %p3387_p2 = por %p3386_p13, %p3385_p5 }
 0x20d   : > { %p3383_p0 = pneg %p3382_p1 }
 0x20e   : > { %p3389_p6 = por %p3388_p4, %p3387_p2 }
 0x210   : > { %p3390_p8 = pnand %p3389_p6, %p3383_p0 }
 0x212   : > { %3393 = shalt.err (!%p3390_p8)
}
 0x213   : > { %s3443_s30 = smov 128   ;;  %s3444_s25 = smov 8  }
 0x214   : > { %3253 = dma.vmem_to_hbm [thread:$0]  (%p3546_p12), %s4464_s4, 27136, %s4462_s13, %s2371_s27, %s3443_s30, %s3443_s30, %s3444_s25  }
 0x215 PF: > { %p3270_p11 = scmp.ge.s32.totalorder %s3436_s12, 2  ;;  %s2399_s15 = sand.u32 1, %s3424_s9  }
 0x216   : > { %p4532_p10 = scmp.ne.s32.totalorder %s4522_s16, 0  ;;  %s2400_s17 = scalar_lea.sflag [#allocation4], %s2399_s15 }
 0x218   : > { %p3264_p3 = pnand %p3270_p11, %p4532_p10 }
 0x21a   : > { %3419 = dma.done.wait (!%p3264_p3), %s2400_s17, 27136  }
 0x21b   : > { %3421 = vsyncadd (!%p3264_p3), %s2400_s17, 4294940160  ;;  %p16_p7 = scmp.ge.s32.totalorder %s3513_s21, 7   ;;  %s4533_s9 = smov %s3428_s10 }
 0x21c   : > { %s4534_s10 = smov %s3432_s11  ;;  %s4535_s11 = smov %s3542_s8 }
 0x21d   : > { %s4536_s12 = smov %s3513_s21  ;;  %18 = sbr.rel (!%p16_p7) target bundleno = 6 (0x6), region = 77 }
 0x224   :  { %2405 = vsyncpa [#allocation3], 1 }
 0x225   :  { %2407 = vsyncpa [#allocation3 + $0x1], 1 }
 0x226   :  { %2408 = vsyncpa [#allocation6], 1 }
 0x227   :  { %2409 = vsyncpa [#allocation4], 1 }
 0x228   :  { %2411 = vsyncpa [#allocation4 + $0x1], 1 }

// kernel: generator128.33
= control target key start
LH: loop header
LB: loop body
LE: loop exit
PB: predicated region body
PF: predicated region fallthrough
CT: control target
= control target key end

     0   :  { %6 = vsyncpa [#allocation3], 0  ;;  %s616_s0 = inlined_call_operand.hbm [shape: f32[768,128], index: 0, kind: input, shape index: {}]   ;;  %s617_s1 = inlined_call_operand.hbm [shape: f32[768,128], index: 1, kind: output, shape index: {}]  }
   0x1   :  { %7 = vsyncpa [#allocation4], 0  ;;  %s572_s6 = smov [#allocation2]   ;;  %s524_s10 = scalar_lea.hbm %s616_s0, 12288 }
   0x2   :  { %s13_s7 = sshll.u32 %s572_s6, 4  ;;  %p525_p0 = scmp.ne.s32.totalorder %s616_s0, %s524_s10  ;;  %s14_s7 = int_to_ptr.vmem [resolvable:$true] %s13_s7 }
   0x3   :  { %p528_p1 = scmp.lt.u32.totalorder %s524_s10, %s616_s0 }
   0x5   :  { %p530_p2 = pnand %p528_p1, %p525_p0 }
   0x7   :  { %533 = shalt.err (!%p530_p2)
}
   0x8   :  { %s534_s15 = scalar_lea.vmem %s14_s7, 12288  ;;  %p539_p4 = scmp.lt.s32.totalorder %s14_s7, %s14_s7 }
   0x9   :  { %p535_p3 = scmp.ne.s32.totalorder %s14_s7, %s534_s15  ;;  %p540_p5 = scmp.lt.s32.totalorder %s534_s15, %s534_s15 }
   0xb   :  { %p541_p6 = por %p540_p5, %p539_p4 }
   0xd   :  { %p542_p7 = pnand %p541_p6, %p535_p3 }
   0xf   :  { %545 = shalt.err (!%p542_p7)
}
  0x10   :  { %s573_s16 = smov 128   ;;  %s574_s17 = smov 8  }
  0x11   :  { %19 = dma.hbm_to_vmem [thread:$0]  %s616_s0, 12288, %s14_s7, [#allocation3], %s573_s16, %s573_s16, %s574_s17  }
  0x12   :  { %568 = dma.done.wait [#allocation3], 12288  }
  0x13   :  { %569 = vsyncadd [#allocation3], 4294955008  ;;  %v23_v0 = vld [vmem:[#allocation2] sm:$0xff]  ;;  %v24_v1 = vld [vmem:[#allocation2 + $0x8] sm:$0xff]  ;;  %s575_s0 = smov [#allocation5]  }
  0x14   :  { %v25_v2 = vld [vmem:[#allocation2 + $0x10] sm:$0xff]  ;;  %332 = vtanh.f32 %v23_v0  ;;  %v26_v3 = vld [vmem:[#allocation2 + $0x18] sm:$0xff]  ;;  %v27_v4 = vld [vmem:[#allocation2 + $0x20] sm:$0xff]  ;;  %s316_s20 = sshll.u32 %s575_s0, 4  ;;  %s317_s20 = int_to_ptr.vmem [resolvable:$true] %s316_s20 }
  0x15   :  { %334 = vtanh.f32 %v24_v1  ;;  %v28_v5 = vld [vmem:[#allocation2 + $0x28] sm:$0xff]  ;;  %v29_v6 = vld [vmem:[#allocation2 + $0x30] sm:$0xff]  ;;  %v30_v7 = vld [vmem:[#allocation2 + $0x38] sm:$0xff]  ;;  %s546_s21 = scalar_lea.vmem %s317_s20, 12288  ;;  %p551_p9 = scmp.lt.s32.totalorder %s317_s20, %s317_s20 }
  0x16   :  { %336 = vtanh.f32 %v25_v2  ;;  %v31_v8 = vld [vmem:[#allocation2 + $0x40] sm:$0xff]  ;;  %v32_v9 = vld [vmem:[#allocation2 + $0x48] sm:$0xff]  ;;  %v33_v10 = vld [vmem:[#allocation2 + $0x50] sm:$0xff]  ;;  %p547_p8 = scmp.ne.s32.totalorder %s317_s20, %s546_s21  ;;  %p552_p10 = scmp.lt.s32.totalorder %s546_s21, %s546_s21 }
  0x17   :  { %338 = vtanh.f32 %v26_v3  ;;  %v34_v11 = vld [vmem:[#allocation2 + $0x58] sm:$0xff]  ;;  %v35_v12 = vld [vmem:[#allocation2 + $0x60] sm:$0xff]  ;;  %v36_v14 = vld [vmem:[#allocation2 + $0x68] sm:$0xff] }
  0x18   :  { %340 = vtanh.f32 %v27_v4  ;;  %v37_v16 = vld [vmem:[#allocation2 + $0x70] sm:$0xff]  ;;  %v38_v18 = vld [vmem:[#allocation2 + $0x78] sm:$0xff]  ;;  %v39_v20 = vld [vmem:[#allocation2 + $0x80] sm:$0xff]  ;;  %p553_p11 = por %p552_p10, %p551_p9 }
  0x19   :  { %342 = vtanh.f32 %v28_v5  ;;  %v40_v22 = vld [vmem:[#allocation2 + $0x88] sm:$0xff]  ;;  %v41_v24 = vld [vmem:[#allocation2 + $0x90] sm:$0xff]  ;;  %v42_v26 = vld [vmem:[#allocation2 + $0x98] sm:$0xff] }
  0x1a   :  { %344 = vtanh.f32 %v29_v6  ;;  %v43_v28 = vld [vmem:[#allocation2 + $0xa0] sm:$0xff]  ;;  %v44_v30 = vld [vmem:[#allocation2 + $0xa8] sm:$0xff]  ;;  %v45_v32 = vld [vmem:[#allocation2 + $0xb0] sm:$0xff]  ;;  %p554_p12 = pnand %p553_p11, %p547_p8 }
  0x1b   :  { %346 = vtanh.f32 %v30_v7  ;;  %v46_v34 = vld [vmem:[#allocation2 + $0xb8] sm:$0xff]  ;;  %v47_v36 = vld [vmem:[#allocation2 + $0xc0] sm:$0xff]  ;;  %v48_v38 = vld [vmem:[#allocation2 + $0xc8] sm:$0xff] }
  0x1c   :  { %348 = vtanh.f32 %v31_v8  ;;  %v49_v40 = vld [vmem:[#allocation2 + $0xd0] sm:$0xff]  ;;  %v50_v42 = vld [vmem:[#allocation2 + $0xd8] sm:$0xff]  ;;  %v51_v44 = vld [vmem:[#allocation2 + $0xe0] sm:$0xff] }
  0x1d   :  { %350 = vtanh.f32 %v32_v9  ;;  %v52_v46 = vld [vmem:[#allocation2 + $0xe8] sm:$0xff]  ;;  %v53_v48 = vld [vmem:[#allocation2 + $0xf0] sm:$0xff]  ;;  %v54_v50 = vld [vmem:[#allocation2 + $0xf8] sm:$0xff] }
  0x1e   :  { %v333_v13 = vpop.eup %332  ;;  %352 = vtanh.f32 %v33_v10  ;;  %v55_v52 = vld [vmem:[#allocation2 + $0x100] sm:$0xff]  ;;  %v56_v54 = vld [vmem:[#allocation2 + $0x108] sm:$0xff]  ;;  %v57_v56 = vld [vmem:[#allocation2 + $0x110] sm:$0xff] }
  0x1f   :  { %v335_v15 = vpop.eup %334  ;;  %215 = vst [vmem:[#allocation5] sm:$0xff] %v333_v13  ;;  %354 = vtanh.f32 %v34_v11  ;;  %v58_v58 = vld [vmem:[#allocation2 + $0x118] sm:$0xff]  ;;  %v59_v60 = vld [vmem:[#allocation2 + $0x120] sm:$0xff]  ;;  %v60_v62 = vld [vmem:[#allocation2 + $0x128] sm:$0xff] }
  0x20   :  { %v337_v17 = vpop.eup %336  ;;  %216 = vst [vmem:[#allocation5 + $0x8] sm:$0xff] %v335_v15  ;;  %356 = vtanh.f32 %v35_v12  ;;  %v61_v0 = vld [vmem:[#allocation2 + $0x130] sm:$0xff]  ;;  %v62_v2 = vld [vmem:[#allocation2 + $0x138] sm:$0xff]  ;;  %v63_v4 = vld [vmem:[#allocation2 + $0x140] sm:$0xff] }
  0x21   :  { %v339_v19 = vpop.eup %338  ;;  %217 = vst [vmem:[#allocation5 + $0x10] sm:$0xff] %v337_v17  ;;  %358 = vtanh.f32 %v36_v14  ;;  %v64_v6 = vld [vmem:[#allocation2 + $0x148] sm:$0xff]  ;;  %v65_v8 = vld [vmem:[#allocation2 + $0x150] sm:$0xff]  ;;  %v66_v10 = vld [vmem:[#allocation2 + $0x158] sm:$0xff] }
  0x22   :  { %v341_v21 = vpop.eup %340  ;;  %218 = vst [vmem:[#allocation5 + $0x18] sm:$0xff] %v339_v19  ;;  %360 = vtanh.f32 %v37_v16  ;;  %v67_v12 = vld [vmem:[#allocation2 + $0x160] sm:$0xff]  ;;  %v68_v14 = vld [vmem:[#allocation2 + $0x168] sm:$0xff]  ;;  %v69_v16 = vld [vmem:[#allocation2 + $0x170] sm:$0xff] }
  0x23   :  { %v343_v23 = vpop.eup %342  ;;  %219 = vst [vmem:[#allocation5 + $0x20] sm:$0xff] %v341_v21  ;;  %362 = vtanh.f32 %v38_v18  ;;  %v70_v18 = vld [vmem:[#allocation2 + $0x178] sm:$0xff] }
  0x24   :  { %v345_v25 = vpop.eup %344  ;;  %220 = vst [vmem:[#allocation5 + $0x28] sm:$0xff] %v343_v23  ;;  %364 = vtanh.f32 %v39_v20  ;;  %v71_v20 = vld [vmem:[#allocation2 + $0x180] sm:$0xff] }
  0x25   :  { %v347_v27 = vpop.eup %346  ;;  %221 = vst [vmem:[#allocation5 + $0x30] sm:$0xff] %v345_v25  ;;  %366 = vtanh.f32 %v40_v22  ;;  %v72_v22 = vld [vmem:[#allocation2 + $0x188] sm:$0xff] }
  0x26   :  { %v349_v29 = vpop.eup %348  ;;  %222 = vst [vmem:[#allocation5 + $0x38] sm:$0xff] %v347_v27  ;;  %368 = vtanh.f32 %v41_v24  ;;  %v73_v24 = vld [vmem:[#allocation2 + $0x190] sm:$0xff] }
  0x27   :  { %v351_v31 = vpop.eup %350  ;;  %223 = vst [vmem:[#allocation5 + $0x40] sm:$0xff] %v349_v29  ;;  %370 = vtanh.f32 %v42_v26  ;;  %v74_v26 = vld [vmem:[#allocation2 + $0x198] sm:$0xff] }
  0x28   :  { %v353_v33 = vpop.eup %352  ;;  %224 = vst [vmem:[#allocation5 + $0x48] sm:$0xff] %v351_v31  ;;  %372 = vtanh.f32 %v43_v28  ;;  %v75_v28 = vld [vmem:[#allocation2 + $0x1a0] sm:$0xff] }
  0x29   :  { %v355_v35 = vpop.eup %354  ;;  %225 = vst [vmem:[#allocation5 + $0x50] sm:$0xff] %v353_v33  ;;  %374 = vtanh.f32 %v44_v30  ;;  %v76_v30 = vld [vmem:[#allocation2 + $0x1a8] sm:$0xff] }
  0x2a   :  { %v357_v37 = vpop.eup %356  ;;  %226 = vst [vmem:[#allocation5 + $0x58] sm:$0xff] %v355_v35  ;;  %376 = vtanh.f32 %v45_v32  ;;  %v77_v32 = vld [vmem:[#allocation2 + $0x1b0] sm:$0xff] }
  0x2b   :  { %v359_v39 = vpop.eup %358  ;;  %227 = vst [vmem:[#allocation5 + $0x60] sm:$0xff] %v357_v37  ;;  %378 = vtanh.f32 %v46_v34  ;;  %v78_v34 = vld [vmem:[#allocation2 + $0x1b8] sm:$0xff] }
  0x2c   :  { %v361_v41 = vpop.eup %360  ;;  %228 = vst [vmem:[#allocation5 + $0x68] sm:$0xff] %v359_v39  ;;  %380 = vtanh.f32 %v47_v36  ;;  %v79_v36 = vld [vmem:[#allocation2 + $0x1c0] sm:$0xff] }
  0x2d   :  { %v363_v43 = vpop.eup %362  ;;  %229 = vst [vmem:[#allocation5 + $0x70] sm:$0xff] %v361_v41  ;;  %382 = vtanh.f32 %v48_v38  ;;  %v80_v38 = vld [vmem:[#allocation2 + $0x1c8] sm:$0xff] }
  0x2e   :  { %v365_v45 = vpop.eup %364  ;;  %230 = vst [vmem:[#allocation5 + $0x78] sm:$0xff] %v363_v43  ;;  %384 = vtanh.f32 %v49_v40  ;;  %v81_v40 = vld [vmem:[#allocation2 + $0x1d0] sm:$0xff] }
  0x2f   :  { %v367_v47 = vpop.eup %366  ;;  %231 = vst [vmem:[#allocation5 + $0x80] sm:$0xff] %v365_v45  ;;  %386 = vtanh.f32 %v50_v42  ;;  %v82_v42 = vld [vmem:[#allocation2 + $0x1d8] sm:$0xff] }
  0x30   :  { %v369_v49 = vpop.eup %368  ;;  %232 = vst [vmem:[#allocation5 + $0x88] sm:$0xff] %v367_v47  ;;  %388 = vtanh.f32 %v51_v44  ;;  %v83_v44 = vld [vmem:[#allocation2 + $0x1e0] sm:$0xff] }
  0x31   :  { %v371_v51 = vpop.eup %370  ;;  %233 = vst [vmem:[#allocation5 + $0x90] sm:$0xff] %v369_v49  ;;  %390 = vtanh.f32 %v52_v46  ;;  %v84_v46 = vld [vmem:[#allocation2 + $0x1e8] sm:$0xff] }
  0x32   :  { %v373_v53 = vpop.eup %372  ;;  %234 = vst [vmem:[#allocation5 + $0x98] sm:$0xff] %v371_v51  ;;  %392 = vtanh.f32 %v53_v48  ;;  %v85_v48 = vld [vmem:[#allocation2 + $0x1f0] sm:$0xff] }
  0x33   :  { %v375_v55 = vpop.eup %374  ;;  %235 = vst [vmem:[#allocation5 + $0xa0] sm:$0xff] %v373_v53  ;;  %394 = vtanh.f32 %v54_v50  ;;  %v86_v50 = vld [vmem:[#allocation2 + $0x1f8] sm:$0xff] }
  0x34   :  { %v377_v57 = vpop.eup %376  ;;  %236 = vst [vmem:[#allocation5 + $0xa8] sm:$0xff] %v375_v55  ;;  %396 = vtanh.f32 %v55_v52  ;;  %v87_v52 = vld [vmem:[#allocation2 + $0x200] sm:$0xff] }
  0x35   :  { %v379_v59 = vpop.eup %378  ;;  %237 = vst [vmem:[#allocation5 + $0xb0] sm:$0xff] %v377_v57  ;;  %398 = vtanh.f32 %v56_v54  ;;  %v88_v54 = vld [vmem:[#allocation2 + $0x208] sm:$0xff] }
  0x36   :  { %v381_v61 = vpop.eup %380  ;;  %238 = vst [vmem:[#allocation5 + $0xb8] sm:$0xff] %v379_v59  ;;  %400 = vtanh.f32 %v57_v56  ;;  %v89_v56 = vld [vmem:[#allocation2 + $0x210] sm:$0xff] }
  0x37   :  { %v383_v63 = vpop.eup %382  ;;  %239 = vst [vmem:[#allocation5 + $0xc0] sm:$0xff] %v381_v61  ;;  %402 = vtanh.f32 %v58_v58  ;;  %v90_v58 = vld [vmem:[#allocation2 + $0x218] sm:$0xff] }
  0x38   :  { %v385_v1 = vpop.eup %384  ;;  %240 = vst [vmem:[#allocation5 + $0xc8] sm:$0xff] %v383_v63  ;;  %404 = vtanh.f32 %v59_v60  ;;  %v91_v60 = vld [vmem:[#allocation2 + $0x220] sm:$0xff] }
  0x39   :  { %v387_v3 = vpop.eup %386  ;;  %241 = vst [vmem:[#allocation5 + $0xd0] sm:$0xff] %v385_v1  ;;  %406 = vtanh.f32 %v60_v62  ;;  %v92_v62 = vld [vmem:[#allocation2 + $0x228] sm:$0xff] }
  0x3a   :  { %v389_v5 = vpop.eup %388  ;;  %242 = vst [vmem:[#allocation5 + $0xd8] sm:$0xff] %v387_v3  ;;  %408 = vtanh.f32 %v61_v0  ;;  %v93_v0 = vld [vmem:[#allocation2 + $0x230] sm:$0xff] }
  0x3b   :  { %v391_v7 = vpop.eup %390  ;;  %243 = vst [vmem:[#allocation5 + $0xe0] sm:$0xff] %v389_v5  ;;  %410 = vtanh.f32 %v62_v2  ;;  %v94_v2 = vld [vmem:[#allocation2 + $0x238] sm:$0xff] }
  0x3c   :  { %v393_v9 = vpop.eup %392  ;;  %244 = vst [vmem:[#allocation5 + $0xe8] sm:$0xff] %v391_v7  ;;  %412 = vtanh.f32 %v63_v4  ;;  %v95_v4 = vld [vmem:[#allocation2 + $0x240] sm:$0xff] }
  0x3d   :  { %v395_v11 = vpop.eup %394  ;;  %245 = vst [vmem:[#allocation5 + $0xf0] sm:$0xff] %v393_v9  ;;  %414 = vtanh.f32 %v64_v6  ;;  %v96_v6 = vld [vmem:[#allocation2 + $0x248] sm:$0xff] }
  0x3e   :  { %v397_v13 = vpop.eup %396  ;;  %246 = vst [vmem:[#allocation5 + $0xf8] sm:$0xff] %v395_v11  ;;  %416 = vtanh.f32 %v65_v8  ;;  %v97_v8 = vld [vmem:[#allocation2 + $0x250] sm:$0xff] }
  0x3f   :  { %v399_v15 = vpop.eup %398  ;;  %247 = vst [vmem:[#allocation5 + $0x100] sm:$0xff] %v397_v13  ;;  %418 = vtanh.f32 %v66_v10  ;;  %v98_v10 = vld [vmem:[#allocation2 + $0x258] sm:$0xff] }
  0x40   :  { %v401_v17 = vpop.eup %400  ;;  %248 = vst [vmem:[#allocation5 + $0x108] sm:$0xff] %v399_v15  ;;  %420 = vtanh.f32 %v67_v12  ;;  %v99_v12 = vld [vmem:[#allocation2 + $0x260] sm:$0xff] }
  0x41   :  { %v403_v19 = vpop.eup %402  ;;  %249 = vst [vmem:[#allocation5 + $0x110] sm:$0xff] %v401_v17  ;;  %422 = vtanh.f32 %v68_v14  ;;  %v100_v14 = vld [vmem:[#allocation2 + $0x268] sm:$0xff] }
  0x42   :  { %v405_v21 = vpop.eup %404  ;;  %250 = vst [vmem:[#allocation5 + $0x118] sm:$0xff] %v403_v19  ;;  %424 = vtanh.f32 %v69_v16  ;;  %v101_v16 = vld [vmem:[#allocation2 + $0x270] sm:$0xff] }
  0x43   :  { %v407_v23 = vpop.eup %406  ;;  %251 = vst [vmem:[#allocation5 + $0x120] sm:$0xff] %v405_v21  ;;  %426 = vtanh.f32 %v70_v18  ;;  %v102_v18 = vld [vmem:[#allocation2 + $0x278] sm:$0xff] }
  0x44   :  { %v409_v25 = vpop.eup %408  ;;  %252 = vst [vmem:[#allocation5 + $0x128] sm:$0xff] %v407_v23  ;;  %428 = vtanh.f32 %v71_v20  ;;  %v103_v20 = vld [vmem:[#allocation2 + $0x280] sm:$0xff] }
  0x45   :  { %v411_v27 = vpop.eup %410  ;;  %253 = vst [vmem:[#allocation5 + $0x130] sm:$0xff] %v409_v25  ;;  %430 = vtanh.f32 %v72_v22  ;;  %v104_v22 = vld [vmem:[#allocation2 + $0x288] sm:$0xff] }
  0x46   :  { %v413_v29 = vpop.eup %412  ;;  %254 = vst [vmem:[#allocation5 + $0x138] sm:$0xff] %v411_v27  ;;  %432 = vtanh.f32 %v73_v24  ;;  %v105_v24 = vld [vmem:[#allocation2 + $0x290] sm:$0xff] }
  0x47   :  { %v415_v31 = vpop.eup %414  ;;  %255 = vst [vmem:[#allocation5 + $0x140] sm:$0xff] %v413_v29  ;;  %434 = vtanh.f32 %v74_v26  ;;  %v106_v26 = vld [vmem:[#allocation2 + $0x298] sm:$0xff] }
  0x48   :  { %v417_v33 = vpop.eup %416  ;;  %256 = vst [vmem:[#allocation5 + $0x148] sm:$0xff] %v415_v31  ;;  %436 = vtanh.f32 %v75_v28  ;;  %v107_v28 = vld [vmem:[#allocation2 + $0x2a0] sm:$0xff] }
  0x49   :  { %v419_v35 = vpop.eup %418  ;;  %257 = vst [vmem:[#allocation5 + $0x150] sm:$0xff] %v417_v33  ;;  %438 = vtanh.f32 %v76_v30  ;;  %v108_v30 = vld [vmem:[#allocation2 + $0x2a8] sm:$0xff] }
  0x4a   :  { %v421_v37 = vpop.eup %420  ;;  %258 = vst [vmem:[#allocation5 + $0x158] sm:$0xff] %v419_v35  ;;  %440 = vtanh.f32 %v77_v32  ;;  %v109_v32 = vld [vmem:[#allocation2 + $0x2b0] sm:$0xff] }
  0x4b   :  { %v423_v39 = vpop.eup %422  ;;  %259 = vst [vmem:[#allocation5 + $0x160] sm:$0xff] %v421_v37  ;;  %442 = vtanh.f32 %v78_v34  ;;  %v110_v34 = vld [vmem:[#allocation2 + $0x2b8] sm:$0xff] }
  0x4c   :  { %v425_v41 = vpop.eup %424  ;;  %260 = vst [vmem:[#allocation5 + $0x168] sm:$0xff] %v423_v39  ;;  %444 = vtanh.f32 %v79_v36  ;;  %v111_v36 = vld [vmem:[#allocation2 + $0x2c0] sm:$0xff] }
  0x4d   :  { %v427_v43 = vpop.eup %426  ;;  %261 = vst [vmem:[#allocation5 + $0x170] sm:$0xff] %v425_v41  ;;  %446 = vtanh.f32 %v80_v38  ;;  %v112_v38 = vld [vmem:[#allocation2 + $0x2c8] sm:$0xff] }
  0x4e   :  { %v429_v45 = vpop.eup %428  ;;  %262 = vst [vmem:[#allocation5 + $0x178] sm:$0xff] %v427_v43  ;;  %448 = vtanh.f32 %v81_v40  ;;  %v113_v40 = vld [vmem:[#allocation2 + $0x2d0] sm:$0xff] }
  0x4f   :  { %v431_v47 = vpop.eup %430  ;;  %263 = vst [vmem:[#allocation5 + $0x180] sm:$0xff] %v429_v45  ;;  %450 = vtanh.f32 %v82_v42  ;;  %v114_v42 = vld [vmem:[#allocation2 + $0x2d8] sm:$0xff] }
  0x50   :  { %v433_v49 = vpop.eup %432  ;;  %264 = vst [vmem:[#allocation5 + $0x188] sm:$0xff] %v431_v47  ;;  %452 = vtanh.f32 %v83_v44  ;;  %v115_v44 = vld [vmem:[#allocation2 + $0x2e0] sm:$0xff] }
  0x51   :  { %v435_v51 = vpop.eup %434  ;;  %265 = vst [vmem:[#allocation5 + $0x190] sm:$0xff] %v433_v49  ;;  %454 = vtanh.f32 %v84_v46  ;;  %v116_v46 = vld [vmem:[#allocation2 + $0x2e8] sm:$0xff] }
  0x52   :  { %v437_v53 = vpop.eup %436  ;;  %266 = vst [vmem:[#allocation5 + $0x198] sm:$0xff] %v435_v51  ;;  %456 = vtanh.f32 %v85_v48  ;;  %v117_v48 = vld [vmem:[#allocation2 + $0x2f0] sm:$0xff] }
  0x53   :  { %v439_v55 = vpop.eup %438  ;;  %267 = vst [vmem:[#allocation5 + $0x1a0] sm:$0xff] %v437_v53  ;;  %458 = vtanh.f32 %v86_v50  ;;  %v118_v50 = vld [vmem:[#allocation2 + $0x2f8] sm:$0xff] }
  0x54   :  { %v441_v57 = vpop.eup %440  ;;  %268 = vst [vmem:[#allocation5 + $0x1a8] sm:$0xff] %v439_v55  ;;  %460 = vtanh.f32 %v87_v52 }
  0x55   :  { %v443_v59 = vpop.eup %442  ;;  %269 = vst [vmem:[#allocation5 + $0x1b0] sm:$0xff] %v441_v57  ;;  %462 = vtanh.f32 %v88_v54 }
  0x56   :  { %v445_v61 = vpop.eup %444  ;;  %270 = vst [vmem:[#allocation5 + $0x1b8] sm:$0xff] %v443_v59  ;;  %464 = vtanh.f32 %v89_v56 }
  0x57   :  { %v447_v63 = vpop.eup %446  ;;  %271 = vst [vmem:[#allocation5 + $0x1c0] sm:$0xff] %v445_v61  ;;  %466 = vtanh.f32 %v90_v58 }
  0x58   :  { %v449_v1 = vpop.eup %448  ;;  %272 = vst [vmem:[#allocation5 + $0x1c8] sm:$0xff] %v447_v63  ;;  %468 = vtanh.f32 %v91_v60 }
  0x59   :  { %v451_v3 = vpop.eup %450  ;;  %273 = vst [vmem:[#allocation5 + $0x1d0] sm:$0xff] %v449_v1  ;;  %470 = vtanh.f32 %v92_v62 }
  0x5a   :  { %v453_v5 = vpop.eup %452  ;;  %274 = vst [vmem:[#allocation5 + $0x1d8] sm:$0xff] %v451_v3  ;;  %472 = vtanh.f32 %v93_v0 }
  0x5b   :  { %v455_v7 = vpop.eup %454  ;;  %275 = vst [vmem:[#allocation5 + $0x1e0] sm:$0xff] %v453_v5  ;;  %474 = vtanh.f32 %v94_v2 }
  0x5c   :  { %v457_v9 = vpop.eup %456  ;;  %276 = vst [vmem:[#allocation5 + $0x1e8] sm:$0xff] %v455_v7  ;;  %476 = vtanh.f32 %v95_v4 }
  0x5d   :  { %v459_v11 = vpop.eup %458  ;;  %277 = vst [vmem:[#allocation5 + $0x1f0] sm:$0xff] %v457_v9  ;;  %478 = vtanh.f32 %v96_v6 }
  0x5e   :  { %v461_v13 = vpop.eup %460  ;;  %278 = vst [vmem:[#allocation5 + $0x1f8] sm:$0xff] %v459_v11  ;;  %480 = vtanh.f32 %v97_v8 }
  0x5f   :  { %v463_v15 = vpop.eup %462  ;;  %279 = vst [vmem:[#allocation5 + $0x200] sm:$0xff] %v461_v13  ;;  %482 = vtanh.f32 %v98_v10 }
  0x60   :  { %v465_v17 = vpop.eup %464  ;;  %280 = vst [vmem:[#allocation5 + $0x208] sm:$0xff] %v463_v15  ;;  %484 = vtanh.f32 %v99_v12 }
  0x61   :  { %v467_v19 = vpop.eup %466  ;;  %281 = vst [vmem:[#allocation5 + $0x210] sm:$0xff] %v465_v17  ;;  %486 = vtanh.f32 %v100_v14 }
  0x62   :  { %v469_v21 = vpop.eup %468  ;;  %282 = vst [vmem:[#allocation5 + $0x218] sm:$0xff] %v467_v19  ;;  %488 = vtanh.f32 %v101_v16 }
  0x63   :  { %v471_v23 = vpop.eup %470  ;;  %283 = vst [vmem:[#allocation5 + $0x220] sm:$0xff] %v469_v21  ;;  %490 = vtanh.f32 %v102_v18 }
  0x64   :  { %v473_v25 = vpop.eup %472  ;;  %284 = vst [vmem:[#allocation5 + $0x228] sm:$0xff] %v471_v23  ;;  %492 = vtanh.f32 %v103_v20 }
  0x65   :  { %v475_v27 = vpop.eup %474  ;;  %285 = vst [vmem:[#allocation5 + $0x230] sm:$0xff] %v473_v25  ;;  %494 = vtanh.f32 %v104_v22 }
  0x66   :  { %v477_v29 = vpop.eup %476  ;;  %286 = vst [vmem:[#allocation5 + $0x238] sm:$0xff] %v475_v27  ;;  %496 = vtanh.f32 %v105_v24 }
  0x67   :  { %v479_v31 = vpop.eup %478  ;;  %287 = vst [vmem:[#allocation5 + $0x240] sm:$0xff] %v477_v29  ;;  %498 = vtanh.f32 %v106_v26 }
  0x68   :  { %v481_v33 = vpop.eup %480  ;;  %288 = vst [vmem:[#allocation5 + $0x248] sm:$0xff] %v479_v31  ;;  %500 = vtanh.f32 %v107_v28 }
  0x69   :  { %v483_v35 = vpop.eup %482  ;;  %289 = vst [vmem:[#allocation5 + $0x250] sm:$0xff] %v481_v33  ;;  %502 = vtanh.f32 %v108_v30 }
  0x6a   :  { %v485_v37 = vpop.eup %484  ;;  %290 = vst [vmem:[#allocation5 + $0x258] sm:$0xff] %v483_v35  ;;  %504 = vtanh.f32 %v109_v32 }
  0x6b   :  { %v487_v39 = vpop.eup %486  ;;  %291 = vst [vmem:[#allocation5 + $0x260] sm:$0xff] %v485_v37  ;;  %506 = vtanh.f32 %v110_v34 }
  0x6c   :  { %v489_v41 = vpop.eup %488  ;;  %292 = vst [vmem:[#allocation5 + $0x268] sm:$0xff] %v487_v39  ;;  %508 = vtanh.f32 %v111_v36 }
  0x6d   :  { %v491_v43 = vpop.eup %490  ;;  %293 = vst [vmem:[#allocation5 + $0x270] sm:$0xff] %v489_v41  ;;  %510 = vtanh.f32 %v112_v38 }
  0x6e   :  { %v493_v45 = vpop.eup %492  ;;  %294 = vst [vmem:[#allocation5 + $0x278] sm:$0xff] %v491_v43  ;;  %512 = vtanh.f32 %v113_v40 }
  0x6f   :  { %v495_v47 = vpop.eup %494  ;;  %295 = vst [vmem:[#allocation5 + $0x280] sm:$0xff] %v493_v45  ;;  %514 = vtanh.f32 %v114_v42 }
  0x70   :  { %v497_v49 = vpop.eup %496  ;;  %296 = vst [vmem:[#allocation5 + $0x288] sm:$0xff] %v495_v47  ;;  %516 = vtanh.f32 %v115_v44 }
  0x71   :  { %v499_v51 = vpop.eup %498  ;;  %297 = vst [vmem:[#allocation5 + $0x290] sm:$0xff] %v497_v49  ;;  %518 = vtanh.f32 %v116_v46 }
  0x72   :  { %v501_v52 = vpop.eup %500  ;;  %298 = vst [vmem:[#allocation5 + $0x298] sm:$0xff] %v499_v51  ;;  %520 = vtanh.f32 %v117_v48 }
  0x73   :  { %v503_v53 = vpop.eup %502  ;;  %299 = vst [vmem:[#allocation5 + $0x2a0] sm:$0xff] %v501_v52  ;;  %522 = vtanh.f32 %v118_v50 }
  0x74   :  { %v505_v54 = vpop.eup %504  ;;  %300 = vst [vmem:[#allocation5 + $0x2a8] sm:$0xff] %v503_v53 }
  0x75   :  { %v507_v55 = vpop.eup %506  ;;  %301 = vst [vmem:[#allocation5 + $0x2b0] sm:$0xff] %v505_v54 }
  0x76   :  { %v509_v56 = vpop.eup %508  ;;  %302 = vst [vmem:[#allocation5 + $0x2b8] sm:$0xff] %v507_v55 }
  0x77   :  { %v511_v57 = vpop.eup %510  ;;  %303 = vst [vmem:[#allocation5 + $0x2c0] sm:$0xff] %v509_v56 }
  0x78   :  { %v513_v58 = vpop.eup %512  ;;  %304 = vst [vmem:[#allocation5 + $0x2c8] sm:$0xff] %v511_v57 }
  0x79   :  { %v515_v59 = vpop.eup %514  ;;  %305 = vst [vmem:[#allocation5 + $0x2d0] sm:$0xff] %v513_v58 }
  0x7a   :  { %v517_v60 = vpop.eup %516  ;;  %306 = vst [vmem:[#allocation5 + $0x2d8] sm:$0xff] %v515_v59 }
  0x7b   :  { %v519_v61 = vpop.eup %518  ;;  %307 = vst [vmem:[#allocation5 + $0x2e0] sm:$0xff] %v517_v60 }
  0x7c   :  { %v521_v62 = vpop.eup %520  ;;  %308 = vst [vmem:[#allocation5 + $0x2e8] sm:$0xff] %v519_v61 }
  0x7d   :  { %v523_v63 = vpop.eup %522  ;;  %309 = vst [vmem:[#allocation5 + $0x2f0] sm:$0xff] %v521_v62 }
  0x7e   :  { %310 = vst [vmem:[#allocation5 + $0x2f8] sm:$0xff] %v523_v63 }
  0x7f   :  { %557 = shalt.err (!%p554_p12)
}
  0x80   :  { %s558_s24 = scalar_lea.hbm %s617_s1, 12288 }
  0x81   :  { %p559_p13 = scmp.ne.s32.totalorder %s617_s1, %s558_s24  ;;  %p562_p0 = scmp.lt.u32.totalorder %s558_s24, %s617_s1 }
  0x83   :  { %p564_p1 = pnand %p562_p0, %p559_p13 }
  0x85   :  { %567 = shalt.err (!%p564_p1)
}
  0x86   :  { %322 = dma.vmem_to_hbm [thread:$0]  %s317_s20, 12288, %s617_s1, [#allocation4], %s573_s16, %s573_s16, %s574_s17  }
  0x87   :  { %570 = dma.done.wait [#allocation4], 12288  }
  0x88   :  { %571 = vsyncadd [#allocation4], 4294955008 }
  0x89   :  { %326 = vsyncpa [#allocation3], 1 }
  0x8a   :  { %327 = vsyncpa [#allocation4], 1 }

</bundles_post_ra>
